<compile_context>
chip_gen: v7x
topology: tpu7x:2x2x1
jax: 0.10.0
libtpu: 0.0.40
codegen_flags: <defaults>
</compile_context>

<pallas_src>
import numpy as np
import jax
import jax.numpy as jnp
from jax.experimental import pallas as pl
from jax.experimental.pallas import tpu as pltpu

# ------------------------- configuration (small) ---------------------------
DIM = 32            # dim
H = W = 8           # input_resolution
DEPTH = 2           # depth (block 0: shift=0, block 1: shift=WINDOW//2)
NUM_HEADS = 4
WINDOW = 4          # window_size
MLP_RATIO = 4.0
BATCH = 2
EPS = 1e-5          # nn.LayerNorm default eps

N_TOK = WINDOW * WINDOW                  # tokens per window
NW = (H // WINDOW) * (W // WINDOW)       # windows per image
L = H * W
HIDDEN = int(DIM * MLP_RATIO)
HEAD_DIM = DIM // NUM_HEADS
SCALE = HEAD_DIM ** -0.5
CD = DIM // 2                            # channels after PatchExpand
NCHUNK = 4                               # 2*DIM / CD
NEG = -1e9                               # "not in the same window" bias
SL = NUM_HEADS * L                       # stacked attention width (4*64 = 256)

PARAM_ORDER = ["n1g", "n1b", "wqkv", "bqkv", "wp", "bp",
               "n2g", "n2b", "w1", "b1", "w2", "b2",
               "bias", "mstack", "selh_sum", "selh_bc",
               "wexp", "upg", "upb", "selm", "selb"]


# ------------------------------ fused kernel --------------------------------
def _fused_kernel(x_ref,
                  n1g, n1b, wqkv, bqkv, wp, bp,
                  n2g, n2b, w1, b1, w2, b2,
                  bias, mstack, selh_sum, selh_bc,
                  wexp, upg, upb, selm, selb,
                  o_ref):
    """BasicLayer_up for BB batch elements: 2 Swin blocks + PatchExpand."""
    bb = x_ref.shape[0]
    rows = bb * L
    half = L // 2

    def layernorm(z, g, b):
        # two-pass (centered) stats, matches nn.LayerNorm (biased variance)
        mu = jnp.mean(z, axis=-1, keepdims=True)
        d = z - mu
        var = jnp.mean(d * d, axis=-1, keepdims=True)
        return d * jax.lax.rsqrt(var + EPS) * g + b

    # leading-dim flatten: (BB, L, DIM) -> (BB*L, DIM); no lane movement
    x = x_ref[...].reshape(rows, DIM)
    msk = mstack[...]                     # (SL, DIM) head-channel mask, stacked

    for blk in range(DEPTH):
        # ---------------- W-MSA / SW-MSA (windowing folded into bias) -------
        xn = layernorm(x, n1g[blk], n1b[blk])
        # fused QKV; attention scale is folded into the Q weight/bias at init
        qkv = jnp.dot(xn, wqkv[blk], preferred_element_type=jnp.float32) + bqkv[blk]
        q = qkv[:, :DIM]
        k = qkv[:, DIM:2 * DIM]
        v = qkv[:, 2 * DIM:]

        bias_blk = bias[blk]              # (L, SL) stacked additive bias
        ctx_parts = []
        for b in range(bb):               # per-batch attention (K/Q must match)
            qb = q[b * L:(b + 1) * L]                                    # (L, DIM)
            kb = k[b * L:(b + 1) * L]
            vb = v[b * L:(b + 1) * L]
            # head-masked K / V stacked along the key (sublane) axis: (SL, DIM)
            kst = jnp.concatenate([kb] * NUM_HEADS, axis=0) * msk
            vst = jnp.concatenate([vb] * NUM_HEADS, axis=0) * msk
            # ONE lane-dense score matmul: (L, SL) = (64, 256)
            s = jax.lax.dot_general(qb, kst, (((1,), (1,)), ((), ())),
                                    preferred_element_type=jnp.float32)
            s = s + bias_blk
            # one shared per-row shift; softmax is shift-invariant per segment
            s = s - jnp.max(s, axis=-1, keepdims=True)
            p = jnp.exp(s)
            # per-head-segment denominators via selector matmuls
            seg_sum = jnp.dot(p, selh_sum[...], preferred_element_type=jnp.float32)  # (L, 4)
            inv = 1.0 / (seg_sum + 1e-30)
            p = p * jnp.dot(inv, selh_bc[...], preferred_element_type=jnp.float32)   # (L, SL)
            # ONE context matmul; each head's context lands in its own channels
            ctx_parts.append(jnp.dot(p, vst, preferred_element_type=jnp.float32))    # (L, DIM)
        ctx = jnp.concatenate(ctx_parts, axis=0) if bb > 1 else ctx_parts[0]

        x = x + jnp.dot(ctx, wp[blk], preferred_element_type=jnp.float32) + bp[blk]

        # ----------------------------- MLP ----------------------------------
        xn2 = layernorm(x, n2g[blk], n2b[blk])
        hdn = jnp.dot(xn2, w1[blk], preferred_element_type=jnp.float32) + b1[blk]
        # TODO(synk): PyTorch nn.GELU() default is the exact erf form; using the
        # tanh approximation here for robust Mosaic lowering (diff ~1e-3).
        hdn = jax.nn.gelu(hdn, approximate=True)
        x = x + jnp.dot(hdn, w2[blk], preferred_element_type=jnp.float32) + b2[blk]

    # --- PatchExpand: linear (DIM -> 2*DIM, no bias) + per-CD-chunk LayerNorm.
    # The norm acts on contiguous CD-sized channel chunks, invariant under the
    # later spatial rearrange.  Chunk stats via selector matmuls (two-pass).
    ye = jnp.dot(x, wexp[...], preferred_element_type=jnp.float32)          # (rows, 2*DIM)
    mean_c = jnp.dot(ye, selm[...], preferred_element_type=jnp.float32)     # (rows, NCHUNK)
    mean_f = jnp.dot(mean_c, selb[...], preferred_element_type=jnp.float32) # (rows, 2*DIM)
    d = ye - mean_f
    var_c = jnp.dot(d * d, selm[...], preferred_element_type=jnp.float32)
    var_f = jnp.dot(var_c, selb[...], preferred_element_type=jnp.float32)
    yn = d * jax.lax.rsqrt(var_f + EPS) * upg[...] + upb[...]               # (rows, 2*DIM)

    # lane-dense (128-wide) unmasked store: pair token r with token r + L/2
    for b in range(bb):
        ynb = yn[b * L:(b + 1) * L]
        o_ref[b] = jnp.concatenate([ynb[:half], ynb[half:]], axis=1).astype(o_ref.dtype)


# ------------------------------ kernel wrapper -------------------------------
def basic_layer_up_call(x, params, bb=None):
    B = x.shape[0]
    if bb is None:
        # Fold batch rows into each grid step: for tiny B put the whole batch in
        # one step (amortizes ~0.35us/step, matmul M reaches 128+); for larger B
        # keep a grid that is a small multiple of the TensorCore count (v7x: 2).
        bb = B if B <= 4 else (B // 2 if B % 2 == 0 else B)
    assert B % bb == 0, (B, bb)
    grid = (B // bb,)
    weights = [params[k] for k in PARAM_ORDER]

    in_specs = [pl.BlockSpec((bb, L, DIM), lambda g: (g, 0, 0))]
    for w in weights:
        nd = w.ndim
        in_specs.append(pl.BlockSpec(w.shape, lambda g, nd=nd: (0,) * nd))
    out_spec = pl.BlockSpec((bb, L // 2, 4 * DIM), lambda g: (g, 0, 0))

    # advisory cost estimate so XLA schedules the surrounding rearrange sensibly
    flops_pe = DEPTH * (2 * L * DIM * 3 * DIM          # fused QKV
                        + 2 * L * SL * DIM             # scores
                        + 2 * L * SL * DIM             # context
                        + 2 * 2 * L * SL * NUM_HEADS   # softmax selector matmuls
                        + 2 * L * DIM * DIM            # proj
                        + 2 * 2 * L * DIM * HIDDEN)    # MLP
    flops_pe += 2 * L * DIM * 2 * DIM + 4 * 2 * L * 2 * DIM * NCHUNK  # PatchExpand
    trans_pe = DEPTH * (L * SL + L * HIDDEN)
    bytes_w = sum(int(np.prod(w.shape)) * 4 for w in weights)
    cost = pl.CostEstimate(flops=int(B * flops_pe),
                           transcendentals=int(B * trans_pe),
                           bytes_accessed=int(bytes_w + B * (L * DIM + L * 2 * DIM) * 4))

    y = pl.pallas_call(
        _fused_kernel,
        out_shape=jax.ShapeDtypeStruct((B, L // 2, 4 * DIM), x.dtype),
        grid=grid,
        in_specs=in_specs,
        out_specs=out_spec,
        compiler_params=pltpu.CompilerParams(dimension_semantics=("parallel",)),
        cost_estimate=cost,
    )(x, *weights)

    # undo the lane pairing (row r holds [token r | token r + L/2]) ...
    y = jnp.concatenate([y[..., :2 * DIM], y[..., 2 * DIM:]], axis=1)   # (B, L, 2*DIM)
    # ... then rearrange 'b h w (p1 p2 c) -> b (h p1) (w p2) c' and flatten spatial
    y = y.reshape(B, H, W, 2, 2, CD).transpose(0, 1, 3, 2, 4, 5)
    return y.reshape(B, (2 * H) * (2 * W), CD)


# --------------------------- host-side constants ------------------------------
def build_relative_position_index(ws):
    coords = np.stack(np.meshgrid(np.arange(ws), np.arange(ws), indexing="ij"))
    cf = coords.reshape(2, -1)
    rel = (cf[:, :, None] - cf[:, None, :]).transpose(1, 2, 0).astype(np.int64)
    rel[:, :, 0] += ws - 1
    rel[:, :, 1] += ws - 1
    rel[:, :, 0] *= 2 * ws - 1
    return rel.sum(-1).reshape(-1)                        # (N_TOK*N_TOK,)


def build_attn_mask_np(shift):
    """Standard Swin shifted-window mask: (NW, N_TOK, N_TOK) with 0 / -100."""
    if shift == 0:
        return np.zeros((NW, N_TOK, N_TOK), np.float32)
    img_mask = np.zeros((H, W), np.float32)
    slices = (slice(0, -WINDOW), slice(-WINDOW, -shift), slice(-shift, None))
    cnt = 0
    for hs in slices:
        for ws_ in slices:
            img_mask[hs, ws_] = cnt
            cnt += 1
    mw = img_mask.reshape(H // WINDOW, WINDOW, W // WINDOW, WINDOW)
    mw = mw.transpose(0, 2, 1, 3).reshape(NW, N_TOK)
    am = mw[:, None, :] - mw[:, :, None]
    return np.where(am != 0, -100.0, 0.0).astype(np.float32)


def build_full_bias(rel_bias, shift):
    """(NUM_HEADS, L, L) additive bias that reproduces roll + window partition:
    rel-pos bias + shift mask for same-(shifted)-window pairs, NEG elsewhere."""
    ii, jj = np.meshgrid(np.arange(H), np.arange(W), indexing="ij")
    si = (ii - shift) % H                   # position on the rolled canvas
    sj = (jj - shift) % W
    wid = ((si // WINDOW) * (W // WINDOW) + (sj // WINDOW)).reshape(-1)
    tid = ((si % WINDOW) * WINDOW + (sj % WINDOW)).reshape(-1)
    attn_mask = build_attn_mask_np(shift)
    same = wid[:, None] == wid[None, :]
    tp, tq = tid[:, None], tid[None, :]
    mask_pq = attn_mask[wid[:, None], tp, tq]
    out = np.empty((NUM_HEADS, L, L), np.float32)
    for h in range(NUM_HEADS):
        out[h] = np.where(same, rel_bias[h][tp, tq] + mask_pq, NEG)
    return out


def init_params(key):
    keys = jax.random.split(key, 1 + 5 * DEPTH)
    rpi = build_relative_position_index(WINDOW)
    shifts = [0 if i % 2 == 0 else WINDOW // 2 for i in range(DEPTH)]

    def randn(k, shape):
        return np.asarray(jax.random.normal(k, shape, dtype=jnp.float32)) * 0.02

    wqkv = np.empty((DEPTH, DIM, 3 * DIM), np.float32)
    bqkv = np.zeros((DEPTH, 1, 3 * DIM), np.float32)
    wp = np.empty((DEPTH, DIM, DIM), np.float32)
    w1 = np.empty((DEPTH, DIM, HIDDEN), np.float32)
    w2 = np.empty((DEPTH, HIDDEN, DIM), np.float32)
    bias_st = np.empty((DEPTH, L, SL), np.float32)

    kidx = 0
    for i in range(DEPTH):
        qw = randn(keys[kidx], (DIM, 3 * DIM)); kidx += 1
        qw[:, :DIM] *= SCALE                 # fold attention scale into Q weight
        bqkv[i, :, :DIM] *= SCALE            # (zero here; kept for generality)
        wqkv[i] = qw
        wp[i] = randn(keys[kidx], (DIM, DIM)); kidx += 1
        w1[i] = randn(keys[kidx], (DIM, HIDDEN)); kidx += 1
        w2[i] = randn(keys[kidx], (HIDDEN, DIM)); kidx += 1
        table = randn(keys[kidx], ((2 * WINDOW - 1) ** 2, NUM_HEADS)); kidx += 1
        rel_bias = table[rpi].reshape(N_TOK, N_TOK, NUM_HEADS).transpose(2, 0, 1)
        full = build_full_bias(rel_bias, shifts[i])      # (NUM_HEADS, L, L)
        bias_st[i] = np.concatenate([full[h] for h in range(NUM_HEADS)], axis=1)
    wexp = randn(keys[kidx], (DIM, 2 * DIM))

    # stacked head-channel mask: row h*L+j keeps only head h's channels
    mstack = np.zeros((SL, DIM), np.float32)
    for h in range(NUM_HEADS):
        mstack[h * L:(h + 1) * L, h * HEAD_DIM:(h + 1) * HEAD_DIM] = 1.0

    # per-head-segment sum / broadcast selectors for the stacked softmax
    seg = np.arange(SL) // L
    selh_sum = (seg[:, None] == np.arange(NUM_HEADS)[None, :]).astype(np.float32)  # (SL, 4)
    selh_bc = np.ascontiguousarray(selh_sum.T)                                     # (4, SL)

    # chunk selectors for the PatchExpand per-CD-chunk LayerNorm
    cidx = np.arange(2 * DIM) // CD
    selm = (cidx[:, None] == np.arange(NCHUNK)[None, :]).astype(np.float32) / CD   # (2*DIM, 4)
    selb = (np.arange(NCHUNK)[:, None] == cidx[None, :]).astype(np.float32)        # (4, 2*DIM)

    params = dict(
        n1g=np.ones((DEPTH, 1, DIM), np.float32),
        n1b=np.zeros((DEPTH, 1, DIM), np.float32),
        wqkv=wqkv, bqkv=bqkv,
        wp=wp, bp=np.zeros((DEPTH, 1, DIM), np.float32),
        n2g=np.ones((DEPTH, 1, DIM), np.float32),
        n2b=np.zeros((DEPTH, 1, DIM), np.float32),
        w1=w1, b1=np.zeros((DEPTH, 1, HIDDEN), np.float32),
        w2=w2, b2=np.zeros((DEPTH, 1, DIM), np.float32),
        bias=bias_st, mstack=mstack,
        selh_sum=selh_sum, selh_bc=selh_bc,
        wexp=wexp,
        upg=np.ones((1, 2 * DIM), np.float32),   # nn.LayerNorm init, tiled over chunks
        upb=np.zeros((1, 2 * DIM), np.float32),
        selm=selm, selb=selb,
    )
    return {k: jnp.asarray(v) for k, v in params.items()}


# --------------------------------- main --------------------------------------
if __name__ == "__main__":
    root = jax.random.PRNGKey(0)
    kx, kp = jax.random.split(root)
    x = jax.random.normal(kx, (BATCH, L, DIM), dtype=jnp.float32)
    params = init_params(kp)

    fwd = jax.jit(lambda xx: basic_layer_up_call(xx, params))
    out = fwd(x)
    jax.block_until_ready(out)
    assert out.shape == (BATCH, 4 * L, DIM // 2), out.shape
    assert bool(jnp.all(jnp.isfinite(out)))
    print("KERNEL_OK")
</pallas_src>

<mosaic_0001>
module attributes {stable_mosaic.version = 11 : i64} {
  func.func @_fused_kernel(%arg0: i32, %arg1: memref<2x64x32xf32, #tpu.memory_space<vmem>>, %arg2: memref<2x1x32xf32, #tpu.memory_space<vmem>>, %arg3: memref<2x1x32xf32, #tpu.memory_space<vmem>>, %arg4: memref<2x32x96xf32, #tpu.memory_space<vmem>>, %arg5: memref<2x1x96xf32, #tpu.memory_space<vmem>>, %arg6: memref<2x32x32xf32, #tpu.memory_space<vmem>>, %arg7: memref<2x1x32xf32, #tpu.memory_space<vmem>>, %arg8: memref<2x1x32xf32, #tpu.memory_space<vmem>>, %arg9: memref<2x1x32xf32, #tpu.memory_space<vmem>>, %arg10: memref<2x32x128xf32, #tpu.memory_space<vmem>>, %arg11: memref<2x1x128xf32, #tpu.memory_space<vmem>>, %arg12: memref<2x128x32xf32, #tpu.memory_space<vmem>>, %arg13: memref<2x1x32xf32, #tpu.memory_space<vmem>>, %arg14: memref<2x64x256xf32, #tpu.memory_space<vmem>>, %arg15: memref<256x32xf32, #tpu.memory_space<vmem>>, %arg16: memref<256x4xf32, #tpu.memory_space<vmem>>, %arg17: memref<4x256xf32, #tpu.memory_space<vmem>>, %arg18: memref<32x64xf32, #tpu.memory_space<vmem>>, %arg19: memref<1x64xf32, #tpu.memory_space<vmem>>, %arg20: memref<1x64xf32, #tpu.memory_space<vmem>>, %arg21: memref<64x4xf32, #tpu.memory_space<vmem>>, %arg22: memref<4x64xf32, #tpu.memory_space<vmem>>, %arg23: memref<2x32x128xf32, #tpu.memory_space<vmem>>) attributes {dimension_semantics = [#tpu.dimension_semantics<parallel>], iteration_bounds = array<i64: 1>, scalar_prefetch = 0 : i64, scratch_operands = 0 : i64, tpu.core_type = #tpu.core_type<tc>, window_params = [{transform_indices = @transform_0, window_bounds = array<i64: 2, 64, 32>}, {pipeline_mode = #tpu.pipeline_mode<synchronous>, transform_indices = @transform_1, window_bounds = array<i64: 2, 1, 32>}, {pipeline_mode = #tpu.pipeline_mode<synchronous>, transform_indices = @transform_2, window_bounds = array<i64: 2, 1, 32>}, {pipeline_mode = #tpu.pipeline_mode<synchronous>, transform_indices = @transform_3, window_bounds = array<i64: 2, 32, 96>}, {pipeline_mode = #tpu.pipeline_mode<synchronous>, transform_indices = @transform_4, window_bounds = array<i64: 2, 1, 96>}, {pipeline_mode = #tpu.pipeline_mode<synchronous>, transform_indices = @transform_5, window_bounds = array<i64: 2, 32, 32>}, {pipeline_mode = #tpu.pipeline_mode<synchronous>, transform_indices = @transform_6, window_bounds = array<i64: 2, 1, 32>}, {pipeline_mode = #tpu.pipeline_mode<synchronous>, transform_indices = @transform_7, window_bounds = array<i64: 2, 1, 32>}, {pipeline_mode = #tpu.pipeline_mode<synchronous>, transform_indices = @transform_8, window_bounds = array<i64: 2, 1, 32>}, {pipeline_mode = #tpu.pipeline_mode<synchronous>, transform_indices = @transform_9, window_bounds = array<i64: 2, 32, 128>}, {pipeline_mode = #tpu.pipeline_mode<synchronous>, transform_indices = @transform_10, window_bounds = array<i64: 2, 1, 128>}, {pipeline_mode = #tpu.pipeline_mode<synchronous>, transform_indices = @transform_11, window_bounds = array<i64: 2, 128, 32>}, {pipeline_mode = #tpu.pipeline_mode<synchronous>, transform_indices = @transform_12, window_bounds = array<i64: 2, 1, 32>}, {pipeline_mode = #tpu.pipeline_mode<synchronous>, transform_indices = @transform_13, window_bounds = array<i64: 2, 64, 256>}, {pipeline_mode = #tpu.pipeline_mode<synchronous>, transform_indices = @transform_14, window_bounds = array<i64: 256, 32>}, {pipeline_mode = #tpu.pipeline_mode<synchronous>, transform_indices = @transform_15, window_bounds = array<i64: 256, 4>}, {pipeline_mode = #tpu.pipeline_mode<synchronous>, transform_indices = @transform_16, window_bounds = array<i64: 4, 256>}, {pipeline_mode = #tpu.pipeline_mode<synchronous>, transform_indices = @transform_17, window_bounds = array<i64: 32, 64>}, {pipeline_mode = #tpu.pipeline_mode<synchronous>, transform_indices = @transform_18, window_bounds = array<i64: 1, 64>}, {pipeline_mode = #tpu.pipeline_mode<synchronous>, transform_indices = @transform_19, window_bounds = array<i64: 1, 64>}, {pipeline_mode = #tpu.pipeline_mode<synchronous>, transform_indices = @transform_20, window_bounds = array<i64: 64, 4>}, {pipeline_mode = #tpu.pipeline_mode<synchronous>, transform_indices = @transform_21, window_bounds = array<i64: 4, 64>}, {transform_indices = @transform_22, window_bounds = array<i64: 2, 32, 128>}]} {
    %c0 = arith.constant 0 : index
    %c0_0 = arith.constant 0 : index
    %c0_1 = arith.constant 0 : index
    %0 = vector.load %arg1[%c0, %c0_0, %c0_1] : memref<2x64x32xf32, #tpu.memory_space<vmem>>, vector<2x64x32xf32>
    %1 = vector.shape_cast %0 : vector<2x64x32xf32> to vector<128x32xf32>
    %c0_2 = arith.constant 0 : index
    %c0_3 = arith.constant 0 : index
    %2 = vector.load %arg15[%c0_2, %c0_3] : memref<256x32xf32, #tpu.memory_space<vmem>>, vector<256x32xf32>
    %c0_4 = arith.constant 0 : index
    %c0_5 = arith.constant 0 : index
    %c0_6 = arith.constant 0 : index
    %3 = vector.load %arg2[%c0_4, %c0_5, %c0_6] : memref<2x1x32xf32, #tpu.memory_space<vmem>>, vector<1x1x32xf32>
    %4 = vector.shape_cast %3 : vector<1x1x32xf32> to vector<1x32xf32>
    %c0_7 = arith.constant 0 : index
    %c0_8 = arith.constant 0 : index
    %c0_9 = arith.constant 0 : index
    %5 = vector.load %arg3[%c0_7, %c0_8, %c0_9] : memref<2x1x32xf32, #tpu.memory_space<vmem>>, vector<1x1x32xf32>
    %6 = vector.shape_cast %5 : vector<1x1x32xf32> to vector<1x32xf32>
    %cst = arith.constant dense<0.000000e+00> : vector<128xf32>
    %7 = vector.multi_reduction <add>, %1, %cst [1] : vector<128x32xf32> to vector<128xf32>
    %8 = vector.shape_cast %7 : vector<128xf32> to vector<128x1xf32>
    %cst_10 = arith.constant 3.200000e+01 : f32
    %9 = vector.broadcast %cst_10 : f32 to vector<128x1xf32>
    %10 = arith.divf %8, %9 : vector<128x1xf32>
    %11 = vector.broadcast %10 : vector<128x1xf32> to vector<128x32xf32>
    %12 = arith.subf %1, %11 : vector<128x32xf32>
    %13 = arith.mulf %12, %12 : vector<128x32xf32>
    %cst_11 = arith.constant dense<0.000000e+00> : vector<128xf32>
    %14 = vector.multi_reduction <add>, %13, %cst_11 [1] : vector<128x32xf32> to vector<128xf32>
    %15 = vector.shape_cast %14 : vector<128xf32> to vector<128x1xf32>
    %cst_12 = arith.constant 3.200000e+01 : f32
    %16 = vector.broadcast %cst_12 : f32 to vector<128x1xf32>
    %17 = arith.divf %15, %16 : vector<128x1xf32>
    %cst_13 = arith.constant 9.99999974E-6 : f32
    %18 = vector.broadcast %cst_13 : f32 to vector<128x1xf32>
    %19 = arith.addf %17, %18 : vector<128x1xf32>
    %20 = math.rsqrt %19 : vector<128x1xf32>
    %21 = vector.broadcast %20 : vector<128x1xf32> to vector<128x32xf32>
    %22 = arith.mulf %12, %21 : vector<128x32xf32>
    %23 = vector.broadcast %4 : vector<1x32xf32> to vector<128x32xf32>
    %24 = arith.mulf %22, %23 : vector<128x32xf32>
    %25 = vector.broadcast %6 : vector<1x32xf32> to vector<128x32xf32>
    %26 = arith.addf %24, %25 : vector<128x32xf32>
    %c0_14 = arith.constant 0 : index
    %c0_15 = arith.constant 0 : index
    %c0_16 = arith.constant 0 : index
    %27 = vector.load %arg4[%c0_14, %c0_15, %c0_16] : memref<2x32x96xf32, #tpu.memory_space<vmem>>, vector<1x32x96xf32>
    %28 = vector.shape_cast %27 : vector<1x32x96xf32> to vector<32x96xf32>
    %cst_17 = arith.constant dense<0.000000e+00> : vector<128x96xf32>
    %29 = tpu.matmul %26, %28, %cst_17 {dimension_numbers = #tpu.dot_dimension_numbers<[1], [0], [0], [1], [0, 0, 1, 1], [], []>} : vector<128x32xf32>, vector<32x96xf32>, vector<128x96xf32> -> vector<128x96xf32>
    %c0_18 = arith.constant 0 : index
    %c0_19 = arith.constant 0 : index
    %c0_20 = arith.constant 0 : index
    %30 = vector.load %arg5[%c0_18, %c0_19, %c0_20] : memref<2x1x96xf32, #tpu.memory_space<vmem>>, vector<1x1x96xf32>
    %31 = vector.shape_cast %30 : vector<1x1x96xf32> to vector<1x96xf32>
    %32 = vector.broadcast %31 : vector<1x96xf32> to vector<128x96xf32>
    %33 = arith.addf %29, %32 : vector<128x96xf32>
    %34 = vector.extract_strided_slice %33 {offsets = [0, 0], sizes = [128, 32], strides = [1, 1]} : vector<128x96xf32> to vector<128x32xf32>
    %35 = vector.extract_strided_slice %33 {offsets = [0, 32], sizes = [128, 32], strides = [1, 1]} : vector<128x96xf32> to vector<128x32xf32>
    %36 = vector.extract_strided_slice %33 {offsets = [0, 64], sizes = [128, 32], strides = [1, 1]} : vector<128x96xf32> to vector<128x32xf32>
    %c0_21 = arith.constant 0 : index
    %c0_22 = arith.constant 0 : index
    %c0_23 = arith.constant 0 : index
    %37 = vector.load %arg14[%c0_21, %c0_22, %c0_23] : memref<2x64x256xf32, #tpu.memory_space<vmem>>, vector<1x64x256xf32>
    %38 = vector.shape_cast %37 : vector<1x64x256xf32> to vector<64x256xf32>
    %39 = vector.extract_strided_slice %34 {offsets = [0, 0], sizes = [64, 32], strides = [1, 1]} : vector<128x32xf32> to vector<64x32xf32>
    %40 = vector.extract_strided_slice %35 {offsets = [0, 0], sizes = [64, 32], strides = [1, 1]} : vector<128x32xf32> to vector<64x32xf32>
    %41 = vector.extract_strided_slice %36 {offsets = [0, 0], sizes = [64, 32], strides = [1, 1]} : vector<128x32xf32> to vector<64x32xf32>
    %42 = tpu.concatenate %40, %40, %40, %40 in 0 : vector<64x32xf32>, vector<64x32xf32>, vector<64x32xf32>, vector<64x32xf32> -> vector<256x32xf32>
    %43 = arith.mulf %42, %2 : vector<256x32xf32>
    %44 = tpu.concatenate %41, %41, %41, %41 in 0 : vector<64x32xf32>, vector<64x32xf32>, vector<64x32xf32>, vector<64x32xf32> -> vector<256x32xf32>
    %45 = arith.mulf %44, %2 : vector<256x32xf32>
    %cst_24 = arith.constant dense<0.000000e+00> : vector<64x256xf32>
    %46 = tpu.matmul %39, %43, %cst_24 {dimension_numbers = #tpu.dot_dimension_numbers<[1], [1], [0], [0], [0, 0, 1, 0], [], []>} : vector<64x32xf32>, vector<256x32xf32>, vector<64x256xf32> -> vector<64x256xf32>
    %47 = arith.addf %46, %38 : vector<64x256xf32>
    %cst_25 = arith.constant dense<0xFF800000> : vector<64xf32>
    %48 = vector.multi_reduction <maximumf>, %47, %cst_25 [1] : vector<64x256xf32> to vector<64xf32>
    %49 = vector.shape_cast %48 : vector<64xf32> to vector<64x1xf32>
    %50 = vector.broadcast %49 : vector<64x1xf32> to vector<64x256xf32>
    %51 = arith.subf %47, %50 : vector<64x256xf32>
    %52 = math.exp %51 : vector<64x256xf32>
    %c0_26 = arith.constant 0 : index
    %c0_27 = arith.constant 0 : index
    %53 = vector.load %arg16[%c0_26, %c0_27] : memref<256x4xf32, #tpu.memory_space<vmem>>, vector<256x4xf32>
    %cst_28 = arith.constant dense<0.000000e+00> : vector<64x4xf32>
    %54 = tpu.matmul %52, %53, %cst_28 {dimension_numbers = #tpu.dot_dimension_numbers<[1], [0], [0], [1], [0, 0, 1, 1], [], []>} : vector<64x256xf32>, vector<256x4xf32>, vector<64x4xf32> -> vector<64x4xf32>
    %cst_29 = arith.constant 1.000000e-30 : f32
    %55 = vector.broadcast %cst_29 : f32 to vector<64x4xf32>
    %56 = arith.addf %54, %55 : vector<64x4xf32>
    %cst_30 = arith.constant 1.000000e+00 : f32
    %57 = vector.broadcast %cst_30 : f32 to vector<64x4xf32>
    %58 = arith.divf %57, %56 : vector<64x4xf32>
    %c0_31 = arith.constant 0 : index
    %c0_32 = arith.constant 0 : index
    %59 = vector.load %arg17[%c0_31, %c0_32] : memref<4x256xf32, #tpu.memory_space<vmem>>, vector<4x256xf32>
    %cst_33 = arith.constant dense<0.000000e+00> : vector<64x256xf32>
    %60 = tpu.matmul %58, %59, %cst_33 {dimension_numbers = #tpu.dot_dimension_numbers<[1], [0], [0], [1], [0, 0, 1, 1], [], []>} : vector<64x4xf32>, vector<4x256xf32>, vector<64x256xf32> -> vector<64x256xf32>
    %61 = arith.mulf %52, %60 : vector<64x256xf32>
    %cst_34 = arith.constant dense<0.000000e+00> : vector<64x32xf32>
    %62 = tpu.matmul %61, %45, %cst_34 {dimension_numbers = #tpu.dot_dimension_numbers<[1], [0], [0], [1], [0, 0, 1, 1], [], []>} : vector<64x256xf32>, vector<256x32xf32>, vector<64x32xf32> -> vector<64x32xf32>
    %63 = vector.extract_strided_slice %34 {offsets = [64, 0], sizes = [64, 32], strides = [1, 1]} : vector<128x32xf32> to vector<64x32xf32>
    %64 = vector.extract_strided_slice %35 {offsets = [64, 0], sizes = [64, 32], strides = [1, 1]} : vector<128x32xf32> to vector<64x32xf32>
    %65 = vector.extract_strided_slice %36 {offsets = [64, 0], sizes = [64, 32], strides = [1, 1]} : vector<128x32xf32> to vector<64x32xf32>
    %66 = tpu.concatenate %64, %64, %64, %64 in 0 : vector<64x32xf32>, vector<64x32xf32>, vector<64x32xf32>, vector<64x32xf32> -> vector<256x32xf32>
    %67 = arith.mulf %66, %2 : vector<256x32xf32>
    %68 = tpu.concatenate %65, %65, %65, %65 in 0 : vector<64x32xf32>, vector<64x32xf32>, vector<64x32xf32>, vector<64x32xf32> -> vector<256x32xf32>
    %69 = arith.mulf %68, %2 : vector<256x32xf32>
    %cst_35 = arith.constant dense<0.000000e+00> : vector<64x256xf32>
    %70 = tpu.matmul %63, %67, %cst_35 {dimension_numbers = #tpu.dot_dimension_numbers<[1], [1], [0], [0], [0, 0, 1, 0], [], []>} : vector<64x32xf32>, vector<256x32xf32>, vector<64x256xf32> -> vector<64x256xf32>
    %71 = arith.addf %70, %38 : vector<64x256xf32>
    %cst_36 = arith.constant dense<0xFF800000> : vector<64xf32>
    %72 = vector.multi_reduction <maximumf>, %71, %cst_36 [1] : vector<64x256xf32> to vector<64xf32>
    %73 = vector.shape_cast %72 : vector<64xf32> to vector<64x1xf32>
    %74 = vector.broadcast %73 : vector<64x1xf32> to vector<64x256xf32>
    %75 = arith.subf %71, %74 : vector<64x256xf32>
    %76 = math.exp %75 : vector<64x256xf32>
    %c0_37 = arith.constant 0 : index
    %c0_38 = arith.constant 0 : index
    %77 = vector.load %arg16[%c0_37, %c0_38] : memref<256x4xf32, #tpu.memory_space<vmem>>, vector<256x4xf32>
    %cst_39 = arith.constant dense<0.000000e+00> : vector<64x4xf32>
    %78 = tpu.matmul %76, %77, %cst_39 {dimension_numbers = #tpu.dot_dimension_numbers<[1], [0], [0], [1], [0, 0, 1, 1], [], []>} : vector<64x256xf32>, vector<256x4xf32>, vector<64x4xf32> -> vector<64x4xf32>
    %cst_40 = arith.constant 1.000000e-30 : f32
    %79 = vector.broadcast %cst_40 : f32 to vector<64x4xf32>
    %80 = arith.addf %78, %79 : vector<64x4xf32>
    %cst_41 = arith.constant 1.000000e+00 : f32
    %81 = vector.broadcast %cst_41 : f32 to vector<64x4xf32>
    %82 = arith.divf %81, %80 : vector<64x4xf32>
    %c0_42 = arith.constant 0 : index
    %c0_43 = arith.constant 0 : index
    %83 = vector.load %arg17[%c0_42, %c0_43] : memref<4x256xf32, #tpu.memory_space<vmem>>, vector<4x256xf32>
    %cst_44 = arith.constant dense<0.000000e+00> : vector<64x256xf32>
    %84 = tpu.matmul %82, %83, %cst_44 {dimension_numbers = #tpu.dot_dimension_numbers<[1], [0], [0], [1], [0, 0, 1, 1], [], []>} : vector<64x4xf32>, vector<4x256xf32>, vector<64x256xf32> -> vector<64x256xf32>
    %85 = arith.mulf %76, %84 : vector<64x256xf32>
    %cst_45 = arith.constant dense<0.000000e+00> : vector<64x32xf32>
    %86 = tpu.matmul %85, %69, %cst_45 {dimension_numbers = #tpu.dot_dimension_numbers<[1], [0], [0], [1], [0, 0, 1, 1], [], []>} : vector<64x256xf32>, vector<256x32xf32>, vector<64x32xf32> -> vector<64x32xf32>
    %87 = tpu.concatenate %62, %86 in 0 : vector<64x32xf32>, vector<64x32xf32> -> vector<128x32xf32>
    %c0_46 = arith.constant 0 : index
    %c0_47 = arith.constant 0 : index
    %c0_48 = arith.constant 0 : index
    %88 = vector.load %arg6[%c0_46, %c0_47, %c0_48] : memref<2x32x32xf32, #tpu.memory_space<vmem>>, vector<1x32x32xf32>
    %89 = vector.shape_cast %88 : vector<1x32x32xf32> to vector<32x32xf32>
    %cst_49 = arith.constant dense<0.000000e+00> : vector<128x32xf32>
    %90 = tpu.matmul %87, %89, %cst_49 {dimension_numbers = #tpu.dot_dimension_numbers<[1], [0], [0], [1], [0, 0, 1, 1], [], []>} : vector<128x32xf32>, vector<32x32xf32>, vector<128x32xf32> -> vector<128x32xf32>
    %91 = arith.addf %1, %90 : vector<128x32xf32>
    %c0_50 = arith.constant 0 : index
    %c0_51 = arith.constant 0 : index
    %c0_52 = arith.constant 0 : index
    %92 = vector.load %arg7[%c0_50, %c0_51, %c0_52] : memref<2x1x32xf32, #tpu.memory_space<vmem>>, vector<1x1x32xf32>
    %93 = vector.shape_cast %92 : vector<1x1x32xf32> to vector<1x32xf32>
    %94 = vector.broadcast %93 : vector<1x32xf32> to vector<128x32xf32>
    %95 = arith.addf %91, %94 : vector<128x32xf32>
    %c0_53 = arith.constant 0 : index
    %c0_54 = arith.constant 0 : index
    %c0_55 = arith.constant 0 : index
    %96 = vector.load %arg8[%c0_53, %c0_54, %c0_55] : memref<2x1x32xf32, #tpu.memory_space<vmem>>, vector<1x1x32xf32>
    %97 = vector.shape_cast %96 : vector<1x1x32xf32> to vector<1x32xf32>
    %c0_56 = arith.constant 0 : index
    %c0_57 = arith.constant 0 : index
    %c0_58 = arith.constant 0 : index
    %98 = vector.load %arg9[%c0_56, %c0_57, %c0_58] : memref<2x1x32xf32, #tpu.memory_space<vmem>>, vector<1x1x32xf32>
    %99 = vector.shape_cast %98 : vector<1x1x32xf32> to vector<1x32xf32>
    %cst_59 = arith.constant dense<0.000000e+00> : vector<128xf32>
    %100 = vector.multi_reduction <add>, %95, %cst_59 [1] : vector<128x32xf32> to vector<128xf32>
    %101 = vector.shape_cast %100 : vector<128xf32> to vector<128x1xf32>
    %cst_60 = arith.constant 3.200000e+01 : f32
    %102 = vector.broadcast %cst_60 : f32 to vector<128x1xf32>
    %103 = arith.divf %101, %102 : vector<128x1xf32>
    %104 = vector.broadcast %103 : vector<128x1xf32> to vector<128x32xf32>
    %105 = arith.subf %95, %104 : vector<128x32xf32>
    %106 = arith.mulf %105, %105 : vector<128x32xf32>
    %cst_61 = arith.constant dense<0.000000e+00> : vector<128xf32>
    %107 = vector.multi_reduction <add>, %106, %cst_61 [1] : vector<128x32xf32> to vector<128xf32>
    %108 = vector.shape_cast %107 : vector<128xf32> to vector<128x1xf32>
    %cst_62 = arith.constant 3.200000e+01 : f32
    %109 = vector.broadcast %cst_62 : f32 to vector<128x1xf32>
    %110 = arith.divf %108, %109 : vector<128x1xf32>
    %cst_63 = arith.constant 9.99999974E-6 : f32
    %111 = vector.broadcast %cst_63 : f32 to vector<128x1xf32>
    %112 = arith.addf %110, %111 : vector<128x1xf32>
    %113 = math.rsqrt %112 : vector<128x1xf32>
    %114 = vector.broadcast %113 : vector<128x1xf32> to vector<128x32xf32>
    %115 = arith.mulf %105, %114 : vector<128x32xf32>
    %116 = vector.broadcast %97 : vector<1x32xf32> to vector<128x32xf32>
    %117 = arith.mulf %115, %116 : vector<128x32xf32>
    %118 = vector.broadcast %99 : vector<1x32xf32> to vector<128x32xf32>
    %119 = arith.addf %117, %118 : vector<128x32xf32>
    %c0_64 = arith.constant 0 : index
    %c0_65 = arith.constant 0 : index
    %c0_66 = arith.constant 0 : index
    %120 = vector.load %arg10[%c0_64, %c0_65, %c0_66] : memref<2x32x128xf32, #tpu.memory_space<vmem>>, vector<1x32x128xf32>
    %121 = vector.shape_cast %120 : vector<1x32x128xf32> to vector<32x128xf32>
    %cst_67 = arith.constant dense<0.000000e+00> : vector<128x128xf32>
    %122 = tpu.matmul %119, %121, %cst_67 {dimension_numbers = #tpu.dot_dimension_numbers<[1], [0], [0], [1], [0, 0, 1, 1], [], []>} : vector<128x32xf32>, vector<32x128xf32>, vector<128x128xf32> -> vector<128x128xf32>
    %c0_68 = arith.constant 0 : index
    %c0_69 = arith.constant 0 : index
    %c0_70 = arith.constant 0 : index
    %123 = vector.load %arg11[%c0_68, %c0_69, %c0_70] : memref<2x1x128xf32, #tpu.memory_space<vmem>>, vector<1x1x128xf32>
    %124 = vector.shape_cast %123 : vector<1x1x128xf32> to vector<1x128xf32>
    %125 = vector.broadcast %124 : vector<1x128xf32> to vector<128x128xf32>
    %126 = arith.addf %122, %125 : vector<128x128xf32>
    %127 = arith.mulf %126, %126 : vector<128x128xf32>
    %128 = arith.mulf %126, %127 : vector<128x128xf32>
    %cst_71 = arith.constant 4.471500e-02 : f32
    %129 = vector.broadcast %cst_71 : f32 to vector<128x128xf32>
    %130 = arith.mulf %129, %128 : vector<128x128xf32>
    %131 = arith.addf %126, %130 : vector<128x128xf32>
    %cst_72 = arith.constant 0.797884583 : f32
    %132 = vector.broadcast %cst_72 : f32 to vector<128x128xf32>
    %133 = arith.mulf %132, %131 : vector<128x128xf32>
    %134 = math.tanh %133 : vector<128x128xf32>
    %cst_73 = arith.constant 1.000000e+00 : f32
    %135 = vector.broadcast %cst_73 : f32 to vector<128x128xf32>
    %136 = arith.addf %135, %134 : vector<128x128xf32>
    %cst_74 = arith.constant 5.000000e-01 : f32
    %137 = vector.broadcast %cst_74 : f32 to vector<128x128xf32>
    %138 = arith.mulf %137, %136 : vector<128x128xf32>
    %139 = arith.mulf %126, %138 : vector<128x128xf32>
    %c0_75 = arith.constant 0 : index
    %c0_76 = arith.constant 0 : index
    %c0_77 = arith.constant 0 : index
    %140 = vector.load %arg12[%c0_75, %c0_76, %c0_77] : memref<2x128x32xf32, #tpu.memory_space<vmem>>, vector<1x128x32xf32>
    %141 = vector.shape_cast %140 : vector<1x128x32xf32> to vector<128x32xf32>
    %cst_78 = arith.constant dense<0.000000e+00> : vector<128x32xf32>
    %142 = tpu.matmul %139, %141, %cst_78 {dimension_numbers = #tpu.dot_dimension_numbers<[1], [0], [0], [1], [0, 0, 1, 1], [], []>} : vector<128x128xf32>, vector<128x32xf32>, vector<128x32xf32> -> vector<128x32xf32>
    %143 = arith.addf %95, %142 : vector<128x32xf32>
    %c0_79 = arith.constant 0 : index
    %c0_80 = arith.constant 0 : index
    %c0_81 = arith.constant 0 : index
    %144 = vector.load %arg13[%c0_79, %c0_80, %c0_81] : memref<2x1x32xf32, #tpu.memory_space<vmem>>, vector<1x1x32xf32>
    %145 = vector.shape_cast %144 : vector<1x1x32xf32> to vector<1x32xf32>
    %146 = vector.broadcast %145 : vector<1x32xf32> to vector<128x32xf32>
    %147 = arith.addf %143, %146 : vector<128x32xf32>
    %c1 = arith.constant 1 : index
    %c0_82 = arith.constant 0 : index
    %c0_83 = arith.constant 0 : index
    %148 = vector.load %arg2[%c1, %c0_82, %c0_83] : memref<2x1x32xf32, #tpu.memory_space<vmem>>, vector<1x1x32xf32>
    %149 = vector.shape_cast %148 : vector<1x1x32xf32> to vector<1x32xf32>
    %c1_84 = arith.constant 1 : index
    %c0_85 = arith.constant 0 : index
    %c0_86 = arith.constant 0 : index
    %150 = vector.load %arg3[%c1_84, %c0_85, %c0_86] : memref<2x1x32xf32, #tpu.memory_space<vmem>>, vector<1x1x32xf32>
    %151 = vector.shape_cast %150 : vector<1x1x32xf32> to vector<1x32xf32>
    %cst_87 = arith.constant dense<0.000000e+00> : vector<128xf32>
    %152 = vector.multi_reduction <add>, %147, %cst_87 [1] : vector<128x32xf32> to vector<128xf32>
    %153 = vector.shape_cast %152 : vector<128xf32> to vector<128x1xf32>
    %cst_88 = arith.constant 3.200000e+01 : f32
    %154 = vector.broadcast %cst_88 : f32 to vector<128x1xf32>
    %155 = arith.divf %153, %154 : vector<128x1xf32>
    %156 = vector.broadcast %155 : vector<128x1xf32> to vector<128x32xf32>
    %157 = arith.subf %147, %156 : vector<128x32xf32>
    %158 = arith.mulf %157, %157 : vector<128x32xf32>
    %cst_89 = arith.constant dense<0.000000e+00> : vector<128xf32>
    %159 = vector.multi_reduction <add>, %158, %cst_89 [1] : vector<128x32xf32> to vector<128xf32>
    %160 = vector.shape_cast %159 : vector<128xf32> to vector<128x1xf32>
    %cst_90 = arith.constant 3.200000e+01 : f32
    %161 = vector.broadcast %cst_90 : f32 to vector<128x1xf32>
    %162 = arith.divf %160, %161 : vector<128x1xf32>
    %cst_91 = arith.constant 9.99999974E-6 : f32
    %163 = vector.broadcast %cst_91 : f32 to vector<128x1xf32>
    %164 = arith.addf %162, %163 : vector<128x1xf32>
    %165 = math.rsqrt %164 : vector<128x1xf32>
    %166 = vector.broadcast %165 : vector<128x1xf32> to vector<128x32xf32>
    %167 = arith.mulf %157, %166 : vector<128x32xf32>
    %168 = vector.broadcast %149 : vector<1x32xf32> to vector<128x32xf32>
    %169 = arith.mulf %167, %168 : vector<128x32xf32>
    %170 = vector.broadcast %151 : vector<1x32xf32> to vector<128x32xf32>
    %171 = arith.addf %169, %170 : vector<128x32xf32>
    %c1_92 = arith.constant 1 : index
    %c0_93 = arith.constant 0 : index
    %c0_94 = arith.constant 0 : index
    %172 = vector.load %arg4[%c1_92, %c0_93, %c0_94] : memref<2x32x96xf32, #tpu.memory_space<vmem>>, vector<1x32x96xf32>
    %173 = vector.shape_cast %172 : vector<1x32x96xf32> to vector<32x96xf32>
    %cst_95 = arith.constant dense<0.000000e+00> : vector<128x96xf32>
    %174 = tpu.matmul %171, %173, %cst_95 {dimension_numbers = #tpu.dot_dimension_numbers<[1], [0], [0], [1], [0, 0, 1, 1], [], []>} : vector<128x32xf32>, vector<32x96xf32>, vector<128x96xf32> -> vector<128x96xf32>
    %c1_96 = arith.constant 1 : index
    %c0_97 = arith.constant 0 : index
    %c0_98 = arith.constant 0 : index
    %175 = vector.load %arg5[%c1_96, %c0_97, %c0_98] : memref<2x1x96xf32, #tpu.memory_space<vmem>>, vector<1x1x96xf32>
    %176 = vector.shape_cast %175 : vector<1x1x96xf32> to vector<1x96xf32>
    %177 = vector.broadcast %176 : vector<1x96xf32> to vector<128x96xf32>
    %178 = arith.addf %174, %177 : vector<128x96xf32>
    %179 = vector.extract_strided_slice %178 {offsets = [0, 0], sizes = [128, 32], strides = [1, 1]} : vector<128x96xf32> to vector<128x32xf32>
    %180 = vector.extract_strided_slice %178 {offsets = [0, 32], sizes = [128, 32], strides = [1, 1]} : vector<128x96xf32> to vector<128x32xf32>
    %181 = vector.extract_strided_slice %178 {offsets = [0, 64], sizes = [128, 32], strides = [1, 1]} : vector<128x96xf32> to vector<128x32xf32>
    %c1_99 = arith.constant 1 : index
    %c0_100 = arith.constant 0 : index
    %c0_101 = arith.constant 0 : index
    %182 = vector.load %arg14[%c1_99, %c0_100, %c0_101] : memref<2x64x256xf32, #tpu.memory_space<vmem>>, vector<1x64x256xf32>
    %183 = vector.shape_cast %182 : vector<1x64x256xf32> to vector<64x256xf32>
    %184 = vector.extract_strided_slice %179 {offsets = [0, 0], sizes = [64, 32], strides = [1, 1]} : vector<128x32xf32> to vector<64x32xf32>
    %185 = vector.extract_strided_slice %180 {offsets = [0, 0], sizes = [64, 32], strides = [1, 1]} : vector<128x32xf32> to vector<64x32xf32>
    %186 = vector.extract_strided_slice %181 {offsets = [0, 0], sizes = [64, 32], strides = [1, 1]} : vector<128x32xf32> to vector<64x32xf32>
    %187 = tpu.concatenate %185, %185, %185, %185 in 0 : vector<64x32xf32>, vector<64x32xf32>, vector<64x32xf32>, vector<64x32xf32> -> vector<256x32xf32>
    %188 = arith.mulf %187, %2 : vector<256x32xf32>
    %189 = tpu.concatenate %186, %186, %186, %186 in 0 : vector<64x32xf32>, vector<64x32xf32>, vector<64x32xf32>, vector<64x32xf32> -> vector<256x32xf32>
    %190 = arith.mulf %189, %2 : vector<256x32xf32>
    %cst_102 = arith.constant dense<0.000000e+00> : vector<64x256xf32>
    %191 = tpu.matmul %184, %188, %cst_102 {dimension_numbers = #tpu.dot_dimension_numbers<[1], [1], [0], [0], [0, 0, 1, 0], [], []>} : vector<64x32xf32>, vector<256x32xf32>, vector<64x256xf32> -> vector<64x256xf32>
    %192 = arith.addf %191, %183 : vector<64x256xf32>
    %cst_103 = arith.constant dense<0xFF800000> : vector<64xf32>
    %193 = vector.multi_reduction <maximumf>, %192, %cst_103 [1] : vector<64x256xf32> to vector<64xf32>
    %194 = vector.shape_cast %193 : vector<64xf32> to vector<64x1xf32>
    %195 = vector.broadcast %194 : vector<64x1xf32> to vector<64x256xf32>
    %196 = arith.subf %192, %195 : vector<64x256xf32>
    %197 = math.exp %196 : vector<64x256xf32>
    %c0_104 = arith.constant 0 : index
    %c0_105 = arith.constant 0 : index
    %198 = vector.load %arg16[%c0_104, %c0_105] : memref<256x4xf32, #tpu.memory_space<vmem>>, vector<256x4xf32>
    %cst_106 = arith.constant dense<0.000000e+00> : vector<64x4xf32>
    %199 = tpu.matmul %197, %198, %cst_106 {dimension_numbers = #tpu.dot_dimension_numbers<[1], [0], [0], [1], [0, 0, 1, 1], [], []>} : vector<64x256xf32>, vector<256x4xf32>, vector<64x4xf32> -> vector<64x4xf32>
    %cst_107 = arith.constant 1.000000e-30 : f32
    %200 = vector.broadcast %cst_107 : f32 to vector<64x4xf32>
    %201 = arith.addf %199, %200 : vector<64x4xf32>
    %cst_108 = arith.constant 1.000000e+00 : f32
    %202 = vector.broadcast %cst_108 : f32 to vector<64x4xf32>
    %203 = arith.divf %202, %201 : vector<64x4xf32>
    %c0_109 = arith.constant 0 : index
    %c0_110 = arith.constant 0 : index
    %204 = vector.load %arg17[%c0_109, %c0_110] : memref<4x256xf32, #tpu.memory_space<vmem>>, vector<4x256xf32>
    %cst_111 = arith.constant dense<0.000000e+00> : vector<64x256xf32>
    %205 = tpu.matmul %203, %204, %cst_111 {dimension_numbers = #tpu.dot_dimension_numbers<[1], [0], [0], [1], [0, 0, 1, 1], [], []>} : vector<64x4xf32>, vector<4x256xf32>, vector<64x256xf32> -> vector<64x256xf32>
    %206 = arith.mulf %197, %205 : vector<64x256xf32>
    %cst_112 = arith.constant dense<0.000000e+00> : vector<64x32xf32>
    %207 = tpu.matmul %206, %190, %cst_112 {dimension_numbers = #tpu.dot_dimension_numbers<[1], [0], [0], [1], [0, 0, 1, 1], [], []>} : vector<64x256xf32>, vector<256x32xf32>, vector<64x32xf32> -> vector<64x32xf32>
    %208 = vector.extract_strided_slice %179 {offsets = [64, 0], sizes = [64, 32], strides = [1, 1]} : vector<128x32xf32> to vector<64x32xf32>
    %209 = vector.extract_strided_slice %180 {offsets = [64, 0], sizes = [64, 32], strides = [1, 1]} : vector<128x32xf32> to vector<64x32xf32>
    %210 = vector.extract_strided_slice %181 {offsets = [64, 0], sizes = [64, 32], strides = [1, 1]} : vector<128x32xf32> to vector<64x32xf32>
    %211 = tpu.concatenate %209, %209, %209, %209 in 0 : vector<64x32xf32>, vector<64x32xf32>, vector<64x32xf32>, vector<64x32xf32> -> vector<256x32xf32>
    %212 = arith.mulf %211, %2 : vector<256x32xf32>
    %213 = tpu.concatenate %210, %210, %210, %210 in 0 : vector<64x32xf32>, vector<64x32xf32>, vector<64x32xf32>, vector<64x32xf32> -> vector<256x32xf32>
    %214 = arith.mulf %213, %2 : vector<256x32xf32>
    %cst_113 = arith.constant dense<0.000000e+00> : vector<64x256xf32>
    %215 = tpu.matmul %208, %212, %cst_113 {dimension_numbers = #tpu.dot_dimension_numbers<[1], [1], [0], [0], [0, 0, 1, 0], [], []>} : vector<64x32xf32>, vector<256x32xf32>, vector<64x256xf32> -> vector<64x256xf32>
    %216 = arith.addf %215, %183 : vector<64x256xf32>
    %cst_114 = arith.constant dense<0xFF800000> : vector<64xf32>
    %217 = vector.multi_reduction <maximumf>, %216, %cst_114 [1] : vector<64x256xf32> to vector<64xf32>
    %218 = vector.shape_cast %217 : vector<64xf32> to vector<64x1xf32>
    %219 = vector.broadcast %218 : vector<64x1xf32> to vector<64x256xf32>
    %220 = arith.subf %216, %219 : vector<64x256xf32>
    %221 = math.exp %220 : vector<64x256xf32>
    %c0_115 = arith.constant 0 : index
    %c0_116 = arith.constant 0 : index
    %222 = vector.load %arg16[%c0_115, %c0_116] : memref<256x4xf32, #tpu.memory_space<vmem>>, vector<256x4xf32>
    %cst_117 = arith.constant dense<0.000000e+00> : vector<64x4xf32>
    %223 = tpu.matmul %221, %222, %cst_117 {dimension_numbers = #tpu.dot_dimension_numbers<[1], [0], [0], [1], [0, 0, 1, 1], [], []>} : vector<64x256xf32>, vector<256x4xf32>, vector<64x4xf32> -> vector<64x4xf32>
    %cst_118 = arith.constant 1.000000e-30 : f32
    %224 = vector.broadcast %cst_118 : f32 to vector<64x4xf32>
    %225 = arith.addf %223, %224 : vector<64x4xf32>
    %cst_119 = arith.constant 1.000000e+00 : f32
    %226 = vector.broadcast %cst_119 : f32 to vector<64x4xf32>
    %227 = arith.divf %226, %225 : vector<64x4xf32>
    %c0_120 = arith.constant 0 : index
    %c0_121 = arith.constant 0 : index
    %228 = vector.load %arg17[%c0_120, %c0_121] : memref<4x256xf32, #tpu.memory_space<vmem>>, vector<4x256xf32>
    %cst_122 = arith.constant dense<0.000000e+00> : vector<64x256xf32>
    %229 = tpu.matmul %227, %228, %cst_122 {dimension_numbers = #tpu.dot_dimension_numbers<[1], [0], [0], [1], [0, 0, 1, 1], [], []>} : vector<64x4xf32>, vector<4x256xf32>, vector<64x256xf32> -> vector<64x256xf32>
    %230 = arith.mulf %221, %229 : vector<64x256xf32>
    %cst_123 = arith.constant dense<0.000000e+00> : vector<64x32xf32>
    %231 = tpu.matmul %230, %214, %cst_123 {dimension_numbers = #tpu.dot_dimension_numbers<[1], [0], [0], [1], [0, 0, 1, 1], [], []>} : vector<64x256xf32>, vector<256x32xf32>, vector<64x32xf32> -> vector<64x32xf32>
    %232 = tpu.concatenate %207, %231 in 0 : vector<64x32xf32>, vector<64x32xf32> -> vector<128x32xf32>
    %c1_124 = arith.constant 1 : index
    %c0_125 = arith.constant 0 : index
    %c0_126 = arith.constant 0 : index
    %233 = vector.load %arg6[%c1_124, %c0_125, %c0_126] : memref<2x32x32xf32, #tpu.memory_space<vmem>>, vector<1x32x32xf32>
    %234 = vector.shape_cast %233 : vector<1x32x32xf32> to vector<32x32xf32>
    %cst_127 = arith.constant dense<0.000000e+00> : vector<128x32xf32>
    %235 = tpu.matmul %232, %234, %cst_127 {dimension_numbers = #tpu.dot_dimension_numbers<[1], [0], [0], [1], [0, 0, 1, 1], [], []>} : vector<128x32xf32>, vector<32x32xf32>, vector<128x32xf32> -> vector<128x32xf32>
    %236 = arith.addf %147, %235 : vector<128x32xf32>
    %c1_128 = arith.constant 1 : index
    %c0_129 = arith.constant 0 : index
    %c0_130 = arith.constant 0 : index
    %237 = vector.load %arg7[%c1_128, %c0_129, %c0_130] : memref<2x1x32xf32, #tpu.memory_space<vmem>>, vector<1x1x32xf32>
    %238 = vector.shape_cast %237 : vector<1x1x32xf32> to vector<1x32xf32>
    %239 = vector.broadcast %238 : vector<1x32xf32> to vector<128x32xf32>
    %240 = arith.addf %236, %239 : vector<128x32xf32>
    %c1_131 = arith.constant 1 : index
    %c0_132 = arith.constant 0 : index
    %c0_133 = arith.constant 0 : index
    %241 = vector.load %arg8[%c1_131, %c0_132, %c0_133] : memref<2x1x32xf32, #tpu.memory_space<vmem>>, vector<1x1x32xf32>
    %242 = vector.shape_cast %241 : vector<1x1x32xf32> to vector<1x32xf32>
    %c1_134 = arith.constant 1 : index
    %c0_135 = arith.constant 0 : index
    %c0_136 = arith.constant 0 : index
    %243 = vector.load %arg9[%c1_134, %c0_135, %c0_136] : memref<2x1x32xf32, #tpu.memory_space<vmem>>, vector<1x1x32xf32>
    %244 = vector.shape_cast %243 : vector<1x1x32xf32> to vector<1x32xf32>
    %cst_137 = arith.constant dense<0.000000e+00> : vector<128xf32>
    %245 = vector.multi_reduction <add>, %240, %cst_137 [1] : vector<128x32xf32> to vector<128xf32>
    %246 = vector.shape_cast %245 : vector<128xf32> to vector<128x1xf32>
    %cst_138 = arith.constant 3.200000e+01 : f32
    %247 = vector.broadcast %cst_138 : f32 to vector<128x1xf32>
    %248 = arith.divf %246, %247 : vector<128x1xf32>
    %249 = vector.broadcast %248 : vector<128x1xf32> to vector<128x32xf32>
    %250 = arith.subf %240, %249 : vector<128x32xf32>
    %251 = arith.mulf %250, %250 : vector<128x32xf32>
    %cst_139 = arith.constant dense<0.000000e+00> : vector<128xf32>
    %252 = vector.multi_reduction <add>, %251, %cst_139 [1] : vector<128x32xf32> to vector<128xf32>
    %253 = vector.shape_cast %252 : vector<128xf32> to vector<128x1xf32>
    %cst_140 = arith.constant 3.200000e+01 : f32
    %254 = vector.broadcast %cst_140 : f32 to vector<128x1xf32>
    %255 = arith.divf %253, %254 : vector<128x1xf32>
    %cst_141 = arith.constant 9.99999974E-6 : f32
    %256 = vector.broadcast %cst_141 : f32 to vector<128x1xf32>
    %257 = arith.addf %255, %256 : vector<128x1xf32>
    %258 = math.rsqrt %257 : vector<128x1xf32>
    %259 = vector.broadcast %258 : vector<128x1xf32> to vector<128x32xf32>
    %260 = arith.mulf %250, %259 : vector<128x32xf32>
    %261 = vector.broadcast %242 : vector<1x32xf32> to vector<128x32xf32>
    %262 = arith.mulf %260, %261 : vector<128x32xf32>
    %263 = vector.broadcast %244 : vector<1x32xf32> to vector<128x32xf32>
    %264 = arith.addf %262, %263 : vector<128x32xf32>
    %c1_142 = arith.constant 1 : index
    %c0_143 = arith.constant 0 : index
    %c0_144 = arith.constant 0 : index
    %265 = vector.load %arg10[%c1_142, %c0_143, %c0_144] : memref<2x32x128xf32, #tpu.memory_space<vmem>>, vector<1x32x128xf32>
    %266 = vector.shape_cast %265 : vector<1x32x128xf32> to vector<32x128xf32>
    %cst_145 = arith.constant dense<0.000000e+00> : vector<128x128xf32>
    %267 = tpu.matmul %264, %266, %cst_145 {dimension_numbers = #tpu.dot_dimension_numbers<[1], [0], [0], [1], [0, 0, 1, 1], [], []>} : vector<128x32xf32>, vector<32x128xf32>, vector<128x128xf32> -> vector<128x128xf32>
    %c1_146 = arith.constant 1 : index
    %c0_147 = arith.constant 0 : index
    %c0_148 = arith.constant 0 : index
    %268 = vector.load %arg11[%c1_146, %c0_147, %c0_148] : memref<2x1x128xf32, #tpu.memory_space<vmem>>, vector<1x1x128xf32>
    %269 = vector.shape_cast %268 : vector<1x1x128xf32> to vector<1x128xf32>
    %270 = vector.broadcast %269 : vector<1x128xf32> to vector<128x128xf32>
    %271 = arith.addf %267, %270 : vector<128x128xf32>
    %272 = arith.mulf %271, %271 : vector<128x128xf32>
    %273 = arith.mulf %271, %272 : vector<128x128xf32>
    %cst_149 = arith.constant 4.471500e-02 : f32
    %274 = vector.broadcast %cst_149 : f32 to vector<128x128xf32>
    %275 = arith.mulf %274, %273 : vector<128x128xf32>
    %276 = arith.addf %271, %275 : vector<128x128xf32>
    %cst_150 = arith.constant 0.797884583 : f32
    %277 = vector.broadcast %cst_150 : f32 to vector<128x128xf32>
    %278 = arith.mulf %277, %276 : vector<128x128xf32>
    %279 = math.tanh %278 : vector<128x128xf32>
    %cst_151 = arith.constant 1.000000e+00 : f32
    %280 = vector.broadcast %cst_151 : f32 to vector<128x128xf32>
    %281 = arith.addf %280, %279 : vector<128x128xf32>
    %cst_152 = arith.constant 5.000000e-01 : f32
    %282 = vector.broadcast %cst_152 : f32 to vector<128x128xf32>
    %283 = arith.mulf %282, %281 : vector<128x128xf32>
    %284 = arith.mulf %271, %283 : vector<128x128xf32>
    %c1_153 = arith.constant 1 : index
    %c0_154 = arith.constant 0 : index
    %c0_155 = arith.constant 0 : index
    %285 = vector.load %arg12[%c1_153, %c0_154, %c0_155] : memref<2x128x32xf32, #tpu.memory_space<vmem>>, vector<1x128x32xf32>
    %286 = vector.shape_cast %285 : vector<1x128x32xf32> to vector<128x32xf32>
    %cst_156 = arith.constant dense<0.000000e+00> : vector<128x32xf32>
    %287 = tpu.matmul %284, %286, %cst_156 {dimension_numbers = #tpu.dot_dimension_numbers<[1], [0], [0], [1], [0, 0, 1, 1], [], []>} : vector<128x128xf32>, vector<128x32xf32>, vector<128x32xf32> -> vector<128x32xf32>
    %288 = arith.addf %240, %287 : vector<128x32xf32>
    %c1_157 = arith.constant 1 : index
    %c0_158 = arith.constant 0 : index
    %c0_159 = arith.constant 0 : index
    %289 = vector.load %arg13[%c1_157, %c0_158, %c0_159] : memref<2x1x32xf32, #tpu.memory_space<vmem>>, vector<1x1x32xf32>
    %290 = vector.shape_cast %289 : vector<1x1x32xf32> to vector<1x32xf32>
    %291 = vector.broadcast %290 : vector<1x32xf32> to vector<128x32xf32>
    %292 = arith.addf %288, %291 : vector<128x32xf32>
    %c0_160 = arith.constant 0 : index
    %c0_161 = arith.constant 0 : index
    %293 = vector.load %arg18[%c0_160, %c0_161] : memref<32x64xf32, #tpu.memory_space<vmem>>, vector<32x64xf32>
    %cst_162 = arith.constant dense<0.000000e+00> : vector<128x64xf32>
    %294 = tpu.matmul %292, %293, %cst_162 {dimension_numbers = #tpu.dot_dimension_numbers<[1], [0], [0], [1], [0, 0, 1, 1], [], []>} : vector<128x32xf32>, vector<32x64xf32>, vector<128x64xf32> -> vector<128x64xf32>
    %c0_163 = arith.constant 0 : index
    %c0_164 = arith.constant 0 : index
    %295 = vector.load %arg21[%c0_163, %c0_164] : memref<64x4xf32, #tpu.memory_space<vmem>>, vector<64x4xf32>
    %cst_165 = arith.constant dense<0.000000e+00> : vector<128x4xf32>
    %296 = tpu.matmul %294, %295, %cst_165 {dimension_numbers = #tpu.dot_dimension_numbers<[1], [0], [0], [1], [0, 0, 1, 1], [], []>} : vector<128x64xf32>, vector<64x4xf32>, vector<128x4xf32> -> vector<128x4xf32>
    %c0_166 = arith.constant 0 : index
    %c0_167 = arith.constant 0 : index
    %297 = vector.load %arg22[%c0_166, %c0_167] : memref<4x64xf32, #tpu.memory_space<vmem>>, vector<4x64xf32>
    %cst_168 = arith.constant dense<0.000000e+00> : vector<128x64xf32>
    %298 = tpu.matmul %296, %297, %cst_168 {dimension_numbers = #tpu.dot_dimension_numbers<[1], [0], [0], [1], [0, 0, 1, 1], [], []>} : vector<128x4xf32>, vector<4x64xf32>, vector<128x64xf32> -> vector<128x64xf32>
    %299 = arith.subf %294, %298 : vector<128x64xf32>
    %300 = arith.mulf %299, %299 : vector<128x64xf32>
    %c0_169 = arith.constant 0 : index
    %c0_170 = arith.constant 0 : index
    %301 = vector.load %arg21[%c0_169, %c0_170] : memref<64x4xf32, #tpu.memory_space<vmem>>, vector<64x4xf32>
    %cst_171 = arith.constant dense<0.000000e+00> : vector<128x4xf32>
    %302 = tpu.matmul %300, %301, %cst_171 {dimension_numbers = #tpu.dot_dimension_numbers<[1], [0], [0], [1], [0, 0, 1, 1], [], []>} : vector<128x64xf32>, vector<64x4xf32>, vector<128x4xf32> -> vector<128x4xf32>
    %c0_172 = arith.constant 0 : index
    %c0_173 = arith.constant 0 : index
    %303 = vector.load %arg22[%c0_172, %c0_173] : memref<4x64xf32, #tpu.memory_space<vmem>>, vector<4x64xf32>
    %cst_174 = arith.constant dense<0.000000e+00> : vector<128x64xf32>
    %304 = tpu.matmul %302, %303, %cst_174 {dimension_numbers = #tpu.dot_dimension_numbers<[1], [0], [0], [1], [0, 0, 1, 1], [], []>} : vector<128x4xf32>, vector<4x64xf32>, vector<128x64xf32> -> vector<128x64xf32>
    %cst_175 = arith.constant 9.99999974E-6 : f32
    %305 = vector.broadcast %cst_175 : f32 to vector<128x64xf32>
    %306 = arith.addf %304, %305 : vector<128x64xf32>
    %307 = math.rsqrt %306 : vector<128x64xf32>
    %308 = arith.mulf %299, %307 : vector<128x64xf32>
    %c0_176 = arith.constant 0 : index
    %c0_177 = arith.constant 0 : index
    %309 = vector.load %arg19[%c0_176, %c0_177] : memref<1x64xf32, #tpu.memory_space<vmem>>, vector<1x64xf32>
    %310 = vector.broadcast %309 : vector<1x64xf32> to vector<128x64xf32>
    %311 = arith.mulf %308, %310 : vector<128x64xf32>
    %c0_178 = arith.constant 0 : index
    %c0_179 = arith.constant 0 : index
    %312 = vector.load %arg20[%c0_178, %c0_179] : memref<1x64xf32, #tpu.memory_space<vmem>>, vector<1x64xf32>
    %313 = vector.broadcast %312 : vector<1x64xf32> to vector<128x64xf32>
    %314 = arith.addf %311, %313 : vector<128x64xf32>
    %315 = vector.extract_strided_slice %314 {offsets = [0, 0], sizes = [64, 64], strides = [1, 1]} : vector<128x64xf32> to vector<64x64xf32>
    %316 = vector.extract_strided_slice %315 {offsets = [0, 0], sizes = [32, 64], strides = [1, 1]} : vector<64x64xf32> to vector<32x64xf32>
    %317 = vector.extract_strided_slice %315 {offsets = [32, 0], sizes = [32, 64], strides = [1, 1]} : vector<64x64xf32> to vector<32x64xf32>
    %318 = tpu.concatenate %316, %317 in 1 : vector<32x64xf32>, vector<32x64xf32> -> vector<32x128xf32>
    %c0_180 = arith.constant 0 : index
    %c0_181 = arith.constant 0 : index
    %c0_182 = arith.constant 0 : index
    %319 = vector.load %arg23[%c0_180, %c0_181, %c0_182] : memref<2x32x128xf32, #tpu.memory_space<vmem>>, vector<1x32x128xf32>
    %320 = vector.shape_cast %319 : vector<1x32x128xf32> to vector<32x128xf32>
    %321 = vector.shape_cast %318 : vector<32x128xf32> to vector<1x32x128xf32>
    tpu.vector_store %arg23[%c0_180, %c0_181, %c0_182], %321 {strides = array<i32>} : memref<2x32x128xf32, #tpu.memory_space<vmem>>, vector<1x32x128xf32>,
    %322 = vector.extract_strided_slice %314 {offsets = [64, 0], sizes = [64, 64], strides = [1, 1]} : vector<128x64xf32> to vector<64x64xf32>
    %323 = vector.extract_strided_slice %322 {offsets = [0, 0], sizes = [32, 64], strides = [1, 1]} : vector<64x64xf32> to vector<32x64xf32>
    %324 = vector.extract_strided_slice %322 {offsets = [32, 0], sizes = [32, 64], strides = [1, 1]} : vector<64x64xf32> to vector<32x64xf32>
    %325 = tpu.concatenate %323, %324 in 1 : vector<32x64xf32>, vector<32x64xf32> -> vector<32x128xf32>
    %c1_183 = arith.constant 1 : index
    %c0_184 = arith.constant 0 : index
    %c0_185 = arith.constant 0 : index
    %326 = vector.load %arg23[%c1_183, %c0_184, %c0_185] : memref<2x32x128xf32, #tpu.memory_space<vmem>>, vector<1x32x128xf32>
    %327 = vector.shape_cast %326 : vector<1x32x128xf32> to vector<32x128xf32>
    %328 = vector.shape_cast %325 : vector<32x128xf32> to vector<1x32x128xf32>
    tpu.vector_store %arg23[%c1_183, %c0_184, %c0_185], %328 {strides = array<i32>} : memref<2x32x128xf32, #tpu.memory_space<vmem>>, vector<1x32x128xf32>,
    return
  }
  func.func @transform_0(%arg0: i32) -> (i32, i32, i32) {
    %c0_i32 = arith.constant 0 : i32
    %c0_i32_0 = arith.constant 0 : i32
    %c0_i32_1 = arith.constant 0 : i32
    return %arg0, %c0_i32, %c0_i32_0 : i32, i32, i32
  }
  func.func @transform_1(%arg0: i32) -> (i32, i32, i32) {
    %c0_i32 = arith.constant 0 : i32
    %c0_i32_0 = arith.constant 0 : i32
    %c0_i32_1 = arith.constant 0 : i32
    %c0_i32_2 = arith.constant 0 : i32
    return %c0_i32, %c0_i32_0, %c0_i32_1 : i32, i32, i32
  }
  func.func @transform_2(%arg0: i32) -> (i32, i32, i32) {
    %c0_i32 = arith.constant 0 : i32
    %c0_i32_0 = arith.constant 0 : i32
    %c0_i32_1 = arith.constant 0 : i32
    %c0_i32_2 = arith.constant 0 : i32
    return %c0_i32, %c0_i32_0, %c0_i32_1 : i32, i32, i32
  }
  func.func @transform_3(%arg0: i32) -> (i32, i32, i32) {
    %c0_i32 = arith.constant 0 : i32
    %c0_i32_0 = arith.constant 0 : i32
    %c0_i32_1 = arith.constant 0 : i32
    %c0_i32_2 = arith.constant 0 : i32
    return %c0_i32, %c0_i32_0, %c0_i32_1 : i32, i32, i32
  }
  func.func @transform_4(%arg0: i32) -> (i32, i32, i32) {
    %c0_i32 = arith.constant 0 : i32
    %c0_i32_0 = arith.constant 0 : i32
    %c0_i32_1 = arith.constant 0 : i32
    %c0_i32_2 = arith.constant 0 : i32
    return %c0_i32, %c0_i32_0, %c0_i32_1 : i32, i32, i32
  }
  func.func @transform_5(%arg0: i32) -> (i32, i32, i32) {
    %c0_i32 = arith.constant 0 : i32
    %c0_i32_0 = arith.constant 0 : i32
    %c0_i32_1 = arith.constant 0 : i32
    %c0_i32_2 = arith.constant 0 : i32
    return %c0_i32, %c0_i32_0, %c0_i32_1 : i32, i32, i32
  }
  func.func @transform_6(%arg0: i32) -> (i32, i32, i32) {
    %c0_i32 = arith.constant 0 : i32
    %c0_i32_0 = arith.constant 0 : i32
    %c0_i32_1 = arith.constant 0 : i32
    %c0_i32_2 = arith.constant 0 : i32
    return %c0_i32, %c0_i32_0, %c0_i32_1 : i32, i32, i32
  }
  func.func @transform_7(%arg0: i32) -> (i32, i32, i32) {
    %c0_i32 = arith.constant 0 : i32
    %c0_i32_0 = arith.constant 0 : i32
    %c0_i32_1 = arith.constant 0 : i32
    %c0_i32_2 = arith.constant 0 : i32
    return %c0_i32, %c0_i32_0, %c0_i32_1 : i32, i32, i32
  }
  func.func @transform_8(%arg0: i32) -> (i32, i32, i32) {
    %c0_i32 = arith.constant 0 : i32
    %c0_i32_0 = arith.constant 0 : i32
    %c0_i32_1 = arith.constant 0 : i32
    %c0_i32_2 = arith.constant 0 : i32
    return %c0_i32, %c0_i32_0, %c0_i32_1 : i32, i32, i32
  }
  func.func @transform_9(%arg0: i32) -> (i32, i32, i32) {
    %c0_i32 = arith.constant 0 : i32
    %c0_i32_0 = arith.constant 0 : i32
    %c0_i32_1 = arith.constant 0 : i32
    %c0_i32_2 = arith.constant 0 : i32
    return %c0_i32, %c0_i32_0, %c0_i32_1 : i32, i32, i32
  }
  func.func @transform_10(%arg0: i32) -> (i32, i32, i32) {
    %c0_i32 = arith.constant 0 : i32
    %c0_i32_0 = arith.constant 0 : i32
    %c0_i32_1 = arith.constant 0 : i32
    %c0_i32_2 = arith.constant 0 : i32
    return %c0_i32, %c0_i32_0, %c0_i32_1 : i32, i32, i32
  }
  func.func @transform_11(%arg0: i32) -> (i32, i32, i32) {
    %c0_i32 = arith.constant 0 : i32
    %c0_i32_0 = arith.constant 0 : i32
    %c0_i32_1 = arith.constant 0 : i32
    %c0_i32_2 = arith.constant 0 : i32
    return %c0_i32, %c0_i32_0, %c0_i32_1 : i32, i32, i32
  }
  func.func @transform_12(%arg0: i32) -> (i32, i32, i32) {
    %c0_i32 = arith.constant 0 : i32
    %c0_i32_0 = arith.constant 0 : i32
    %c0_i32_1 = arith.constant 0 : i32
    %c0_i32_2 = arith.constant 0 : i32
    return %c0_i32, %c0_i32_0, %c0_i32_1 : i32, i32, i32
  }
  func.func @transform_13(%arg0: i32) -> (i32, i32, i32) {
    %c0_i32 = arith.constant 0 : i32
    %c0_i32_0 = arith.constant 0 : i32
    %c0_i32_1 = arith.constant 0 : i32
    %c0_i32_2 = arith.constant 0 : i32
    return %c0_i32, %c0_i32_0, %c0_i32_1 : i32, i32, i32
  }
  func.func @transform_14(%arg0: i32) -> (i32, i32) {
    %c0_i32 = arith.constant 0 : i32
    %c0_i32_0 = arith.constant 0 : i32
    %c0_i32_1 = arith.constant 0 : i32
    return %c0_i32, %c0_i32_0 : i32, i32
  }
  func.func @transform_15(%arg0: i32) -> (i32, i32) {
    %c0_i32 = arith.constant 0 : i32
    %c0_i32_0 = arith.constant 0 : i32
    %c0_i32_1 = arith.constant 0 : i32
    return %c0_i32, %c0_i32_0 : i32, i32
  }
  func.func @transform_16(%arg0: i32) -> (i32, i32) {
    %c0_i32 = arith.constant 0 : i32
    %c0_i32_0 = arith.constant 0 : i32
    %c0_i32_1 = arith.constant 0 : i32
    return %c0_i32, %c0_i32_0 : i32, i32
  }
  func.func @transform_17(%arg0: i32) -> (i32, i32) {
    %c0_i32 = arith.constant 0 : i32
    %c0_i32_0 = arith.constant 0 : i32
    %c0_i32_1 = arith.constant 0 : i32
    return %c0_i32, %c0_i32_0 : i32, i32
  }
  func.func @transform_18(%arg0: i32) -> (i32, i32) {
    %c0_i32 = arith.constant 0 : i32
    %c0_i32_0 = arith.constant 0 : i32
    %c0_i32_1 = arith.constant 0 : i32
    return %c0_i32, %c0_i32_0 : i32, i32
  }
  func.func @transform_19(%arg0: i32) -> (i32, i32) {
    %c0_i32 = arith.constant 0 : i32
    %c0_i32_0 = arith.constant 0 : i32
    %c0_i32_1 = arith.constant 0 : i32
    return %c0_i32, %c0_i32_0 : i32, i32
  }
  func.func @transform_20(%arg0: i32) -> (i32, i32) {
    %c0_i32 = arith.constant 0 : i32
    %c0_i32_0 = arith.constant 0 : i32
    %c0_i32_1 = arith.constant 0 : i32
    return %c0_i32, %c0_i32_0 : i32, i32
  }
  func.func @transform_21(%arg0: i32) -> (i32, i32) {
    %c0_i32 = arith.constant 0 : i32
    %c0_i32_0 = arith.constant 0 : i32
    %c0_i32_1 = arith.constant 0 : i32
    return %c0_i32, %c0_i32_0 : i32, i32
  }
  func.func @transform_22(%arg0: i32) -> (i32, i32, i32) {
    %c0_i32 = arith.constant 0 : i32
    %c0_i32_0 = arith.constant 0 : i32
    %c0_i32_1 = arith.constant 0 : i32
    return %arg0, %c0_i32, %c0_i32_0 : i32, i32, i32
  }
}

</mosaic_0001>

<bundles_post_ra>
// kernel: _lambda_.1
= control target key start
LH: loop header
LB: loop body
LE: loop exit
PB: predicated region body
PF: predicated region fallthrough
CT: control target
= control target key end

     0   :  { %s16090_s0 = inlined_call_operand.vmem [shape: f32[2,64,32], index: 0, kind: input, shape index: {}]   ;;  %s16091_s1 = inlined_call_operand.vmem [shape: f32[2,1,32], index: 1, kind: input, shape index: {}, may-alias: {1,7}]   ;;  %s16092_s2 = inlined_call_operand.vmem [shape: f32[2,1,32], index: 2, kind: input, shape index: {}, may-alias: {2,6,8,12}]   ;;  %s16093_s3 = inlined_call_operand.hbm [shape: f32[2,32,96], index: 3, kind: input, shape index: {}]   ;;  %s16094_s4 = inlined_call_operand.vmem [shape: f32[2,1,96], index: 4, kind: input, shape index: {}]   ;;  %s16095_s5 = inlined_call_operand.vmem [shape: f32[2,32,32], index: 5, kind: input, shape index: {}]   ;;  %s16096_s6 = inlined_call_operand.vmem [shape: f32[2,1,32], index: 6, kind: input, shape index: {}, may-alias: {2,6,8,12}]   ;;  %s16097_s7 = inlined_call_operand.vmem [shape: f32[2,1,32], index: 7, kind: input, shape index: {}, may-alias: {1,7}]   ;;  %s16098_s8 = inlined_call_operand.vmem [shape: f32[2,1,32], index: 8, kind: input, shape index: {}, may-alias: {2,6,8,12}]   ;;  %s16099_s9 = inlined_call_operand.vmem [shape: f32[2,32,128], index: 9, kind: input, shape index: {}]   ;;  %s16100_s10 = inlined_call_operand.vmem [shape: f32[2,1,128], index: 10, kind: input, shape index: {}]   ;;  %s16101_s11 = inlined_call_operand.hbm [shape: f32[2,128,32], index: 11, kind: input, shape index: {}]   ;;  %s16102_s12 = inlined_call_operand.vmem [shape: f32[2,1,32], index: 12, kind: input, shape index: {}, may-alias: {2,6,8,12}]   ;;  %s16103_s13 = inlined_call_operand.hbm [shape: f32[2,64,256], index: 13, kind: input, shape index: {}]   ;;  %s16104_s14 = inlined_call_operand.hbm [shape: f32[256,32], index: 14, kind: input, shape index: {}]   ;;  %s16105_s15 = inlined_call_operand.hbm [shape: f32[256,4], index: 15, kind: input, shape index: {}]   ;;  %s16106_s16 = inlined_call_operand.vmem [shape: f32[4,256], index: 16, kind: input, shape index: {}]   ;;  %s16107_s17 = inlined_call_operand.vmem [shape: f32[32,64], index: 17, kind: input, shape index: {}]   ;;  %s16108_s18 = inlined_call_operand.vmem [shape: f32[1,64], index: 18, kind: input, shape index: {}]   ;;  %s16109_s19 = inlined_call_operand.vmem [shape: f32[1,64], index: 19, kind: input, shape index: {}]   ;;  %s16110_s20 = inlined_call_operand.vmem [shape: f32[64,4], index: 20, kind: input, shape index: {}]   ;;  %s16111_s21 = inlined_call_operand.vmem [shape: f32[4,64], index: 21, kind: input, shape index: {}]   ;;  %s16112_s22 = inlined_call_operand.vmem [shape: f32[2,32,128], index: 22, kind: output, shape index: {}]  }
   0x1   :  { %16329 = sst [smem:[#allocation105_spill]] %s16090_s0 }
   0x2   :  { %16330 = sst [smem:[#allocation106_spill]] %s16091_s1 }
   0x3   :  { %16331 = sst [smem:[#allocation107_spill]] %s16092_s2 }
   0x4   :  { %16332 = sst [smem:[#allocation108_spill]] %s16093_s3 }
   0x5   :  { %16333 = sst [smem:[#allocation109_spill]] %s16094_s4 }
   0x6   :  { %16334 = sst [smem:[#allocation110_spill]] %s16095_s5 }
   0x7   :  { %16335 = sst [smem:[#allocation111_spill]] %s16096_s6 }
   0x8   :  { %16336 = sst [smem:[#allocation112_spill]] %s16112_s22 }
   0x9   :  { %27 = vsyncpa [#allocation3], 0 }
   0xa   :  { %28 = vsyncpa [#allocation5], 0 }
   0xb   :  { %29 = vsyncpa [#allocation8], 0  ;;  %s12085_s3 = smov [#allocation4]   ;;  %s12086_s29 = smov [#allocation7]  }
   0xc   :  { %s67_s28 = sshll.u32 %s12085_s3, 4  ;;  %s93_s30 = sshll.u32 %s12086_s29, 4  ;;  %s68_s28 = int_to_ptr.vmem [resolvable:$true] %s67_s28  ;;  %s12213_s30 = int_to_ptr.vmem [resolvable:$true] %s93_s30 }
   0xd   :  { %s11969_s23 = scalar_lea.hbm %s16101_s11, 4096 }
   0xe   :  { %p11970_p0 = scmp.ne.s32.totalorder %s16101_s11, %s11969_s23  ;;  %p11973_p1 = scmp.lt.u32.totalorder %s11969_s23, %s16101_s11 }
  0x10   :  { %p11975_p2 = pnand %p11973_p1, %p11970_p0 }
  0x12   :  { %11978 = shalt.err (!%p11975_p2)
}
  0x13   :  { %s11979_s25 = scalar_lea.vmem %s68_s28, 4096  ;;  %p11984_p4 = scmp.lt.s32.totalorder %s68_s28, %s68_s28 }
  0x14   :  { %p11980_p3 = scmp.ne.s32.totalorder %s68_s28, %s11979_s25  ;;  %p11985_p5 = scmp.lt.s32.totalorder %s11979_s25, %s11979_s25 }
  0x16   :  { %p11986_p6 = por %p11985_p5, %p11984_p4 }
  0x18   :  { %p11987_p7 = pnand %p11986_p6, %p11980_p3 }
  0x1a   :  { %11990 = shalt.err (!%p11987_p7)
}
  0x1b   :  { %s12087_s26 = smov 128   ;;  %s12088_s2 = smov 8  }
  0x1c   :  { %73 = dma.hbm_to_vmem [thread:$0]  %s16101_s11, 4096, %s68_s28, [#allocation5], %s12087_s26, %s12087_s26, %s12088_s2  }
  0x1d   :  { %s11991_s0 = scalar_lea.hbm %s16104_s14, 4096 }
  0x1e   :  { %p11992_p8 = scmp.ne.s32.totalorder %s16104_s14, %s11991_s0  ;;  %p11995_p9 = scmp.lt.u32.totalorder %s11991_s0, %s16104_s14 }
  0x20   :  { %p11997_p10 = pnand %p11995_p9, %p11992_p8 }
  0x22   :  { %12000 = shalt.err (!%p11997_p10)
}
  0x23   :  { %s12001_s6 = scalar_lea.vmem %s12213_s30, 4096  ;;  %p12006_p12 = scmp.lt.s32.totalorder %s12213_s30, %s12213_s30 }
  0x24   :  { %p12002_p11 = scmp.ne.s32.totalorder %s12213_s30, %s12001_s6  ;;  %p12007_p13 = scmp.lt.s32.totalorder %s12001_s6, %s12001_s6 }
  0x26   :  { %p12008_p0 = por %p12007_p13, %p12006_p12 }
  0x28   :  { %p12009_p1 = pnand %p12008_p0, %p12002_p11 }
  0x2a   :  { %12012 = shalt.err (!%p12009_p1)
}
  0x2b   :  { %99 = dma.hbm_to_vmem [thread:$0]  %s16104_s14, 4096, %s12213_s30, [#allocation8], %s12087_s26, %s12087_s26, %s12088_s2  }
  0x2c   :  { %s12089_s25 = smov [#allocation2]   ;;  %s12090_s3 = smov [#allocation6]  }
  0x2d   :  { %s41_s27 = sshll.u32 %s12089_s25, 4  ;;  %s81_s29 = sshll.u32 %s12090_s3, 4  ;;  %s42_s27 = int_to_ptr.vmem [resolvable:$true] %s41_s27  ;;  %s12250_s29 = int_to_ptr.vmem [resolvable:$true] %s81_s29 }
  0x2e   :  { %s16337_s23 = sld [smem:[#allocation108_spill]] }
  0x34   :  { %s12013_s1 = scalar_lea.hbm %s16337_s23, 1024 }
  0x35   :  { %p12014_p2 = scmp.ne.s32.totalorder %s16337_s23, %s12013_s1  ;;  %p12017_p3 = scmp.lt.u32.totalorder %s12013_s1, %s16337_s23 }
  0x37   :  { %p12019_p4 = pnand %p12017_p3, %p12014_p2 }
  0x39   :  { %12022 = shalt.err (!%p12019_p4)
}
  0x3a   :  { %s12023_s14 = scalar_lea.vmem %s42_s27, 1024  ;;  %p12028_p6 = scmp.lt.s32.totalorder %s42_s27, %s42_s27 }
  0x3b   :  { %p12024_p5 = scmp.ne.s32.totalorder %s42_s27, %s12023_s14  ;;  %p12029_p7 = scmp.lt.s32.totalorder %s12023_s14, %s12023_s14 }
  0x3d   :  { %p12030_p8 = por %p12029_p7, %p12028_p6 }
  0x3f   :  { %p12031_p9 = pnand %p12030_p8, %p12024_p5 }
  0x41   :  { %12034 = shalt.err (!%p12031_p9)
}
  0x42   :  { %47 = dma.hbm_to_vmem [thread:$0]  %s16337_s23, 1024, %s42_s27, [#allocation3], %s12087_s26, %s12087_s26, %s12088_s2  }
  0x43   :  { %s12035_s22 = scalar_lea.hbm %s16103_s13, 4096 }
  0x44   :  { %p12036_p10 = scmp.ne.s32.totalorder %s16103_s13, %s12035_s22  ;;  %p12039_p11 = scmp.lt.u32.totalorder %s12035_s22, %s16103_s13 }
  0x46   :  { %p12041_p12 = pnand %p12039_p11, %p12036_p10 }
  0x48   :  { %12044 = shalt.err (!%p12041_p12)
}
  0x49   :  { %s12045_s5 = scalar_lea.vmem %s12250_s29, 4096  ;;  %p12050_p0 = scmp.lt.s32.totalorder %s12250_s29, %s12250_s29 }
  0x4a   :  { %p12046_p13 = scmp.ne.s32.totalorder %s12250_s29, %s12045_s5  ;;  %p12051_p1 = scmp.lt.s32.totalorder %s12045_s5, %s12045_s5 }
  0x4c   :  { %p12052_p2 = por %p12051_p1, %p12050_p0 }
  0x4e   :  { %p12053_p3 = pnand %p12052_p2, %p12046_p13 }
  0x50   :  { %12056 = shalt.err (!%p12053_p3)
}
  0x51   :  { %s12091_s27 = smov 256   ;;  %s12092_s23 = smov 16  }
  0x52   :  { %87 = dma.hbm_to_vmem [thread:$0]  %s16103_s13, 4096, %s12250_s29, [#allocation5], %s12091_s27, %s12091_s27, %s12092_s23  }
  0x53   :  { %s12093_s14 = smov [#allocation9]   ;;  %s12057_s25 = scalar_lea.hbm %s16105_s15, 4096 }
  0x54   :  { %s105_s30 = sshll.u32 %s12093_s14, 4  ;;  %p12058_p4 = scmp.ne.s32.totalorder %s16105_s15, %s12057_s25  ;;  %s106_s30 = int_to_ptr.vmem [resolvable:$true] %s105_s30 }
  0x55   :  { %p12061_p5 = scmp.lt.u32.totalorder %s12057_s25, %s16105_s15 }
  0x57   :  { %p12063_p6 = pnand %p12061_p5, %p12058_p4 }
  0x59   :  { %12066 = shalt.err (!%p12063_p6)
}
  0x5a   :  { %s12067_s1 = scalar_lea.vmem %s106_s30, 4096  ;;  %p12072_p8 = scmp.lt.s32.totalorder %s106_s30, %s106_s30 }
  0x5b   :  { %p12068_p7 = scmp.ne.s32.totalorder %s106_s30, %s12067_s1  ;;  %p12073_p9 = scmp.lt.s32.totalorder %s12067_s1, %s12067_s1 }
  0x5d   :  { %p12074_p10 = por %p12073_p9, %p12072_p8 }
  0x5f   :  { %p12075_p11 = pnand %p12074_p10, %p12068_p7 }
  0x61   :  { %12078 = shalt.err (!%p12075_p11)
}
  0x62   :  { %111 = dma.hbm_to_vmem [thread:$0]  %s16105_s15, 4096, %s106_s30, [#allocation8], %s12087_s26, %s12087_s26, %s12088_s2  }
  0x63   :  { %12079 = dma.done.wait [#allocation3], 1024  }
  0x64   :  { %12080 = vsyncadd [#allocation3], 4294966272 }
  0x65   :  { %12081 = dma.done.wait [#allocation5], 8192  }
  0x66   :  { %12082 = vsyncadd [#allocation5], 4294959104 }
  0x67   :  { %12083 = dma.done.wait [#allocation8], 8192  }
  0x68   :  { %12084 = vsyncadd [#allocation8], 4294959104  ;;  %vm189_vm0 = vcmask 261120   ;;  %s16338_s23 = sld [smem:[#allocation105_spill]]  ;;  %v443_v56 = vld [vmem:[#allocation2] sm:$0xff]  ;;  %v444_v57 = vld [vmem:[#allocation2 + $0x8] sm:$0xff] }
  0x69   :  { %v10209_v58 = vpack.c.bf16 %v444_v57, %v443_v56  ;;  %v445_v59 = vld [vmem:[#allocation2 + $0x10] sm:$0xff]  ;;  %v446_v60 = vld [vmem:[#allocation2 + $0x18] sm:$0xff]  ;;  %v172_v62 = vld [vmem:[#allocation7 + $0x88] sm:$0xff]  ;;  %s12094_s1 = smov 32   ;;  %s16339_s5 = sld [smem:[#allocation106_spill]]  ;;  %vm1501_vm2 = vcmask 1043456  }
  0x6a   :  { %v10213_v61 = vpack.c.bf16 %v446_v60, %v445_v59  ;;  %v171_v63 = vld [vmem:[#allocation7 + $0x80] sm:$0xff]  ;;  %s16340_s6 = sld [smem:[#allocation107_spill]]  ;;  %s16363_s15 = sld [smem:[#allocation109_spill]]  ;;  %vm12668_vm1 = vmpackc.low %vm189_vm0, %vm189_vm0  ;;  %vm1476_vm3 = vcmask 31744   ;;  %vm7456_vm4 = vcmask 523264  }
  0x6b   :  { %10210 = vmatprep.subr.bf16.mxu0 %v10209_v58  ;;  %s12095_s26 = smov 96   ;;  %s12096_s3 = smov 64  }
  0x6c   :  { %10212 = vmatpush3.bf16.msra.mxu0 %v10209_v58  ;;  %s16477_s29 = sld [smem:[#allocation110_spill]]  ;;  %s16478_s22 = sld [smem:[#allocation111_spill]] }
  0x6d   :  { %10214 = vmatprep.subr.bf16.mxu0 %v10213_v61  ;;  %s16663_s13 = sld [smem:[#allocation112_spill]] }
  0x6e   :  { %v139_v0 = vld [vmem:[%s16338_s23] sm:$0xff]  ;;  %v141_v1 = vld [vmem:[%s16338_s23 + $0x10] sm:$0xff]  ;;  %v140_v2 = vld [vmem:[%s16338_s23 + $0x8] sm:$0xff] }
  0x6f   :  { %v190_v3 = vsel %vm189_vm0, %v139_v0, 0.0  ;;  %v196_v4 = vsel %vm189_vm0, %v141_v1, 0.0  ;;  %v142_v5 = vld [vmem:[%s16338_s23 + $0x18] sm:$0xff]  ;;  %v193_v6 = vsel %vm189_vm0, %v140_v2, 0.0  ;;  %v143_v8 = vld [vmem:[%s16338_s23 + $0x20] sm:$0xff]  ;;  %v144_v9 = vld [vmem:[%s16338_s23 + $0x28] sm:$0xff] }
  0x70   :  { %191 = vadd.xlane.f32.xlu0 %v190_v3  ;;  %197 = vadd.xlane.f32.xlu1 %v196_v4  ;;  %v199_v7 = vsel %vm189_vm0, %v142_v5, 0.0  ;;  %v202_v10 = vsel %vm189_vm0, %v143_v8, 0.0  ;;  %v205_v11 = vsel %vm189_vm0, %v144_v9, 0.0  ;;  %v145_v12 = vld [vmem:[%s16338_s23 + $0x30] sm:$0xff]  ;;  %v146_v13 = vld [vmem:[%s16338_s23 + $0x38] sm:$0xff] }
  0x71   :  { %v208_v14 = vsel %vm189_vm0, %v145_v12, 0.0  ;;  %v211_v15 = vsel %vm189_vm0, %v146_v13, 0.0  ;;  %10216 = vmatpush3.bf16.msra.mxu0 %v10213_v61  ;;  %v157_v3 = vld [vmem:[#allocation7 + $0x10] sm:$0xff]  ;;  %v174_v4 = vld [vmem:[#allocation7 + $0x98] sm:$0xff]  ;;  %v12406_v60 = vld [vmem:[%s16339_s5] ss:$0 sm:$0xff] }
  0x74   :  { %194 = vadd.xlane.f32.xlu0 %v193_v6  ;;  %200 = vadd.xlane.f32.xlu1 %v199_v7  ;;  %v158_v6 = vld [vmem:[#allocation7 + $0x18] sm:$0xff]  ;;  %v159_v7 = vld [vmem:[#allocation7 + $0x20] sm:$0xff] }
  0x78   :  { %203 = vadd.xlane.f32.xlu0 %v202_v10  ;;  %206 = vadd.xlane.f32.xlu1 %v205_v11  ;;  %v160_v10 = vld [vmem:[#allocation7 + $0x28] sm:$0xff]  ;;  %v161_v11 = vld [vmem:[#allocation7 + $0x30] sm:$0xff] }
  0x7c   :  { %209 = vadd.xlane.f32.xlu0 %v208_v14  ;;  %212 = vadd.xlane.f32.xlu1 %v211_v15  ;;  %v162_v14 = vld [vmem:[#allocation7 + $0x38] sm:$0xff]  ;;  %v163_v15 = vld [vmem:[#allocation7 + $0x40] sm:$0xff] }
  0xfd   :  { %v192_v16 = vpop.xlane.xlu0 %191  ;;  %v198_v17 = vpop.xlane.xlu1 %197 }
  0xfe   :  { %v239_v18 = vmul.f32 0.03125, %v192_v16  ;;  %v241_v19 = vmul.f32 0.03125, %v198_v17  ;;  %v180_v16 = vld [vmem:[#allocation7 + $0xc8] sm:$0xff]  ;;  %v181_v17 = vld [vmem:[#allocation7 + $0xd0] sm:$0xff] }
 0x100   :  { %v12331_v20 = vsub.f32 %v139_v0, %v239_v18  ;;  %v12333_v21 = vsub.f32 %v141_v1, %v241_v19  ;;  %v155_v0 = vld [vmem:[#allocation7] sm:$0xff]  ;;  %v173_v1 = vld [vmem:[#allocation7 + $0x90] sm:$0xff]  ;;  %v164_v18 = vld [vmem:[#allocation7 + $0x48] sm:$0xff] }
 0x101   :  { %v195_v22 = vpop.xlane.xlu0 %194  ;;  %v201_v23 = vpop.xlane.xlu1 %200  ;;  %v165_v19 = vld [vmem:[#allocation7 + $0x50] sm:$0xff] }
 0x102   :  { %v240_v24 = vmul.f32 0.03125, %v195_v22  ;;  %v242_v25 = vmul.f32 0.03125, %v201_v23  ;;  %v271_v26 = vmul.f32 %v12331_v20, %v12331_v20  ;;  %v273_v27 = vmul.f32 %v12333_v21, %v12333_v21  ;;  %v182_v22 = vld [vmem:[#allocation7 + $0xd8] sm:$0xff]  ;;  %v183_v23 = vld [vmem:[#allocation7 + $0xe0] sm:$0xff] }
 0x104   :  { %v12339_v28 = vsub.f32 %v140_v2, %v240_v24  ;;  %v12341_v29 = vsub.f32 %v142_v5, %v242_v25  ;;  %v287_v30 = vsel %vm189_vm0, %v271_v26, 0.0  ;;  %v293_v33 = vsel %vm189_vm0, %v273_v27, 0.0  ;;  %v156_v2 = vld [vmem:[#allocation7 + $0x8] sm:$0xff]  ;;  %v175_v5 = vld [vmem:[#allocation7 + $0xa0] sm:$0xff]  ;;  %v166_v24 = vld [vmem:[#allocation7 + $0x58] sm:$0xff] }
 0x105   :  { %288 = vadd.xlane.f32.xlu0 %v287_v30  ;;  %v204_v31 = vpop.xlane.xlu0 %203  ;;  %v207_v32 = vpop.xlane.xlu1 %206  ;;  %v167_v25 = vld [vmem:[#allocation7 + $0x60] sm:$0xff]  ;;  %v184_v26 = vld [vmem:[#allocation7 + $0xe8] sm:$0xff]  ;;  %v185_v27 = vld [vmem:[#allocation7 + $0xf0] sm:$0xff] }
 0x106   :  { %v243_v34 = vmul.f32 0.03125, %v204_v31  ;;  %v244_v35 = vmul.f32 0.03125, %v207_v32  ;;  %v272_v36 = vmul.f32 %v12339_v28, %v12339_v28  ;;  %v274_v37 = vmul.f32 %v12341_v29, %v12341_v29  ;;  %v168_v30 = vld [vmem:[#allocation7 + $0x68] sm:$0xff]  ;;  %v169_v31 = vld [vmem:[#allocation7 + $0x70] sm:$0xff]  ;;  %v186_v32 = vld [vmem:[#allocation7 + $0xf8] sm:$0xff] }
 0x108   :  { %v12349_v38 = vsub.f32 %v143_v8, %v243_v34  ;;  %v12351_v39 = vsub.f32 %v144_v9, %v244_v35  ;;  %v290_v40 = vsel %vm189_vm0, %v272_v36, 0.0  ;;  %v296_v43 = vsel %vm189_vm0, %v274_v37, 0.0  ;;  %v176_v8 = vld [vmem:[#allocation7 + $0xa8] sm:$0xff]  ;;  %v177_v9 = vld [vmem:[#allocation7 + $0xb0] sm:$0xff] }
 0x109   :  { %294 = vadd.xlane.f32.xlu0 %v293_v33  ;;  %291 = vadd.xlane.f32.xlu1 %v290_v40  ;;  %v210_v41 = vpop.xlane.xlu0 %209  ;;  %v213_v42 = vpop.xlane.xlu1 %212  ;;  %v170_v33 = vld [vmem:[#allocation7 + $0x78] sm:$0xff] }
 0x10a   :  { %v245_v44 = vmul.f32 0.03125, %v210_v41  ;;  %v246_v45 = vmul.f32 0.03125, %v213_v42  ;;  %v275_v46 = vmul.f32 %v12349_v38, %v12349_v38  ;;  %v276_v47 = vmul.f32 %v12351_v39, %v12351_v39 }
 0x10c   :  { %v12359_v48 = vsub.f32 %v145_v12, %v245_v44  ;;  %v12361_v49 = vsub.f32 %v146_v13, %v246_v45  ;;  %v299_v50 = vsel %vm189_vm0, %v275_v46, 0.0  ;;  %v302_v51 = vsel %vm189_vm0, %v276_v47, 0.0  ;;  %v178_v12 = vld [vmem:[#allocation7 + $0xb8] sm:$0xff]  ;;  %v179_v13 = vld [vmem:[#allocation7 + $0xc0] sm:$0xff] }
 0x10d   :  { %297 = vadd.xlane.f32.xlu1 %v296_v43  ;;  %300 = vadd.xlane.f32.xlu0 %v299_v50 }
 0x10e   :  { %v277_v52 = vmul.f32 %v12359_v48, %v12359_v48  ;;  %v278_v53 = vmul.f32 %v12361_v49, %v12361_v49 }
 0x110   :  { %v305_v54 = vsel %vm189_vm0, %v277_v52, 0.0  ;;  %v308_v55 = vsel %vm189_vm0, %v278_v53, 0.0 }
 0x111   :  { %303 = vadd.xlane.f32.xlu1 %v302_v51  ;;  %306 = vadd.xlane.f32.xlu0 %v305_v54 }
 0x115   :  { %309 = vadd.xlane.f32.xlu1 %v308_v55 }
 0x126   :  { %729 = vrot.lane.b32.xlu1 %v172_v62, %s12094_s1 }
 0x127   :  { %727 = vrot.lane.b32.xlu0 %v171_v63, %s12094_s1 }
 0x12a   :  { %695 = vrot.lane.b32.xlu1 %v155_v0, %s12094_s1  ;;  %v12412_v0 = vld [vmem:[%s16340_s6] ss:$0 sm:$0xff] }
 0x12b   :  { %731 = vrot.lane.b32.xlu0 %v173_v1, %s12094_s1 }
 0x12e   :  { %697 = vrot.lane.b32.xlu1 %v156_v2, %s12094_s1 }
 0x12f   :  { %699 = vrot.lane.b32.xlu0 %v157_v3, %s12094_s1 }
 0x132   :  { %733 = vrot.lane.b32.xlu1 %v174_v4, %s12094_s1 }
 0x133   :  { %735 = vrot.lane.b32.xlu0 %v175_v5, %s12094_s1 }
 0x136   :  { %701 = vrot.lane.b32.xlu1 %v158_v6, %s12094_s1 }
 0x137   :  { %703 = vrot.lane.b32.xlu0 %v159_v7, %s12094_s1 }
 0x13a   :  { %737 = vrot.lane.b32.xlu1 %v176_v8, %s12094_s1 }
 0x13b   :  { %739 = vrot.lane.b32.xlu0 %v177_v9, %s12094_s1 }
 0x13e   :  { %705 = vrot.lane.b32.xlu1 %v160_v10, %s12094_s1 }
 0x13f   :  { %707 = vrot.lane.b32.xlu0 %v161_v11, %s12094_s1 }
 0x142   :  { %741 = vrot.lane.b32.xlu1 %v178_v12, %s12094_s1 }
 0x143   :  { %743 = vrot.lane.b32.xlu0 %v179_v13, %s12094_s1 }
 0x146   :  { %709 = vrot.lane.b32.xlu1 %v162_v14, %s12094_s1 }
 0x147   :  { %711 = vrot.lane.b32.xlu0 %v163_v15, %s12094_s1 }
 0x14a   :  { %745 = vrot.lane.b32.xlu1 %v180_v16, %s12094_s1 }
 0x14b   :  { %747 = vrot.lane.b32.xlu0 %v181_v17, %s12094_s1 }
 0x14e   :  { %713 = vrot.lane.b32.xlu1 %v164_v18, %s12094_s1 }
 0x14f   :  { %715 = vrot.lane.b32.xlu0 %v165_v19, %s12094_s1 }
 0x152   :  { %749 = vrot.lane.b32.xlu1 %v182_v22, %s12094_s1 }
 0x153   :  { %751 = vrot.lane.b32.xlu0 %v183_v23, %s12094_s1 }
 0x156   :  { %717 = vrot.lane.b32.xlu1 %v166_v24, %s12094_s1 }
 0x157   :  { %719 = vrot.lane.b32.xlu0 %v167_v25, %s12094_s1 }
 0x15a   :  { %753 = vrot.lane.b32.xlu1 %v184_v26, %s12094_s1 }
 0x15b   :  { %755 = vrot.lane.b32.xlu0 %v185_v27, %s12094_s1 }
 0x15e   :  { %721 = vrot.lane.b32.xlu1 %v168_v30, %s12094_s1 }
 0x15f   :  { %723 = vrot.lane.b32.xlu0 %v169_v31, %s12094_s1 }
 0x162   :  { %757 = vrot.lane.b32.xlu1 %v186_v32, %s12094_s1 }
 0x166   :  { %725 = vrot.lane.b32.xlu1 %v170_v33, %s12094_s1 }
 0x192   :  { %v289_v34 = vpop.xlane.xlu0 %288 }
 0x193   :  { %v335_v35 = vmul.f32 0.03125, %v289_v34 }
 0x195   :  { %v351_v36 = vadd.f32 1e-05, %v335_v35 }
 0x196   :  { %v292_v37 = vpop.xlane.xlu1 %291  ;;  %v295_v40 = vpop.xlane.xlu0 %294 }
 0x197   :  { %11465 = vrsqrt.f32 %v351_v36  ;;  %v336_v41 = vmul.f32 0.03125, %v292_v37  ;;  %v337_v42 = vmul.f32 0.03125, %v295_v40 }
 0x199   :  { %v352_v43 = vadd.f32 1e-05, %v336_v41  ;;  %v353_v44 = vadd.f32 1e-05, %v337_v42 }
 0x19a   :  { %v298_v45 = vpop.xlane.xlu1 %297  ;;  %v301_v46 = vpop.xlane.xlu0 %300 }
 0x19b   :  { %11467 = vrsqrt.f32 %v352_v43  ;;  %v338_v47 = vmul.f32 0.03125, %v298_v45  ;;  %v339_v50 = vmul.f32 0.03125, %v301_v46 }
 0x19c   :  { %11469 = vrsqrt.f32 %v353_v44 }
 0x19d   :  { %v354_v51 = vadd.f32 1e-05, %v338_v47  ;;  %v355_v52 = vadd.f32 1e-05, %v339_v50 }
 0x19e   :  { %v304_v53 = vpop.xlane.xlu1 %303  ;;  %v307_v54 = vpop.xlane.xlu0 %306 }
 0x19f   :  { %11471 = vrsqrt.f32 %v354_v51  ;;  %v340_v55 = vmul.f32 0.03125, %v304_v53  ;;  %v341_v56 = vmul.f32 0.03125, %v307_v54  ;;  %v8401_v54 = vld [vmem:[%s16363_s15] ss:$0 sm:$0xff] }
 0x1a0   :  { %11473 = vrsqrt.f32 %v355_v52 }
 0x1a1   :  { %v11466_v57 = vpop.eup %11465  ;;  %v356_v58 = vadd.f32 1e-05, %v340_v55  ;;  %v357_v59 = vadd.f32 1e-05, %v341_v56 }
 0x1a2   :  { %v310_v61 = vpop.xlane.xlu1 %309  ;;  %v383_v62 = vmul.f32 %v11466_v57, %v12331_v20  ;;  %v12451_v32 = vpop.permute.xlu0 %727 }
 0x1a3   :  { %11475 = vrsqrt.f32 %v356_v58  ;;  %v342_v63 = vmul.f32 0.03125, %v310_v61  ;;  %16344 = vst [vmem:[#allocation16_spill] sm:$0xff] %v12451_v32 }
 0x1a4   :  { %11477 = vrsqrt.f32 %v357_v59  ;;  %v405_v1 = vmul.f32 %v12406_v60, %v383_v62 }
 0x1a5   :  { %v11468_v2 = vpop.eup %11467  ;;  %v358_v3 = vadd.f32 1e-05, %v342_v63 }
 0x1a6   :  { %v11470_v4 = vpop.eup %11469  ;;  %v427_v5 = vadd.f32 %v12412_v0, %v405_v1  ;;  %v384_v6 = vmul.f32 %v11468_v2, %v12339_v28  ;;  %v12445_v27 = vpop.permute.xlu1 %729 }
 0x1a7   :  { %11479 = vrsqrt.f32 %v358_v3  ;;  %v385_v20 = vmul.f32 %v11470_v4, %v12333_v21  ;;  %16341 = vst [vmem:[#allocation13_spill] sm:$0xff] %v12445_v27  ;;  %v12455_v33 = vpop.permute.xlu0 %731 }
 0x1a8   :  { %9749 = vmatprep.mubr.msk.f32.mxu0 %vm189_vm0, %v427_v5  ;;  %v406_v7 = vmul.f32 %v12406_v60, %v384_v6  ;;  %16346 = vst [vmem:[#allocation18_spill] sm:$0xff] %v12455_v33 }
 0x1a9   :  { %v11472_v8 = vpop.eup %11471  ;;  %v407_v9 = vmul.f32 %v12406_v60, %v385_v20 }
 0x1aa   :  { %v11474_v10 = vpop.eup %11473  ;;  %v428_v11 = vadd.f32 %v12412_v0, %v406_v7  ;;  %v386_v12 = vmul.f32 %v11472_v8, %v12341_v29  ;;  %v12447_v30 = vpop.permute.xlu1 %695 }
 0x1ab   :  { %v429_v13 = vadd.f32 %v12412_v0, %v407_v9  ;;  %v387_v14 = vmul.f32 %v11474_v10, %v12349_v38  ;;  %16342 = vst [vmem:[#allocation14_spill] sm:$0xff] %v12447_v30  ;;  %v12459_v35 = vpop.permute.xlu0 %699 }
 0x1ac   :  { %9750 = vmatmul.mubr.msk.f32.vlgmr.msra.gmra.mrb[0].mxu0 %vm189_vm0, %v428_v11  ;;  %v408_v21 = vmul.f32 %v12406_v60, %v386_v12  ;;  %16348 = vst [vmem:[#allocation20_spill] sm:$0xff] %v12459_v35 }
 0x1ad   :  { %v11476_v28 = vpop.eup %11475  ;;  %9752 = vmatprep.mubr.msk.f32.mxu0 %vm189_vm0, %v429_v13  ;;  %v409_v15 = vmul.f32 %v12406_v60, %v387_v14 }
 0x1ae   :  { %v11478_v16 = vpop.eup %11477  ;;  %v430_v17 = vadd.f32 %v12412_v0, %v408_v21  ;;  %v388_v18 = vmul.f32 %v11476_v28, %v12351_v39  ;;  %v12449_v31 = vpop.permute.xlu1 %697 }
 0x1af   :  { %v431_v29 = vadd.f32 %v12412_v0, %v409_v15  ;;  %v389_v19 = vmul.f32 %v11478_v16, %v12359_v48  ;;  %16343 = vst [vmem:[#allocation15_spill] sm:$0xff] %v12449_v31  ;;  %v12463_v37 = vpop.permute.xlu0 %735 }
 0x1b0   :  { %9753 = vmatmul.mubr.msk.f32.gmra.mrb[2].mxu0 %vm189_vm0, %v430_v17  ;;  %v410_v38 = vmul.f32 %v12406_v60, %v388_v18  ;;  %16350 = vst [vmem:[#allocation22_spill] sm:$0xff] %v12463_v37 }
 0x1b1   :  { %v11480_v22 = vpop.eup %11479  ;;  %9755 = vmatprep.mubr.msk.f32.mxu0 %vm189_vm0, %v431_v29  ;;  %v411_v23 = vmul.f32 %v12406_v60, %v389_v19 }
 0x1b2   :  { %v432_v24 = vadd.f32 %v12412_v0, %v410_v38  ;;  %v390_v25 = vmul.f32 %v11480_v22, %v12361_v49  ;;  %v12453_v49 = vpop.permute.xlu1 %733 }
 0x1b3   :  { %v433_v26 = vadd.f32 %v12412_v0, %v411_v23  ;;  %16345 = vst [vmem:[#allocation17_spill] sm:$0xff] %v12453_v49  ;;  %v12467_v41 = vpop.permute.xlu0 %703 }
 0x1b4   :  { %9756 = vmatmul.mubr.msk.f32.gmra.mrb[4].mxu0 %vm189_vm0, %v432_v24  ;;  %v412_v39 = vmul.f32 %v12406_v60, %v390_v25  ;;  %16352 = vst [vmem:[#allocation24_spill] sm:$0xff] %v12467_v41 }
 0x1b5   :  { %9758 = vmatprep.mubr.msk.f32.mxu0 %vm189_vm0, %v433_v26 }
 0x1b6   :  { %v434_v48 = vadd.f32 %v12412_v0, %v412_v39  ;;  %v12457_v34 = vpop.permute.xlu1 %701 }
 0x1b7   :  { %16347 = vst [vmem:[#allocation19_spill] sm:$0xff] %v12457_v34  ;;  %v12471_v43 = vpop.permute.xlu0 %739 }
 0x1b8   :  { %9759 = vmatmul.mubr.msk.f32.gmra.mrb[6].mxu0 %vm189_vm0, %v434_v48  ;;  %16354 = vst [vmem:[#allocation26_spill] sm:$0xff] %v12471_v43 }
 0x1ba   :  { %v12461_v36 = vpop.permute.xlu1 %737 }
 0x1bb   :  { %16349 = vst [vmem:[#allocation21_spill] sm:$0xff] %v12461_v36  ;;  %v12475_v45 = vpop.permute.xlu0 %707 }
 0x1bc   :  { %16356 = vst [vmem:[#allocation28_spill] sm:$0xff] %v12475_v45 }
 0x1be   :  { %v12465_v40 = vpop.permute.xlu1 %705 }
 0x1bf   :  { %16351 = vst [vmem:[#allocation23_spill] sm:$0xff] %v12465_v40  ;;  %v12479_v47 = vpop.permute.xlu0 %743 }
 0x1c0   :  { %16358 = vst [vmem:[#allocation30_spill] sm:$0xff] %v12479_v47 }
 0x1c2   :  { %v12469_v42 = vpop.permute.xlu1 %741 }
 0x1c3   :  { %16353 = vst [vmem:[#allocation25_spill] sm:$0xff] %v12469_v42  ;;  %v12483_v51 = vpop.permute.xlu0 %711 }
 0x1c4   :  { %16360 = vst [vmem:[#allocation32_spill] sm:$0xff] %v12483_v51 }
 0x1c6   :  { %v12473_v44 = vpop.permute.xlu1 %709 }
 0x1c7   :  { %16355 = vst [vmem:[#allocation27_spill] sm:$0xff] %v12473_v44  ;;  %v12487_v53 = vpop.permute.xlu0 %747 }
 0x1c8   :  { %16362 = vst [vmem:[#allocation34_spill] sm:$0xff] %v12487_v53 }
 0x1ca   :  { %v12477_v46 = vpop.permute.xlu1 %745 }
 0x1cb   :  { %16357 = vst [vmem:[#allocation29_spill] sm:$0xff] %v12477_v46  ;;  %v12498_v61 = vpop.permute.xlu0 %715 }
 0x1cc   :  { %16365 = vst [vmem:[#allocation36_spill] sm:$0xff] %v12498_v61 }
 0x1ce   :  { %v12481_v50 = vpop.permute.xlu1 %713 }
 0x1cf   :  { %16359 = vst [vmem:[#allocation31_spill] sm:$0xff] %v12481_v50  ;;  %v12526_v14 = vpop.permute.xlu0 %751 }
 0x1d0   :  { %16367 = vst [vmem:[#allocation38_spill] sm:$0xff] %v12526_v14 }
 0x1d2   :  { %v12485_v52 = vpop.permute.xlu1 %749 }
 0x1d3   :  { %16361 = vst [vmem:[#allocation33_spill] sm:$0xff] %v12485_v52 }
 0x1d6   :  { %v12494_v58 = vpop.permute.xlu1 %717 }
 0x1d7   :  { %16364 = vst [vmem:[#allocation35_spill] sm:$0xff] %v12494_v58 }
 0x1da   :  { %v12518_v10 = vpop.permute.xlu1 %753 }
 0x1db   :  { %16366 = vst [vmem:[#allocation37_spill] sm:$0xff] %v12518_v10 }
 0x1de   :  { %v12546_v48 = vpop.permute.xlu1 %721 }
 0x1df   :  { %16371 = vst [vmem:[#allocation42_spill] sm:$0xff] %v12546_v48 }
 0x27f   :  { %v9751_v55 = vpop.f32.mrb[0].mxu0 }
 0x280   :  { %v12492_v56 = vadd.f32 %v9751_v55, %v8401_v54  ;;  %v568_v57 = vpop.f32.mrb[1].mxu0  ;;  %v12548_v55 = vpop.permute.xlu0 %719 }
 0x281   :  { %v12496_v59 = vadd.f32 %v8401_v54, %v568_v57  ;;  %16372 = vst [vmem:[#allocation43_spill] sm:$0xff] %v12548_v55 }
 0x282   :  { %v792_v62 = vmul.f32 %v12449_v31, %v12492_v56  ;;  %v808_v63 = vmul.f32 %v12445_v27, %v12492_v56 }
 0x283   :  { %v9754_v1 = vpop.f32.mrb[2].mxu0  ;;  %8867 = vmatprep.mubr.msk.f32.mxu1 %vm189_vm0, %v12496_v59  ;;  %v791_v2 = vmul.f32 %v12447_v30, %v12496_v59  ;;  %v807_v3 = vmul.f32 %v12451_v32, %v12496_v59 }
 0x284   :  { %v12510_v4 = vadd.f32 %v9754_v1, %v8401_v54  ;;  %v578_v5 = vpop.f32.mrb[3].mxu0  ;;  %v815_v1 = vmul.f32 %v12479_v47, %v12496_v59 }
 0x285   :  { %v12512_v6 = vadd.f32 %v8401_v54, %v578_v5  ;;  %v10829_v20 = vpack.i.bf16 %v792_v62, %v791_v2  ;;  %v10824_v7 = vpack.i.bf16 %v808_v63, %v807_v3  ;;  %v816_v2 = vmul.f32 %v12477_v46, %v12492_v56 }
 0x286   :  { %v810_v8 = vmul.f32 %v12453_v49, %v12510_v4  ;;  %v794_v9 = vmul.f32 %v12457_v34, %v12510_v4  ;;  %v799_v3 = vmul.f32 %v12483_v51, %v12496_v59  ;;  %v800_v5 = vmul.f32 %v12481_v50, %v12492_v56 }
 0x287   :  { %10830 = vrot.lane.b32.xlu1 %v10829_v20, %s12095_s26  ;;  %v9757_v11 = vpop.f32.mrb[4].mxu0  ;;  %10825 = vrot.lane.b32.xlu0 %v10824_v7, %s12095_s26  ;;  %v809_v12 = vmul.f32 %v12455_v33, %v12512_v6  ;;  %v793_v13 = vmul.f32 %v12459_v35, %v12512_v6 }
 0x288   :  { %v12528_v21 = vadd.f32 %v9757_v11, %v8401_v54  ;;  %v588_v28 = vpop.f32.mrb[5].mxu0  ;;  %v10864_v11 = vpack.i.bf16 %v816_v2, %v815_v1 }
 0x289   :  { %v12530_v15 = vadd.f32 %v8401_v54, %v588_v28  ;;  %v10834_v16 = vpack.i.bf16 %v810_v8, %v809_v12  ;;  %v10839_v17 = vpack.i.bf16 %v794_v9, %v793_v13  ;;  %v12570_v8 = vpop.permute.xlu1 %757  ;;  %v12572_v9 = vpop.permute.xlu0 %755  ;;  %v10869_v12 = vpack.i.bf16 %v800_v5, %v799_v3 }
 0x28a   :  { %16368 = vst [vmem:[#allocation39_spill] sm:$0xff] %v12528_v21  ;;  %v812_v18 = vmul.f32 %v12461_v36, %v12528_v21  ;;  %v796_v29 = vmul.f32 %v12465_v40, %v12528_v21  ;;  %16373 = vst [vmem:[#allocation44_spill] sm:$0xff] %v12570_v8  ;;  %v817_v13 = vmul.f32 %v12487_v53, %v12512_v6 }
 0x28b   :  { %v9760_v19 = vpop.f32.mrb[6].mxu0  ;;  %10835 = vrot.lane.b32.xlu0 %v10834_v16, %s12095_s26  ;;  %10840 = vrot.lane.b32.xlu1 %v10839_v17, %s12095_s26  ;;  %v811_v38 = vmul.f32 %v12463_v37, %v12530_v15  ;;  %v795_v22 = vmul.f32 %v12467_v41, %v12530_v15  ;;  %16374 = vst [vmem:[#allocation45_spill] sm:$0xff] %v12572_v9 }
 0x28c   :  { %v12542_v23 = vadd.f32 %v9760_v19, %v8401_v54  ;;  %v598_v24 = vpop.f32.mrb[7].mxu0  ;;  %v818_v28 = vmul.f32 %v12485_v52, %v12510_v4  ;;  %v801_v16 = vmul.f32 %v12498_v61, %v12512_v6  ;;  %v802_v17 = vmul.f32 %v12494_v58, %v12510_v4 }
 0x28d   :  { %v12544_v25 = vadd.f32 %v8401_v54, %v598_v24  ;;  %v10844_v26 = vpack.i.bf16 %v812_v18, %v811_v38  ;;  %v10849_v39 = vpack.i.bf16 %v796_v29, %v795_v22  ;;  %v819_v18 = vmul.f32 %v12526_v14, %v12530_v15 }
 0x28e   :  { %16369 = vst [vmem:[#allocation40_spill] sm:$0xff] %v12542_v23  ;;  %v814_v57 = vmul.f32 %v12469_v42, %v12542_v23  ;;  %v798_v62 = vmul.f32 %v12473_v44, %v12542_v23  ;;  %v820_v29 = vmul.f32 %v12518_v10, %v12528_v21  ;;  %v803_v19 = vmul.f32 %v12548_v55, %v12530_v15 }
 0x28f   :  { %16370 = vst [vmem:[#allocation41_spill] sm:$0xff] %v12544_v25  ;;  %10845 = vrot.lane.b32.xlu0 %v10844_v26, %s12095_s26  ;;  %10850 = vrot.lane.b32.xlu1 %v10849_v39, %s12095_s26  ;;  %v813_v54 = vmul.f32 %v12471_v43, %v12544_v25  ;;  %v797_v63 = vmul.f32 %v12475_v45, %v12544_v25  ;;  %v12592_v26 = vpop.permute.xlu1 %725  ;;  %v12594_v39 = vpop.permute.xlu0 %723 }
 0x290   :  { %v804_v38 = vmul.f32 %v12546_v48, %v12528_v21  ;;  %v10874_v22 = vpack.i.bf16 %v818_v28, %v817_v13  ;;  %v10879_v24 = vpack.i.bf16 %v802_v17, %v801_v16  ;;  %16375 = vst [vmem:[#allocation46_spill] sm:$0xff] %v12592_v26  ;;  %16376 = vst [vmem:[#allocation47_spill] sm:$0xff] %v12594_v39  ;;  %v12634_v16 = vld [vmem:[%s16338_s23 + $0x58] sm:$0xff]  ;;  %v12639_v17 = vld [vmem:[%s16338_s23 + $0x68] sm:$0xff] }
 0x291   :  { %v10854_v20 = vpack.i.bf16 %v814_v57, %v813_v54  ;;  %v10859_v7 = vpack.i.bf16 %v798_v62, %v797_v63  ;;  %v10884_v57 = vpack.i.bf16 %v820_v29, %v819_v18  ;;  %v821_v54 = vmul.f32 %v12572_v9, %v12544_v25  ;;  %v12646_v29 = vld [vmem:[%s16338_s23 + $0x60] sm:$0xff] }
 0x292   :  { %v10889_v62 = vpack.i.bf16 %v804_v38, %v803_v19  ;;  %v822_v63 = vmul.f32 %v12570_v8, %v12542_v23  ;;  %v805_v1 = vmul.f32 %v12594_v39, %v12544_v25  ;;  %v806_v2 = vmul.f32 %v12592_v26, %v12542_v23  ;;  %v12653_v38 = vld [vmem:[%s16338_s23 + $0x78] sm:$0xff] }
 0x293   :  { %10855 = vrot.lane.b32.xlu0 %v10854_v20, %s12095_s26  ;;  %10860 = vrot.lane.b32.xlu1 %v10859_v7, %s12095_s26  ;;  %v12613_v20 = vld [vmem:[%s16338_s23 + $0x40] sm:$0xff]  ;;  %v223_v18 = vsel %vm189_vm0, %v12634_v16, 0.0  ;;  %v229_v19 = vsel %vm189_vm0, %v12639_v17, 0.0 }
 0x294   :  { %v10894_v3 = vpack.i.bf16 %v822_v63, %v821_v54  ;;  %v10899_v5 = vpack.i.bf16 %v806_v2, %v805_v1  ;;  %v214_v7 = vsel %vm189_vm0, %v12613_v20, 0.0 }
 0x297   :  { %10865 = vrot.lane.b32.xlu0 %v10864_v11, %s12095_s26  ;;  %10870 = vrot.lane.b32.xlu1 %v10869_v12, %s12095_s26  ;;  %v12620_v11 = vld [vmem:[%s16338_s23 + $0x50] sm:$0xff]  ;;  %v12625_v12 = vld [vmem:[%s16338_s23 + $0x48] sm:$0xff] }
 0x298   :  { %v220_v13 = vsel %vm189_vm0, %v12620_v11, 0.0  ;;  %v217_v28 = vsel %vm189_vm0, %v12625_v12, 0.0 }
 0x29b   :  { %10875 = vrot.lane.b32.xlu0 %v10874_v22, %s12095_s26  ;;  %10880 = vrot.lane.b32.xlu1 %v10879_v24, %s12095_s26  ;;  %v226_v22 = vsel %vm189_vm0, %v12646_v29, 0.0  ;;  %v12660_v24 = vld [vmem:[%s16338_s23 + $0x70] sm:$0xff] }
 0x29f   :  { %10885 = vrot.lane.b32.xlu0 %v10884_v57, %s12095_s26  ;;  %10890 = vrot.lane.b32.xlu1 %v10889_v62, %s12095_s26  ;;  %v235_v57 = vsel %vm189_vm0, %v12653_v38, 0.0  ;;  %v232_v62 = vsel %vm189_vm0, %v12660_v24, 0.0 }
 0x2a3   :  { %10895 = vrot.lane.b32.xlu0 %v10894_v3, %s12095_s26  ;;  %10900 = vrot.lane.b32.xlu1 %v10899_v5, %s12095_s26 }
 0x2c2   :  { %215 = vadd.xlane.f32.xlu0 %v214_v7  ;;  %v16377_v7 = vmov 0 }
 0x2c3   :  { %v16378_v7 = vsel %vm12668_vm1, 4294967295, %v16377_v7 }
 0x2c4   :  { %16379 = vst [vmem:[#allocation48_spill] sm:$0xff] %v16378_v7 }
 0x2c6   :  { %221 = vadd.xlane.f32.xlu0 %v220_v13 }
 0x2c7   :  { %218 = vadd.xlane.f32.xlu1 %v217_v28 }
 0x2ca   :  { %224 = vadd.xlane.f32.xlu0 %v223_v18 }
 0x2cb   :  { %230 = vadd.xlane.f32.xlu1 %v229_v19 }
 0x2ce   :  { %227 = vadd.xlane.f32.xlu0 %v226_v22 }
 0x2cf   :  { %236 = vadd.xlane.f32.xlu1 %v235_v57 }
 0x2d2   :  { %233 = vadd.xlane.f32.xlu0 %v232_v62 }
 0x2f9   :  { %v10831_v54 = vpop.permute.xlu1 %10830  ;;  %v10826_v63 = vpop.permute.xlu0 %10825 }
 0x2fa   :  { %v10833_v1 = vunpack.i.h.bf16 %v10831_v54  ;;  %v10832_v2 = vunpack.i.l.bf16 %v10831_v54  ;;  %v10828_v3 = vunpack.i.h.bf16 %v10826_v63  ;;  %v10827_v5 = vunpack.i.l.bf16 %v10826_v63 }
 0x2fc   :  { %v10217_v13 = vpack.c.bf16 %v10828_v3, %v10827_v5  ;;  %v10220_v28 = vpack.c.bf16 %v10833_v1, %v10832_v2 }
 0x2fd   :  { %v10836_v18 = vpop.permute.xlu0 %10835  ;;  %v10841_v19 = vpop.permute.xlu1 %10840 }
 0x2fe   :  { %v10838_v22 = vunpack.i.h.bf16 %v10836_v18  ;;  %v10837_v26 = vunpack.i.l.bf16 %v10836_v18  ;;  %10219 = vmatprep.subr.msk.bf16.mxu1 %vm12668_vm1, %v10217_v13  ;;  %v10843_v62 = vunpack.i.h.bf16 %v10841_v19  ;;  %v10842_v54 = vunpack.i.l.bf16 %v10841_v19 }
 0x2ff   :  { %10222 = vmatpush3.bf16.xpose.msk.msra.mxu1 %vm12668_vm1, %v10220_v28 }
 0x300   :  { %v10223_v57 = vpack.c.bf16 %v10838_v22, %v10837_v26  ;;  %v10226_v1 = vpack.c.bf16 %v10843_v62, %v10842_v54 }
 0x301   :  { %v10846_v63 = vpop.permute.xlu0 %10845  ;;  %v10851_v2 = vpop.permute.xlu1 %10850 }
 0x302   :  { %v10848_v39 = vunpack.i.h.bf16 %v10846_v63  ;;  %v10847_v8 = vunpack.i.l.bf16 %v10846_v63  ;;  %10225 = vmatprep.subr.msk.bf16.mxu1 %vm12668_vm1, %v10223_v57  ;;  %v10853_v13 = vunpack.i.h.bf16 %v10851_v2  ;;  %v10852_v26 = vunpack.i.l.bf16 %v10851_v2 }
 0x304   :  { %v10229_v3 = vpack.c.bf16 %v10848_v39, %v10847_v8  ;;  %v10232_v19 = vpack.c.bf16 %v10853_v13, %v10852_v26 }
 0x305   :  { %v10856_v5 = vpop.permute.xlu0 %10855  ;;  %v10861_v22 = vpop.permute.xlu1 %10860 }
 0x306   :  { %v10858_v28 = vunpack.i.h.bf16 %v10856_v5  ;;  %v10857_v18 = vunpack.i.l.bf16 %v10856_v5  ;;  %v10863_v8 = vunpack.i.h.bf16 %v10861_v22  ;;  %v10862_v39 = vunpack.i.l.bf16 %v10861_v22 }
 0x307   :  { %10228 = vmatpush3.bf16.xpose.msk.msra.mxu1 %vm12668_vm1, %v10226_v1 }
 0x308   :  { %10231 = vmatprep.subr.msk.bf16.mxu1 %vm12668_vm1, %v10229_v3  ;;  %v10235_v63 = vpack.c.bf16 %v10858_v28, %v10857_v18  ;;  %v10238_v54 = vpack.c.bf16 %v10863_v8, %v10862_v39 }
 0x309   :  { %v10866_v9 = vpop.permute.xlu0 %10865  ;;  %v10871_v1 = vpop.permute.xlu1 %10870 }
 0x30a   :  { %v10868_v57 = vunpack.i.h.bf16 %v10866_v9  ;;  %v10867_v62 = vunpack.i.l.bf16 %v10866_v9  ;;  %v10873_v5 = vunpack.i.h.bf16 %v10871_v1  ;;  %v10872_v13 = vunpack.i.l.bf16 %v10871_v1 }
 0x30c   :  { %v10241_v3 = vpack.c.bf16 %v10868_v57, %v10867_v62  ;;  %v10244_v18 = vpack.c.bf16 %v10873_v5, %v10872_v13 }
 0x30d   :  { %v10876_v2 = vpop.permute.xlu0 %10875 }
 0x30e   :  { %v10878_v26 = vunpack.i.h.bf16 %v10876_v2  ;;  %v10877_v28 = vunpack.i.l.bf16 %v10876_v2 }
 0x30f   :  { %10234 = vmatpush3.bf16.xpose.msk.msra.mxu1 %vm12668_vm1, %v10232_v19  ;;  %v10881_v19 = vpop.permute.xlu1 %10880 }
 0x310   :  { %10237 = vmatprep.subr.msk.bf16.mxu1 %vm12668_vm1, %v10235_v63  ;;  %v10247_v63 = vpack.c.bf16 %v10878_v26, %v10877_v28  ;;  %v10883_v9 = vunpack.i.h.bf16 %v10881_v19  ;;  %v10882_v8 = vunpack.i.l.bf16 %v10881_v19 }
 0x311   :  { %v10886_v22 = vpop.permute.xlu0 %10885 }
 0x312   :  { %v10888_v39 = vunpack.i.h.bf16 %v10886_v22  ;;  %v10887_v57 = vunpack.i.l.bf16 %v10886_v22  ;;  %v10250_v62 = vpack.c.bf16 %v10883_v9, %v10882_v8 }
 0x315   :  { %v10896_v1 = vpop.permute.xlu0 %10895 }
 0x316   :  { %v10898_v13 = vunpack.i.h.bf16 %v10896_v1  ;;  %v10897_v26 = vunpack.i.l.bf16 %v10896_v1 }
 0x317   :  { %10240 = vmatpush3.bf16.xpose.msk.msra.mxu1 %vm12668_vm1, %v10238_v54  ;;  %v10891_v54 = vpop.permute.xlu1 %10890 }
 0x318   :  { %10243 = vmatprep.subr.msk.bf16.mxu1 %vm12668_vm1, %v10241_v3  ;;  %v10253_v3 = vpack.c.bf16 %v10888_v39, %v10887_v57  ;;  %v10893_v2 = vunpack.i.h.bf16 %v10891_v54  ;;  %v10892_v5 = vunpack.i.l.bf16 %v10891_v54 }
 0x31a   :  { %v10256_v28 = vpack.c.bf16 %v10893_v2, %v10892_v5 }
 0x31f   :  { %10246 = vmatpush3.bf16.xpose.msk.msra.mxu1 %vm12668_vm1, %v10244_v18  ;;  %v10901_v18 = vpop.permute.xlu1 %10900 }
 0x320   :  { %10249 = vmatprep.subr.msk.bf16.mxu1 %vm12668_vm1, %v10247_v63  ;;  %v10259_v63 = vpack.c.bf16 %v10898_v13, %v10897_v26  ;;  %v10903_v19 = vunpack.i.h.bf16 %v10901_v18  ;;  %v10902_v22 = vunpack.i.l.bf16 %v10901_v18 }
 0x322   :  { %v10262_v9 = vpack.c.bf16 %v10903_v19, %v10902_v22 }
 0x327   :  { %10252 = vmatpush3.bf16.xpose.msk.msra.mxu1 %vm12668_vm1, %v10250_v62 }
 0x328   :  { %10255 = vmatprep.subr.msk.bf16.mxu1 %vm12668_vm1, %v10253_v3 }
 0x32f   :  { %10258 = vmatpush3.bf16.xpose.msk.msra.mxu1 %vm12668_vm1, %v10256_v28 }
 0x330   :  { %10261 = vmatprep.subr.msk.bf16.mxu1 %vm12668_vm1, %v10259_v63 }
 0x337   :  { %10264 = vmatpush3.bf16.xpose.msk.msra.mxu1 %vm12668_vm1, %v10262_v9 }
 0x33e   :  { %8868 = vmatmul.mubr.msk.f32.vlgmr.msra.gmra.mrb[0].mxu1 %vm189_vm0, %v12496_v59 }
 0x33f   :  { %8869 = vmatprep.mubr.msk.f32.mxu1 %vm189_vm0, %v12492_v56 }
 0x342   :  { %8870 = vmatmul.mubr.msk.f32.gmra.mrb[2].mxu1 %vm189_vm0, %v12492_v56 }
 0x343   :  { %8871 = vmatprep.mubr.msk.f32.mxu1 %vm189_vm0, %v12512_v6 }
 0x346   :  { %8872 = vmatmul.mubr.msk.f32.gmra.mrb[4].mxu1 %vm189_vm0, %v12512_v6 }
 0x347   :  { %8873 = vmatprep.mubr.msk.f32.mxu1 %vm189_vm0, %v12510_v4 }
 0x34a   :  { %8874 = vmatmul.mubr.msk.f32.gmra.mrb[6].mxu1 %vm189_vm0, %v12510_v4 }
 0x34b   :  { %8875 = vmatprep.mubr.msk.f32.mxu1 %vm189_vm0, %v12530_v15 }
 0x34e   :  { %8876 = vmatmul.mubr.msk.f32.gmra.mrb[8].mxu1 %vm189_vm0, %v12530_v15 }
 0x34f   :  { %v216_v8 = vpop.xlane.xlu0 %215  ;;  %8877 = vmatprep.mubr.msk.f32.mxu1 %vm189_vm0, %v12528_v21 }
 0x350   :  { %v247_v39 = vmul.f32 0.03125, %v216_v8 }
 0x352   :  { %v12725_v57 = vsub.f32 %v12613_v20, %v247_v39  ;;  %8878 = vmatmul.mubr.msk.f32.gmra.mrb[10].mxu1 %vm189_vm0, %v12528_v21  ;;  %v1334_v21 = vld [vmem:[#allocation9 + $0x70] sm:$0xff] }
 0x353   :  { %v222_v62 = vpop.xlane.xlu0 %221  ;;  %8879 = vmatprep.mubr.msk.f32.mxu1 %vm189_vm0, %v12544_v25 }
 0x354   :  { %v249_v54 = vmul.f32 0.03125, %v222_v62  ;;  %v219_v3 = vpop.xlane.xlu1 %218  ;;  %v279_v1 = vmul.f32 %v12725_v57, %v12725_v57 }
 0x355   :  { %v248_v2 = vmul.f32 0.03125, %v219_v3 }
 0x356   :  { %v12734_v5 = vsub.f32 %v12620_v11, %v249_v54  ;;  %8880 = vmatmul.mubr.msk.f32.gmra.mrb[12].mxu1 %vm189_vm0, %v12544_v25  ;;  %v311_v20 = vsel %vm189_vm0, %v279_v1, 0.0  ;;  %v1349_v25 = vld [vmem:[#allocation9 + $0xe8] sm:$0xff] }
 0x357   :  { %v12740_v13 = vsub.f32 %v12625_v12, %v248_v2  ;;  %312 = vadd.xlane.f32.xlu0 %v311_v20  ;;  %v225_v26 = vpop.xlane.xlu0 %224  ;;  %8881 = vmatprep.mubr.msk.f32.mxu1 %vm189_vm0, %v12542_v23 }
 0x358   :  { %v250_v28 = vmul.f32 0.03125, %v225_v26  ;;  %v281_v18 = vmul.f32 %v12734_v5, %v12734_v5  ;;  %v231_v63 = vpop.xlane.xlu1 %230 }
 0x359   :  { %v280_v11 = vmul.f32 %v12740_v13, %v12740_v13  ;;  %v252_v19 = vmul.f32 0.03125, %v231_v63 }
 0x35a   :  { %v12749_v22 = vsub.f32 %v12634_v16, %v250_v28  ;;  %8882 = vmatmul.mubr.msk.f32.gmra.mrb[14].mxu1 %vm189_vm0, %v12542_v23  ;;  %v317_v12 = vsel %vm189_vm0, %v281_v18, 0.0 }
 0x35b   :  { %318 = vadd.xlane.f32.xlu0 %v317_v12  ;;  %v228_v9 = vpop.xlane.xlu0 %227  ;;  %v314_v8 = vsel %vm189_vm0, %v280_v11, 0.0  ;;  %v12756_v39 = vsub.f32 %v12639_v17, %v252_v19 }
 0x35c   :  { %v251_v62 = vmul.f32 0.03125, %v228_v9  ;;  %315 = vadd.xlane.f32.xlu1 %v314_v8  ;;  %v237_v54 = vpop.xlane.xlu1 %236  ;;  %v282_v3 = vmul.f32 %v12749_v22, %v12749_v22  ;;  %v1336_v8 = vld [vmem:[#allocation9 + $0x80] sm:$0xff] }
 0x35d   :  { %v254_v16 = vmul.f32 0.03125, %v237_v54  ;;  %v284_v1 = vmul.f32 %v12756_v39, %v12756_v39  ;;  %v1320_v54 = vld [vmem:[#allocation9] sm:$0xff] }
 0x35e   :  { %v12763_v2 = vsub.f32 %v12646_v29, %v251_v62  ;;  %v320_v20 = vsel %vm189_vm0, %v282_v3, 0.0  ;;  %v1337_v62 = vld [vmem:[#allocation9 + $0x88] sm:$0xff] }
 0x35f   :  { %v234_v26 = vpop.xlane.xlu0 %233  ;;  %v12767_v28 = vsub.f32 %v12653_v38, %v254_v16  ;;  %v326_v63 = vsel %vm189_vm0, %v284_v1, 0.0  ;;  %v12782_v3 = vpack.c.bf16 %v1337_v62, %v1336_v8  ;;  %v1338_v16 = vld [vmem:[#allocation9 + $0x90] sm:$0xff]  ;;  %v1339_v1 = vld [vmem:[#allocation9 + $0x98] sm:$0xff] }
 0x360   :  { %v253_v17 = vmul.f32 0.03125, %v234_v26  ;;  %321 = vadd.xlane.f32.xlu1 %v320_v20  ;;  %v283_v18 = vmul.f32 %v12763_v2, %v12763_v2  ;;  %v12786_v26 = vpack.c.bf16 %v1339_v1, %v1338_v16  ;;  %v1342_v8 = vld [vmem:[#allocation9 + $0xb0] sm:$0xff]  ;;  %v1343_v62 = vld [vmem:[#allocation9 + $0xb8] sm:$0xff] }
 0x361   :  { %v286_v11 = vmul.f32 %v12767_v28, %v12767_v28  ;;  %16380 = vst [vmem:[#allocation49_spill] sm:$0xff] %v12782_v3  ;;  %10266 = vmatprep.subr.bf16.mxu0 %v12782_v3  ;;  %v1326_v16 = vld [vmem:[#allocation9 + $0x30] sm:$0xff]  ;;  %v1327_v1 = vld [vmem:[#allocation9 + $0x38] sm:$0xff] }
 0x362   :  { %v12775_v19 = vsub.f32 %v12660_v24, %v253_v17  ;;  %v323_v29 = vsel %vm189_vm0, %v283_v18, 0.0  ;;  %v1321_v24 = vld [vmem:[#allocation9 + $0x8] sm:$0xff]  ;;  %16382 = vst [vmem:[#allocation51_spill] sm:$0xff] %v12786_v26  ;;  %v1322_v17 = vld [vmem:[#allocation9 + $0x10] sm:$0xff]  ;;  %v1323_v18 = vld [vmem:[#allocation9 + $0x18] sm:$0xff] }
 0x363   :  { %324 = vadd.xlane.f32.xlu0 %v323_v29  ;;  %v332_v12 = vsel %vm189_vm0, %v286_v11, 0.0  ;;  %v12784_v20 = vpack.c.bf16 %v1321_v24, %v1320_v54  ;;  %v1341_v11 = vld [vmem:[#allocation9 + $0xa8] sm:$0xff]  ;;  %v12790_v29 = vpack.c.bf16 %v1323_v18, %v1322_v17  ;;  %v12799_v24 = vpack.c.bf16 %v1343_v62, %v1342_v8  ;;  %v1344_v17 = vld [vmem:[#allocation9 + $0xc0] sm:$0xff] }
 0x364   :  { %327 = vadd.xlane.f32.xlu1 %v326_v63  ;;  %v285_v38 = vmul.f32 %v12775_v19, %v12775_v19  ;;  %v1340_v63 = vld [vmem:[#allocation9 + $0xa0] sm:$0xff]  ;;  %v1345_v18 = vld [vmem:[#allocation9 + $0xc8] sm:$0xff] }
 0x365   :  { %16381 = vst [vmem:[#allocation50_spill] sm:$0xff] %v12784_v20  ;;  %10268 = vmatpush3.bf16.msra.mxu0 %v12784_v20  ;;  %16383 = vst [vmem:[#allocation52_spill] sm:$0xff] %v12790_v29 }
 0x366   :  { %v329_v9 = vsel %vm189_vm0, %v285_v38, 0.0  ;;  %10270 = vmatprep.subr.bf16.mxu0 %v12786_v26  ;;  %v12793_v38 = vpack.c.bf16 %v1341_v11, %v1340_v63  ;;  %16386 = vst [vmem:[#allocation55_spill] sm:$0xff] %v12799_v24  ;;  %v12802_v63 = vpack.c.bf16 %v1327_v1, %v1326_v16  ;;  %v12805_v11 = vpack.c.bf16 %v1345_v18, %v1344_v17 }
 0x367   :  { %330 = vadd.xlane.f32.xlu0 %v329_v9  ;;  %v1325_v9 = vld [vmem:[#allocation9 + $0x28] sm:$0xff] }
 0x368   :  { %333 = vadd.xlane.f32.xlu1 %v332_v12  ;;  %16384 = vst [vmem:[#allocation53_spill] sm:$0xff] %v12793_v38  ;;  %v1324_v12 = vld [vmem:[#allocation9 + $0x20] sm:$0xff]  ;;  %16387 = vst [vmem:[#allocation56_spill] sm:$0xff] %v12802_v63 }
 0x369   :  { %10272 = vmatpush3.bf16.msra.mxu0 %v12790_v29  ;;  %v12796_v54 = vpack.c.bf16 %v1325_v9, %v1324_v12  ;;  %16388 = vst [vmem:[#allocation57_spill] sm:$0xff] %v12805_v11 }
 0x36a   :  { %10274 = vmatprep.subr.bf16.mxu0 %v12793_v38 }
 0x36b   :  { %16385 = vst [vmem:[#allocation54_spill] sm:$0xff] %v12796_v54 }
 0x36d   :  { %10276 = vmatpush3.bf16.msra.mxu0 %v12796_v54 }
 0x36e   :  { %10278 = vmatprep.subr.bf16.mxu0 %v12799_v24 }
 0x371   :  { %10280 = vmatpush3.bf16.msra.mxu0 %v12802_v63 }
 0x372   :  { %10282 = vmatprep.subr.bf16.mxu0 %v12805_v11 }
 0x3e4   :  { %v313_v12 = vpop.xlane.xlu0 %312 }
 0x3e5   :  { %v343_v9 = vmul.f32 0.03125, %v313_v12 }
 0x3e7   :  { %v359_v8 = vadd.f32 1e-05, %v343_v9 }
 0x3e8   :  { %v319_v62 = vpop.xlane.xlu0 %318 }
 0x3e9   :  { %11481 = vrsqrt.f32 %v359_v8  ;;  %v345_v38 = vmul.f32 0.03125, %v319_v62  ;;  %v316_v29 = vpop.xlane.xlu1 %315 }
 0x3ea   :  { %v344_v26 = vmul.f32 0.03125, %v316_v29 }
 0x3eb   :  { %v361_v20 = vadd.f32 1e-05, %v345_v38 }
 0x3ec   :  { %v360_v54 = vadd.f32 1e-05, %v344_v26 }
 0x3ed   :  { %11483 = vrsqrt.f32 %v361_v20  ;;  %v322_v16 = vpop.xlane.xlu1 %321 }
 0x3ee   :  { %11485 = vrsqrt.f32 %v360_v54  ;;  %v346_v1 = vmul.f32 0.03125, %v322_v16 }
 0x3f0   :  { %v362_v17 = vadd.f32 1e-05, %v346_v1  ;;  %v325_v18 = vpop.xlane.xlu0 %324 }
 0x3f1   :  { %v347_v24 = vmul.f32 0.03125, %v325_v18  ;;  %v328_v63 = vpop.xlane.xlu1 %327 }
 0x3f2   :  { %11487 = vrsqrt.f32 %v362_v17  ;;  %v348_v11 = vmul.f32 0.03125, %v328_v63 }
 0x3f3   :  { %v11482_v3 = vpop.eup %11481  ;;  %v363_v12 = vadd.f32 1e-05, %v347_v24 }
 0x3f4   :  { %v364_v9 = vadd.f32 1e-05, %v348_v11  ;;  %v331_v23 = vpop.xlane.xlu0 %330  ;;  %v391_v8 = vmul.f32 %v11482_v3, %v12725_v57 }
 0x3f5   :  { %11489 = vrsqrt.f32 %v363_v12  ;;  %v349_v29 = vmul.f32 0.03125, %v331_v23  ;;  %v334_v38 = vpop.xlane.xlu1 %333 }
 0x3f6   :  { %11491 = vrsqrt.f32 %v364_v9  ;;  %v350_v20 = vmul.f32 0.03125, %v334_v38  ;;  %v413_v26 = vmul.f32 %v12406_v60, %v391_v8 }
 0x3f7   :  { %v11484_v54 = vpop.eup %11483  ;;  %v365_v62 = vadd.f32 1e-05, %v349_v29 }
 0x3f8   :  { %v11486_v16 = vpop.eup %11485  ;;  %v366_v1 = vadd.f32 1e-05, %v350_v20  ;;  %v435_v17 = vadd.f32 %v12412_v0, %v413_v26  ;;  %v393_v63 = vmul.f32 %v11484_v54, %v12734_v5 }
 0x3f9   :  { %11493 = vrsqrt.f32 %v365_v62  ;;  %v392_v24 = vmul.f32 %v11486_v16, %v12740_v13 }
 0x3fa   :  { %11495 = vrsqrt.f32 %v366_v1  ;;  %9761 = vmatprep.mubr.msk.f32.mxu0 %vm189_vm0, %v435_v17  ;;  %v415_v23 = vmul.f32 %v12406_v60, %v393_v63 }
 0x3fb   :  { %v414_v57 = vmul.f32 %v12406_v60, %v392_v24 }
 0x3fc   :  { %v11488_v3 = vpop.eup %11487  ;;  %v437_v12 = vadd.f32 %v12412_v0, %v415_v23  ;;  %v648_v23 = vld [vmem:[#allocation6 + $0x8] sm:$0xff] }
 0x3fd   :  { %v436_v11 = vadd.f32 %v12412_v0, %v414_v57  ;;  %v394_v18 = vmul.f32 %v11488_v3, %v12749_v22 }
 0x3ff   :  { %v11490_v9 = vpop.eup %11489  ;;  %9762 = vmatmul.mubr.msk.f32.gmra.mrb[8].mxu0 %vm189_vm0, %v436_v11  ;;  %v416_v5 = vmul.f32 %v12406_v60, %v394_v18  ;;  %v649_v18 = vld [vmem:[#allocation6 + $0x10] sm:$0xff] }
 0x400   :  { %v11492_v13 = vpop.eup %11491  ;;  %9764 = vmatprep.mubr.msk.f32.mxu0 %vm189_vm0, %v437_v12  ;;  %v395_v8 = vmul.f32 %v11490_v9, %v12763_v2  ;;  %v650_v12 = vld [vmem:[#allocation6 + $0x18] sm:$0xff] }
 0x401   :  { %v438_v29 = vadd.f32 %v12412_v0, %v416_v5  ;;  %v396_v38 = vmul.f32 %v11492_v13, %v12756_v39 }
 0x402   :  { %v417_v20 = vmul.f32 %v12406_v60, %v395_v8  ;;  %v651_v8 = vld [vmem:[#allocation6 + $0x20] sm:$0xff] }
 0x403   :  { %v11494_v26 = vpop.eup %11493  ;;  %9765 = vmatmul.mubr.msk.f32.gmra.mrb[10].mxu0 %vm189_vm0, %v438_v29  ;;  %v418_v22 = vmul.f32 %v12406_v60, %v396_v38  ;;  %v652_v29 = vld [vmem:[#allocation6 + $0x28] sm:$0xff] }
 0x404   :  { %v11496_v54 = vpop.eup %11495  ;;  %v439_v62 = vadd.f32 %v12412_v0, %v417_v20  ;;  %v397_v16 = vmul.f32 %v11494_v26, %v12775_v19  ;;  %v647_v19 = vld [vmem:[#allocation6] sm:$0xff] }
 0x405   :  { %v440_v1 = vadd.f32 %v12412_v0, %v418_v22  ;;  %v398_v2 = vmul.f32 %v11496_v54, %v12767_v28 }
 0x406   :  { %9767 = vmatprep.mubr.msk.f32.mxu0 %vm189_vm0, %v439_v62  ;;  %v419_v39 = vmul.f32 %v12406_v60, %v397_v16  ;;  %v653_v62 = vld [vmem:[#allocation6 + $0x30] sm:$0xff]  ;;  %v654_v16 = vld [vmem:[#allocation6 + $0x38] sm:$0xff] }
 0x407   :  { %9768 = vmatmul.mubr.msk.f32.gmra.mrb[12].mxu0 %vm189_vm0, %v440_v1  ;;  %v420_v17 = vmul.f32 %v12406_v60, %v398_v2 }
 0x408   :  { %v441_v63 = vadd.f32 %v12412_v0, %v419_v39 }
 0x409   :  { %v442_v24 = vadd.f32 %v12412_v0, %v420_v17 }
 0x40a   :  { %9770 = vmatprep.mubr.msk.f32.mxu0 %vm189_vm0, %v441_v63 }
 0x40b   :  { %9771 = vmatmul.mubr.msk.f32.gmra.mrb[14].mxu0 %vm189_vm0, %v442_v24  ;;  %v655_v24 = vld [vmem:[#allocation6 + $0x40] sm:$0xff] }
 0x411   :  { %v1201_v57 = vpop.f32.mrb[0].mxu1 }
 0x412   :  { %v12841_v28 = vadd.f32 %v1201_v57, %v647_v19  ;;  %v1203_v3 = vpop.f32.mrb[1].mxu1  ;;  %v656_v19 = vld [vmem:[#allocation6 + $0x48] sm:$0xff] }
 0x413   :  { %v12843_v11 = vadd.f32 %v1203_v3, %v648_v23 }
 0x415   :  { %v1207_v9 = vpop.f32.mrb[2].mxu1  ;;  %v1248_v60 = vmax.f32 %v12841_v28, %v12843_v11 }
 0x416   :  { %v12847_v5 = vadd.f32 %v1207_v9, %v649_v18  ;;  %v1209_v0 = vpop.f32.mrb[3].mxu1  ;;  %v657_v9 = vld [vmem:[#allocation6 + $0x50] sm:$0xff] }
 0x417   :  { %v12849_v13 = vadd.f32 %v1209_v0, %v650_v12  ;;  %1249 = vmax.xlane.f32.xlu0 %v1248_v60  ;;  %v658_v60 = vld [vmem:[#allocation6 + $0x58] sm:$0xff] }
 0x419   :  { %v1213_v38 = vpop.f32.mrb[4].mxu1  ;;  %v1251_v20 = vmax.f32 %v12847_v5, %v12849_v13 }
 0x41a   :  { %v12853_v26 = vadd.f32 %v1213_v38, %v651_v8  ;;  %v1215_v22 = vpop.f32.mrb[5].mxu1  ;;  %v1329_v38 = vld [vmem:[#allocation9 + $0x48] sm:$0xff] }
 0x41b   :  { %v12855_v54 = vadd.f32 %v1215_v22, %v652_v29  ;;  %1252 = vmax.xlane.f32.xlu1 %v1251_v20  ;;  %v1328_v29 = vld [vmem:[#allocation9 + $0x40] sm:$0xff] }
 0x41d   :  { %v1219_v1 = vpop.f32.mrb[6].mxu1  ;;  %v1254_v2 = vmax.f32 %v12853_v26, %v12855_v54 }
 0x41e   :  { %v12859_v39 = vadd.f32 %v1219_v1, %v653_v62  ;;  %v1221_v17 = vpop.f32.mrb[7].mxu1  ;;  %v12873_v62 = vpack.c.bf16 %v1329_v38, %v1328_v29  ;;  %v659_v1 = vld [vmem:[#allocation6 + $0x60] sm:$0xff]  ;;  %v661_v38 = vld [vmem:[#allocation6 + $0x70] sm:$0xff] }
 0x41f   :  { %v12861_v63 = vadd.f32 %v1221_v17, %v654_v16  ;;  %1255 = vmax.xlane.f32.xlu0 %v1254_v2  ;;  %v660_v2 = vld [vmem:[#allocation6 + $0x68] sm:$0xff]  ;;  %v1346_v17 = vld [vmem:[#allocation9 + $0xd0] sm:$0xff] }
 0x420   :  { %16389 = vst [vmem:[#allocation58_spill] sm:$0xff] %v12873_v62  ;;  %10284 = vmatpush3.bf16.msra.mxu0 %v12873_v62  ;;  %v1348_v62 = vld [vmem:[#allocation9 + $0xe0] sm:$0xff] }
 0x421   :  { %v1225_v23 = vpop.f32.mrb[8].mxu1  ;;  %v1257_v57 = vmax.f32 %v12859_v39, %v12861_v63 }
 0x422   :  { %v12865_v3 = vadd.f32 %v1225_v23, %v655_v24  ;;  %v1227_v18 = vpop.f32.mrb[9].mxu1  ;;  %v1347_v24 = vld [vmem:[#allocation9 + $0xd8] sm:$0xff] }
 0x423   :  { %v12867_v12 = vadd.f32 %v1227_v18, %v656_v19  ;;  %1258 = vmax.xlane.f32.xlu1 %v1257_v57  ;;  %v12880_v57 = vpack.c.bf16 %v1347_v24, %v1346_v17  ;;  %v1330_v18 = vld [vmem:[#allocation9 + $0x50] sm:$0xff] }
 0x425   :  { %v1231_v0 = vpop.f32.mrb[10].mxu1  ;;  %v1260_v8 = vmax.f32 %v12865_v3, %v12867_v12  ;;  %16390 = vst [vmem:[#allocation59_spill] sm:$0xff] %v12880_v57  ;;  %10286 = vmatprep.subr.bf16.mxu0 %v12880_v57  ;;  %v1351_v57 = vld [vmem:[#allocation9 + $0xf8] sm:$0xff] }
 0x426   :  { %v12871_v20 = vadd.f32 %v1231_v0, %v657_v9  ;;  %v1233_v22 = vpop.f32.mrb[11].mxu1  ;;  %v1331_v9 = vld [vmem:[#allocation9 + $0x58] sm:$0xff] }
 0x427   :  { %v12875_v16 = vadd.f32 %v1233_v22, %v658_v60  ;;  %1261 = vmax.xlane.f32.xlu0 %v1260_v8  ;;  %v12884_v60 = vpack.c.bf16 %v1331_v9, %v1330_v18  ;;  %v662_v22 = vld [vmem:[#allocation6 + $0x78] sm:$0xff]  ;;  %v1333_v18 = vld [vmem:[#allocation9 + $0x68] sm:$0xff] }
 0x429   :  { %v1237_v19 = vpop.f32.mrb[12].mxu1  ;;  %v1263_v23 = vmax.f32 %v12871_v20, %v12875_v16  ;;  %16391 = vst [vmem:[#allocation60_spill] sm:$0xff] %v12884_v60  ;;  %10288 = vmatpush3.bf16.msra.mxu0 %v12884_v60  ;;  %v1350_v60 = vld [vmem:[#allocation9 + $0xf0] sm:$0xff] }
 0x42a   :  { %v12882_v0 = vadd.f32 %v1237_v19, %v659_v1  ;;  %v1239_v29 = vpop.f32.mrb[13].mxu1  ;;  %v12892_v1 = vpack.c.bf16 %v1349_v25, %v1348_v62  ;;  %v1332_v19 = vld [vmem:[#allocation9 + $0x60] sm:$0xff]  ;;  %v12904_v62 = vpack.c.bf16 %v1351_v57, %v1350_v60 }
 0x42b   :  { %v12886_v8 = vadd.f32 %v1239_v29, %v660_v2  ;;  %1264 = vmax.xlane.f32.xlu1 %v1263_v23  ;;  %v12896_v23 = vpack.c.bf16 %v1333_v18, %v1332_v19 }
 0x42c   :  { %16392 = vst [vmem:[#allocation61_spill] sm:$0xff] %v12892_v1  ;;  %10290 = vmatprep.subr.bf16.mxu0 %v12892_v1  ;;  %16394 = vst [vmem:[#allocation63_spill] sm:$0xff] %v12904_v62 }
 0x42d   :  { %v1243_v17 = vpop.f32.mrb[14].mxu1  ;;  %v1266_v24 = vmax.f32 %v12882_v0, %v12886_v8  ;;  %16393 = vst [vmem:[#allocation62_spill] sm:$0xff] %v12896_v23  ;;  %10292 = vmatpush3.bf16.msra.mxu0 %v12896_v23 }
 0x42e   :  { %v12894_v9 = vadd.f32 %v1243_v17, %v661_v38  ;;  %v1245_v2 = vpop.f32.mrb[15].mxu1  ;;  %v1335_v38 = vld [vmem:[#allocation9 + $0x78] sm:$0xff]  ;;  %10294 = vmatprep.subr.bf16.mxu0 %v12904_v62 }
 0x42f   :  { %v12898_v29 = vadd.f32 %v1245_v2, %v662_v22  ;;  %1267 = vmax.xlane.f32.xlu0 %v1266_v24  ;;  %v12906_v17 = vpack.c.bf16 %v1335_v38, %v1334_v21 }
 0x431   :  { %v1269_v25 = vmax.f32 %v12894_v9, %v12898_v29  ;;  %16395 = vst [vmem:[#allocation64_spill] sm:$0xff] %v12906_v17  ;;  %10296 = vmatpush3.bf16.msra.mxu0 %v12906_v17 }
 0x433   :  { %1270 = vmax.xlane.f32.xlu1 %v1269_v25 }
 0x4a4   :  { %v1250_v22 = vpop.xlane.xlu0 %1249 }
 0x4a5   :  { %v1272_v24 = vsub.f32 %v12841_v28, %v1250_v22  ;;  %v1273_v19 = vsub.f32 %v12843_v11, %v1250_v22 }
 0x4a7   :  { %v1288_v18 = vmul.f32 1.442695, %v1272_v24  ;;  %v1290_v2 = vmul.f32 1.442695, %v1273_v19 }
 0x4a8   :  { %v1253_v23 = vpop.xlane.xlu1 %1252 }
 0x4a9   :  { %11497 = vpow2.f32 %v1288_v18  ;;  %v1274_v57 = vsub.f32 %v12847_v5, %v1253_v23  ;;  %v1275_v60 = vsub.f32 %v12849_v13, %v1253_v23 }
 0x4aa   :  { %11499 = vpow2.f32 %v1290_v2 }
 0x4ab   :  { %v1292_v21 = vmul.f32 1.442695, %v1274_v57  ;;  %v1294_v25 = vmul.f32 1.442695, %v1275_v60 }
 0x4ac   :  { %v1256_v38 = vpop.xlane.xlu0 %1255 }
 0x4ad   :  { %11501 = vpow2.f32 %v1292_v21  ;;  %v1276_v17 = vsub.f32 %v12853_v26, %v1256_v38  ;;  %v1277_v62 = vsub.f32 %v12855_v54, %v1256_v38 }
 0x4ae   :  { %11503 = vpow2.f32 %v1294_v25 }
 0x4af   :  { %v1296_v28 = vmul.f32 1.442695, %v1276_v17  ;;  %v1298_v11 = vmul.f32 1.442695, %v1277_v62 }
 0x4b0   :  { %v1259_v22 = vpop.xlane.xlu1 %1258 }
 0x4b1   :  { %11505 = vpow2.f32 %v1296_v28  ;;  %v1278_v24 = vsub.f32 %v12859_v39, %v1259_v22  ;;  %v1279_v5 = vsub.f32 %v12861_v63, %v1259_v22 }
 0x4b2   :  { %11507 = vpow2.f32 %v1298_v11 }
 0x4b3   :  { %v12918_v13 = vpop.eup %11497  ;;  %v1300_v23 = vmul.f32 1.442695, %v1278_v24  ;;  %v1302_v19 = vmul.f32 1.442695, %v1279_v5 }
 0x4b4   :  { %v12920_v18 = vpop.eup %11499  ;;  %v1262_v2 = vpop.xlane.xlu0 %1261 }
 0x4b5   :  { %11509 = vpow2.f32 %v1300_v23  ;;  %1416 = vmatprep.mubr.f32.mxu0 %v12920_v18  ;;  %v1280_v26 = vsub.f32 %v12865_v3, %v1262_v2  ;;  %v1281_v54 = vsub.f32 %v12867_v12, %v1262_v2 }
 0x4b6   :  { %11511 = vpow2.f32 %v1302_v19  ;;  %1417 = vmatmul.mubr.f32.vlgmr.msra.gmra.mrb[16].mxu0 %v12918_v13 }
 0x4b7   :  { %v12926_v39 = vpop.eup %11501  ;;  %v1304_v63 = vmul.f32 1.442695, %v1280_v26  ;;  %v1306_v62 = vmul.f32 1.442695, %v1281_v54 }
 0x4b8   :  { %v12928_v17 = vpop.eup %11503  ;;  %v1265_v57 = vpop.xlane.xlu1 %1264 }
 0x4b9   :  { %11513 = vpow2.f32 %v1304_v63  ;;  %v1282_v60 = vsub.f32 %v12871_v20, %v1265_v57  ;;  %v1283_v21 = vsub.f32 %v12875_v16, %v1265_v57  ;;  %1421 = vmatprep.mubr.f32.mxu0 %v12928_v17  ;;  %v1473_v57 = vld [vmem:[%s16106_s16] sm:$0xff] }
 0x4ba   :  { %11515 = vpow2.f32 %v1306_v62  ;;  %1422 = vmatmul.mubr.f32.gmra.mrb[18].mxu0 %v12926_v39 }
 0x4bb   :  { %v12934_v3 = vpop.eup %11505  ;;  %v1308_v12 = vmul.f32 1.442695, %v1282_v60  ;;  %v1310_v25 = vmul.f32 1.442695, %v1283_v21  ;;  %v12973_v21 = vcombine.high %v1473_v57, %v1473_v57 }
 0x4bc   :  { %v12936_v38 = vpop.eup %11507  ;;  %v1268_v28 = vpop.xlane.xlu0 %1267 }
 0x4bd   :  { %11517 = vpow2.f32 %v1308_v12  ;;  %1426 = vmatprep.mubr.f32.mxu0 %v12936_v38  ;;  %v1284_v11 = vsub.f32 %v12882_v0, %v1268_v28  ;;  %v1285_v20 = vsub.f32 %v12886_v8, %v1268_v28  ;;  %16397 = vst [vmem:[#allocation66_spill] sm:$0xff] %v12973_v21  ;;  %8458 = vmatprep.subr.msk.mxu0 %vm1501_vm2, %v12973_v21  ;;  %v11881_v28 = vld [vmem:[%s16363_s15] ss:$0 sm:$0xff] }
 0x4be   :  { %11519 = vpow2.f32 %v1310_v25  ;;  %1427 = vmatmul.mubr.f32.gmra.mrb[20].mxu0 %v12934_v3 }
 0x4bf   :  { %v12942_v16 = vpop.eup %11509  ;;  %v1312_v22 = vmul.f32 1.442695, %v1284_v11  ;;  %v1314_v24 = vmul.f32 1.442695, %v1285_v20  ;;  %8459 = vmatpush1.msk.msra.mxu0 %vm1501_vm2, %v1473_v57 }
 0x4c0   :  { %v12944_v5 = vpop.eup %11511  ;;  %v1271_v23 = vpop.xlane.xlu1 %1270 }
 0x4c1   :  { %11521 = vpow2.f32 %v1312_v22  ;;  %v1286_v19 = vsub.f32 %v12894_v9, %v1271_v23  ;;  %v1287_v2 = vsub.f32 %v12898_v29, %v1271_v23  ;;  %1431 = vmatprep.mubr.f32.mxu0 %v12944_v5 }
 0x4c2   :  { %11523 = vpow2.f32 %v1314_v24  ;;  %1432 = vmatmul.mubr.f32.gmra.mrb[22].mxu0 %v12942_v16 }
 0x4c3   :  { %v12950_v0 = vpop.eup %11513  ;;  %v1316_v8 = vmul.f32 1.442695, %v1286_v19  ;;  %v1318_v26 = vmul.f32 1.442695, %v1287_v2 }
 0x4c4   :  { %v12952_v54 = vpop.eup %11515 }
 0x4c5   :  { %11525 = vpow2.f32 %v1316_v8  ;;  %1436 = vmatprep.mubr.f32.mxu0 %v12952_v54 }
 0x4c6   :  { %11527 = vpow2.f32 %v1318_v26  ;;  %1437 = vmatmul.mubr.f32.gmra.mrb[24].mxu0 %v12950_v0 }
 0x4c7   :  { %v12956_v9 = vpop.eup %11517 }
 0x4c8   :  { %v12958_v29 = vpop.eup %11519 }
 0x4c9   :  { %1441 = vmatprep.mubr.f32.mxu0 %v12958_v29 }
 0x4ca   :  { %1442 = vmatmul.mubr.f32.gmra.mrb[26].mxu0 %v12956_v9 }
 0x4cb   :  { %v12962_v63 = vpop.eup %11521 }
 0x4cc   :  { %v12964_v62 = vpop.eup %11523 }
 0x4cd   :  { %1446 = vmatprep.mubr.f32.mxu0 %v12964_v62 }
 0x4ce   :  { %1447 = vmatmul.mubr.f32.gmra.mrb[28].mxu0 %v12962_v63 }
 0x4cf   :  { %v12971_v60 = vpop.eup %11525 }
 0x4d0   :  { %16396 = vst [vmem:[#allocation65_spill] sm:$0xff] %v12971_v60  ;;  %v12975_v12 = vpop.eup %11527 }
 0x4d1   :  { %16398 = vst [vmem:[#allocation67_spill] sm:$0xff] %v12975_v12  ;;  %1451 = vmatprep.mubr.f32.mxu0 %v12975_v12 }
 0x4d2   :  { %1452 = vmatmul.mubr.f32.gmra.mrb[30].mxu0 %v12971_v60  ;;  %v9763_v25 = vpop.f32.mrb[8].mxu0 }
 0x4d3   :  { %v12984_v11 = vadd.f32 %v11881_v28, %v9763_v25  ;;  %v608_v20 = vpop.f32.mrb[9].mxu0 }
 0x4d4   :  { %v12987_v22 = vadd.f32 %v11881_v28, %v608_v20 }
 0x4d5   :  { %v1869_v24 = vmul.f32 %v12449_v31, %v12984_v11  ;;  %v1885_v23 = vmul.f32 %v12445_v27, %v12984_v11 }
 0x4d6   :  { %v9766_v19 = vpop.f32.mrb[10].mxu0  ;;  %v1868_v2 = vmul.f32 %v12447_v30, %v12987_v22  ;;  %v1884_v8 = vmul.f32 %v12451_v32, %v12987_v22 }
 0x4d7   :  { %v12997_v26 = vadd.f32 %v11881_v28, %v9766_v19  ;;  %v618_v25 = vpop.f32.mrb[11].mxu0 }
 0x4d8   :  { %v12999_v21 = vadd.f32 %v11881_v28, %v618_v25  ;;  %v10909_v57 = vpack.i.bf16 %v1869_v24, %v1868_v2  ;;  %v10904_v20 = vpack.i.bf16 %v1885_v23, %v1884_v8 }
 0x4d9   :  { %v1887_v31 = vmul.f32 %v12453_v49, %v12997_v26  ;;  %v1871_v24 = vmul.f32 %v12457_v34, %v12997_v26 }
 0x4da   :  { %v9769_v60 = vpop.f32.mrb[12].mxu0  ;;  %10910 = vrot.lane.b32.xlu1 %v10909_v57, %s12095_s26  ;;  %10905 = vrot.lane.b32.xlu0 %v10904_v20, %s12095_s26  ;;  %v1886_v30 = vmul.f32 %v12455_v33, %v12999_v21  ;;  %v1870_v25 = vmul.f32 %v12459_v35, %v12999_v21 }
 0x4db   :  { %v13007_v27 = vadd.f32 %v11881_v28, %v9769_v60  ;;  %v628_v19 = vpop.f32.mrb[13].mxu0 }
 0x4dc   :  { %v13013_v23 = vadd.f32 %v11881_v28, %v628_v19  ;;  %v10914_v2 = vpack.i.bf16 %v1887_v31, %v1886_v30  ;;  %v10919_v49 = vpack.i.bf16 %v1871_v24, %v1870_v25 }
 0x4dd   :  { %v1889_v8 = vmul.f32 %v12461_v36, %v13007_v27  ;;  %v1873_v30 = vmul.f32 %v12465_v40, %v13007_v27 }
 0x4de   :  { %v9772_v57 = vpop.f32.mrb[14].mxu0  ;;  %10915 = vrot.lane.b32.xlu1 %v10914_v2, %s12095_s26  ;;  %v1888_v60 = vmul.f32 %v12463_v37, %v13013_v23  ;;  %v1872_v19 = vmul.f32 %v12467_v41, %v13013_v23 }
 0x4df   :  { %v13020_v20 = vadd.f32 %v11881_v28, %v9772_v57  ;;  %v638_v33 = vpop.f32.mrb[15].mxu0 }
 0x4e0   :  { %v13022_v35 = vadd.f32 %v11881_v28, %v638_v33  ;;  %v10924_v32 = vpack.i.bf16 %v1889_v8, %v1888_v60  ;;  %v1892_v33 = vmul.f32 %v12479_v47, %v12987_v22  ;;  %v1893_v28 = vmul.f32 %v12477_v46, %v12984_v11 }
 0x4e1   :  { %v1891_v31 = vmul.f32 %v12469_v42, %v13020_v20  ;;  %v10929_v25 = vpack.i.bf16 %v1873_v30, %v1872_v19  ;;  %v1875_v57 = vmul.f32 %v12473_v44, %v13020_v20  ;;  %v1894_v19 = vmul.f32 %v12487_v53, %v12999_v21 }
 0x4e2   :  { %10920 = vrot.lane.b32.xlu1 %v10919_v49, %s12095_s26  ;;  %10925 = vrot.lane.b32.xlu0 %v10924_v32, %s12095_s26  ;;  %v1890_v2 = vmul.f32 %v12471_v43, %v13022_v35  ;;  %v1874_v8 = vmul.f32 %v12475_v45, %v13022_v35  ;;  %v1876_v32 = vmul.f32 %v12483_v51, %v12987_v22 }
 0x4e3   :  { %v1877_v49 = vmul.f32 %v12481_v50, %v12984_v11  ;;  %v10944_v46 = vpack.i.bf16 %v1893_v28, %v1892_v33  ;;  %v1895_v30 = vmul.f32 %v12485_v52, %v12997_v26  ;;  %v1896_v33 = vmul.f32 %v12526_v14, %v13013_v23 }
 0x4e4   :  { %v10934_v24 = vpack.i.bf16 %v1891_v31, %v1890_v2  ;;  %v10939_v60 = vpack.i.bf16 %v1875_v57, %v1874_v8  ;;  %v1878_v31 = vmul.f32 %v12498_v61, %v12999_v21  ;;  %v1879_v2 = vmul.f32 %v12494_v58, %v12997_v26 }
 0x4e5   :  { %v1897_v28 = vmul.f32 %v12518_v10, %v13007_v27 }
 0x4e6   :  { %10930 = vrot.lane.b32.xlu1 %v10929_v25, %s12095_s26  ;;  %10935 = vrot.lane.b32.xlu0 %v10934_v24, %s12095_s26  ;;  %v10949_v25 = vpack.i.bf16 %v1877_v49, %v1876_v32  ;;  %v10954_v24 = vpack.i.bf16 %v1895_v30, %v1894_v19  ;;  %v10959_v8 = vpack.i.bf16 %v1879_v2, %v1878_v31  ;;  %v16399_v32 = vld [vmem:[#allocation45_spill] sm:$0xff]  ;;  %v16400_v19 = vld [vmem:[#allocation44_spill] sm:$0xff]  ;;  %v16401_v31 = vld [vmem:[#allocation47_spill] sm:$0xff] }
 0x4e7   :  { %v10964_v57 = vpack.i.bf16 %v1897_v28, %v1896_v33  ;;  %v1898_v49 = vmul.f32 %v16399_v32, %v13022_v35  ;;  %v1899_v30 = vmul.f32 %v16400_v19, %v13020_v20  ;;  %v1882_v2 = vmul.f32 %v16401_v31, %v13022_v35  ;;  %v16402_v33 = vld [vmem:[#allocation46_spill] sm:$0xff]  ;;  %v11882_v19 = vld [vmem:[#allocation7 + $0x80] sm:$0xff] }
 0x4e8   :  { %v1883_v28 = vmul.f32 %v16402_v33, %v13020_v20 }
 0x4ea   :  { %10940 = vrot.lane.b32.xlu1 %v10939_v60, %s12095_s26  ;;  %10945 = vrot.lane.b32.xlu0 %v10944_v46, %s12095_s26  ;;  %v1880_v46 = vmul.f32 %v12548_v55, %v13013_v23  ;;  %v1881_v60 = vmul.f32 %v12546_v48, %v13007_v27  ;;  %v10979_v32 = vpack.i.bf16 %v1883_v28, %v1882_v2  ;;  %v11893_v2 = vld [vmem:[#allocation7 + $0x28] sm:$0xff]  ;;  %v11894_v28 = vld [vmem:[#allocation7 + $0xb0] sm:$0xff] }
 0x4ee   :  { %10950 = vrot.lane.b32.xlu1 %v10949_v25, %s12095_s26  ;;  %10955 = vrot.lane.b32.xlu0 %v10954_v24, %s12095_s26  ;;  %v10969_v25 = vpack.i.bf16 %v1881_v60, %v1880_v46  ;;  %v10974_v24 = vpack.i.bf16 %v1899_v30, %v1898_v49  ;;  %v11884_v46 = vld [vmem:[#allocation7] sm:$0xff]  ;;  %v11886_v60 = vld [vmem:[#allocation7 + $0x90] sm:$0xff]  ;;  %v11887_v49 = vld [vmem:[#allocation7 + $0x98] sm:$0xff] }
 0x4ef   :  { %v11889_v30 = vld [vmem:[#allocation7 + $0x18] sm:$0xff] }
 0x4f2   :  { %10960 = vrot.lane.b32.xlu1 %v10959_v8, %s12095_s26  ;;  %10965 = vrot.lane.b32.xlu0 %v10964_v57, %s12095_s26  ;;  %v11883_v8 = vld [vmem:[#allocation7 + $0x88] sm:$0xff] }
 0x4f3   :  { %v11885_v57 = vld [vmem:[#allocation7 + $0x8] sm:$0xff] }
 0x4f6   :  { %10970 = vrot.lane.b32.xlu1 %v10969_v25, %s12095_s26  ;;  %10975 = vrot.lane.b32.xlu0 %v10974_v24, %s12095_s26  ;;  %v11891_v25 = vld [vmem:[#allocation7 + $0xa8] sm:$0xff]  ;;  %v11892_v24 = vld [vmem:[#allocation7 + $0x20] sm:$0xff] }
 0x4fa   :  { %10980 = vrot.lane.b32.xlu1 %v10979_v32, %s12095_s26  ;;  %855 = vrot.lane.b32.xlu0 %v11882_v19, %s12096_s3  ;;  %v11888_v32 = vld [vmem:[#allocation7 + $0x10] sm:$0xff]  ;;  %v11890_v19 = vld [vmem:[#allocation7 + $0xa0] sm:$0xff] }
 0x4fe   :  { %857 = vrot.lane.b32.xlu1 %v11883_v8, %s12096_s3  ;;  %823 = vrot.lane.b32.xlu0 %v11884_v46, %s12096_s3  ;;  %v11895_v8 = vld [vmem:[#allocation7 + $0xb8] sm:$0xff]  ;;  %v11896_v46 = vld [vmem:[#allocation7 + $0x30] sm:$0xff] }
 0x502   :  { %825 = vrot.lane.b32.xlu1 %v11885_v57, %s12096_s3  ;;  %859 = vrot.lane.b32.xlu0 %v11886_v60, %s12096_s3  ;;  %v11897_v57 = vld [vmem:[#allocation7 + $0x38] sm:$0xff]  ;;  %v11898_v60 = vld [vmem:[#allocation7 + $0xc0] sm:$0xff] }
 0x506   :  { %861 = vrot.lane.b32.xlu1 %v11887_v49, %s12096_s3  ;;  %827 = vrot.lane.b32.xlu0 %v11888_v32, %s12096_s3  ;;  %v16184_v49 = vmov 0.0   ;;  %v11899_v32 = vld [vmem:[#allocation7 + $0xc8] sm:$0xff] }
 0x507   :  { %1570 = vmatprep.mubr.f32.mxu0 %v16184_v49 }
 0x50a   :  { %829 = vrot.lane.b32.xlu1 %v11889_v30, %s12096_s3  ;;  %863 = vrot.lane.b32.xlu0 %v11890_v19, %s12096_s3  ;;  %v11900_v30 = vld [vmem:[#allocation7 + $0x40] sm:$0xff]  ;;  %v11901_v19 = vld [vmem:[#allocation7 + $0x48] sm:$0xff] }
 0x50e   :  { %865 = vrot.lane.b32.xlu1 %v11891_v25, %s12096_s3  ;;  %831 = vrot.lane.b32.xlu0 %v11892_v24, %s12096_s3  ;;  %v11902_v25 = vld [vmem:[#allocation7 + $0xd0] sm:$0xff]  ;;  %v11903_v24 = vld [vmem:[#allocation7 + $0xd8] sm:$0xff] }
 0x512   :  { %833 = vrot.lane.b32.xlu1 %v11893_v2, %s12096_s3  ;;  %867 = vrot.lane.b32.xlu0 %v11894_v28, %s12096_s3  ;;  %v11904_v2 = vld [vmem:[#allocation7 + $0x50] sm:$0xff]  ;;  %v11905_v28 = vld [vmem:[#allocation7 + $0x58] sm:$0xff] }
 0x516   :  { %869 = vrot.lane.b32.xlu1 %v11895_v8, %s12096_s3  ;;  %835 = vrot.lane.b32.xlu0 %v11896_v46, %s12096_s3  ;;  %v11906_v8 = vld [vmem:[#allocation7 + $0xe0] sm:$0xff]  ;;  %v11907_v46 = vld [vmem:[#allocation7 + $0xe8] sm:$0xff] }
 0x51a   :  { %837 = vrot.lane.b32.xlu1 %v11897_v57, %s12096_s3  ;;  %871 = vrot.lane.b32.xlu0 %v11898_v60, %s12096_s3  ;;  %v11908_v57 = vld [vmem:[#allocation7 + $0x60] sm:$0xff]  ;;  %v11909_v60 = vld [vmem:[#allocation7 + $0x68] sm:$0xff] }
 0x51e   :  { %873 = vrot.lane.b32.xlu1 %v11899_v32, %s12096_s3  ;;  %839 = vrot.lane.b32.xlu0 %v11900_v30, %s12096_s3  ;;  %v11910_v32 = vld [vmem:[#allocation7 + $0xf0] sm:$0xff]  ;;  %v11911_v30 = vld [vmem:[#allocation7 + $0xf8] sm:$0xff] }
 0x522   :  { %841 = vrot.lane.b32.xlu1 %v11901_v19, %s12096_s3  ;;  %875 = vrot.lane.b32.xlu0 %v11902_v25, %s12096_s3  ;;  %v11912_v19 = vld [vmem:[#allocation7 + $0x70] sm:$0xff]  ;;  %v11913_v25 = vld [vmem:[#allocation7 + $0x78] sm:$0xff] }
 0x526   :  { %877 = vrot.lane.b32.xlu1 %v11903_v24, %s12096_s3  ;;  %843 = vrot.lane.b32.xlu0 %v11904_v2, %s12096_s3 }
 0x52a   :  { %845 = vrot.lane.b32.xlu1 %v11905_v28, %s12096_s3  ;;  %879 = vrot.lane.b32.xlu0 %v11906_v8, %s12096_s3 }
 0x52e   :  { %881 = vrot.lane.b32.xlu1 %v11907_v46, %s12096_s3  ;;  %847 = vrot.lane.b32.xlu0 %v11908_v57, %s12096_s3 }
 0x532   :  { %849 = vrot.lane.b32.xlu1 %v11909_v60, %s12096_s3  ;;  %883 = vrot.lane.b32.xlu0 %v11910_v32, %s12096_s3 }
 0x536   :  { %885 = vrot.lane.b32.xlu1 %v11911_v30, %s12096_s3  ;;  %851 = vrot.lane.b32.xlu0 %v11912_v19, %s12096_s3 }
 0x53a   :  { %853 = vrot.lane.b32.xlu1 %v11913_v25, %s12096_s3 }
 0x54c   :  { %v13114_v24 = vpop.permute.xlu1 %10910  ;;  %v10906_v2 = vpop.permute.xlu0 %10905 }
 0x54d   :  { %v10908_v28 = vunpack.i.h.bf16 %v10906_v2  ;;  %v10907_v8 = vunpack.i.l.bf16 %v10906_v2 }
 0x54f   :  { %v10329_v46 = vpack.c.bf16 %v10908_v28, %v10907_v8 }
 0x550   :  { %v13116_v57 = vpop.permute.xlu1 %10915 }
 0x551   :  { %10331 = vmatprep.subr.msk.bf16.mxu0 %vm12668_vm1, %v10329_v46 }
 0x554   :  { %v13120_v60 = vpop.permute.xlu1 %10920  ;;  %v13122_v32 = vpop.permute.xlu0 %10925 }
 0x558   :  { %v13124_v30 = vpop.permute.xlu1 %10930  ;;  %v13126_v19 = vpop.permute.xlu0 %10935 }
 0x55c   :  { %v13128_v25 = vpop.permute.xlu1 %10940  ;;  %v13130_v49 = vpop.permute.xlu0 %10945 }
 0x560   :  { %v13132_v33 = vpop.permute.xlu1 %10950  ;;  %v13134_v2 = vpop.permute.xlu0 %10955 }
 0x564   :  { %v13136_v28 = vpop.permute.xlu1 %10960  ;;  %v13138_v8 = vpop.permute.xlu0 %10965 }
 0x568   :  { %v13140_v46 = vpop.permute.xlu1 %10970  ;;  %v13142_v31 = vpop.permute.xlu0 %10975 }
 0x56c   :  { %v13144_v48 = vpop.permute.xlu1 %10980  ;;  %v13146_v55 = vpop.permute.xlu0 %855 }
 0x56d   :  { %16403 = vst [vmem:[#allocation68_spill] sm:$0xff] %v13146_v55  ;;  %v935_v58 = vmul.f32 %v13146_v55, %v12496_v59 }
 0x570   :  { %v13148_v10 = vpop.permute.xlu1 %857  ;;  %v13150_v14 = vpop.permute.xlu0 %823 }
 0x571   :  { %16404 = vst [vmem:[#allocation69_spill] sm:$0xff] %v13148_v10  ;;  %16405 = vst [vmem:[#allocation70_spill] sm:$0xff] %v13150_v14  ;;  %v936_v61 = vmul.f32 %v13148_v10, %v12492_v56  ;;  %v919_v51 = vmul.f32 %v13150_v14, %v12496_v59 }
 0x573   :  { %v10984_v52 = vpack.i.bf16 %v936_v61, %v935_v58 }
 0x574   :  { %v13156_v53 = vpop.permute.xlu1 %825  ;;  %v13158_v50 = vpop.permute.xlu0 %859 }
 0x575   :  { %16406 = vst [vmem:[#allocation71_spill] sm:$0xff] %v13156_v53  ;;  %16407 = vst [vmem:[#allocation72_spill] sm:$0xff] %v13158_v50  ;;  %v920_v47 = vmul.f32 %v13156_v53, %v12492_v56  ;;  %10985 = vrot.lane.b32.xlu0 %v10984_v52, %s12096_s3  ;;  %v937_v58 = vmul.f32 %v13158_v50, %v12512_v6 }
 0x577   :  { %v10989_v45 = vpack.i.bf16 %v920_v47, %v919_v51 }
 0x578   :  { %v13165_v43 = vpop.permute.xlu1 %861  ;;  %v13167_v44 = vpop.permute.xlu0 %827  ;;  %v16459_v7 = vld [vmem:[#allocation70_spill] sm:$0xff] }
 0x579   :  { %16408 = vst [vmem:[#allocation73_spill] sm:$0xff] %v13165_v43  ;;  %16409 = vst [vmem:[#allocation74_spill] sm:$0xff] %v13167_v44  ;;  %v938_v61 = vmul.f32 %v13165_v43, %v12510_v4  ;;  %10990 = vrot.lane.b32.xlu1 %v10989_v45, %s12096_s3  ;;  %v921_v47 = vmul.f32 %v13167_v44, %v12512_v6 }
 0x57b   :  { %v10994_v42 = vpack.i.bf16 %v938_v61, %v937_v58  ;;  %v16414_v58 = vld [vmem:[#allocation39_spill] sm:$0xff] }
 0x57c   :  { %v13174_v40 = vpop.permute.xlu1 %829  ;;  %v13176_v41 = vpop.permute.xlu0 %863 }
 0x57d   :  { %16410 = vst [vmem:[#allocation75_spill] sm:$0xff] %v13174_v40  ;;  %16411 = vst [vmem:[#allocation76_spill] sm:$0xff] %v13176_v41  ;;  %v922_v51 = vmul.f32 %v13174_v40, %v12510_v4  ;;  %10995 = vrot.lane.b32.xlu0 %v10994_v42, %s12096_s3  ;;  %v939_v45 = vmul.f32 %v13176_v41, %v12530_v15 }
 0x57f   :  { %v10999_v52 = vpack.i.bf16 %v922_v51, %v921_v47 }
 0x580   :  { %v13183_v37 = vpop.permute.xlu1 %865  ;;  %v13185_v36 = vpop.permute.xlu0 %831 }
 0x581   :  { %16412 = vst [vmem:[#allocation77_spill] sm:$0xff] %v13183_v37  ;;  %16413 = vst [vmem:[#allocation78_spill] sm:$0xff] %v13185_v36  ;;  %v940_v61 = vmul.f32 %v13183_v37, %v16414_v58  ;;  %11000 = vrot.lane.b32.xlu1 %v10999_v52, %s12096_s3  ;;  %v923_v42 = vmul.f32 %v13185_v36, %v12530_v15  ;;  %v16419_v37 = vld [vmem:[#allocation41_spill] sm:$0xff] }
 0x583   :  { %v11004_v34 = vpack.i.bf16 %v940_v61, %v939_v45  ;;  %v16420_v45 = vld [vmem:[#allocation40_spill] sm:$0xff] }
 0x584   :  { %v13192_v44 = vpop.permute.xlu1 %833  ;;  %v13194_v50 = vpop.permute.xlu0 %867 }
 0x585   :  { %16415 = vst [vmem:[#allocation39_spill] sm:$0xff] %v13192_v44  ;;  %16416 = vst [vmem:[#allocation79_spill] sm:$0xff] %v13194_v50  ;;  %v924_v47 = vmul.f32 %v13192_v44, %v16414_v58  ;;  %11005 = vrot.lane.b32.xlu0 %v11004_v34, %s12096_s3  ;;  %v941_v52 = vmul.f32 %v13194_v50, %v16419_v37 }
 0x587   :  { %v11009_v51 = vpack.i.bf16 %v924_v47, %v923_v42 }
 0x588   :  { %v13201_v40 = vpop.permute.xlu1 %869  ;;  %v13203_v41 = vpop.permute.xlu0 %835 }
 0x589   :  { %16417 = vst [vmem:[#allocation80_spill] sm:$0xff] %v13201_v40  ;;  %16418 = vst [vmem:[#allocation81_spill] sm:$0xff] %v13203_v41  ;;  %v942_v61 = vmul.f32 %v13201_v40, %v16420_v45  ;;  %v8915_v43 = vpop.f32.mrb[16].mxu0  ;;  %11010 = vrot.lane.b32.xlu1 %v11009_v51, %s12096_s3  ;;  %v925_v42 = vmul.f32 %v13203_v41, %v16419_v37 }
 0x58a   :  { %v8916_v36 = vpop.f32.mrb[17].mxu0 }
 0x58b   :  { %v8917_v55 = vadd.f32 %v8916_v36, %v8915_v43  ;;  %v11014_v14 = vpack.i.bf16 %v942_v61, %v941_v52 }
 0x58c   :  { %v13210_v44 = vpop.permute.xlu1 %837  ;;  %v13212_v34 = vpop.permute.xlu0 %871 }
 0x58d   :  { %16421 = vst [vmem:[#allocation41_spill] sm:$0xff] %v13210_v44  ;;  %16422 = vst [vmem:[#allocation40_spill] sm:$0xff] %v13212_v34  ;;  %v1419_v47 = vadd.f32 1e-30, %v8917_v55  ;;  %v926_v50 = vmul.f32 %v13210_v44, %v16420_v45  ;;  %v8918_v10 = vpop.f32.mrb[18].mxu0  ;;  %11015 = vrot.lane.b32.xlu0 %v11014_v14, %s12096_s3  ;;  %v943_v52 = vmul.f32 %v13212_v34, %v12496_v59 }
 0x58e   :  { %v8919_v40 = vpop.f32.mrb[19].mxu0 }
 0x58f   :  { %11529 = vrcp.f32 %v1419_v47  ;;  %v8920_v51 = vadd.f32 %v8919_v40, %v8918_v10  ;;  %v11019_v53 = vpack.i.bf16 %v926_v50, %v925_v42  ;;  %v10913_v40 = vunpack.i.h.bf16 %v13114_v24 }
 0x590   :  { %v13219_v36 = vpop.permute.xlu1 %873  ;;  %v13221_v43 = vpop.permute.xlu0 %839  ;;  %v10912_v42 = vunpack.i.l.bf16 %v13114_v24 }
 0x591   :  { %16423 = vst [vmem:[#allocation82_spill] sm:$0xff] %v13219_v36  ;;  %16424 = vst [vmem:[#allocation83_spill] sm:$0xff] %v13221_v43  ;;  %v1424_v61 = vadd.f32 1e-30, %v8920_v51  ;;  %v944_v55 = vmul.f32 %v13219_v36, %v12492_v56  ;;  %v8921_v41 = vpop.f32.mrb[20].mxu0  ;;  %11020 = vrot.lane.b32.xlu1 %v11019_v53, %s12096_s3  ;;  %v927_v51 = vmul.f32 %v13221_v43, %v12496_v59 }
 0x592   :  { %v8922_v44 = vpop.f32.mrb[21].mxu0 }
 0x593   :  { %11531 = vrcp.f32 %v1424_v61  ;;  %v8923_v14 = vadd.f32 %v8922_v44, %v8921_v41  ;;  %v11024_v47 = vpack.i.bf16 %v944_v55, %v943_v52  ;;  %v10918_v41 = vunpack.i.h.bf16 %v13116_v57 }
 0x594   :  { %v13229_v50 = vpop.permute.xlu1 %841  ;;  %v13231_v10 = vpop.permute.xlu0 %875  ;;  %v10917_v44 = vunpack.i.l.bf16 %v13116_v57 }
 0x595   :  { %16425 = vst [vmem:[#allocation84_spill] sm:$0xff] %v13229_v50  ;;  %16426 = vst [vmem:[#allocation85_spill] sm:$0xff] %v13231_v10  ;;  %v1429_v34 = vadd.f32 1e-30, %v8923_v14  ;;  %v928_v36 = vmul.f32 %v13229_v50, %v12492_v56  ;;  %v8924_v53 = vpop.f32.mrb[22].mxu0  ;;  %11025 = vrot.lane.b32.xlu0 %v11024_v47, %s12096_s3  ;;  %v10332_v14 = vpack.c.bf16 %v10913_v40, %v10912_v42  ;;  %v16429_v40 = vmov 0.0  }
 0x596   :  { %v8925_v52 = vpop.f32.mrb[23].mxu0  ;;  %v945_v56 = vmul.f32 %v13231_v10, %v12512_v6  ;;  %v10335_v57 = vpack.c.bf16 %v10918_v41, %v10917_v44  ;;  %v10922_v44 = vunpack.i.l.bf16 %v13120_v60 }
 0x597   :  { %11533 = vrcp.f32 %v1429_v34  ;;  %v8926_v61 = vadd.f32 %v8925_v52, %v8924_v53  ;;  %v11029_v55 = vpack.i.bf16 %v928_v36, %v927_v51  ;;  %v10923_v51 = vunpack.i.h.bf16 %v13120_v60 }
 0x598   :  { %v13241_v24 = vpop.permute.xlu1 %877  ;;  %v13243_v12 = vpop.permute.xlu0 %843 }
 0x599   :  { %16427 = vst [vmem:[#allocation86_spill] sm:$0xff] %v13241_v24  ;;  %16428 = vst [vmem:[#allocation87_spill] sm:$0xff] %v13243_v12  ;;  %v11530_v59 = vpop.eup %11529  ;;  %v1434_v43 = vadd.f32 1e-30, %v8926_v61  ;;  %v946_v47 = vmul.f32 %v13241_v24, %v12510_v4  ;;  %v8927_v50 = vpop.f32.mrb[24].mxu0  ;;  %11030 = vrot.lane.b32.xlu1 %v11029_v55, %s12096_s3 }
 0x59a   :  { %v8928_v34 = vpop.f32.mrb[25].mxu0  ;;  %8460 = vmatmul.mubr.msk.f32.vlgmr.msra.gmra.mrb[32].mxu0 %vm1476_vm3, %v11530_v59  ;;  %v10928_v59 = vunpack.i.h.bf16 %v13122_v32 }
 0x59b   :  { %11535 = vrcp.f32 %v1434_v43  ;;  %v8929_v36 = vadd.f32 %v8928_v34, %v8927_v50  ;;  %10334 = vmatpush3.bf16.xpose.msk.msra.mxu0 %vm12668_vm1, %v10332_v14  ;;  %1576 = vmatprep.mubr.f32.mxu0 %v16429_v40  ;;  %v11034_v42 = vpack.i.bf16 %v946_v47, %v945_v56  ;;  %v929_v43 = vmul.f32 %v13243_v12, %v12512_v6 }
 0x59c   :  { %10337 = vmatprep.subr.msk.bf16.mxu0 %vm12668_vm1, %v10335_v57  ;;  %v13257_v53 = vpop.permute.xlu1 %845  ;;  %v13259_v52 = vpop.permute.xlu0 %879  ;;  %v10927_v14 = vunpack.i.l.bf16 %v13122_v32  ;;  %v10338_v34 = vpack.c.bf16 %v10923_v51, %v10922_v44  ;;  %v10933_v44 = vunpack.i.h.bf16 %v13124_v30 }
 0x59d   :  { %16430 = vst [vmem:[#allocation88_spill] sm:$0xff] %v13257_v53  ;;  %16431 = vst [vmem:[#allocation89_spill] sm:$0xff] %v13259_v52  ;;  %v11532_v41 = vpop.eup %11531  ;;  %v1439_v50 = vadd.f32 1e-30, %v8929_v36  ;;  %v930_v61 = vmul.f32 %v13257_v53, %v12510_v4  ;;  %v8930_v55 = vpop.f32.mrb[26].mxu0  ;;  %11035 = vrot.lane.b32.xlu0 %v11034_v42, %s12096_s3  ;;  %v947_v36 = vmul.f32 %v13259_v52, %v12530_v15 }
 0x59e   :  { %v8931_v56 = vpop.f32.mrb[27].mxu0  ;;  %8461 = vmatmul.mubr.msk.f32.gmra.mrb[34].mxu0 %vm1476_vm3, %v11532_v41  ;;  %v10341_v41 = vpack.c.bf16 %v10928_v59, %v10927_v14  ;;  %v10932_v14 = vunpack.i.l.bf16 %v13124_v30 }
 0x59f   :  { %11537 = vrcp.f32 %v1439_v50  ;;  %v8932_v47 = vadd.f32 %v8931_v56, %v8930_v55  ;;  %1582 = vmatprep.mubr.f32.mxu0 %v16429_v40  ;;  %v11039_v60 = vpack.i.bf16 %v930_v61, %v929_v43 }
 0x5a0   :  { %v13271_v6 = vpop.permute.xlu1 %881  ;;  %v13273_v57 = vpop.permute.xlu0 %847 }
 0x5a1   :  { %16432 = vst [vmem:[#allocation90_spill] sm:$0xff] %v13271_v6  ;;  %16433 = vst [vmem:[#allocation91_spill] sm:$0xff] %v13273_v57  ;;  %v11534_v4 = vpop.eup %11533  ;;  %v1444_v42 = vadd.f32 1e-30, %v8932_v47  ;;  %v948_v32 = vmul.f32 %v13271_v6, %v16414_v58  ;;  %v8933_v10 = vpop.f32.mrb[28].mxu0  ;;  %11040 = vrot.lane.b32.xlu1 %v11039_v60, %s12096_s3 }
 0x5a2   :  { %v8934_v50 = vpop.f32.mrb[29].mxu0  ;;  %8462 = vmatmul.mubr.msk.f32.gmra.mrb[36].mxu0 %vm1476_vm3, %v11534_v4  ;;  %v10938_v4 = vunpack.i.h.bf16 %v13126_v19 }
 0x5a3   :  { %11539 = vrcp.f32 %v1444_v42  ;;  %v8935_v43 = vadd.f32 %v8934_v50, %v8933_v10  ;;  %10340 = vmatpush3.bf16.xpose.msk.msra.mxu0 %vm12668_vm1, %v10338_v34  ;;  %1588 = vmatprep.mubr.f32.mxu0 %v16429_v40  ;;  %v11044_v51 = vpack.i.bf16 %v948_v32, %v947_v36  ;;  %v931_v10 = vmul.f32 %v13273_v57, %v12530_v15 }
 0x5a4   :  { %10343 = vmatprep.subr.msk.bf16.mxu0 %vm12668_vm1, %v10341_v41  ;;  %v13287_v61 = vpop.permute.xlu1 %849  ;;  %v13289_v55 = vpop.permute.xlu0 %883  ;;  %v10937_v34 = vunpack.i.l.bf16 %v13126_v19  ;;  %v10344_v41 = vpack.c.bf16 %v10933_v44, %v10932_v14 }
 0x5a5   :  { %16434 = vst [vmem:[#allocation92_spill] sm:$0xff] %v13287_v61  ;;  %16435 = vst [vmem:[#allocation93_spill] sm:$0xff] %v13289_v55  ;;  %v11536_v59 = vpop.eup %11535  ;;  %v1449_v56 = vadd.f32 1e-30, %v8935_v43  ;;  %v932_v47 = vmul.f32 %v13287_v61, %v16414_v58  ;;  %v8936_v60 = vpop.f32.mrb[30].mxu0  ;;  %11045 = vrot.lane.b32.xlu0 %v11044_v51, %s12096_s3  ;;  %v949_v58 = vmul.f32 %v13289_v55, %v16419_v37 }
 0x5a6   :  { %v8937_v36 = vpop.f32.mrb[31].mxu0  ;;  %8463 = vmatmul.mubr.msk.f32.gmra.mrb[38].mxu0 %vm1476_vm3, %v11536_v59  ;;  %v10347_v19 = vpack.c.bf16 %v10938_v4, %v10937_v34  ;;  %v10948_v4 = vunpack.i.h.bf16 %v13130_v49  ;;  %v10947_v34 = vunpack.i.l.bf16 %v13130_v49  ;;  %v10953_v49 = vunpack.i.h.bf16 %v13132_v33 }
 0x5a7   :  { %11541 = vrcp.f32 %v1449_v56  ;;  %v8938_v42 = vadd.f32 %v8937_v36, %v8936_v60  ;;  %1594 = vmatprep.mubr.f32.mxu0 %v16429_v40  ;;  %v11049_v30 = vpack.i.bf16 %v932_v47, %v931_v10  ;;  %v10943_v10 = vunpack.i.h.bf16 %v13128_v25 }
 0x5a8   :  { %v13301_v15 = vpop.permute.xlu1 %885  ;;  %v13308_v51 = vpop.permute.xlu0 %851  ;;  %v10942_v56 = vunpack.i.l.bf16 %v13128_v25  ;;  %v10353_v25 = vpack.c.bf16 %v10948_v4, %v10947_v34  ;;  %v10982_v34 = vunpack.i.l.bf16 %v13144_v48 }
 0x5a9   :  { %16436 = vst [vmem:[#allocation94_spill] sm:$0xff] %v13301_v15  ;;  %v11538_v32 = vpop.eup %11537  ;;  %v1454_v50 = vadd.f32 1e-30, %v8938_v42  ;;  %v950_v43 = vmul.f32 %v13301_v15, %v16420_v45  ;;  %11050 = vrot.lane.b32.xlu1 %v11049_v30, %s12096_s3  ;;  %16437 = vst [vmem:[#allocation95_spill] sm:$0xff] %v13308_v51  ;;  %v933_v47 = vmul.f32 %v13308_v51, %v16419_v37 }
 0x5aa   :  { %8464 = vmatmul.mubr.msk.f32.gmra.mrb[40].mxu0 %vm1476_vm3, %v11538_v32  ;;  %v10350_v30 = vpack.c.bf16 %v10943_v10, %v10942_v56  ;;  %v10958_v32 = vunpack.i.h.bf16 %v13134_v2  ;;  %v10973_v10 = vunpack.i.h.bf16 %v13140_v46  ;;  %v10972_v56 = vunpack.i.l.bf16 %v13140_v46 }
 0x5ab   :  { %11543 = vrcp.f32 %v1454_v50  ;;  %10346 = vmatpush3.bf16.xpose.msk.msra.mxu0 %vm12668_vm1, %v10344_v41  ;;  %1600 = vmatprep.mubr.f32.mxu0 %v16429_v40  ;;  %v11054_v44 = vpack.i.bf16 %v950_v43, %v949_v58  ;;  %v10957_v41 = vunpack.i.l.bf16 %v13134_v2  ;;  %v10963_v43 = vunpack.i.h.bf16 %v13136_v28 }
 0x5ac   :  { %10349 = vmatprep.subr.msk.bf16.mxu0 %vm12668_vm1, %v10347_v19  ;;  %v13316_v59 = vpop.permute.xlu1 %853  ;;  %v10968_v19 = vunpack.i.h.bf16 %v13138_v8  ;;  %v10967_v2 = vunpack.i.l.bf16 %v13138_v8  ;;  %v10983_v8 = vunpack.i.h.bf16 %v13144_v48 }
 0x5ad   :  { %16438 = vst [vmem:[#allocation96_spill] sm:$0xff] %v13316_v59  ;;  %v11540_v14 = vpop.eup %11539  ;;  %v934_v60 = vmul.f32 %v13316_v59, %v16420_v45  ;;  %11055 = vrot.lane.b32.xlu0 %v11054_v44, %s12096_s3  ;;  %v10952_v45 = vunpack.i.l.bf16 %v13132_v33  ;;  %v10359_v50 = vpack.c.bf16 %v10958_v32, %v10957_v41  ;;  %v10962_v33 = vunpack.i.l.bf16 %v13136_v28 }
 0x5ae   :  { %8465 = vmatmul.mubr.msk.f32.gmra.mrb[42].mxu0 %vm1476_vm3, %v11540_v14  ;;  %v10365_v14 = vpack.c.bf16 %v10968_v19, %v10967_v2  ;;  %v10977_v28 = vunpack.i.l.bf16 %v13142_v31 }
 0x5af   :  { %1606 = vmatprep.mubr.f32.mxu0 %v16429_v40  ;;  %v11059_v36 = vpack.i.bf16 %v934_v60, %v933_v47  ;;  %v10356_v58 = vpack.c.bf16 %v10953_v49, %v10952_v45  ;;  %v10362_v44 = vpack.c.bf16 %v10963_v43, %v10962_v33  ;;  %v10978_v47 = vunpack.i.h.bf16 %v13142_v31 }
 0x5b0   :  { %v10368_v60 = vpack.c.bf16 %v10973_v10, %v10972_v56 }
 0x5b1   :  { %v11542_v42 = vpop.eup %11541  ;;  %11060 = vrot.lane.b32.xlu1 %v11059_v36, %s12096_s3  ;;  %v10371_v4 = vpack.c.bf16 %v10978_v47, %v10977_v28  ;;  %v10374_v36 = vpack.c.bf16 %v10983_v8, %v10982_v34 }
 0x5b2   :  { %8466 = vmatmul.mubr.msk.f32.gmra.mrb[44].mxu0 %vm1476_vm3, %v11542_v42 }
 0x5b3   :  { %10352 = vmatpush3.bf16.xpose.msk.msra.mxu0 %vm12668_vm1, %v10350_v30  ;;  %1612 = vmatprep.mubr.f32.mxu0 %v16429_v40 }
 0x5b4   :  { %10355 = vmatprep.subr.msk.bf16.mxu0 %vm12668_vm1, %v10353_v25 }
 0x5b5   :  { %v11544_v37 = vpop.eup %11543 }
 0x5b6   :  { %8467 = vmatmul.mubr.msk.f32.gmra.mrb[46].mxu0 %vm1476_vm3, %v11544_v37 }
 0x5b7   :  { %9027 = vmatprep.mubr.msk.f32.mxu0 %vm189_vm0, %v12987_v22 }
 0x5bb   :  { %10358 = vmatpush3.bf16.xpose.msk.msra.mxu0 %vm12668_vm1, %v10356_v58 }
 0x5bc   :  { %10361 = vmatprep.subr.msk.bf16.mxu0 %vm12668_vm1, %v10359_v50 }
 0x5c3   :  { %10364 = vmatpush3.bf16.xpose.msk.msra.mxu0 %vm12668_vm1, %v10362_v44 }
 0x5c4   :  { %10367 = vmatprep.subr.msk.bf16.mxu0 %vm12668_vm1, %v10365_v14 }
 0x5cb   :  { %10370 = vmatpush3.bf16.xpose.msk.msra.mxu0 %vm12668_vm1, %v10368_v60 }
 0x5cc   :  { %10373 = vmatprep.subr.msk.bf16.mxu0 %vm12668_vm1, %v10371_v4 }
 0x5d3   :  { %10376 = vmatpush3.bf16.xpose.msk.msra.mxu0 %vm12668_vm1, %v10374_v36 }
 0x5da   :  { %9028 = vmatmul.mubr.msk.f32.vlgmr.msra.gmra.mrb[48].mxu0 %vm189_vm0, %v12987_v22 }
 0x5db   :  { %9029 = vmatprep.mubr.msk.f32.mxu0 %vm189_vm0, %v12984_v11 }
 0x5de   :  { %9030 = vmatmul.mubr.msk.f32.gmra.mrb[50].mxu0 %vm189_vm0, %v12984_v11 }
 0x5df   :  { %9031 = vmatprep.mubr.msk.f32.mxu0 %vm189_vm0, %v12999_v21 }
 0x5e2   :  { %9032 = vmatmul.mubr.msk.f32.gmra.mrb[52].mxu0 %vm189_vm0, %v12999_v21 }
 0x5e3   :  { %9033 = vmatprep.mubr.msk.f32.mxu0 %vm189_vm0, %v12997_v26 }
 0x5e6   :  { %9034 = vmatmul.mubr.msk.f32.gmra.mrb[54].mxu0 %vm189_vm0, %v12997_v26 }
 0x5e7   :  { %9035 = vmatprep.mubr.msk.f32.mxu0 %vm189_vm0, %v13013_v23  ;;  %v10986_v48 = vpop.permute.xlu0 %10985 }
 0x5e8   :  { %v10988_v31 = vunpack.i.h.bf16 %v10986_v48  ;;  %v10987_v46 = vunpack.i.l.bf16 %v10986_v48 }
 0x5ea   :  { %9036 = vmatmul.mubr.msk.f32.gmra.mrb[56].mxu0 %vm189_vm0, %v13013_v23  ;;  %v10297_v42 = vpack.c.bf16 %v10988_v31, %v10987_v46 }
 0x5eb   :  { %9037 = vmatprep.mubr.msk.f32.mxu0 %vm189_vm0, %v13007_v27  ;;  %v10991_v30 = vpop.permute.xlu1 %10990 }
 0x5ec   :  { %v10993_v25 = vunpack.i.h.bf16 %v10991_v30  ;;  %v10992_v37 = vunpack.i.l.bf16 %v10991_v30  ;;  %10298 = vmatprep.subr.bf16.mxu1 %v10297_v42 }
 0x5ee   :  { %v10299_v49 = vpack.c.bf16 %v10993_v25, %v10992_v37  ;;  %9038 = vmatmul.mubr.msk.f32.gmra.mrb[58].mxu0 %vm189_vm0, %v13007_v27 }
 0x5ef   :  { %9039 = vmatprep.mubr.msk.f32.mxu0 %vm189_vm0, %v13022_v35  ;;  %v10996_v45 = vpop.permute.xlu0 %10995 }
 0x5f0   :  { %v10998_v32 = vunpack.i.h.bf16 %v10996_v45  ;;  %v10997_v41 = vunpack.i.l.bf16 %v10996_v45  ;;  %10300 = vmatpush3.bf16.msra.mxu1 %v10299_v49 }
 0x5f2   :  { %9040 = vmatmul.mubr.msk.f32.gmra.mrb[60].mxu0 %vm189_vm0, %v13022_v35  ;;  %v10301_v58 = vpack.c.bf16 %v10998_v32, %v10997_v41 }
 0x5f3   :  { %9041 = vmatprep.mubr.msk.f32.mxu0 %vm189_vm0, %v13020_v20  ;;  %v11001_v50 = vpop.permute.xlu1 %11000 }
 0x5f4   :  { %v11003_v43 = vunpack.i.h.bf16 %v11001_v50  ;;  %v11002_v33 = vunpack.i.l.bf16 %v11001_v50  ;;  %10302 = vmatprep.subr.bf16.mxu1 %v10301_v58 }
 0x5f6   :  { %v10303_v19 = vpack.c.bf16 %v11003_v43, %v11002_v33  ;;  %9042 = vmatmul.mubr.msk.f32.gmra.mrb[62].mxu0 %vm189_vm0, %v13020_v20 }
 0x5f7   :  { %v11006_v2 = vpop.permute.xlu0 %11005 }
 0x5f8   :  { %v11008_v44 = vunpack.i.h.bf16 %v11006_v2  ;;  %v11007_v14 = vunpack.i.l.bf16 %v11006_v2  ;;  %10304 = vmatpush3.bf16.msra.mxu1 %v10303_v19 }
 0x5fa   :  { %v10305_v10 = vpack.c.bf16 %v11008_v44, %v11007_v14 }
 0x5fb   :  { %v11011_v56 = vpop.permute.xlu1 %11010 }
 0x5fc   :  { %v11013_v47 = vunpack.i.h.bf16 %v11011_v56  ;;  %v11012_v28 = vunpack.i.l.bf16 %v11011_v56  ;;  %10306 = vmatprep.subr.bf16.mxu1 %v10305_v10 }
 0x5fe   :  { %v10307_v60 = vpack.c.bf16 %v11013_v47, %v11012_v28 }
 0x5ff   :  { %v11016_v4 = vpop.permute.xlu0 %11015 }
 0x600   :  { %v11018_v8 = vunpack.i.h.bf16 %v11016_v4  ;;  %v11017_v34 = vunpack.i.l.bf16 %v11016_v4  ;;  %10308 = vmatpush3.bf16.msra.mxu1 %v10307_v60 }
 0x602   :  { %v10309_v36 = vpack.c.bf16 %v11018_v8, %v11017_v34 }
 0x603   :  { %v11021_v48 = vpop.permute.xlu1 %11020 }
 0x604   :  { %v11023_v31 = vunpack.i.h.bf16 %v11021_v48  ;;  %v11022_v46 = vunpack.i.l.bf16 %v11021_v48  ;;  %10310 = vmatprep.subr.bf16.mxu1 %v10309_v36 }
 0x606   :  { %v10311_v42 = vpack.c.bf16 %v11023_v31, %v11022_v46 }
 0x607   :  { %v11026_v30 = vpop.permute.xlu0 %11025 }
 0x608   :  { %v11028_v25 = vunpack.i.h.bf16 %v11026_v30  ;;  %v11027_v37 = vunpack.i.l.bf16 %v11026_v30  ;;  %10312 = vmatpush3.bf16.msra.mxu1 %v10311_v42 }
 0x60a   :  { %v10313_v49 = vpack.c.bf16 %v11028_v25, %v11027_v37 }
 0x60b   :  { %v11031_v45 = vpop.permute.xlu1 %11030 }
 0x60c   :  { %v11033_v32 = vunpack.i.h.bf16 %v11031_v45  ;;  %v11032_v41 = vunpack.i.l.bf16 %v11031_v45  ;;  %10314 = vmatprep.subr.bf16.mxu1 %v10313_v49  ;;  %v16439_v45 = vld [vmem:[#allocation49_spill] sm:$0xff] }
 0x60e   :  { %v10315_v58 = vpack.c.bf16 %v11033_v32, %v11032_v41 }
 0x60f   :  { %v11036_v50 = vpop.permute.xlu0 %11035 }
 0x610   :  { %v11038_v43 = vunpack.i.h.bf16 %v11036_v50  ;;  %v11037_v33 = vunpack.i.l.bf16 %v11036_v50  ;;  %10316 = vmatpush3.bf16.msra.mxu1 %v10315_v58 }
 0x612   :  { %v10317_v19 = vpack.c.bf16 %v11038_v43, %v11037_v33 }
 0x613   :  { %v11041_v2 = vpop.permute.xlu1 %11040 }
 0x614   :  { %v11043_v44 = vunpack.i.h.bf16 %v11041_v2  ;;  %v11042_v14 = vunpack.i.l.bf16 %v11041_v2  ;;  %10318 = vmatprep.subr.bf16.mxu1 %v10317_v19  ;;  %v16440_v2 = vld [vmem:[#allocation50_spill] sm:$0xff] }
 0x616   :  { %v10319_v10 = vpack.c.bf16 %v11043_v44, %v11042_v14  ;;  %v16441_v14 = vld [vmem:[#allocation51_spill] sm:$0xff] }
 0x617   :  { %v11046_v56 = vpop.permute.xlu0 %11045 }
 0x618   :  { %v11048_v47 = vunpack.i.h.bf16 %v11046_v56  ;;  %v11047_v28 = vunpack.i.l.bf16 %v11046_v56  ;;  %10320 = vmatpush3.bf16.msra.mxu1 %v10319_v10 }
 0x61a   :  { %v10321_v60 = vpack.c.bf16 %v11048_v47, %v11047_v28  ;;  %v16442_v47 = vld [vmem:[#allocation52_spill] sm:$0xff]  ;;  %v16443_v28 = vld [vmem:[#allocation53_spill] sm:$0xff] }
 0x61b   :  { %v11051_v4 = vpop.permute.xlu1 %11050 }
 0x61c   :  { %v11053_v8 = vunpack.i.h.bf16 %v11051_v4  ;;  %v11052_v34 = vunpack.i.l.bf16 %v11051_v4  ;;  %10322 = vmatprep.subr.bf16.mxu1 %v10321_v60  ;;  %v16444_v4 = vld [vmem:[#allocation54_spill] sm:$0xff] }
 0x61e   :  { %v10323_v36 = vpack.c.bf16 %v11053_v8, %v11052_v34  ;;  %v16445_v34 = vld [vmem:[#allocation55_spill] sm:$0xff] }
 0x61f   :  { %v11056_v48 = vpop.permute.xlu0 %11055 }
 0x620   :  { %v11058_v31 = vunpack.i.h.bf16 %v11056_v48  ;;  %v11057_v46 = vunpack.i.l.bf16 %v11056_v48  ;;  %10324 = vmatpush3.bf16.msra.mxu1 %v10323_v36  ;;  %v16446_v48 = vld [vmem:[#allocation56_spill] sm:$0xff] }
 0x622   :  { %v10325_v42 = vpack.c.bf16 %v11058_v31, %v11057_v46  ;;  %v16447_v46 = vld [vmem:[#allocation57_spill] sm:$0xff] }
 0x623   :  { %v11061_v30 = vpop.permute.xlu1 %11060 }
 0x624   :  { %v11063_v25 = vunpack.i.h.bf16 %v11061_v30  ;;  %v11062_v37 = vunpack.i.l.bf16 %v11061_v30  ;;  %10326 = vmatprep.subr.bf16.mxu1 %v10325_v42  ;;  %v16448_v30 = vld [vmem:[#allocation58_spill] sm:$0xff] }
 0x626   :  { %v10327_v49 = vpack.c.bf16 %v11063_v25, %v11062_v37  ;;  %v16449_v37 = vld [vmem:[#allocation59_spill] sm:$0xff] }
 0x628   :  { %10328 = vmatpush3.bf16.msra.mxu1 %v10327_v49 }
 0x629   :  { %10378 = vmatprep.subr.bf16.mxu1 %v16439_v45 }
 0x66d   :  { %v1572_v32 = vpop.f32.mrb[32].mxu0 }
 0x66e   :  { %v1574_v41 = vpop.f32.mrb[33].mxu0  ;;  %v1619_v50 = vmul.f32 %v12918_v13, %v1572_v32  ;;  %v16450_v32 = vld [vmem:[#allocation60_spill] sm:$0xff] }
 0x66f   :  { %v1620_v58 = vmul.f32 %v12920_v18, %v1574_v41 }
 0x671   :  { %v1578_v43 = vpop.f32.mrb[34].mxu0  ;;  %1827 = vmatprep.mubr.f32.mxu1 %v1620_v58 }
 0x672   :  { %v1580_v33 = vpop.f32.mrb[35].mxu0  ;;  %1828 = vmatmul.mubr.f32.vlgmr.msra.gmra.mrb[16].mxu1 %v1619_v50  ;;  %v1621_v44 = vmul.f32 %v12926_v39, %v1578_v43  ;;  %v16451_v50 = vld [vmem:[#allocation67_spill] sm:$0xff]  ;;  %v16452_v43 = vld [vmem:[#allocation62_spill] sm:$0xff] }
 0x673   :  { %v1622_v19 = vmul.f32 %v12928_v17, %v1580_v33  ;;  %10380 = vmatpush3.bf16.msra.mxu1 %v16440_v2  ;;  %v16453_v33 = vld [vmem:[#allocation65_spill] sm:$0xff] }
 0x674   :  { %10382 = vmatprep.subr.bf16.mxu1 %v16441_v14 }
 0x675   :  { %v1584_v10 = vpop.f32.mrb[36].mxu0  ;;  %1832 = vmatprep.mubr.f32.mxu1 %v1622_v19 }
 0x676   :  { %v1586_v56 = vpop.f32.mrb[37].mxu0  ;;  %1833 = vmatmul.mubr.f32.gmra.mrb[18].mxu1 %v1621_v44  ;;  %v1623_v13 = vmul.f32 %v12934_v3, %v1584_v10  ;;  %v16454_v44 = vld [vmem:[#allocation63_spill] sm:$0xff]  ;;  %v16456_v10 = vld [vmem:[#allocation66_spill] sm:$0xff] }
 0x677   :  { %v1624_v18 = vmul.f32 %v12936_v38, %v1586_v56  ;;  %10384 = vmatpush3.bf16.msra.mxu1 %v16442_v47  ;;  %v11914_v56 = vld [vmem:[#allocation6] sm:$0xff] }
 0x678   :  { %10386 = vmatprep.subr.bf16.mxu1 %v16443_v28 }
 0x679   :  { %v1590_v60 = vpop.f32.mrb[38].mxu0  ;;  %1837 = vmatprep.mubr.f32.mxu1 %v1624_v18 }
 0x67a   :  { %v1592_v17 = vpop.f32.mrb[39].mxu0  ;;  %1838 = vmatmul.mubr.f32.gmra.mrb[20].mxu1 %v1623_v13  ;;  %v1625_v8 = vmul.f32 %v12942_v16, %v1590_v60  ;;  %v11915_v60 = vld [vmem:[#allocation6 + $0x8] sm:$0xff] }
 0x67b   :  { %v1626_v39 = vmul.f32 %v12944_v5, %v1592_v17  ;;  %10388 = vmatpush3.bf16.msra.mxu1 %v16444_v4 }
 0x67c   :  { %10390 = vmatprep.subr.bf16.mxu1 %v16445_v34 }
 0x67d   :  { %v1596_v36 = vpop.f32.mrb[40].mxu0  ;;  %1842 = vmatprep.mubr.f32.mxu1 %v1626_v39 }
 0x67e   :  { %v1598_v38 = vpop.f32.mrb[41].mxu0  ;;  %1843 = vmatmul.mubr.f32.gmra.mrb[22].mxu1 %v1625_v8  ;;  %v1627_v31 = vmul.f32 %v12950_v0, %v1596_v36  ;;  %v11916_v36 = vld [vmem:[#allocation6 + $0x10] sm:$0xff] }
 0x67f   :  { %v1628_v3 = vmul.f32 %v12952_v54, %v1598_v38  ;;  %10392 = vmatpush3.bf16.msra.mxu1 %v16446_v48 }
 0x680   :  { %10394 = vmatprep.subr.bf16.mxu1 %v16447_v46 }
 0x681   :  { %v1602_v42 = vpop.f32.mrb[42].mxu0  ;;  %1847 = vmatprep.mubr.f32.mxu1 %v1628_v3 }
 0x682   :  { %v1604_v5 = vpop.f32.mrb[43].mxu0  ;;  %1848 = vmatmul.mubr.f32.gmra.mrb[24].mxu1 %v1627_v31  ;;  %v1629_v25 = vmul.f32 %v12956_v9, %v1602_v42  ;;  %v11917_v31 = vld [vmem:[#allocation6 + $0x18] sm:$0xff] }
 0x683   :  { %v1630_v16 = vmul.f32 %v12958_v29, %v1604_v5  ;;  %10396 = vmatpush3.bf16.msra.mxu1 %v16448_v30 }
 0x684   :  { %10398 = vmatprep.subr.bf16.mxu1 %v16449_v37 }
 0x685   :  { %v1608_v49 = vpop.f32.mrb[44].mxu0  ;;  %1852 = vmatprep.mubr.f32.mxu1 %v1630_v16 }
 0x686   :  { %v1610_v54 = vpop.f32.mrb[45].mxu0  ;;  %1853 = vmatmul.mubr.f32.gmra.mrb[26].mxu1 %v1629_v25  ;;  %v1631_v41 = vmul.f32 %v12962_v63, %v1608_v49  ;;  %v11918_v25 = vld [vmem:[#allocation6 + $0x20] sm:$0xff] }
 0x687   :  { %v1632_v0 = vmul.f32 %v12964_v62, %v1610_v54  ;;  %10400 = vmatpush3.bf16.msra.mxu1 %v16450_v32  ;;  %v16455_v62 = vld [vmem:[#allocation64_spill] sm:$0xff] }
 0x688   :  { %10402 = vmatprep.subr.bf16.mxu1 %v12892_v1 }
 0x689   :  { %v1614_v58 = vpop.f32.mrb[46].mxu0  ;;  %1857 = vmatprep.mubr.f32.mxu1 %v1632_v0  ;;  %v11919_v0 = vld [vmem:[#allocation6 + $0x28] sm:$0xff] }
 0x68a   :  { %v1616_v29 = vpop.f32.mrb[47].mxu0  ;;  %1858 = vmatmul.mubr.f32.gmra.mrb[28].mxu1 %v1631_v41  ;;  %v1633_v19 = vmul.f32 %v16453_v33, %v1614_v58 }
 0x68b   :  { %v1634_v9 = vmul.f32 %v16451_v50, %v1616_v29  ;;  %10404 = vmatpush3.bf16.msra.mxu1 %v16452_v43  ;;  %v11920_v50 = vld [vmem:[#allocation6 + $0x30] sm:$0xff]  ;;  %v16463_v43 = vld [vmem:[#allocation72_spill] sm:$0xff] }
 0x68c   :  { %10406 = vmatprep.subr.bf16.mxu1 %v16454_v44 }
 0x68d   :  { %1862 = vmatprep.mubr.f32.mxu1 %v1634_v9 }
 0x68e   :  { %1863 = vmatmul.mubr.f32.gmra.mrb[30].mxu1 %v1633_v19  ;;  %v11921_v19 = vld [vmem:[#allocation6 + $0x38] sm:$0xff] }
 0x68f   :  { %10408 = vmatpush3.bf16.msra.mxu1 %v16455_v62  ;;  %v16462_v62 = vld [vmem:[#allocation77_spill] sm:$0xff] }
 0x690   :  { %8508 = vmatprep.subr.msk.mxu1 %vm1501_vm2, %v16456_v10  ;;  %v1900_v10 = vmul.f32 %v16459_v7, %v12987_v22  ;;  %v1921_v44 = vmul.f32 %v16462_v62, %v13007_v27  ;;  %v16465_v7 = vld [vmem:[#allocation75_spill] sm:$0xff] }
 0x6ad   :  { %v2182_v63 = vpop.f32.mrb[48].mxu0 }
 0x6ae   :  { %v13431_v18 = vadd.f32 %v11914_v56, %v2182_v63  ;;  %v2184_v13 = vpop.f32.mrb[49].mxu0 }
 0x6af   :  { %v13433_v17 = vadd.f32 %v11915_v60, %v2184_v13  ;;  %v11922_v60 = vld [vmem:[#allocation6 + $0x40] sm:$0xff] }
 0x6b1   :  { %v2229_v39 = vmax.f32 %v13431_v18, %v13433_v17  ;;  %v2188_v8 = vpop.f32.mrb[50].mxu0 }
 0x6b2   :  { %v13437_v38 = vadd.f32 %v11916_v36, %v2188_v8  ;;  %v2190_v3 = vpop.f32.mrb[51].mxu0  ;;  %v11923_v36 = vld [vmem:[#allocation6 + $0x48] sm:$0xff] }
 0x6b3   :  { %v13439_v42 = vadd.f32 %v11917_v31, %v2190_v3  ;;  %2230 = vmax.xlane.f32.xlu0 %v2229_v39 }
 0x6b5   :  { %v2232_v5 = vmax.f32 %v13437_v38, %v13439_v42  ;;  %v2194_v16 = vpop.f32.mrb[52].mxu0 }
 0x6b6   :  { %v13443_v49 = vadd.f32 %v11918_v25, %v2194_v16  ;;  %v2196_v54 = vpop.f32.mrb[53].mxu0  ;;  %v11924_v16 = vld [vmem:[#allocation6 + $0x50] sm:$0xff] }
 0x6b7   :  { %v13445_v41 = vadd.f32 %v11919_v0, %v2196_v54  ;;  %2233 = vmax.xlane.f32.xlu1 %v2232_v5  ;;  %v11925_v0 = vld [vmem:[#allocation6 + $0x58] sm:$0xff] }
 0x6b9   :  { %v2235_v58 = vmax.f32 %v13443_v49, %v13445_v41  ;;  %v2200_v29 = vpop.f32.mrb[54].mxu0 }
 0x6ba   :  { %v13449_v9 = vadd.f32 %v11920_v50, %v2200_v29  ;;  %v2202_v33 = vpop.f32.mrb[55].mxu0 }
 0x6bb   :  { %v13451_v63 = vadd.f32 %v11921_v19, %v2202_v33  ;;  %2236 = vmax.xlane.f32.xlu0 %v2235_v58  ;;  %v11926_v33 = vld [vmem:[#allocation6 + $0x60] sm:$0xff] }
 0x6bd   :  { %v2238_v56 = vmax.f32 %v13449_v9, %v13451_v63  ;;  %v2206_v13 = vpop.f32.mrb[56].mxu0 }
 0x6be   :  { %v13455_v39 = vadd.f32 %v11922_v60, %v2206_v13  ;;  %v2208_v8 = vpop.f32.mrb[57].mxu0  ;;  %v11927_v13 = vld [vmem:[#allocation6 + $0x68] sm:$0xff] }
 0x6bf   :  { %v13457_v3 = vadd.f32 %v11923_v36, %v2208_v8  ;;  %2239 = vmax.xlane.f32.xlu0 %v2238_v56 }
 0x6c1   :  { %v2241_v31 = vmax.f32 %v13455_v39, %v13457_v3  ;;  %v2212_v5 = vpop.f32.mrb[58].mxu0 }
 0x6c2   :  { %v13461_v25 = vadd.f32 %v11924_v16, %v2212_v5  ;;  %v2214_v54 = vpop.f32.mrb[59].mxu0  ;;  %v11928_v5 = vld [vmem:[#allocation6 + $0x70] sm:$0xff] }
 0x6c3   :  { %v13463_v58 = vadd.f32 %v11925_v0, %v2214_v54  ;;  %2242 = vmax.xlane.f32.xlu0 %v2241_v31  ;;  %v11929_v54 = vld [vmem:[#allocation6 + $0x78] sm:$0xff] }
 0x6c5   :  { %v2244_v29 = vmax.f32 %v13461_v25, %v13463_v58  ;;  %v2218_v50 = vpop.f32.mrb[60].mxu0 }
 0x6c6   :  { %v13467_v19 = vadd.f32 %v11926_v33, %v2218_v50  ;;  %v2220_v56 = vpop.f32.mrb[61].mxu0  ;;  %v16457_v33 = vld [vmem:[#allocation71_spill] sm:$0xff] }
 0x6c7   :  { %v13469_v60 = vadd.f32 %v11927_v13, %v2220_v56  ;;  %2245 = vmax.xlane.f32.xlu1 %v2244_v29  ;;  %v1901_v56 = vmul.f32 %v16457_v33, %v12984_v11  ;;  %v16458_v29 = vld [vmem:[#allocation69_spill] sm:$0xff]  ;;  %v1918_v33 = vmul.f32 %v16463_v43, %v12999_v21 }
 0x6c8   :  { %v1917_v13 = vmul.f32 %v16458_v29, %v12984_v11  ;;  %v16464_v29 = vld [vmem:[#allocation76_spill] sm:$0xff] }
 0x6c9   :  { %v2247_v8 = vmax.f32 %v13467_v19, %v13469_v60  ;;  %v2224_v36 = vpop.f32.mrb[62].mxu0  ;;  %v1920_v1 = vmul.f32 %v16464_v29, %v13013_v23 }
 0x6ca   :  { %v13473_v16 = vadd.f32 %v11928_v5, %v2224_v36  ;;  %v2226_v31 = vpop.f32.mrb[63].mxu0  ;;  %v16460_v36 = vld [vmem:[#allocation68_spill] sm:$0xff] }
 0x6cb   :  { %v13475_v0 = vadd.f32 %v11929_v54, %v2226_v31  ;;  %2248 = vmax.xlane.f32.xlu0 %v2247_v8  ;;  %v1916_v5 = vmul.f32 %v16460_v36, %v12987_v22  ;;  %v16461_v31 = vld [vmem:[#allocation73_spill] sm:$0xff]  ;;  %v11069_v8 = vpack.i.bf16 %v1901_v56, %v1900_v10  ;;  %v1903_v36 = vmul.f32 %v16465_v7, %v12997_v26  ;;  %v16466_v10 = vld [vmem:[#allocation80_spill] sm:$0xff] }
 0x6cc   :  { %v1919_v54 = vmul.f32 %v16461_v31, %v12997_v26  ;;  %v1923_v56 = vmul.f32 %v16466_v10, %v13020_v20  ;;  %v11084_v31 = vpack.i.bf16 %v1921_v44, %v1920_v1  ;;  %v16471_v1 = vld [vmem:[#allocation78_spill] sm:$0xff] }
 0x6cd   :  { %v2250_v50 = vmax.f32 %v13473_v16, %v13475_v0  ;;  %v1904_v44 = vmul.f32 %v16471_v1, %v13013_v23 }
 0x6ce   :  { %v11074_v32 = vpack.i.bf16 %v1919_v54, %v1918_v33  ;;  %v16470_v33 = vld [vmem:[#allocation82_spill] sm:$0xff] }
 0x6cf   :  { %2251 = vmax.xlane.f32.xlu1 %v2250_v50  ;;  %v11064_v50 = vpack.i.bf16 %v1917_v13, %v1916_v5  ;;  %v16467_v13 = vld [vmem:[#allocation74_spill] sm:$0xff]  ;;  %v1925_v54 = vmul.f32 %v16470_v33, %v12984_v11  ;;  %v16476_v33 = vld [vmem:[#allocation83_spill] sm:$0xff] }
 0x6d0   :  { %v1902_v5 = vmul.f32 %v16467_v13, %v12999_v21 }
 0x6d2   :  { %v11079_v43 = vpack.i.bf16 %v1903_v36, %v1902_v5  ;;  %v16474_v36 = vld [vmem:[#allocation81_spill] sm:$0xff] }
 0x6d3   :  { %v1906_v5 = vmul.f32 %v16474_v36, %v13022_v35 }
 0x6e0   :  { %11070 = vrot.lane.b32.xlu1 %v11069_v8, %s12096_s3  ;;  %v16468_v8 = vld [vmem:[#allocation79_spill] sm:$0xff] }
 0x6e1   :  { %11065 = vrot.lane.b32.xlu0 %v11064_v50, %s12096_s3  ;;  %v1922_v62 = vmul.f32 %v16468_v8, %v13022_v35  ;;  %v16469_v50 = vld [vmem:[#allocation39_spill] sm:$0xff] }
 0x6e2   :  { %v1905_v29 = vmul.f32 %v16469_v50, %v13007_v27 }
 0x6e3   :  { %v11094_v7 = vpack.i.bf16 %v1923_v56, %v1922_v62  ;;  %v16475_v62 = vld [vmem:[#allocation84_spill] sm:$0xff] }
 0x6e4   :  { %11075 = vrot.lane.b32.xlu1 %v11074_v32, %s12096_s3  ;;  %v16472_v32 = vld [vmem:[#allocation40_spill] sm:$0xff]  ;;  %v11089_v13 = vpack.i.bf16 %v1905_v29, %v1904_v44 }
 0x6e5   :  { %11085 = vrot.lane.b32.xlu0 %v11084_v31, %s12096_s3  ;;  %v1924_v10 = vmul.f32 %v16472_v32, %v12987_v22  ;;  %v16473_v31 = vld [vmem:[#allocation41_spill] sm:$0xff]  ;;  %v1908_v32 = vmul.f32 %v16476_v33, %v12987_v22 }
 0x6e6   :  { %v1907_v8 = vmul.f32 %v16473_v31, %v13020_v20 }
 0x6e7   :  { %v11104_v50 = vpack.i.bf16 %v1925_v54, %v1924_v10 }
 0x6e8   :  { %11080 = vrot.lane.b32.xlu1 %v11079_v43, %s12096_s3  ;;  %v1909_v43 = vmul.f32 %v16475_v62, %v12984_v11  ;;  %v11099_v56 = vpack.i.bf16 %v1907_v8, %v1906_v5 }
 0x6e9   :  { %11095 = vrot.lane.b32.xlu0 %v11094_v7, %s12096_s3 }
 0x6ea   :  { %v11109_v7 = vpack.i.bf16 %v1909_v43, %v1908_v32 }
 0x6ec   :  { %11090 = vrot.lane.b32.xlu1 %v11089_v13, %s12096_s3 }
 0x6ed   :  { %11105 = vrot.lane.b32.xlu0 %v11104_v50, %s12096_s3 }
 0x6f0   :  { %11100 = vrot.lane.b32.xlu1 %v11099_v56, %s12096_s3 }
 0x6f4   :  { %11110 = vrot.lane.b32.xlu1 %v11109_v7, %s12096_s3 }
 0x740   :  { %v2231_v29 = vpop.xlane.xlu0 %2230 }
 0x741   :  { %v2253_v10 = vsub.f32 %v13431_v18, %v2231_v29  ;;  %v2254_v54 = vsub.f32 %v13433_v17, %v2231_v29 }
 0x743   :  { %v2269_v13 = vmul.f32 1.442695, %v2253_v10  ;;  %v2271_v44 = vmul.f32 1.442695, %v2254_v54 }
 0x744   :  { %v2234_v50 = vpop.xlane.xlu1 %2233 }
 0x745   :  { %11545 = vpow2.f32 %v2269_v13  ;;  %v2255_v11 = vsub.f32 %v13437_v38, %v2234_v50  ;;  %v2256_v8 = vsub.f32 %v13439_v42, %v2234_v50  ;;  %v8971_v5 = vpop.f32.mrb[16].mxu1 }
 0x746   :  { %11547 = vpow2.f32 %v2271_v44  ;;  %v8972_v22 = vpop.f32.mrb[17].mxu1 }
 0x747   :  { %v2273_v56 = vmul.f32 1.442695, %v2255_v11  ;;  %v2275_v32 = vmul.f32 1.442695, %v2256_v8  ;;  %v13533_v43 = vadd.f32 %v8972_v22, %v8971_v5 }
 0x748   :  { %v2237_v7 = vpop.xlane.xlu0 %2236 }
 0x749   :  { %11549 = vpow2.f32 %v2273_v56  ;;  %v2257_v18 = vsub.f32 %v13443_v49, %v2237_v7  ;;  %v2258_v17 = vsub.f32 %v13445_v41, %v2237_v7  ;;  %v8974_v29 = vpop.f32.mrb[18].mxu1 }
 0x74a   :  { %11551 = vpow2.f32 %v2275_v32  ;;  %v8975_v10 = vpop.f32.mrb[19].mxu1 }
 0x74b   :  { %v2277_v54 = vmul.f32 1.442695, %v2257_v18  ;;  %v2279_v38 = vmul.f32 1.442695, %v2258_v17  ;;  %v13537_v13 = vadd.f32 %v8975_v10, %v8974_v29 }
 0x74c   :  { %v2240_v42 = vpop.xlane.xlu0 %2239 }
 0x74d   :  { %11553 = vpow2.f32 %v2277_v54  ;;  %v2259_v44 = vsub.f32 %v13449_v9, %v2240_v42  ;;  %v2260_v50 = vsub.f32 %v13451_v63, %v2240_v42  ;;  %v8977_v11 = vpop.f32.mrb[20].mxu1 }
 0x74e   :  { %11555 = vpow2.f32 %v2279_v38  ;;  %v8978_v8 = vpop.f32.mrb[21].mxu1  ;;  %v11930_v38 = vld [vmem:[%s16106_s16] sm:$0xff] }
 0x74f   :  { %v13541_v5 = vpop.eup %11545  ;;  %v2281_v49 = vmul.f32 1.442695, %v2259_v44  ;;  %v2283_v41 = vmul.f32 1.442695, %v2260_v50  ;;  %v13543_v22 = vadd.f32 %v8978_v8, %v8977_v11 }
 0x750   :  { %v13545_v56 = vpop.eup %11547  ;;  %v2243_v32 = vpop.xlane.xlu0 %2242 }
 0x751   :  { %11557 = vpow2.f32 %v2281_v49  ;;  %2365 = vmatprep.mubr.f32.mxu1 %v13545_v56  ;;  %v2261_v7 = vsub.f32 %v13455_v39, %v2243_v32  ;;  %v2262_v9 = vsub.f32 %v13457_v3, %v2243_v32  ;;  %v8980_v63 = vpop.f32.mrb[22].mxu1 }
 0x752   :  { %11559 = vpow2.f32 %v2283_v41  ;;  %2366 = vmatmul.mubr.f32.vlgmr.msra.gmra.mrb[32].mxu1 %v13541_v5  ;;  %v8981_v18 = vpop.f32.mrb[23].mxu1 }
 0x753   :  { %v13551_v17 = vpop.eup %11549  ;;  %v2285_v29 = vmul.f32 1.442695, %v2261_v7  ;;  %v2287_v10 = vmul.f32 1.442695, %v2262_v9  ;;  %v13553_v54 = vadd.f32 %v8981_v18, %v8980_v63  ;;  %8509 = vmatpush1.msk.msra.mxu1 %vm1501_vm2, %v11930_v38 }
 0x754   :  { %v13559_v39 = vpop.eup %11551  ;;  %v2246_v3 = vpop.xlane.xlu1 %2245 }
 0x755   :  { %11561 = vpow2.f32 %v2285_v29  ;;  %v2263_v42 = vsub.f32 %v13461_v25, %v2246_v3  ;;  %v2264_v44 = vsub.f32 %v13463_v58, %v2246_v3  ;;  %2370 = vmatprep.mubr.f32.mxu1 %v13559_v39  ;;  %v8983_v50 = vpop.f32.mrb[24].mxu1 }
 0x756   :  { %11563 = vpow2.f32 %v2287_v10  ;;  %2371 = vmatmul.mubr.f32.gmra.mrb[34].mxu1 %v13551_v17  ;;  %v8984_v11 = vpop.f32.mrb[25].mxu1 }
 0x757   :  { %v13565_v8 = vpop.eup %11553  ;;  %v2289_v49 = vmul.f32 1.442695, %v2263_v42  ;;  %v2291_v41 = vmul.f32 1.442695, %v2264_v44  ;;  %v13567_v32 = vadd.f32 %v8984_v11, %v8983_v50 }
 0x758   :  { %v13569_v7 = vpop.eup %11555  ;;  %v2249_v9 = vpop.xlane.xlu0 %2248 }
 0x759   :  { %11565 = vpow2.f32 %v2289_v49  ;;  %2375 = vmatprep.mubr.f32.mxu1 %v13569_v7  ;;  %v2265_v25 = vsub.f32 %v13467_v19, %v2249_v9  ;;  %v2266_v58 = vsub.f32 %v13469_v60, %v2249_v9  ;;  %v8986_v63 = vpop.f32.mrb[26].mxu1 }
 0x75a   :  { %11567 = vpow2.f32 %v2291_v41  ;;  %2376 = vmatmul.mubr.f32.gmra.mrb[36].mxu1 %v13565_v8  ;;  %v8987_v18 = vpop.f32.mrb[27].mxu1 }
 0x75b   :  { %v13575_v29 = vpop.eup %11557  ;;  %v2293_v10 = vmul.f32 1.442695, %v2265_v25  ;;  %v2295_v38 = vmul.f32 1.442695, %v2266_v58  ;;  %v13577_v3 = vadd.f32 %v8987_v18, %v8986_v63 }
 0x75c   :  { %v13579_v42 = vpop.eup %11559  ;;  %v2252_v44 = vpop.xlane.xlu1 %2251 }
 0x75d   :  { %v11066_v50 = vpop.permute.xlu0 %11065  ;;  %11569 = vpow2.f32 %v2293_v10  ;;  %v2267_v19 = vsub.f32 %v13473_v16, %v2252_v44  ;;  %v2268_v60 = vsub.f32 %v13475_v0, %v2252_v44  ;;  %2380 = vmatprep.mubr.f32.mxu1 %v13579_v42  ;;  %v8989_v49 = vpop.f32.mrb[28].mxu1 }
 0x75e   :  { %v11068_v11 = vunpack.i.h.bf16 %v11066_v50  ;;  %11571 = vpow2.f32 %v2295_v38  ;;  %v11067_v41 = vunpack.i.l.bf16 %v11066_v50  ;;  %2381 = vmatmul.mubr.f32.gmra.mrb[38].mxu1 %v13575_v29  ;;  %v8990_v9 = vpop.f32.mrb[29].mxu1 }
 0x75f   :  { %v13585_v25 = vpop.eup %11561  ;;  %v2297_v58 = vmul.f32 1.442695, %v2267_v19  ;;  %v2299_v63 = vmul.f32 1.442695, %v2268_v60  ;;  %v13587_v18 = vadd.f32 %v8990_v9, %v8989_v49 }
 0x760   :  { %v13589_v10 = vpop.eup %11563  ;;  %v11071_v16 = vpop.permute.xlu1 %11070  ;;  %v10409_v62 = vpack.c.bf16 %v11068_v11, %v11067_v41 }
 0x761   :  { %11573 = vpow2.f32 %v2297_v58  ;;  %v11073_v0 = vunpack.i.h.bf16 %v11071_v16  ;;  %v11072_v44 = vunpack.i.l.bf16 %v11071_v16  ;;  %2385 = vmatprep.mubr.f32.mxu1 %v13589_v10  ;;  %v11086_v38 = vpop.permute.xlu0 %11085  ;;  %v8992_v50 = vpop.f32.mrb[30].mxu1 }
 0x762   :  { %11575 = vpow2.f32 %v2299_v63  ;;  %2386 = vmatmul.mubr.f32.gmra.mrb[40].mxu1 %v13585_v25  ;;  %10410 = vmatprep.subr.bf16.mxu0 %v10409_v62  ;;  %v8993_v33 = vpop.f32.mrb[31].mxu1  ;;  %v11088_v36 = vunpack.i.h.bf16 %v11086_v38 }
 0x763   :  { %v13593_v19 = vpop.eup %11565  ;;  %v10411_v60 = vpack.c.bf16 %v11073_v0, %v11072_v44  ;;  %v13595_v49 = vadd.f32 %v8993_v33, %v8992_v50  ;;  %v11087_v0 = vunpack.i.l.bf16 %v11086_v38 }
 0x764   :  { %v13597_v9 = vpop.eup %11567  ;;  %v11076_v11 = vpop.permute.xlu1 %11075 }
 0x765   :  { %v11078_v41 = vunpack.i.h.bf16 %v11076_v11  ;;  %v11077_v58 = vunpack.i.l.bf16 %v11076_v11  ;;  %2390 = vmatprep.mubr.f32.mxu1 %v13597_v9  ;;  %10412 = vmatpush3.bf16.msra.mxu0 %v10411_v60  ;;  %v11096_v16 = vpop.permute.xlu0 %11095 }
 0x766   :  { %2391 = vmatmul.mubr.f32.gmra.mrb[42].mxu1 %v13593_v19  ;;  %v11098_v37 = vunpack.i.h.bf16 %v11096_v16  ;;  %v11097_v30 = vunpack.i.l.bf16 %v11096_v16 }
 0x767   :  { %v13601_v63 = vpop.eup %11569  ;;  %v10413_v62 = vpack.c.bf16 %v11078_v41, %v11077_v58  ;;  %v10417_v58 = vpack.c.bf16 %v11088_v36, %v11087_v0 }
 0x768   :  { %v13603_v31 = vpop.eup %11571  ;;  %v11081_v33 = vpop.permute.xlu1 %11080  ;;  %v10421_v34 = vpack.c.bf16 %v11098_v37, %v11097_v30 }
 0x769   :  { %v11083_v44 = vunpack.i.h.bf16 %v11081_v33  ;;  %v11082_v50 = vunpack.i.l.bf16 %v11081_v33  ;;  %2395 = vmatprep.mubr.f32.mxu1 %v13603_v31  ;;  %10414 = vmatprep.subr.bf16.mxu0 %v10413_v62  ;;  %v11106_v46 = vpop.permute.xlu0 %11105 }
 0x76a   :  { %2396 = vmatmul.mubr.f32.gmra.mrb[44].mxu1 %v13601_v63  ;;  %v11108_v33 = vunpack.i.h.bf16 %v11106_v46 }
 0x76b   :  { %v13607_v11 = vpop.eup %11573  ;;  %v10415_v60 = vpack.c.bf16 %v11083_v44, %v11082_v50  ;;  %v11107_v44 = vunpack.i.l.bf16 %v11106_v46  ;;  %v2809_v46 = vld [vmem:[%s16477_s29 + $0x8] sm:$0xff] }
 0x76c   :  { %v13609_v1 = vpop.eup %11575  ;;  %v11091_v41 = vpop.permute.xlu1 %11090 }
 0x76d   :  { %v11093_v48 = vunpack.i.h.bf16 %v11091_v41  ;;  %v11092_v38 = vunpack.i.l.bf16 %v11091_v41  ;;  %2400 = vmatprep.mubr.f32.mxu1 %v13609_v1  ;;  %10416 = vmatpush3.bf16.msra.mxu0 %v10415_v60  ;;  %v10425_v41 = vpack.c.bf16 %v11108_v33, %v11107_v44 }
 0x76e   :  { %2401 = vmatmul.mubr.f32.gmra.mrb[46].mxu1 %v13607_v11  ;;  %10418 = vmatprep.subr.bf16.mxu0 %v10417_v58 }
 0x76f   :  { %v10419_v62 = vpack.c.bf16 %v11093_v48, %v11092_v38  ;;  %2510 = vmatprep.mubr.f32.mxu1 %v16429_v40  ;;  %v2808_v48 = vld [vmem:[%s16477_s29] sm:$0xff] }
 0x770   :  { %v11101_v50 = vpop.permute.xlu1 %11100  ;;  %v10441_v30 = vpack.c.bf16 %v2809_v46, %v2808_v48 }
 0x771   :  { %v11103_v4 = vunpack.i.h.bf16 %v11101_v50  ;;  %v11102_v16 = vunpack.i.l.bf16 %v11101_v50  ;;  %10420 = vmatpush3.bf16.msra.mxu0 %v10419_v62 }
 0x772   :  { %10422 = vmatprep.subr.bf16.mxu0 %v10421_v34  ;;  %10442 = vmatprep.subr.bf16.mxu1 %v10441_v30 }
 0x773   :  { %v10423_v36 = vpack.c.bf16 %v11103_v4, %v11102_v16 }
 0x774   :  { %v11111_v0 = vpop.permute.xlu1 %11110 }
 0x775   :  { %v11113_v28 = vunpack.i.h.bf16 %v11111_v0  ;;  %v11112_v47 = vunpack.i.l.bf16 %v11111_v0  ;;  %10424 = vmatpush3.bf16.msra.mxu0 %v10423_v36  ;;  %v2810_v0 = vld [vmem:[%s16477_s29 + $0x10] sm:$0xff] }
 0x776   :  { %10426 = vmatprep.subr.bf16.mxu0 %v10425_v41  ;;  %v2811_v41 = vld [vmem:[%s16477_s29 + $0x18] sm:$0xff] }
 0x777   :  { %v10427_v60 = vpack.c.bf16 %v11113_v28, %v11112_v47  ;;  %v10445_v46 = vpack.c.bf16 %v2811_v41, %v2810_v0 }
 0x779   :  { %10428 = vmatpush3.bf16.msra.mxu0 %v10427_v60 }
 0x825   :  { %v9075_v34 = vpop.f32.mrb[32].mxu1 }
 0x826   :  { %v9076_v4 = vpop.f32.mrb[33].mxu1 }
 0x827   :  { %v9077_v37 = vadd.f32 %v9076_v4, %v9075_v34 }
 0x829   :  { %v2368_v58 = vadd.f32 1e-30, %v9077_v37  ;;  %v9078_v38 = vpop.f32.mrb[34].mxu1 }
 0x82a   :  { %v9079_v62 = vpop.f32.mrb[35].mxu1 }
 0x82b   :  { %11577 = vrcp.f32 %v2368_v58  ;;  %v9080_v33 = vadd.f32 %v9079_v62, %v9078_v38 }
 0x82d   :  { %v2373_v47 = vadd.f32 1e-30, %v9080_v33  ;;  %v9081_v28 = vpop.f32.mrb[36].mxu1 }
 0x82e   :  { %v9082_v44 = vpop.f32.mrb[37].mxu1 }
 0x82f   :  { %11579 = vrcp.f32 %v2373_v47  ;;  %v9083_v50 = vadd.f32 %v9082_v44, %v9081_v28 }
 0x831   :  { %v2378_v16 = vadd.f32 1e-30, %v9083_v50  ;;  %v9084_v36 = vpop.f32.mrb[38].mxu1 }
 0x832   :  { %v9085_v60 = vpop.f32.mrb[39].mxu1 }
 0x833   :  { %11581 = vrcp.f32 %v2378_v16  ;;  %v9086_v48 = vadd.f32 %v9085_v60, %v9084_v36 }
 0x835   :  { %v11578_v34 = vpop.eup %11577  ;;  %v2383_v4 = vadd.f32 1e-30, %v9086_v48  ;;  %v9087_v37 = vpop.f32.mrb[40].mxu1 }
 0x836   :  { %v9088_v58 = vpop.f32.mrb[41].mxu1  ;;  %8510 = vmatmul.mubr.msk.f32.vlgmr.msra.gmra.mrb[48].mxu1 %vm1476_vm3, %v11578_v34 }
 0x837   :  { %11583 = vrcp.f32 %v2383_v4  ;;  %v9089_v38 = vadd.f32 %v9088_v58, %v9087_v37  ;;  %10444 = vmatpush3.bf16.msra.mxu1 %v10441_v30  ;;  %2516 = vmatprep.mubr.f32.mxu1 %v16429_v40 }
 0x838   :  { %10446 = vmatprep.subr.bf16.mxu1 %v10445_v46 }
 0x839   :  { %v11580_v62 = vpop.eup %11579  ;;  %v2388_v33 = vadd.f32 1e-30, %v9089_v38  ;;  %v9090_v47 = vpop.f32.mrb[42].mxu1 }
 0x83a   :  { %v9091_v28 = vpop.f32.mrb[43].mxu1  ;;  %8511 = vmatmul.mubr.msk.f32.gmra.mrb[50].mxu1 %vm1476_vm3, %v11580_v62 }
 0x83b   :  { %11585 = vrcp.f32 %v2388_v33  ;;  %v9092_v44 = vadd.f32 %v9091_v28, %v9090_v47  ;;  %2522 = vmatprep.mubr.f32.mxu1 %v16429_v40  ;;  %10448 = vmatpush3.bf16.msra.mxu1 %v10445_v46 }
 0x83d   :  { %v11582_v50 = vpop.eup %11581  ;;  %v2393_v16 = vadd.f32 1e-30, %v9092_v44  ;;  %v9093_v36 = vpop.f32.mrb[44].mxu1 }
 0x83e   :  { %v9094_v0 = vpop.f32.mrb[45].mxu1  ;;  %8512 = vmatmul.mubr.msk.f32.gmra.mrb[52].mxu1 %vm1476_vm3, %v11582_v50 }
 0x83f   :  { %11587 = vrcp.f32 %v2393_v16  ;;  %v9095_v30 = vadd.f32 %v9094_v0, %v9093_v36  ;;  %2528 = vmatprep.mubr.f32.mxu1 %v16429_v40 }
 0x841   :  { %v11584_v41 = vpop.eup %11583  ;;  %v2398_v60 = vadd.f32 1e-30, %v9095_v30  ;;  %v9096_v48 = vpop.f32.mrb[46].mxu1 }
 0x842   :  { %v9097_v34 = vpop.f32.mrb[47].mxu1  ;;  %8513 = vmatmul.mubr.msk.f32.gmra.mrb[54].mxu1 %vm1476_vm3, %v11584_v41  ;;  %v13691_v41 = vld [vmem:[%s16478_s22] ss:$0 sm:$0xff] }
 0x843   :  { %11589 = vrcp.f32 %v2398_v60  ;;  %v9098_v4 = vadd.f32 %v9097_v34, %v9096_v48  ;;  %2534 = vmatprep.mubr.f32.mxu1 %v16429_v40  ;;  %v11931_v60 = vld [vmem:[%s16338_s23 + $0x8] sm:$0xff] }
 0x845   :  { %v11586_v46 = vpop.eup %11585  ;;  %v2403_v37 = vadd.f32 1e-30, %v9098_v4  ;;  %v11932_v4 = vld [vmem:[%s16338_s23] sm:$0xff] }
 0x846   :  { %8514 = vmatmul.mubr.msk.f32.gmra.mrb[56].mxu1 %vm1476_vm3, %v11586_v46 }
 0x847   :  { %11591 = vrcp.f32 %v2403_v37  ;;  %2540 = vmatprep.mubr.f32.mxu1 %v16429_v40 }
 0x849   :  { %v11588_v58 = vpop.eup %11587 }
 0x84a   :  { %8515 = vmatmul.mubr.msk.f32.gmra.mrb[58].mxu1 %vm1476_vm3, %v11588_v58 }
 0x84b   :  { %2546 = vmatprep.mubr.f32.mxu1 %v16429_v40 }
 0x84d   :  { %v11590_v38 = vpop.eup %11589 }
 0x84e   :  { %8516 = vmatmul.mubr.msk.f32.gmra.mrb[60].mxu1 %vm1476_vm3, %v11590_v38 }
 0x84f   :  { %2552 = vmatprep.mubr.f32.mxu1 %v16429_v40 }
 0x851   :  { %v11592_v62 = vpop.eup %11591 }
 0x852   :  { %8517 = vmatmul.mubr.msk.f32.gmra.mrb[62].mxu1 %vm1476_vm3, %v11592_v62  ;;  %v11933_v62 = vld [vmem:[%s16338_s23 + $0x18] sm:$0xff] }
 0x853   :  { %9781 = vmatprep.mubr.msk.f32.mxu1 %vm189_vm0, %v13533_v43 }
 0x856   :  { %9782 = vmatmul.mubr.msk.f32.vlgmr.msra.gmra.mrb[64].mxu1 %vm189_vm0, %v13537_v13 }
 0x857   :  { %9784 = vmatprep.mubr.msk.f32.mxu1 %vm189_vm0, %v13543_v22 }
 0x85a   :  { %9785 = vmatmul.mubr.msk.f32.gmra.mrb[66].mxu1 %vm189_vm0, %v13553_v54 }
 0x85b   :  { %9787 = vmatprep.mubr.msk.f32.mxu1 %vm189_vm0, %v13567_v32 }
 0x85e   :  { %9788 = vmatmul.mubr.msk.f32.gmra.mrb[68].mxu1 %vm189_vm0, %v13577_v3 }
 0x85f   :  { %9790 = vmatprep.mubr.msk.f32.mxu1 %vm189_vm0, %v13587_v18 }
 0x862   :  { %9791 = vmatmul.mubr.msk.f32.gmra.mrb[70].mxu1 %vm189_vm0, %v13595_v49 }
 0x909   :  { %v13657_v43 = vpop.f32.mrb[48].mxu1 }
 0x90a   :  { %v2514_v13 = vpop.f32.mrb[49].mxu1 }
 0x90b   :  { %v2560_v22 = vmul.f32 %v13545_v56, %v2514_v13 }
 0x90d   :  { %v13660_v33 = vpop.f32.mrb[50].mxu1  ;;  %2767 = vmatprep.mubr.f32.mxu0 %v2560_v22 }
 0x90e   :  { %v13662_v54 = vpop.f32.mrb[51].mxu1 }
 0x911   :  { %v13664_v32 = vpop.f32.mrb[52].mxu1 }
 0x912   :  { %v13666_v47 = vpop.f32.mrb[53].mxu1 }
 0x915   :  { %v13668_v3 = vpop.f32.mrb[54].mxu1 }
 0x916   :  { %v13670_v18 = vpop.f32.mrb[55].mxu1 }
 0x919   :  { %v13672_v28 = vpop.f32.mrb[56].mxu1 }
 0x91a   :  { %v13674_v49 = vpop.f32.mrb[57].mxu1 }
 0x91d   :  { %v13676_v44 = vpop.f32.mrb[58].mxu1 }
 0x91e   :  { %v13678_v56 = vpop.f32.mrb[59].mxu1 }
 0x921   :  { %v13680_v50 = vpop.f32.mrb[60].mxu1 }
 0x922   :  { %v13682_v16 = vpop.f32.mrb[61].mxu1 }
 0x925   :  { %v13684_v36 = vpop.f32.mrb[62].mxu1 }
 0x926   :  { %v13686_v0 = vpop.f32.mrb[63].mxu1 }
 0x929   :  { %v9783_v30 = vpop.f32.mrb[64].mxu1 }
 0x92a   :  { %v3006_v48 = vadd.f32 %v11931_v60, %v9783_v30  ;;  %v2926_v34 = vpop.f32.mrb[65].mxu1  ;;  %v11934_v60 = vld [vmem:[%s16338_s23 + $0x10] sm:$0xff] }
 0x92b   :  { %v3005_v46 = vadd.f32 %v11932_v4, %v2926_v34 }
 0x92c   :  { %v13700_v37 = vadd.f32 %v13691_v41, %v3006_v48 }
 0x92d   :  { %v13703_v58 = vadd.f32 %v13691_v41, %v3005_v46  ;;  %v9786_v38 = vpop.f32.mrb[66].mxu1 }
 0x92e   :  { %v3008_v13 = vadd.f32 %v11933_v62, %v9786_v38  ;;  %v2936_v22 = vpop.f32.mrb[67].mxu1  ;;  %v3049_v30 = vsel %vm189_vm0, %v13700_v37, 0.0  ;;  %v11935_v62 = vld [vmem:[%s16338_s23 + $0x28] sm:$0xff] }
 0x92f   :  { %v3007_v34 = vadd.f32 %v11934_v60, %v2936_v22  ;;  %3050 = vadd.xlane.f32.xlu1 %v3049_v30  ;;  %v3046_v48 = vsel %vm189_vm0, %v13703_v58, 0.0  ;;  %v11936_v30 = vld [vmem:[%s16338_s23 + $0x20] sm:$0xff] }
 0x930   :  { %v13716_v4 = vadd.f32 %v13691_v41, %v3008_v13  ;;  %3047 = vadd.xlane.f32.xlu0 %v3046_v48 }
 0x931   :  { %v13719_v46 = vadd.f32 %v13691_v41, %v3007_v34  ;;  %v9789_v38 = vpop.f32.mrb[68].mxu1 }
 0x932   :  { %v3010_v40 = vadd.f32 %v11935_v62, %v9789_v38  ;;  %v2946_v14 = vpop.f32.mrb[69].mxu1  ;;  %v3055_v22 = vsel %vm189_vm0, %v13716_v4, 0.0 }
 0x933   :  { %v3009_v13 = vadd.f32 %v11936_v30, %v2946_v14  ;;  %3056 = vadd.xlane.f32.xlu1 %v3055_v22  ;;  %v3052_v60 = vsel %vm189_vm0, %v13719_v46, 0.0  ;;  %v1911_v22 = vmul.f32 %v13257_v53, %v12997_v26 }
 0x934   :  { %v13732_v34 = vadd.f32 %v13691_v41, %v3010_v40  ;;  %3053 = vadd.xlane.f32.xlu0 %v3052_v60  ;;  %v1910_v40 = vmul.f32 %v13243_v12, %v12999_v21  ;;  %v16479_v60 = vld [vmem:[#allocation85_spill] sm:$0xff] }
 0x935   :  { %v13735_v48 = vadd.f32 %v13691_v41, %v3009_v13  ;;  %v9792_v38 = vpop.f32.mrb[70].mxu1  ;;  %v1927_v13 = vmul.f32 %v13241_v24, %v12997_v26  ;;  %v1926_v45 = vmul.f32 %v16479_v60, %v12999_v21  ;;  %v3298_v24 = vld [vmem:[%s16099_s9] sm:$0xff] }
 0x936   :  { %v2956_v62 = vpop.f32.mrb[71].mxu1  ;;  %v3061_v2 = vsel %vm189_vm0, %v13732_v34, 0.0  ;;  %v11119_v30 = vpack.i.bf16 %v1911_v22, %v1910_v40  ;;  %v11938_v22 = vld [vmem:[%s16338_s23 + $0x30] sm:$0xff] }
 0x937   :  { %3062 = vadd.xlane.f32.xlu1 %v3061_v2  ;;  %v3058_v14 = vsel %vm189_vm0, %v13735_v48, 0.0  ;;  %v11114_v2 = vpack.i.bf16 %v1927_v13, %v1926_v45  ;;  %v3011_v40 = vadd.f32 %v11938_v22, %v2956_v62  ;;  %v1912_v62 = vmul.f32 %v13273_v57, %v13013_v23 }
 0x938   :  { %3059 = vadd.xlane.f32.xlu0 %v3058_v14  ;;  %v11937_v14 = vld [vmem:[%s16338_s23 + $0x38] sm:$0xff]  ;;  %v1928_v22 = vmul.f32 %v13259_v52, %v13013_v23 }
 0x939   :  { %v3012_v53 = vadd.f32 %v11937_v14, %v9792_v38  ;;  %v1913_v38 = vmul.f32 %v13287_v61, %v13007_v27  ;;  %v1914_v14 = vmul.f32 %v13308_v51, %v13022_v35 }
 0x93b   :  { %v13758_v26 = vadd.f32 %v13691_v41, %v3012_v53  ;;  %v1915_v53 = vmul.f32 %v13316_v59, %v13020_v20  ;;  %v11129_v13 = vpack.i.bf16 %v1913_v38, %v1912_v62  ;;  %v1930_v38 = vmul.f32 %v13289_v55, %v13022_v35 }
 0x93d   :  { %v3067_v21 = vsel %vm189_vm0, %v13758_v26, 0.0 }
 0x948   :  { %11120 = vrot.lane.b32.xlu1 %v11119_v30, %s12096_s3  ;;  %v13761_v30 = vadd.f32 %v13691_v41, %v3011_v40  ;;  %v11139_v40 = vpack.i.bf16 %v1915_v53, %v1914_v14 }
 0x94a   :  { %v3064_v45 = vsel %vm189_vm0, %v13761_v30, 0.0 }
 0x94e   :  { %11115 = vrot.lane.b32.xlu0 %v11114_v2, %s12096_s3  ;;  %v1929_v2 = vmul.f32 %v13271_v6, %v13007_v27 }
 0x96c   :  { %3068 = vadd.xlane.f32.xlu1 %v3067_v21  ;;  %v1931_v21 = vmul.f32 %v13301_v15, %v13020_v20 }
 0x96d   :  { %3065 = vadd.xlane.f32.xlu0 %v3064_v45  ;;  %v11124_v45 = vpack.i.bf16 %v1929_v2, %v1928_v22 }
 0x96e   :  { %v11134_v27 = vpack.i.bf16 %v1931_v21, %v1930_v38 }
 0x97d   :  { %11130 = vrot.lane.b32.xlu1 %v11129_v13, %s12096_s3 }
 0x981   :  { %11140 = vrot.lane.b32.xlu1 %v11139_v40, %s12096_s3 }
 0x983   :  { %11125 = vrot.lane.b32.xlu0 %v11124_v45, %s12096_s3 }
 0x987   :  { %11135 = vrot.lane.b32.xlu0 %v11134_v27, %s12096_s3 }
 0x9bc   :  { %v3051_v62 = vpop.xlane.xlu1 %3050 }
 0x9bd   :  { %v3095_v13 = vmul.f32 0.03125, %v3051_v62  ;;  %v3048_v59 = vpop.xlane.xlu0 %3047 }
 0x9be   :  { %v3094_v51 = vmul.f32 0.03125, %v3048_v59 }
 0x9bf   :  { %v13788_v23 = vsub.f32 %v13700_v37, %v3095_v13 }
 0x9c0   :  { %v13791_v20 = vsub.f32 %v13703_v58, %v3094_v51  ;;  %v3057_v53 = vpop.xlane.xlu1 %3056 }
 0x9c1   :  { %v3097_v2 = vmul.f32 0.03125, %v3057_v53  ;;  %v3054_v14 = vpop.xlane.xlu0 %3053  ;;  %v3127_v35 = vmul.f32 %v13788_v23, %v13788_v23 }
 0x9c2   :  { %v3096_v22 = vmul.f32 0.03125, %v3054_v14  ;;  %v3126_v40 = vmul.f32 %v13791_v20, %v13791_v20 }
 0x9c3   :  { %v3145_v21 = vsel %vm189_vm0, %v3127_v35, 0.0  ;;  %v13799_v59 = vsub.f32 %v13716_v4, %v3097_v2 }
 0x9c4   :  { %v13802_v45 = vsub.f32 %v13719_v46, %v3096_v22  ;;  %v3063_v51 = vpop.xlane.xlu1 %3062  ;;  %3146 = vadd.xlane.f32.xlu1 %v3145_v21  ;;  %v3142_v38 = vsel %vm189_vm0, %v3126_v40, 0.0 }
 0x9c5   :  { %v3099_v27 = vmul.f32 0.03125, %v3063_v51  ;;  %3143 = vadd.xlane.f32.xlu0 %v3142_v38  ;;  %v3060_v62 = vpop.xlane.xlu0 %3059  ;;  %v3129_v21 = vmul.f32 %v13799_v59, %v13799_v59 }
 0x9c6   :  { %v3098_v13 = vmul.f32 0.03125, %v3060_v62  ;;  %v3128_v53 = vmul.f32 %v13802_v45, %v13802_v45 }
 0x9c7   :  { %v13808_v14 = vsub.f32 %v13732_v34, %v3099_v27 }
 0x9c8   :  { %v13811_v2 = vsub.f32 %v13735_v48, %v3098_v13  ;;  %v11121_v35 = vpop.permute.xlu1 %11120  ;;  %v3148_v22 = vsel %vm189_vm0, %v3128_v53, 0.0  ;;  %v3151_v13 = vsel %vm189_vm0, %v3129_v21, 0.0 }
 0x9c9   :  { %v11123_v40 = vunpack.i.h.bf16 %v11121_v35  ;;  %v11122_v51 = vunpack.i.l.bf16 %v11121_v35  ;;  %3149 = vadd.xlane.f32.xlu0 %v3148_v22  ;;  %v11116_v38 = vpop.permute.xlu0 %11115  ;;  %v3131_v62 = vmul.f32 %v13808_v14, %v13808_v14 }
 0x9ca   :  { %v11118_v15 = vunpack.i.h.bf16 %v11116_v38  ;;  %v11117_v55 = vunpack.i.l.bf16 %v11116_v38  ;;  %v3130_v53 = vmul.f32 %v13811_v2, %v13811_v2 }
 0x9cb   :  { %v3157_v27 = vsel %vm189_vm0, %v3131_v62, 0.0  ;;  %v10431_v57 = vpack.c.bf16 %v11123_v40, %v11122_v51 }
 0x9cc   :  { %3158 = vadd.xlane.f32.xlu1 %v3157_v27  ;;  %v10429_v61 = vpack.c.bf16 %v11118_v15, %v11117_v55  ;;  %v3154_v35 = vsel %vm189_vm0, %v3130_v53, 0.0 }
 0x9cd   :  { %3152 = vadd.xlane.f32.xlu0 %v3151_v13 }
 0x9ce   :  { %10430 = vmatprep.subr.bf16.mxu0 %v10429_v61 }
 0x9cf   :  { %10432 = vmatpush3.bf16.msra.mxu0 %v10431_v57 }
 0x9d1   :  { %3155 = vadd.xlane.f32.xlu0 %v3154_v35 }
 0x9f9   :  { %v3069_v22 = vpop.xlane.xlu1 %3068 }
 0x9fa   :  { %v3101_v6 = vmul.f32 0.03125, %v3069_v22  ;;  %v3066_v52 = vpop.xlane.xlu0 %3065 }
 0x9fb   :  { %v3100_v38 = vmul.f32 0.03125, %v3066_v52 }
 0x9fc   :  { %v13824_v62 = vsub.f32 %v13758_v26, %v3101_v6 }
 0x9fd   :  { %v13827_v21 = vsub.f32 %v13761_v30, %v3100_v38  ;;  %v11131_v55 = vpop.permute.xlu1 %11130 }
 0x9fe   :  { %v11133_v15 = vunpack.i.h.bf16 %v11131_v55  ;;  %v11132_v27 = vunpack.i.l.bf16 %v11131_v55  ;;  %v11126_v40 = vpop.permute.xlu0 %11125  ;;  %v3133_v57 = vmul.f32 %v13824_v62, %v13824_v62 }
 0x9ff   :  { %v11128_v61 = vunpack.i.h.bf16 %v11126_v40  ;;  %v11127_v51 = vunpack.i.l.bf16 %v11126_v40  ;;  %v3132_v13 = vmul.f32 %v13827_v21, %v13827_v21  ;;  %v3299_v40 = vld [vmem:[%s16099_s9 + $0x8] sm:$0xff] }
 0xa00   :  { %v3163_v52 = vsel %vm189_vm0, %v3133_v57, 0.0  ;;  %v10435_v22 = vpack.c.bf16 %v11133_v15, %v11132_v27  ;;  %v3300_v15 = vld [vmem:[%s16099_s9 + $0x10] sm:$0xff]  ;;  %v3301_v27 = vld [vmem:[%s16099_s9 + $0x18] sm:$0xff] }
 0xa01   :  { %3164 = vadd.xlane.f32.xlu1 %v3163_v52  ;;  %v11141_v6 = vpop.permute.xlu1 %11140  ;;  %v3160_v53 = vsel %vm189_vm0, %v3132_v13, 0.0  ;;  %v10433_v35 = vpack.c.bf16 %v11128_v61, %v11127_v51  ;;  %v10449_v13 = vpack.c.bf16 %v3299_v40, %v3298_v24  ;;  %v2559_v51 = vmul.f32 %v13541_v5, %v13657_v43  ;;  %v13888_v40 = vld [vmem:[%s16098_s8] ss:$0 sm:$0xff] }
 0xa02   :  { %v11143_v38 = vunpack.i.h.bf16 %v11141_v6  ;;  %v11142_v12 = vunpack.i.l.bf16 %v11141_v6  ;;  %3161 = vadd.xlane.f32.xlu0 %v3160_v53  ;;  %v11136_v55 = vpop.permute.xlu0 %11135  ;;  %v10453_v6 = vpack.c.bf16 %v3301_v27, %v3300_v15  ;;  %v2564_v24 = vmul.f32 %v13569_v7, %v13666_v47 }
 0xa03   :  { %v11138_v60 = vunpack.i.h.bf16 %v11136_v55  ;;  %v11137_v57 = vunpack.i.l.bf16 %v11136_v55  ;;  %10434 = vmatprep.subr.bf16.mxu0 %v10433_v35  ;;  %v2563_v5 = vmul.f32 %v13565_v8, %v13664_v32  ;;  %v2566_v43 = vmul.f32 %v13579_v42, %v13670_v18 }
 0xa04   :  { %10436 = vmatpush3.bf16.msra.mxu0 %v10435_v22  ;;  %v10439_v61 = vpack.c.bf16 %v11143_v38, %v11142_v12  ;;  %v2561_v12 = vmul.f32 %v13551_v17, %v13660_v33  ;;  %v2568_v17 = vmul.f32 %v13589_v10, %v13674_v49  ;;  %v2567_v7 = vmul.f32 %v13585_v25, %v13672_v28 }
 0xa05   :  { %v10437_v52 = vpack.c.bf16 %v11138_v60, %v11137_v57  ;;  %v2562_v60 = vmul.f32 %v13559_v39, %v13662_v54  ;;  %v2565_v39 = vmul.f32 %v13575_v29, %v13668_v3  ;;  %v2570_v33 = vmul.f32 %v13597_v9, %v13678_v56 }
 0xa06   :  { %v2569_v8 = vmul.f32 %v13593_v19, %v13676_v44  ;;  %v2572_v42 = vmul.f32 %v13603_v31, %v13682_v16  ;;  %v2571_v29 = vmul.f32 %v13601_v63, %v13680_v50  ;;  %v2574_v10 = vmul.f32 %v13609_v1, %v13686_v0  ;;  %v13880_v0 = vld [vmem:[%s16097_s7] ss:$0 sm:$0xff] }
 0xa07   :  { %10438 = vmatprep.subr.bf16.mxu0 %v10437_v52  ;;  %v2573_v25 = vmul.f32 %v13607_v11, %v13684_v36 }
 0xa08   :  { %10440 = vmatpush3.bf16.msra.mxu0 %v10439_v61 }
 0xa09   :  { %10450 = vmatprep.subr.bf16.mxu0 %v10449_v13 }
 0xa0b   :  { %2768 = vmatmul.mubr.f32.vlgmr.msra.gmra.mrb[64].mxu0 %v2559_v51 }
 0xa0c   :  { %2772 = vmatprep.mubr.f32.mxu0 %v2562_v60  ;;  %10452 = vmatpush3.bf16.msra.mxu0 %v10449_v13 }
 0xa0d   :  { %10454 = vmatprep.subr.bf16.mxu0 %v10453_v6 }
 0xa0f   :  { %2773 = vmatmul.mubr.f32.gmra.mrb[66].mxu0 %v2561_v12 }
 0xa10   :  { %2777 = vmatprep.mubr.f32.mxu0 %v2564_v24  ;;  %10456 = vmatpush3.bf16.msra.mxu0 %v10453_v6 }
 0xa13   :  { %2778 = vmatmul.mubr.f32.gmra.mrb[68].mxu0 %v2563_v5 }
 0xa14   :  { %2782 = vmatprep.mubr.f32.mxu0 %v2566_v43 }
 0xa17   :  { %2783 = vmatmul.mubr.f32.gmra.mrb[70].mxu0 %v2565_v39 }
 0xa18   :  { %2787 = vmatprep.mubr.f32.mxu0 %v2568_v17 }
 0xa1b   :  { %2788 = vmatmul.mubr.f32.gmra.mrb[72].mxu0 %v2567_v7 }
 0xa1c   :  { %2792 = vmatprep.mubr.f32.mxu0 %v2570_v33 }
 0xa1f   :  { %2793 = vmatmul.mubr.f32.gmra.mrb[74].mxu0 %v2569_v8 }
 0xa20   :  { %2797 = vmatprep.mubr.f32.mxu0 %v2572_v42 }
 0xa23   :  { %2798 = vmatmul.mubr.f32.gmra.mrb[76].mxu0 %v2571_v29 }
 0xa24   :  { %2802 = vmatprep.mubr.f32.mxu0 %v2574_v10 }
 0xa27   :  { %2803 = vmatmul.mubr.f32.gmra.mrb[78].mxu0 %v2573_v25 }
 0xa51   :  { %v3147_v9 = vpop.xlane.xlu1 %3146 }
 0xa52   :  { %v3191_v54 = vmul.f32 0.03125, %v3147_v9  ;;  %v3144_v19 = vpop.xlane.xlu0 %3143 }
 0xa53   :  { %v3190_v32 = vmul.f32 0.03125, %v3144_v19 }
 0xa54   :  { %v3207_v47 = vadd.f32 1e-05, %v3191_v54 }
 0xa55   :  { %v3206_v31 = vadd.f32 1e-05, %v3190_v32 }
 0xa56   :  { %11593 = vrsqrt.f32 %v3207_v47  ;;  %v3150_v3 = vpop.xlane.xlu0 %3149 }
 0xa57   :  { %11595 = vrsqrt.f32 %v3206_v31  ;;  %v3192_v18 = vmul.f32 0.03125, %v3150_v3  ;;  %v3646_v31 = vld [vmem:[#allocation4] sm:$0xff]  ;;  %v3647_v3 = vld [vmem:[#allocation4 + $0x8] sm:$0xff] }
 0xa59   :  { %v3208_v63 = vadd.f32 1e-05, %v3192_v18  ;;  %v3159_v28 = vpop.xlane.xlu1 %3158  ;;  %v10457_v18 = vpack.c.bf16 %v3647_v3, %v3646_v31 }
 0xa5a   :  { %v3195_v49 = vmul.f32 0.03125, %v3159_v28  ;;  %v3153_v1 = vpop.xlane.xlu0 %3152  ;;  %v3650_v28 = vld [vmem:[#allocation4 + $0x20] sm:$0xff] }
 0xa5b   :  { %11597 = vrsqrt.f32 %v3208_v63  ;;  %v3193_v44 = vmul.f32 0.03125, %v3153_v1  ;;  %10458 = vmatprep.subr.bf16.mxu1 %v10457_v18  ;;  %v3649_v63 = vld [vmem:[#allocation4 + $0x18] sm:$0xff] }
 0xa5c   :  { %v3211_v56 = vadd.f32 1e-05, %v3195_v49  ;;  %10460 = vmatpush3.bf16.msra.mxu1 %v10457_v18  ;;  %v3651_v49 = vld [vmem:[#allocation4 + $0x28] sm:$0xff] }
 0xa5d   :  { %v3209_v50 = vadd.f32 1e-05, %v3193_v44  ;;  %v10465_v1 = vpack.c.bf16 %v3651_v49, %v3650_v28  ;;  %v3652_v44 = vld [vmem:[#allocation4 + $0x30] sm:$0xff] }
 0xa5e   :  { %11599 = vrsqrt.f32 %v3211_v56  ;;  %v3156_v11 = vpop.xlane.xlu0 %3155  ;;  %v3653_v56 = vld [vmem:[#allocation4 + $0x38] sm:$0xff] }
 0xa5f   :  { %11601 = vrsqrt.f32 %v3209_v50  ;;  %v3194_v16 = vmul.f32 0.03125, %v3156_v11  ;;  %v10469_v50 = vpack.c.bf16 %v3653_v56, %v3652_v44  ;;  %v3654_v11 = vld [vmem:[#allocation4 + $0x40] sm:$0xff] }
 0xa60   :  { %v11594_v36 = vpop.eup %11593 }
 0xa61   :  { %v11596_v53 = vpop.eup %11595  ;;  %v3239_v35 = vmul.f32 %v11594_v36, %v13788_v23  ;;  %v3210_v22 = vadd.f32 1e-05, %v3194_v16  ;;  %v3655_v16 = vld [vmem:[#allocation4 + $0x48] sm:$0xff] }
 0xa62   :  { %v3238_v38 = vmul.f32 %v11596_v53, %v13791_v20  ;;  %v10473_v36 = vpack.c.bf16 %v3655_v16, %v3654_v11  ;;  %v3656_v53 = vld [vmem:[#allocation4 + $0x50] sm:$0xff] }
 0xa63   :  { %v3261_v55 = vmul.f32 %v13880_v0, %v3239_v35  ;;  %11603 = vrsqrt.f32 %v3210_v22  ;;  %v3657_v35 = vld [vmem:[#allocation4 + $0x58] sm:$0xff] }
 0xa64   :  { %v3260_v57 = vmul.f32 %v13880_v0, %v3238_v38  ;;  %v10477_v22 = vpack.c.bf16 %v3657_v35, %v3656_v53  ;;  %v3658_v38 = vld [vmem:[#allocation4 + $0x60] sm:$0xff] }
 0xa65   :  { %v11598_v52 = vpop.eup %11597  ;;  %v3283_v23 = vadd.f32 %v13888_v40, %v3261_v55  ;;  %v3659_v55 = vld [vmem:[#allocation4 + $0x68] sm:$0xff] }
 0xa66   :  { %v3282_v13 = vadd.f32 %v13888_v40, %v3260_v57  ;;  %v3240_v61 = vmul.f32 %v11598_v52, %v13802_v45  ;;  %v10481_v57 = vpack.c.bf16 %v3659_v55, %v3658_v38  ;;  %v3660_v52 = vld [vmem:[#allocation4 + $0x70] sm:$0xff] }
 0xa68   :  { %v11600_v15 = vpop.eup %11599  ;;  %9813 = vmatprep.mubr.msk.f32.mxu0 %vm189_vm0, %v3282_v13  ;;  %v3262_v20 = vmul.f32 %v13880_v0, %v3240_v61  ;;  %v3661_v13 = vld [vmem:[#allocation4 + $0x78] sm:$0xff] }
 0xa69   :  { %v11602_v27 = vpop.eup %11601  ;;  %9814 = vmatmul.mubr.msk.f32.vlgmr.msra.gmra.mrb[80].mxu0 %vm189_vm0, %v3283_v23  ;;  %v3243_v60 = vmul.f32 %v11600_v15, %v13808_v14  ;;  %v10485_v61 = vpack.c.bf16 %v3661_v13, %v3660_v52 }
 0xa6a   :  { %v3284_v51 = vadd.f32 %v13888_v40, %v3262_v20  ;;  %v3241_v6 = vmul.f32 %v11602_v27, %v13799_v59 }
 0xa6b   :  { %v3265_v43 = vmul.f32 %v13880_v0, %v3243_v60 }
 0xa6c   :  { %9816 = vmatprep.mubr.msk.f32.mxu0 %vm189_vm0, %v3284_v51  ;;  %v3263_v45 = vmul.f32 %v13880_v0, %v3241_v6 }
 0xa6d   :  { %v11604_v12 = vpop.eup %11603  ;;  %v3287_v59 = vadd.f32 %v13888_v40, %v3265_v43 }
 0xa6e   :  { %v3285_v24 = vadd.f32 %v13888_v40, %v3263_v45  ;;  %v3242_v5 = vmul.f32 %v11604_v12, %v13811_v2 }
 0xa70   :  { %9817 = vmatmul.mubr.msk.f32.gmra.mrb[82].mxu0 %vm189_vm0, %v3285_v24  ;;  %v3264_v39 = vmul.f32 %v13880_v0, %v3242_v5 }
 0xa72   :  { %v3286_v17 = vadd.f32 %v13888_v40, %v3264_v39 }
 0xa74   :  { %9819 = vmatprep.mubr.msk.f32.mxu0 %vm189_vm0, %v3286_v17 }
 0xa75   :  { %9820 = vmatmul.mubr.msk.f32.gmra.mrb[84].mxu0 %vm189_vm0, %v3287_v59 }
 0xa8e   :  { %v3165_v14 = vpop.xlane.xlu1 %3164 }
 0xa8f   :  { %v3197_v7 = vmul.f32 0.03125, %v3165_v14  ;;  %v3162_v33 = vpop.xlane.xlu0 %3161 }
 0xa90   :  { %v3196_v8 = vmul.f32 0.03125, %v3162_v33 }
 0xa91   :  { %v3213_v42 = vadd.f32 1e-05, %v3197_v7 }
 0xa92   :  { %v3212_v2 = vadd.f32 1e-05, %v3196_v8 }
 0xa93   :  { %11605 = vrsqrt.f32 %v3213_v42 }
 0xa94   :  { %11607 = vrsqrt.f32 %v3212_v2 }
 0xa9d   :  { %v11606_v29 = vpop.eup %11605 }
 0xa9e   :  { %v11608_v10 = vpop.eup %11607  ;;  %v3245_v25 = vmul.f32 %v11606_v29, %v13824_v62  ;;  %v3648_v62 = vld [vmem:[#allocation4 + $0x10] sm:$0xff] }
 0xa9f   :  { %v3244_v9 = vmul.f32 %v11608_v10, %v13827_v21  ;;  %v10461_v21 = vpack.c.bf16 %v3649_v63, %v3648_v62 }
 0xaa0   :  { %v3267_v54 = vmul.f32 %v13880_v0, %v3245_v25 }
 0xaa1   :  { %v3266_v19 = vmul.f32 %v13880_v0, %v3244_v9  ;;  %10462 = vmatprep.subr.bf16.mxu1 %v10461_v21  ;;  %v13930_v9 = vld [vmem:[%s16100_s10] ss:$0 sm:$0xff] }
 0xaa2   :  { %v3289_v47 = vadd.f32 %v13888_v40, %v3267_v54  ;;  %10464 = vmatpush3.bf16.msra.mxu1 %v10461_v21 }
 0xaa3   :  { %v3288_v32 = vadd.f32 %v13888_v40, %v3266_v19  ;;  %10466 = vmatprep.subr.bf16.mxu1 %v10465_v1 }
 0xaa5   :  { %9822 = vmatprep.mubr.msk.f32.mxu0 %vm189_vm0, %v3288_v32 }
 0xaa6   :  { %9823 = vmatmul.mubr.msk.f32.gmra.mrb[86].mxu0 %vm189_vm0, %v3289_v47  ;;  %10468 = vmatpush3.bf16.msra.mxu1 %v10465_v1 }
 0xaa7   :  { %10470 = vmatprep.subr.bf16.mxu1 %v10469_v50 }
 0xaaa   :  { %10472 = vmatpush3.bf16.msra.mxu1 %v10469_v50 }
 0xaab   :  { %10474 = vmatprep.subr.bf16.mxu1 %v10473_v36 }
 0xaae   :  { %10476 = vmatpush3.bf16.msra.mxu1 %v10473_v36 }
 0xaaf   :  { %10478 = vmatprep.subr.bf16.mxu1 %v10477_v22 }
 0xab2   :  { %10480 = vmatpush3.bf16.msra.mxu1 %v10477_v22 }
 0xab3   :  { %10482 = vmatprep.subr.bf16.mxu1 %v10481_v57 }
 0xab6   :  { %10484 = vmatpush3.bf16.msra.mxu1 %v10481_v57 }
 0xab7   :  { %10486 = vmatprep.subr.bf16.mxu1 %v10485_v61 }
 0xaba   :  { %10488 = vmatpush3.bf16.msra.mxu1 %v10485_v61 }
 0xade   :  { %v9131_v23 = vpop.f32.mrb[64].mxu0 }
 0xadf   :  { %v9132_v15 = vpop.f32.mrb[65].mxu0 }
 0xae0   :  { %v9133_v20 = vadd.f32 %v9132_v15, %v9131_v23 }
 0xae2   :  { %v9134_v27 = vpop.f32.mrb[66].mxu0  ;;  %9793 = vmatprep.mubr.msk.f32.mxu1 %vm189_vm0, %v9133_v20 }
 0xae3   :  { %v9135_v51 = vpop.f32.mrb[67].mxu0 }
 0xae4   :  { %v9136_v6 = vadd.f32 %v9135_v51, %v9134_v27 }
 0xae6   :  { %v9137_v60 = vpop.f32.mrb[68].mxu0  ;;  %9794 = vmatmul.mubr.msk.f32.gmra.mrb[72].mxu1 %vm189_vm0, %v9136_v6 }
 0xae7   :  { %v9138_v45 = vpop.f32.mrb[69].mxu0 }
 0xae8   :  { %v9139_v12 = vadd.f32 %v9138_v45, %v9137_v60 }
 0xaea   :  { %v9140_v24 = vpop.f32.mrb[70].mxu0  ;;  %9796 = vmatprep.mubr.msk.f32.mxu1 %vm189_vm0, %v9139_v12 }
 0xaeb   :  { %v9141_v5 = vpop.f32.mrb[71].mxu0 }
 0xaec   :  { %v9142_v43 = vadd.f32 %v9141_v5, %v9140_v24 }
 0xaee   :  { %v9143_v39 = vpop.f32.mrb[72].mxu0  ;;  %9797 = vmatmul.mubr.msk.f32.gmra.mrb[74].mxu1 %vm189_vm0, %v9142_v43 }
 0xaef   :  { %v9144_v17 = vpop.f32.mrb[73].mxu0 }
 0xaf0   :  { %v9145_v59 = vadd.f32 %v9144_v17, %v9143_v39 }
 0xaf2   :  { %v9146_v14 = vpop.f32.mrb[74].mxu0  ;;  %9799 = vmatprep.mubr.msk.f32.mxu1 %vm189_vm0, %v9145_v59 }
 0xaf3   :  { %v9147_v7 = vpop.f32.mrb[75].mxu0 }
 0xaf4   :  { %v9148_v33 = vadd.f32 %v9147_v7, %v9146_v14 }
 0xaf6   :  { %v9149_v8 = vpop.f32.mrb[76].mxu0  ;;  %9800 = vmatmul.mubr.msk.f32.gmra.mrb[76].mxu1 %vm189_vm0, %v9148_v33 }
 0xaf7   :  { %v9150_v42 = vpop.f32.mrb[77].mxu0 }
 0xaf8   :  { %v9151_v2 = vadd.f32 %v9150_v42, %v9149_v8 }
 0xafa   :  { %v9152_v29 = vpop.f32.mrb[78].mxu0  ;;  %9802 = vmatprep.mubr.msk.f32.mxu1 %vm189_vm0, %v9151_v2 }
 0xafb   :  { %v9153_v10 = vpop.f32.mrb[79].mxu0 }
 0xafc   :  { %v9154_v25 = vadd.f32 %v9153_v10, %v9152_v29 }
 0xafe   :  { %9803 = vmatmul.mubr.msk.f32.gmra.mrb[78].mxu1 %vm189_vm0, %v9154_v25 }
 0xb3c   :  { %v9815_v54 = vpop.f32.mrb[80].mxu0 }
 0xb3d   :  { %v3429_v19 = vadd.f32 %v9815_v54, %v13930_v9  ;;  %v3423_v32 = vpop.f32.mrb[81].mxu0 }
 0xb3e   :  { %v3424_v47 = vadd.f32 %v13930_v9, %v3423_v32 }
 0xb3f   :  { %v3503_v31 = vmul.f32 %v3429_v19, %v3429_v19 }
 0xb40   :  { %v3502_v3 = vmul.f32 %v3424_v47, %v3424_v47 }
 0xb41   :  { %v3519_v18 = vmul.f32 %v3503_v31, %v3429_v19 }
 0xb42   :  { %v3518_v62 = vmul.f32 %v3502_v3, %v3424_v47 }
 0xb43   :  { %v3535_v63 = vmul.f32 0.044715, %v3519_v18  ;;  %v9818_v21 = vpop.f32.mrb[82].mxu0 }
 0xb44   :  { %v3534_v28 = vmul.f32 0.044715, %v3518_v62  ;;  %v3439_v49 = vadd.f32 %v9818_v21, %v13930_v9  ;;  %v3433_v1 = vpop.f32.mrb[83].mxu0 }
 0xb45   :  { %v3551_v44 = vadd.f32 %v3535_v63, %v3429_v19  ;;  %v3434_v56 = vadd.f32 %v13930_v9, %v3433_v1 }
 0xb46   :  { %v3550_v50 = vadd.f32 %v3534_v28, %v3424_v47  ;;  %v3505_v11 = vmul.f32 %v3439_v49, %v3439_v49 }
 0xb47   :  { %v3567_v16 = vmul.f32 0.7978846, %v3551_v44  ;;  %v3504_v36 = vmul.f32 %v3434_v56, %v3434_v56 }
 0xb48   :  { %v3566_v53 = vmul.f32 0.7978846, %v3550_v50  ;;  %v3521_v35 = vmul.f32 %v3505_v11, %v3439_v49  ;;  %v9821_v22 = vpop.f32.mrb[84].mxu0 }
 0xb49   :  { %11609 = vtanh.f32 %v3567_v16  ;;  %v3520_v38 = vmul.f32 %v3504_v36, %v3434_v56  ;;  %v3449_v55 = vadd.f32 %v9821_v22, %v13930_v9  ;;  %v3443_v57 = vpop.f32.mrb[85].mxu0 }
 0xb4a   :  { %v3537_v52 = vmul.f32 0.044715, %v3521_v35  ;;  %v3444_v13 = vadd.f32 %v13930_v9, %v3443_v57  ;;  %11611 = vtanh.f32 %v3566_v53 }
 0xb4b   :  { %v3536_v61 = vmul.f32 0.044715, %v3520_v38  ;;  %v3507_v23 = vmul.f32 %v3449_v55, %v3449_v55 }
 0xb4c   :  { %v3553_v15 = vadd.f32 %v3537_v52, %v3439_v49  ;;  %v3506_v20 = vmul.f32 %v3444_v13, %v3444_v13 }
 0xb4d   :  { %v3552_v27 = vadd.f32 %v3536_v61, %v3434_v56  ;;  %v3523_v51 = vmul.f32 %v3507_v23, %v3449_v55 }
 0xb4e   :  { %v3569_v6 = vmul.f32 0.7978846, %v3553_v15  ;;  %v3522_v60 = vmul.f32 %v3506_v20, %v3444_v13 }
 0xb4f   :  { %v3568_v45 = vmul.f32 0.7978846, %v3552_v27  ;;  %v3539_v12 = vmul.f32 0.044715, %v3523_v51 }
 0xb50   :  { %v3538_v24 = vmul.f32 0.044715, %v3522_v60  ;;  %11613 = vtanh.f32 %v3569_v6 }
 0xb51   :  { %v3555_v5 = vadd.f32 %v3539_v12, %v3449_v55  ;;  %11615 = vtanh.f32 %v3568_v45 }
 0xb52   :  { %v3554_v43 = vadd.f32 %v3538_v24, %v3444_v13  ;;  %v11939_v24 = vld [vmem:[%s16338_s23 + $0x48] sm:$0xff] }
 0xb53   :  { %v11610_v39 = vpop.eup %11609  ;;  %v3571_v17 = vmul.f32 0.7978846, %v3555_v5 }
 0xb54   :  { %v11612_v59 = vpop.eup %11611  ;;  %v3599_v14 = vadd.f32 1.0, %v11610_v39  ;;  %v3570_v7 = vmul.f32 0.7978846, %v3554_v43  ;;  %v11940_v39 = vld [vmem:[%s16338_s23 + $0x40] sm:$0xff] }
 0xb55   :  { %v3598_v33 = vadd.f32 1.0, %v11612_v59  ;;  %11617 = vtanh.f32 %v3571_v17 }
 0xb56   :  { %v3615_v8 = vmul.f32 0.5, %v3599_v14  ;;  %11619 = vtanh.f32 %v3570_v7 }
 0xb57   :  { %v3614_v42 = vmul.f32 0.5, %v3598_v33 }
 0xb58   :  { %v3631_v10 = vmul.f32 %v3615_v8, %v3429_v19 }
 0xb59   :  { %v3630_v2 = vmul.f32 %v3614_v42, %v3424_v47  ;;  %v11941_v42 = vld [vmem:[%s16338_s23 + $0x58] sm:$0xff] }
 0xb5a   :  { %v11614_v29 = vpop.eup %11613 }
 0xb5b   :  { %v11616_v25 = vpop.eup %11615  ;;  %9869 = vmatprep.mubr.f32.mxu1 %v3630_v2  ;;  %v3601_v54 = vadd.f32 1.0, %v11614_v29 }
 0xb5c   :  { %9870 = vmatmul.mubr.f32.vlgmr.msra.gmra.mrb[80].mxu1 %v3631_v10  ;;  %v3600_v32 = vadd.f32 1.0, %v11616_v25  ;;  %v11942_v10 = vld [vmem:[%s16338_s23 + $0x50] sm:$0xff] }
 0xb5d   :  { %v3617_v31 = vmul.f32 0.5, %v3601_v54 }
 0xb5e   :  { %v3616_v3 = vmul.f32 0.5, %v3600_v32 }
 0xb5f   :  { %v11618_v18 = vpop.eup %11617  ;;  %v3633_v28 = vmul.f32 %v3617_v31, %v3439_v49 }
 0xb60   :  { %v11620_v62 = vpop.eup %11619  ;;  %v3632_v63 = vmul.f32 %v3616_v3, %v3434_v56  ;;  %v3603_v21 = vadd.f32 1.0, %v11618_v18 }
 0xb61   :  { %v3602_v1 = vadd.f32 1.0, %v11620_v62  ;;  %v11943_v62 = vld [vmem:[%s16338_s23 + $0x68] sm:$0xff] }
 0xb62   :  { %9872 = vmatprep.mubr.f32.mxu1 %v3632_v63  ;;  %v3619_v44 = vmul.f32 0.5, %v3603_v21 }
 0xb63   :  { %9873 = vmatmul.mubr.f32.gmra.mrb[82].mxu1 %v3633_v28  ;;  %v3618_v50 = vmul.f32 0.5, %v3602_v1  ;;  %v11944_v28 = vld [vmem:[%s16338_s23 + $0x60] sm:$0xff] }
 0xb64   :  { %v3635_v11 = vmul.f32 %v3619_v44, %v3449_v55 }
 0xb65   :  { %v3634_v47 = vmul.f32 %v3618_v50, %v3444_v13 }
 0xb67   :  { %9875 = vmatprep.mubr.f32.mxu1 %v3634_v47 }
 0xb68   :  { %9876 = vmatmul.mubr.f32.gmra.mrb[84].mxu1 %v3635_v11 }
 0xb79   :  { %v9824_v19 = vpop.f32.mrb[86].mxu0 }
 0xb7a   :  { %v3459_v16 = vadd.f32 %v9824_v19, %v13930_v9  ;;  %v3453_v36 = vpop.f32.mrb[87].mxu0 }
 0xb7b   :  { %v3454_v53 = vadd.f32 %v13930_v9, %v3453_v36 }
 0xb7c   :  { %v3509_v35 = vmul.f32 %v3459_v16, %v3459_v16 }
 0xb7d   :  { %v3508_v22 = vmul.f32 %v3454_v53, %v3454_v53 }
 0xb7e   :  { %v3525_v56 = vmul.f32 %v3509_v35, %v3459_v16  ;;  %v11946_v35 = vld [vmem:[%s16338_s23 + $0x70] sm:$0xff] }
 0xb7f   :  { %v3524_v38 = vmul.f32 %v3508_v22, %v3454_v53 }
 0xb80   :  { %v3541_v49 = vmul.f32 0.044715, %v3525_v56 }
 0xb81   :  { %v3540_v57 = vmul.f32 0.044715, %v3524_v38 }
 0xb82   :  { %v3557_v52 = vadd.f32 %v3541_v49, %v3459_v16 }
 0xb83   :  { %v3556_v61 = vadd.f32 %v3540_v57, %v3454_v53 }
 0xb84   :  { %v3573_v23 = vmul.f32 0.7978846, %v3557_v52 }
 0xb85   :  { %v3572_v15 = vmul.f32 0.7978846, %v3556_v61  ;;  %v8554_v61 = vld [vmem:[%s16102_s12] ss:$0 sm:$0xff] }
 0xb86   :  { %11621 = vtanh.f32 %v3573_v23 }
 0xb87   :  { %11623 = vtanh.f32 %v3572_v15 }
 0xb90   :  { %v11622_v55 = vpop.eup %11621 }
 0xb91   :  { %v11624_v13 = vpop.eup %11623  ;;  %v3605_v20 = vadd.f32 1.0, %v11622_v55 }
 0xb92   :  { %v3604_v27 = vadd.f32 1.0, %v11624_v13 }
 0xb93   :  { %v3621_v51 = vmul.f32 0.5, %v3605_v20 }
 0xb94   :  { %v3620_v6 = vmul.f32 0.5, %v3604_v27 }
 0xb95   :  { %v3637_v45 = vmul.f32 %v3621_v51, %v3459_v16  ;;  %v11945_v16 = vld [vmem:[%s16338_s23 + $0x78] sm:$0xff] }
 0xb96   :  { %v3636_v60 = vmul.f32 %v3620_v6, %v3454_v53 }
 0xb98   :  { %9878 = vmatprep.mubr.f32.mxu1 %v3636_v60 }
 0xb99   :  { %9879 = vmatmul.mubr.f32.gmra.mrb[86].mxu1 %v3637_v45 }
 0xbb9   :  { %v9795_v12 = vpop.f32.mrb[72].mxu1 }
 0xbba   :  { %v3014_v5 = vadd.f32 %v11939_v24, %v9795_v12  ;;  %v2966_v43 = vpop.f32.mrb[73].mxu1 }
 0xbbb   :  { %v3013_v17 = vadd.f32 %v11940_v39, %v2966_v43 }
 0xbbc   :  { %v13947_v59 = vadd.f32 %v13691_v41, %v3014_v5 }
 0xbbd   :  { %v13950_v14 = vadd.f32 %v13691_v41, %v3013_v17 }
 0xbbe   :  { %v3073_v7 = vsel %vm189_vm0, %v13947_v59, 0.0 }
 0xbbf   :  { %3074 = vadd.xlane.f32.xlu1 %v3073_v7  ;;  %v3070_v33 = vsel %vm189_vm0, %v13950_v14, 0.0 }
 0xbc0   :  { %3071 = vadd.xlane.f32.xlu0 %v3070_v33 }
 0xbc1   :  { %v9798_v8 = vpop.f32.mrb[74].mxu1 }
 0xbc2   :  { %v3016_v2 = vadd.f32 %v11941_v42, %v9798_v8  ;;  %v2976_v29 = vpop.f32.mrb[75].mxu1 }
 0xbc3   :  { %v3015_v25 = vadd.f32 %v11942_v10, %v2976_v29 }
 0xbc4   :  { %v13963_v54 = vadd.f32 %v13691_v41, %v3016_v2 }
 0xbc5   :  { %v13966_v32 = vadd.f32 %v13691_v41, %v3015_v25 }
 0xbc6   :  { %v3079_v31 = vsel %vm189_vm0, %v13963_v54, 0.0 }
 0xbc7   :  { %3080 = vadd.xlane.f32.xlu1 %v3079_v31  ;;  %v3076_v3 = vsel %vm189_vm0, %v13966_v32, 0.0 }
 0xbc8   :  { %3077 = vadd.xlane.f32.xlu0 %v3076_v3 }
 0xbc9   :  { %v9801_v18 = vpop.f32.mrb[76].mxu1 }
 0xbca   :  { %v3018_v63 = vadd.f32 %v11943_v62, %v9801_v18  ;;  %v2986_v21 = vpop.f32.mrb[77].mxu1 }
 0xbcb   :  { %v3017_v1 = vadd.f32 %v11944_v28, %v2986_v21 }
 0xbcc   :  { %v13979_v44 = vadd.f32 %v13691_v41, %v3018_v63 }
 0xbcd   :  { %v13982_v50 = vadd.f32 %v13691_v41, %v3017_v1 }
 0xbce   :  { %v3085_v47 = vsel %vm189_vm0, %v13979_v44, 0.0 }
 0xbcf   :  { %3086 = vadd.xlane.f32.xlu1 %v3085_v47  ;;  %v3082_v11 = vsel %vm189_vm0, %v13982_v50, 0.0 }
 0xbd0   :  { %3083 = vadd.xlane.f32.xlu0 %v3082_v11 }
 0xbd1   :  { %v9804_v19 = vpop.f32.mrb[78].mxu1 }
 0xbd2   :  { %v3020_v36 = vadd.f32 %v11945_v16, %v9804_v19  ;;  %v2996_v53 = vpop.f32.mrb[79].mxu1 }
 0xbd3   :  { %v3019_v22 = vadd.f32 %v11946_v35, %v2996_v53 }
 0xbd4   :  { %v13995_v56 = vadd.f32 %v13691_v41, %v3020_v36 }
 0xbd5   :  { %v13998_v38 = vadd.f32 %v13691_v41, %v3019_v22 }
 0xbd6   :  { %v3091_v49 = vsel %vm189_vm0, %v13995_v56, 0.0 }
 0xbd7   :  { %3092 = vadd.xlane.f32.xlu1 %v3091_v49  ;;  %v3088_v57 = vsel %vm189_vm0, %v13998_v38, 0.0 }
 0xbd8   :  { %3089 = vadd.xlane.f32.xlu0 %v3088_v57 }
 0xc2f   :  { %v9871_v52 = vpop.f32.mrb[80].mxu1 }
 0xc30   :  { %v3808_v23 = vadd.f32 %v9871_v52, %v13700_v37  ;;  %v3728_v15 = vpop.f32.mrb[81].mxu1 }
 0xc31   :  { %v3807_v55 = vadd.f32 %v3728_v15, %v13703_v58 }
 0xc32   :  { %v14009_v41 = vadd.f32 %v8554_v61, %v3808_v23 }
 0xc33   :  { %v14011_v13 = vadd.f32 %v8554_v61, %v3807_v55 }
 0xc34   :  { %16480 = vst [vmem:[#allocation67_spill] sm:$0xff] %v14009_v41  ;;  %v3853_v20 = vsel %vm189_vm0, %v14009_v41, 0.0 }
 0xc35   :  { %16481 = vst [vmem:[#allocation65_spill] sm:$0xff] %v14011_v13  ;;  %3854 = vadd.xlane.f32.xlu1 %v3853_v20  ;;  %v3850_v27 = vsel %vm189_vm0, %v14011_v13, 0.0 }
 0xc36   :  { %v9874_v51 = vpop.f32.mrb[82].mxu1  ;;  %3851 = vadd.xlane.f32.xlu0 %v3850_v27 }
 0xc37   :  { %v3810_v6 = vadd.f32 %v9874_v51, %v13716_v4  ;;  %v3738_v60 = vpop.f32.mrb[83].mxu1 }
 0xc38   :  { %v3809_v37 = vadd.f32 %v3738_v60, %v13719_v46 }
 0xc39   :  { %v14019_v45 = vadd.f32 %v8554_v61, %v3810_v6 }
 0xc3a   :  { %v14021_v58 = vadd.f32 %v8554_v61, %v3809_v37 }
 0xc3b   :  { %16482 = vst [vmem:[#allocation97_spill] sm:$0xff] %v14019_v45  ;;  %v9877_v12 = vpop.f32.mrb[84].mxu1  ;;  %v3859_v24 = vsel %vm189_vm0, %v14019_v45, 0.0 }
 0xc3c   :  { %16483 = vst [vmem:[#allocation98_spill] sm:$0xff] %v14021_v58  ;;  %v3812_v5 = vadd.f32 %v9877_v12, %v13732_v34  ;;  %3860 = vadd.xlane.f32.xlu1 %v3859_v24  ;;  %v3748_v43 = vpop.f32.mrb[85].mxu1  ;;  %v3856_v39 = vsel %vm189_vm0, %v14021_v58, 0.0 }
 0xc3d   :  { %v3811_v4 = vadd.f32 %v3748_v43, %v13735_v48  ;;  %3857 = vadd.xlane.f32.xlu0 %v3856_v39 }
 0xc3e   :  { %v14029_v17 = vadd.f32 %v8554_v61, %v3812_v5 }
 0xc3f   :  { %v14031_v46 = vadd.f32 %v8554_v61, %v3811_v4 }
 0xc40   :  { %16484 = vst [vmem:[#allocation99_spill] sm:$0xff] %v14029_v17  ;;  %v3865_v7 = vsel %vm189_vm0, %v14029_v17, 0.0 }
 0xc41   :  { %16485 = vst [vmem:[#allocation100_spill] sm:$0xff] %v14031_v46  ;;  %3866 = vadd.xlane.f32.xlu1 %v3865_v7  ;;  %v3862_v33 = vsel %vm189_vm0, %v14031_v46, 0.0 }
 0xc42   :  { %3863 = vadd.xlane.f32.xlu0 %v3862_v33 }
 0xc4c   :  { %v3075_v34 = vpop.xlane.xlu1 %3074 }
 0xc4d   :  { %v3072_v8 = vpop.xlane.xlu0 %3071  ;;  %v3103_v42 = vmul.f32 0.03125, %v3075_v34 }
 0xc4e   :  { %v3102_v2 = vmul.f32 0.03125, %v3072_v8 }
 0xc4f   :  { %v14038_v25 = vsub.f32 %v13947_v59, %v3103_v42 }
 0xc50   :  { %v14042_v62 = vsub.f32 %v13950_v14, %v3102_v2 }
 0xc51   :  { %v3135_v36 = vmul.f32 %v14038_v25, %v14038_v25 }
 0xc52   :  { %v3134_v49 = vmul.f32 %v14042_v62, %v14042_v62 }
 0xc53   :  { %v3169_v23 = vsel %vm189_vm0, %v3135_v36, 0.0 }
 0xc54   :  { %v3081_v29 = vpop.xlane.xlu1 %3080  ;;  %v3166_v27 = vsel %vm189_vm0, %v3134_v49, 0.0 }
 0xc55   :  { %v3078_v10 = vpop.xlane.xlu0 %3077  ;;  %v3105_v31 = vmul.f32 0.03125, %v3081_v29 }
 0xc56   :  { %v3104_v63 = vmul.f32 0.03125, %v3078_v10 }
 0xc57   :  { %v14050_v19 = vsub.f32 %v13963_v54, %v3105_v31 }
 0xc58   :  { %v14057_v53 = vsub.f32 %v13966_v32, %v3104_v63 }
 0xc59   :  { %v3137_v15 = vmul.f32 %v14050_v19, %v14050_v19 }
 0xc5a   :  { %v3136_v51 = vmul.f32 %v14057_v53, %v14057_v53 }
 0xc5b   :  { %v3175_v60 = vsel %vm189_vm0, %v3137_v15, 0.0 }
 0xc5c   :  { %v3087_v21 = vpop.xlane.xlu1 %3086  ;;  %v3172_v24 = vsel %vm189_vm0, %v3136_v51, 0.0 }
 0xc5d   :  { %v3084_v1 = vpop.xlane.xlu0 %3083  ;;  %v3107_v16 = vmul.f32 0.03125, %v3087_v21 }
 0xc5e   :  { %v3106_v35 = vmul.f32 0.03125, %v3084_v1 }
 0xc5f   :  { %v14064_v52 = vsub.f32 %v13979_v44, %v3107_v16 }
 0xc60   :  { %v14070_v55 = vsub.f32 %v13982_v50, %v3106_v35 }
 0xc61   :  { %v3139_v37 = vmul.f32 %v14064_v52, %v14064_v52 }
 0xc62   :  { %v3138_v5 = vmul.f32 %v14070_v55, %v14070_v55 }
 0xc63   :  { %v3181_v43 = vsel %vm189_vm0, %v3139_v37, 0.0 }
 0xc64   :  { %v3178_v4 = vsel %vm189_vm0, %v3138_v5, 0.0  ;;  %v4103_v5 = vld [vmem:[#allocation2 + $0x20] sm:$0xff] }
 0xc65   :  { %v3090_v57 = vpop.xlane.xlu0 %3089 }
 0xc66   :  { %v3108_v20 = vmul.f32 0.03125, %v3090_v57 }
 0xc68   :  { %v14082_v12 = vsub.f32 %v13998_v38, %v3108_v20 }
 0xc6a   :  { %v3140_v7 = vmul.f32 %v14082_v12, %v14082_v12 }
 0xc6c   :  { %v9880_v48 = vpop.f32.mrb[86].mxu1  ;;  %v3184_v34 = vsel %vm189_vm0, %v3140_v7, 0.0  ;;  %v4106_v7 = vld [vmem:[#allocation2 + $0x38] sm:$0xff] }
 0xc6d   :  { %v3814_v3 = vadd.f32 %v9880_v48, %v13758_v26  ;;  %v3758_v18 = vpop.f32.mrb[87].mxu1 }
 0xc6e   :  { %v3813_v28 = vadd.f32 %v3758_v18, %v13761_v30  ;;  %v3093_v30 = vpop.xlane.xlu1 %3092 }
 0xc6f   :  { %v14045_v47 = vadd.f32 %v8554_v61, %v3814_v3 }
 0xc70   :  { %v14047_v11 = vadd.f32 %v8554_v61, %v3813_v28  ;;  %v3109_v61 = vmul.f32 0.03125, %v3093_v30 }
 0xc71   :  { %16486 = vst [vmem:[#allocation101_spill] sm:$0xff] %v14045_v47  ;;  %v3871_v26 = vsel %vm189_vm0, %v14045_v47, 0.0 }
 0xc72   :  { %16487 = vst [vmem:[#allocation102_spill] sm:$0xff] %v14047_v11  ;;  %3872 = vadd.xlane.f32.xlu1 %v3871_v26  ;;  %v3868_v22 = vsel %vm189_vm0, %v14047_v11, 0.0  ;;  %v14076_v6 = vsub.f32 %v13995_v56, %v3109_v61 }
 0xc73   :  { %3869 = vadd.xlane.f32.xlu0 %v3868_v22 }
 0xc74   :  { %v3141_v39 = vmul.f32 %v14076_v6, %v14076_v6 }
 0xc76   :  { %3170 = vadd.xlane.f32.xlu1 %v3169_v23  ;;  %v3187_v33 = vsel %vm189_vm0, %v3141_v39, 0.0 }
 0xc77   :  { %3167 = vadd.xlane.f32.xlu0 %v3166_v27 }
 0xc7a   :  { %3176 = vadd.xlane.f32.xlu1 %v3175_v60 }
 0xc7b   :  { %3173 = vadd.xlane.f32.xlu0 %v3172_v24 }
 0xc7e   :  { %3182 = vadd.xlane.f32.xlu1 %v3181_v43  ;;  %v4104_v43 = vld [vmem:[#allocation2 + $0x28] sm:$0xff] }
 0xc7f   :  { %3179 = vadd.xlane.f32.xlu0 %v3178_v4  ;;  %v10489_v39 = vpack.c.bf16 %v4104_v43, %v4103_v5  ;;  %v4105_v4 = vld [vmem:[#allocation2 + $0x30] sm:$0xff] }
 0xc81   :  { %10490 = vmatprep.subr.bf16.mxu0 %v10489_v39 }
 0xc82   :  { %3188 = vadd.xlane.f32.xlu1 %v3187_v33  ;;  %10492 = vmatpush3.bf16.msra.mxu0 %v10489_v39  ;;  %v10493_v33 = vpack.c.bf16 %v4106_v7, %v4105_v4 }
 0xc83   :  { %3185 = vadd.xlane.f32.xlu0 %v3184_v34  ;;  %v16488_v34 = vld [vmem:[#allocation49_spill] sm:$0xff] }
 0xc84   :  { %10494 = vmatprep.subr.bf16.mxu0 %v10493_v33 }
 0xc86   :  { %10496 = vmatpush3.bf16.msra.mxu0 %v10493_v33 }
 0xc87   :  { %10546 = vmatprep.subr.bf16.mxu0 %v16488_v34  ;;  %v16544_v34 = vld [vmem:[#allocation46_spill] sm:$0xff] }
 0xcc2   :  { %v3855_v8 = vpop.xlane.xlu1 %3854 }
 0xcc3   :  { %v3899_v42 = vmul.f32 0.03125, %v3855_v8  ;;  %v3852_v2 = vpop.xlane.xlu0 %3851 }
 0xcc4   :  { %v3898_v29 = vmul.f32 0.03125, %v3852_v2 }
 0xcc5   :  { %v14096_v10 = vsub.f32 %v14009_v41, %v3899_v42 }
 0xcc6   :  { %v14099_v48 = vsub.f32 %v14011_v13, %v3898_v29 }
 0xcc7   :  { %v3931_v31 = vmul.f32 %v14096_v10, %v14096_v10 }
 0xcc8   :  { %v3930_v3 = vmul.f32 %v14099_v48, %v14099_v48 }
 0xcc9   :  { %v3861_v18 = vpop.xlane.xlu1 %3860  ;;  %v3949_v63 = vsel %vm189_vm0, %v3931_v31, 0.0 }
 0xcca   :  { %v3901_v21 = vmul.f32 0.03125, %v3861_v18  ;;  %3950 = vadd.xlane.f32.xlu1 %v3949_v63  ;;  %v3858_v28 = vpop.xlane.xlu0 %3857  ;;  %v3946_v1 = vsel %vm189_vm0, %v3930_v3, 0.0 }
 0xccb   :  { %v3900_v16 = vmul.f32 0.03125, %v3858_v28  ;;  %3947 = vadd.xlane.f32.xlu0 %v3946_v1 }
 0xccc   :  { %v14108_v26 = vsub.f32 %v14019_v45, %v3901_v21 }
 0xccd   :  { %v14111_v36 = vsub.f32 %v14021_v58, %v3900_v16  ;;  %v16532_v58 = vld [vmem:[#allocation31_spill] sm:$0xff] }
 0xcce   :  { %v3867_v35 = vpop.xlane.xlu1 %3866  ;;  %v3933_v30 = vmul.f32 %v14108_v26, %v14108_v26 }
 0xccf   :  { %v3903_v22 = vmul.f32 0.03125, %v3867_v35  ;;  %v3864_v49 = vpop.xlane.xlu0 %3863  ;;  %v3932_v57 = vmul.f32 %v14111_v36, %v14111_v36 }
 0xcd0   :  { %v3902_v61 = vmul.f32 0.03125, %v3864_v49  ;;  %v3955_v23 = vsel %vm189_vm0, %v3933_v30, 0.0 }
 0xcd1   :  { %v14119_v15 = vsub.f32 %v14029_v17, %v3903_v22  ;;  %3956 = vadd.xlane.f32.xlu1 %v3955_v23  ;;  %v3952_v20 = vsel %vm189_vm0, %v3932_v57, 0.0 }
 0xcd2   :  { %v14123_v27 = vsub.f32 %v14031_v46, %v3902_v61  ;;  %3953 = vadd.xlane.f32.xlu0 %v3952_v20 }
 0xcd3   :  { %v3935_v51 = vmul.f32 %v14119_v15, %v14119_v15 }
 0xcd4   :  { %v3934_v60 = vmul.f32 %v14123_v27, %v14123_v27 }
 0xcd5   :  { %v3961_v37 = vsel %vm189_vm0, %v3935_v51, 0.0 }
 0xcd6   :  { %3962 = vadd.xlane.f32.xlu1 %v3961_v37  ;;  %v3958_v24 = vsel %vm189_vm0, %v3934_v60, 0.0 }
 0xcd7   :  { %3959 = vadd.xlane.f32.xlu0 %v3958_v24 }
 0xcff   :  { %v3873_v8 = vpop.xlane.xlu1 %3872 }
 0xd00   :  { %v3905_v42 = vmul.f32 0.03125, %v3873_v8  ;;  %v3870_v2 = vpop.xlane.xlu0 %3869 }
 0xd01   :  { %v3904_v29 = vmul.f32 0.03125, %v3870_v2 }
 0xd02   :  { %v14133_v31 = vsub.f32 %v14045_v47, %v3905_v42  ;;  %v16526_v47 = vld [vmem:[#allocation27_spill] sm:$0xff] }
 0xd03   :  { %v14136_v3 = vsub.f32 %v14047_v11, %v3904_v29  ;;  %v3171_v18 = vpop.xlane.xlu1 %3170 }
 0xd04   :  { %v3199_v63 = vmul.f32 0.03125, %v3171_v18  ;;  %v3168_v21 = vpop.xlane.xlu0 %3167  ;;  %v3937_v28 = vmul.f32 %v14133_v31, %v14133_v31 }
 0xd05   :  { %v3198_v1 = vmul.f32 0.03125, %v3168_v21  ;;  %v3936_v16 = vmul.f32 %v14136_v3, %v14136_v3 }
 0xd06   :  { %v3215_v35 = vadd.f32 1e-05, %v3199_v63  ;;  %v3967_v30 = vsel %vm189_vm0, %v3937_v28, 0.0 }
 0xd07   :  { %v3214_v22 = vadd.f32 1e-05, %v3198_v1  ;;  %3968 = vadd.xlane.f32.xlu1 %v3967_v30  ;;  %v3177_v49 = vpop.xlane.xlu1 %3176  ;;  %v3964_v57 = vsel %vm189_vm0, %v3936_v16, 0.0 }
 0xd08   :  { %11625 = vrsqrt.f32 %v3215_v35  ;;  %v3201_v61 = vmul.f32 0.03125, %v3177_v49  ;;  %3965 = vadd.xlane.f32.xlu0 %v3964_v57  ;;  %v3174_v23 = vpop.xlane.xlu0 %3173 }
 0xd09   :  { %11627 = vrsqrt.f32 %v3214_v22  ;;  %v3200_v20 = vmul.f32 0.03125, %v3174_v23 }
 0xd0a   :  { %v3217_v51 = vadd.f32 1e-05, %v3201_v61 }
 0xd0b   :  { %v3216_v60 = vadd.f32 1e-05, %v3200_v20  ;;  %v3183_v37 = vpop.xlane.xlu1 %3182 }
 0xd0c   :  { %11629 = vrsqrt.f32 %v3217_v51  ;;  %v3203_v24 = vmul.f32 0.03125, %v3183_v37  ;;  %v3180_v5 = vpop.xlane.xlu0 %3179 }
 0xd0d   :  { %11631 = vrsqrt.f32 %v3216_v60  ;;  %v3202_v43 = vmul.f32 0.03125, %v3180_v5 }
 0xd0e   :  { %v3219_v39 = vadd.f32 1e-05, %v3203_v24 }
 0xd0f   :  { %v3218_v4 = vadd.f32 1e-05, %v3202_v43  ;;  %v3189_v7 = vpop.xlane.xlu1 %3188 }
 0xd10   :  { %11633 = vrsqrt.f32 %v3219_v39  ;;  %v3205_v33 = vmul.f32 0.03125, %v3189_v7  ;;  %v3186_v8 = vpop.xlane.xlu0 %3185 }
 0xd11   :  { %11635 = vrsqrt.f32 %v3218_v4  ;;  %v3204_v42 = vmul.f32 0.03125, %v3186_v8 }
 0xd12   :  { %v11626_v2 = vpop.eup %11625  ;;  %v3221_v29 = vadd.f32 1e-05, %v3205_v33 }
 0xd13   :  { %v11628_v18 = vpop.eup %11627  ;;  %v3220_v63 = vadd.f32 1e-05, %v3204_v42  ;;  %v3247_v21 = vmul.f32 %v11626_v2, %v14038_v25 }
 0xd14   :  { %11637 = vrsqrt.f32 %v3221_v29  ;;  %v3246_v28 = vmul.f32 %v11628_v18, %v14042_v62 }
 0xd15   :  { %11639 = vrsqrt.f32 %v3220_v63  ;;  %v3269_v1 = vmul.f32 %v13880_v0, %v3247_v21 }
 0xd16   :  { %v11630_v16 = vpop.eup %11629  ;;  %v3268_v35 = vmul.f32 %v13880_v0, %v3246_v28 }
 0xd17   :  { %v11632_v30 = vpop.eup %11631  ;;  %v3249_v22 = vmul.f32 %v11630_v16, %v14050_v19  ;;  %v3291_v61 = vadd.f32 %v13888_v40, %v3269_v1 }
 0xd18   :  { %v3290_v49 = vadd.f32 %v13888_v40, %v3268_v35  ;;  %v3248_v57 = vmul.f32 %v11632_v30, %v14057_v53 }
 0xd19   :  { %v3271_v25 = vmul.f32 %v13880_v0, %v3249_v22 }
 0xd1a   :  { %v11634_v23 = vpop.eup %11633  ;;  %9825 = vmatprep.mubr.msk.f32.mxu0 %vm189_vm0, %v3290_v49  ;;  %v3270_v62 = vmul.f32 %v13880_v0, %v3248_v57 }
 0xd1b   :  { %v11636_v20 = vpop.eup %11635  ;;  %9826 = vmatmul.mubr.msk.f32.gmra.mrb[88].mxu0 %vm189_vm0, %v3291_v61  ;;  %v3251_v51 = vmul.f32 %v11634_v23, %v14064_v52  ;;  %v3293_v53 = vadd.f32 %v13888_v40, %v3271_v25  ;;  %v14179_v61 = vld [vmem:[%s16339_s5 + $0x1] ss:$0 sm:$0xff] }
 0xd1c   :  { %v3292_v19 = vadd.f32 %v13888_v40, %v3270_v62  ;;  %v3250_v60 = vmul.f32 %v11636_v20, %v14070_v55 }
 0xd1d   :  { %v3273_v37 = vmul.f32 %v13880_v0, %v3251_v51 }
 0xd1e   :  { %v11638_v24 = vpop.eup %11637  ;;  %9828 = vmatprep.mubr.msk.f32.mxu0 %vm189_vm0, %v3292_v19  ;;  %v3272_v5 = vmul.f32 %v13880_v0, %v3250_v60  ;;  %v8558_v60 = vld [vmem:[%s16340_s6 + $0x1] ss:$0 sm:$0xff] }
 0xd1f   :  { %v11640_v43 = vpop.eup %11639  ;;  %9829 = vmatmul.mubr.msk.f32.gmra.mrb[90].mxu0 %vm189_vm0, %v3293_v53  ;;  %v3253_v39 = vmul.f32 %v11638_v24, %v14076_v6  ;;  %v3295_v55 = vadd.f32 %v13888_v40, %v3273_v37 }
 0xd20   :  { %v3294_v52 = vadd.f32 %v13888_v40, %v3272_v5  ;;  %v3252_v4 = vmul.f32 %v11640_v43, %v14082_v12 }
 0xd21   :  { %v3275_v7 = vmul.f32 %v13880_v0, %v3253_v39 }
 0xd22   :  { %9831 = vmatprep.mubr.msk.f32.mxu0 %vm189_vm0, %v3294_v52  ;;  %v3274_v33 = vmul.f32 %v13880_v0, %v3252_v4  ;;  %v16489_v52 = vld [vmem:[#allocation50_spill] sm:$0xff] }
 0xd23   :  { %9832 = vmatmul.mubr.msk.f32.gmra.mrb[92].mxu0 %vm189_vm0, %v3295_v55  ;;  %v3297_v42 = vadd.f32 %v13888_v40, %v3275_v7  ;;  %v16490_v55 = vld [vmem:[#allocation51_spill] sm:$0xff] }
 0xd24   :  { %v3296_v8 = vadd.f32 %v13888_v40, %v3274_v33 }
 0xd26   :  { %9834 = vmatprep.mubr.msk.f32.mxu0 %vm189_vm0, %v3296_v8 }
 0xd27   :  { %9835 = vmatmul.mubr.msk.f32.gmra.mrb[94].mxu0 %vm189_vm0, %v3297_v42 }
 0xd57   :  { %v3951_v6 = vpop.xlane.xlu1 %3950 }
 0xd58   :  { %v3995_v12 = vmul.f32 0.03125, %v3951_v6  ;;  %v3948_v2 = vpop.xlane.xlu0 %3947 }
 0xd59   :  { %v3994_v29 = vmul.f32 0.03125, %v3948_v2  ;;  %v16492_v2 = vld [vmem:[#allocation53_spill] sm:$0xff] }
 0xd5a   :  { %v4011_v18 = vadd.f32 1e-05, %v3995_v12  ;;  %v16491_v12 = vld [vmem:[#allocation52_spill] sm:$0xff] }
 0xd5b   :  { %v4010_v63 = vadd.f32 1e-05, %v3994_v29 }
 0xd5c   :  { %11641 = vrsqrt.f32 %v4011_v18 }
 0xd5d   :  { %11643 = vrsqrt.f32 %v4010_v63  ;;  %v16493_v63 = vld [vmem:[#allocation54_spill] sm:$0xff] }
 0xd5e   :  { %v3957_v21 = vpop.xlane.xlu1 %3956 }
 0xd5f   :  { %v3997_v0 = vmul.f32 0.03125, %v3957_v21  ;;  %v3954_v28 = vpop.xlane.xlu0 %3953 }
 0xd60   :  { %v3996_v1 = vmul.f32 0.03125, %v3954_v28  ;;  %v16497_v28 = vld [vmem:[#allocation58_spill] sm:$0xff] }
 0xd61   :  { %v4013_v16 = vadd.f32 1e-05, %v3997_v0  ;;  %v16496_v0 = vld [vmem:[#allocation57_spill] sm:$0xff] }
 0xd62   :  { %v4012_v35 = vadd.f32 1e-05, %v3996_v1  ;;  %v16498_v1 = vld [vmem:[#allocation59_spill] sm:$0xff] }
 0xd63   :  { %11645 = vrsqrt.f32 %v4013_v16  ;;  %v3963_v40 = vpop.xlane.xlu1 %3962  ;;  %v16499_v16 = vld [vmem:[#allocation60_spill] sm:$0xff] }
 0xd64   :  { %11647 = vrsqrt.f32 %v4012_v35  ;;  %v3999_v30 = vmul.f32 0.03125, %v3963_v40  ;;  %v3960_v22 = vpop.xlane.xlu0 %3959  ;;  %v16500_v35 = vld [vmem:[#allocation61_spill] sm:$0xff]  ;;  %v16501_v40 = vld [vmem:[#allocation62_spill] sm:$0xff] }
 0xd65   :  { %v3998_v49 = vmul.f32 0.03125, %v3960_v22  ;;  %v16503_v22 = vld [vmem:[#allocation64_spill] sm:$0xff] }
 0xd66   :  { %v11642_v57 = vpop.eup %11641  ;;  %v4015_v25 = vadd.f32 1e-05, %v3999_v30  ;;  %v16502_v30 = vld [vmem:[#allocation63_spill] sm:$0xff] }
 0xd67   :  { %v11644_v23 = vpop.eup %11643  ;;  %v4043_v62 = vmul.f32 %v11642_v57, %v14096_v10  ;;  %v4014_v20 = vadd.f32 1e-05, %v3998_v49  ;;  %v16504_v49 = vld [vmem:[#allocation66_spill] sm:$0xff] }
 0xd68   :  { %11649 = vrsqrt.f32 %v4015_v25  ;;  %v4042_v51 = vmul.f32 %v11644_v23, %v14099_v48 }
 0xd69   :  { %v4065_v19 = vmul.f32 %v14179_v61, %v4043_v62  ;;  %11651 = vrsqrt.f32 %v4014_v20 }
 0xd6a   :  { %v4064_v53 = vmul.f32 %v14179_v61, %v4042_v51 }
 0xd6b   :  { %v4087_v5 = vadd.f32 %v8558_v60, %v4065_v19 }
 0xd6c   :  { %v4086_v37 = vadd.f32 %v8558_v60, %v4064_v53 }
 0xd6d   :  { %v11646_v24 = vpop.eup %11645 }
 0xd6e   :  { %v11648_v43 = vpop.eup %11647  ;;  %9901 = vmatprep.mubr.msk.f32.mxu0 %vm189_vm0, %v4086_v37  ;;  %v4045_v10 = vmul.f32 %v11646_v24, %v14108_v26 }
 0xd6f   :  { %9902 = vmatmul.mubr.msk.f32.vlgmr.msra.gmra.mrb[96].mxu0 %vm189_vm0, %v4087_v5  ;;  %v4044_v48 = vmul.f32 %v11648_v43, %v14111_v36 }
 0xd70   :  { %v4067_v39 = vmul.f32 %v14179_v61, %v4045_v10  ;;  %10548 = vmatpush3.bf16.msra.mxu0 %v16489_v52 }
 0xd71   :  { %v4066_v4 = vmul.f32 %v14179_v61, %v4044_v48  ;;  %10550 = vmatprep.subr.bf16.mxu0 %v16490_v55  ;;  %v16543_v55 = vld [vmem:[#allocation47_spill] sm:$0xff] }
 0xd72   :  { %v11650_v7 = vpop.eup %11649  ;;  %v4089_v6 = vadd.f32 %v8558_v60, %v4067_v39 }
 0xd73   :  { %v11652_v33 = vpop.eup %11651  ;;  %v4088_v8 = vadd.f32 %v8558_v60, %v4066_v4  ;;  %v4047_v42 = vmul.f32 %v11650_v7, %v14119_v15  ;;  %v16494_v15 = vld [vmem:[#allocation55_spill] sm:$0xff] }
 0xd74   :  { %v4046_v26 = vmul.f32 %v11652_v33, %v14123_v27  ;;  %10552 = vmatpush3.bf16.msra.mxu0 %v16491_v12  ;;  %v16495_v27 = vld [vmem:[#allocation56_spill] sm:$0xff] }
 0xd75   :  { %9904 = vmatprep.mubr.msk.f32.mxu0 %vm189_vm0, %v4088_v8  ;;  %v4069_v36 = vmul.f32 %v14179_v61, %v4047_v42  ;;  %10554 = vmatprep.subr.bf16.mxu0 %v16492_v2  ;;  %v16542_v2 = vld [vmem:[#allocation44_spill] sm:$0xff] }
 0xd76   :  { %9905 = vmatmul.mubr.msk.f32.gmra.mrb[98].mxu0 %vm189_vm0, %v4089_v6  ;;  %v4068_v29 = vmul.f32 %v14179_v61, %v4046_v26 }
 0xd77   :  { %v4091_v21 = vadd.f32 %v8558_v60, %v4069_v36 }
 0xd78   :  { %v4090_v18 = vadd.f32 %v8558_v60, %v4068_v29  ;;  %10556 = vmatpush3.bf16.msra.mxu0 %v16493_v63 }
 0xd79   :  { %10558 = vmatprep.subr.bf16.mxu0 %v16494_v15  ;;  %v16541_v15 = vld [vmem:[#allocation45_spill] sm:$0xff] }
 0xd7a   :  { %9907 = vmatprep.mubr.msk.f32.mxu0 %vm189_vm0, %v4090_v18 }
 0xd7b   :  { %9908 = vmatmul.mubr.msk.f32.gmra.mrb[100].mxu0 %vm189_vm0, %v4091_v21 }
 0xd7c   :  { %10560 = vmatpush3.bf16.msra.mxu0 %v16495_v27 }
 0xd7d   :  { %10562 = vmatprep.subr.bf16.mxu0 %v16496_v0  ;;  %v16536_v0 = vld [vmem:[#allocation35_spill] sm:$0xff] }
 0xd80   :  { %10564 = vmatpush3.bf16.msra.mxu0 %v16497_v28 }
 0xd81   :  { %10566 = vmatprep.subr.bf16.mxu0 %v16498_v1  ;;  %v16535_v1 = vld [vmem:[#allocation36_spill] sm:$0xff] }
 0xd84   :  { %10568 = vmatpush3.bf16.msra.mxu0 %v16499_v16 }
 0xd85   :  { %10570 = vmatprep.subr.bf16.mxu0 %v16500_v35  ;;  %v16534_v35 = vld [vmem:[#allocation33_spill] sm:$0xff] }
 0xd88   :  { %10572 = vmatpush3.bf16.msra.mxu0 %v16501_v40 }
 0xd89   :  { %10574 = vmatprep.subr.bf16.mxu0 %v16502_v30  ;;  %v16533_v30 = vld [vmem:[#allocation34_spill] sm:$0xff] }
 0xd8c   :  { %10576 = vmatpush3.bf16.msra.mxu0 %v16503_v22 }
 0xd8d   :  { %8617 = vmatprep.subr.msk.mxu0 %vm1501_vm2, %v16504_v49 }
 0xd94   :  { %v3969_v57 = vpop.xlane.xlu1 %3968 }
 0xd95   :  { %v4001_v25 = vmul.f32 0.03125, %v3969_v57  ;;  %v3966_v23 = vpop.xlane.xlu0 %3965 }
 0xd96   :  { %v4000_v62 = vmul.f32 0.03125, %v3966_v23 }
 0xd97   :  { %v4017_v20 = vadd.f32 1e-05, %v4001_v25 }
 0xd98   :  { %v4016_v51 = vadd.f32 1e-05, %v4000_v62 }
 0xd99   :  { %11653 = vrsqrt.f32 %v4017_v20 }
 0xd9a   :  { %11655 = vrsqrt.f32 %v4016_v51 }
 0xda3   :  { %v11654_v19 = vpop.eup %11653 }
 0xda4   :  { %v11656_v53 = vpop.eup %11655  ;;  %v4049_v37 = vmul.f32 %v11654_v19, %v14133_v31 }
 0xda5   :  { %v4048_v24 = vmul.f32 %v11656_v53, %v14136_v3 }
 0xda6   :  { %v4071_v5 = vmul.f32 %v14179_v61, %v4049_v37 }
 0xda7   :  { %v4070_v43 = vmul.f32 %v14179_v61, %v4048_v24 }
 0xda8   :  { %v4093_v48 = vadd.f32 %v8558_v60, %v4071_v5 }
 0xda9   :  { %v4092_v10 = vadd.f32 %v8558_v60, %v4070_v43 }
 0xdab   :  { %9910 = vmatprep.mubr.msk.f32.mxu0 %vm189_vm0, %v4092_v10 }
 0xdac   :  { %9911 = vmatmul.mubr.msk.f32.gmra.mrb[102].mxu0 %vm189_vm0, %v4093_v48 }
 0xdee   :  { %v9827_v39 = vpop.f32.mrb[88].mxu0 }
 0xdef   :  { %v14226_v4 = vadd.f32 %v9827_v39, %v13930_v9  ;;  %v3463_v7 = vpop.f32.mrb[89].mxu0 }
 0xdf0   :  { %v14229_v33 = vadd.f32 %v13930_v9, %v3463_v7 }
 0xdf1   :  { %v3511_v31 = vmul.f32 %v14226_v4, %v14226_v4 }
 0xdf2   :  { %v3510_v3 = vmul.f32 %v14229_v33, %v14229_v33  ;;  %v9830_v61 = vpop.f32.mrb[90].mxu0 }
 0xdf3   :  { %v3527_v60 = vmul.f32 %v3511_v31, %v14226_v4  ;;  %v14237_v8 = vadd.f32 %v9830_v61, %v13930_v9  ;;  %v3473_v42 = vpop.f32.mrb[91].mxu0 }
 0xdf4   :  { %v3526_v6 = vmul.f32 %v3510_v3, %v14229_v33  ;;  %v14241_v26 = vadd.f32 %v13930_v9, %v3473_v42 }
 0xdf5   :  { %v3543_v36 = vmul.f32 0.044715, %v3527_v60  ;;  %v3513_v29 = vmul.f32 %v14237_v8, %v14237_v8 }
 0xdf6   :  { %v3542_v18 = vmul.f32 0.044715, %v3526_v6  ;;  %v3512_v21 = vmul.f32 %v14241_v26, %v14241_v26  ;;  %v9833_v57 = vpop.f32.mrb[92].mxu0 }
 0xdf7   :  { %v3559_v25 = vadd.f32 %v3543_v36, %v14226_v4  ;;  %v3529_v23 = vmul.f32 %v3513_v29, %v14237_v8  ;;  %v14250_v62 = vadd.f32 %v9833_v57, %v13930_v9  ;;  %v3483_v20 = vpop.f32.mrb[93].mxu0 }
 0xdf8   :  { %v3558_v51 = vadd.f32 %v3542_v18, %v14229_v33  ;;  %v3528_v19 = vmul.f32 %v3512_v21, %v14241_v26  ;;  %v14255_v53 = vadd.f32 %v13930_v9, %v3483_v20 }
 0xdf9   :  { %v3575_v37 = vmul.f32 0.7978846, %v3559_v25  ;;  %v3545_v24 = vmul.f32 0.044715, %v3529_v23  ;;  %v3515_v5 = vmul.f32 %v14250_v62, %v14250_v62 }
 0xdfa   :  { %v3574_v43 = vmul.f32 0.7978846, %v3558_v51  ;;  %v3544_v10 = vmul.f32 0.044715, %v3528_v19  ;;  %v3514_v48 = vmul.f32 %v14255_v53, %v14255_v53  ;;  %v9836_v39 = vpop.f32.mrb[94].mxu0 }
 0xdfb   :  { %v3561_v7 = vadd.f32 %v3545_v24, %v14237_v8  ;;  %v3531_v31 = vmul.f32 %v3515_v5, %v14250_v62  ;;  %v14264_v3 = vadd.f32 %v9836_v39, %v13930_v9  ;;  %v3493_v61 = vpop.f32.mrb[95].mxu0  ;;  %11657 = vtanh.f32 %v3575_v37 }
 0xdfc   :  { %v3560_v60 = vadd.f32 %v3544_v10, %v14241_v26  ;;  %v3530_v42 = vmul.f32 %v3514_v48, %v14255_v53  ;;  %v3494_v6 = vadd.f32 %v13930_v9, %v3493_v61  ;;  %11659 = vtanh.f32 %v3574_v43 }
 0xdfd   :  { %v3577_v36 = vmul.f32 0.7978846, %v3561_v7  ;;  %v3547_v29 = vmul.f32 0.044715, %v3531_v31  ;;  %v3517_v18 = vmul.f32 %v14264_v3, %v14264_v3 }
 0xdfe   :  { %v3576_v21 = vmul.f32 0.7978846, %v3560_v60  ;;  %v3546_v57 = vmul.f32 0.044715, %v3530_v42  ;;  %v3516_v25 = vmul.f32 %v3494_v6, %v3494_v6 }
 0xdff   :  { %v3563_v23 = vadd.f32 %v3547_v29, %v14250_v62  ;;  %v3533_v20 = vmul.f32 %v3517_v18, %v14264_v3  ;;  %11661 = vtanh.f32 %v3577_v36 }
 0xe00   :  { %v3562_v51 = vadd.f32 %v3546_v57, %v14255_v53  ;;  %v3532_v19 = vmul.f32 %v3516_v25, %v3494_v6  ;;  %11663 = vtanh.f32 %v3576_v21 }
 0xe01   :  { %v3579_v37 = vmul.f32 0.7978846, %v3563_v23  ;;  %v3549_v9 = vmul.f32 0.044715, %v3533_v20 }
 0xe02   :  { %v3578_v24 = vmul.f32 0.7978846, %v3562_v51  ;;  %v3548_v5 = vmul.f32 0.044715, %v3532_v19 }
 0xe03   :  { %v3565_v43 = vadd.f32 %v3549_v9, %v14264_v3  ;;  %11665 = vtanh.f32 %v3579_v37 }
 0xe04   :  { %v3564_v10 = vadd.f32 %v3548_v5, %v3494_v6  ;;  %11667 = vtanh.f32 %v3578_v24 }
 0xe05   :  { %v11658_v48 = vpop.eup %11657  ;;  %v3581_v39 = vmul.f32 0.7978846, %v3565_v43 }
 0xe06   :  { %v11660_v7 = vpop.eup %11659  ;;  %v3580_v31 = vmul.f32 0.7978846, %v3564_v10  ;;  %v3607_v61 = vadd.f32 1.0, %v11658_v48 }
 0xe07   :  { %v3606_v60 = vadd.f32 1.0, %v11660_v7  ;;  %11669 = vtanh.f32 %v3581_v39 }
 0xe08   :  { %v3623_v42 = vmul.f32 0.5, %v3607_v61  ;;  %11671 = vtanh.f32 %v3580_v31 }
 0xe09   :  { %v11662_v36 = vpop.eup %11661  ;;  %v3622_v29 = vmul.f32 0.5, %v3606_v60 }
 0xe0a   :  { %v11664_v18 = vpop.eup %11663  ;;  %v3609_v21 = vadd.f32 1.0, %v11662_v36  ;;  %v3639_v23 = vmul.f32 %v3623_v42, %v14226_v4 }
 0xe0b   :  { %v3638_v57 = vmul.f32 %v3622_v29, %v14229_v33  ;;  %v3608_v25 = vadd.f32 1.0, %v11664_v18 }
 0xe0c   :  { %v3625_v20 = vmul.f32 0.5, %v3609_v21  ;;  %v16507_v21 = vld [vmem:[#allocation13_spill] sm:$0xff] }
 0xe0d   :  { %v11666_v51 = vpop.eup %11665  ;;  %9881 = vmatprep.mubr.f32.mxu1 %v3638_v57  ;;  %v3624_v19 = vmul.f32 0.5, %v3608_v25  ;;  %v16508_v57 = vld [vmem:[#allocation15_spill] sm:$0xff]  ;;  %v16509_v25 = vld [vmem:[#allocation16_spill] sm:$0xff] }
 0xe0e   :  { %v11668_v37 = vpop.eup %11667  ;;  %9882 = vmatmul.mubr.f32.gmra.mrb[88].mxu1 %v3639_v23  ;;  %v3611_v9 = vadd.f32 1.0, %v11666_v51  ;;  %v3641_v43 = vmul.f32 %v3625_v20, %v14237_v8  ;;  %v14285_v8 = vld [vmem:[%s16363_s15 + $0x1] ss:$0 sm:$0xff]  ;;  %v16510_v20 = vld [vmem:[#allocation14_spill] sm:$0xff] }
 0xe0f   :  { %v3640_v24 = vmul.f32 %v3624_v19, %v14241_v26  ;;  %v3610_v5 = vadd.f32 1.0, %v11668_v37 }
 0xe10   :  { %v3627_v10 = vmul.f32 0.5, %v3611_v9 }
 0xe11   :  { %v11670_v48 = vpop.eup %11669  ;;  %9884 = vmatprep.mubr.f32.mxu1 %v3640_v24  ;;  %v3626_v39 = vmul.f32 0.5, %v3610_v5 }
 0xe12   :  { %v11672_v33 = vpop.eup %11671  ;;  %9885 = vmatmul.mubr.f32.gmra.mrb[90].mxu1 %v3641_v43  ;;  %v3613_v7 = vadd.f32 1.0, %v11670_v48  ;;  %v3643_v61 = vmul.f32 %v3627_v10, %v14250_v62  ;;  %v16513_v10 = vld [vmem:[#allocation17_spill] sm:$0xff] }
 0xe13   :  { %v3642_v4 = vmul.f32 %v3626_v39, %v14255_v53  ;;  %v3612_v31 = vadd.f32 1.0, %v11672_v33  ;;  %v16514_v39 = vld [vmem:[#allocation18_spill] sm:$0xff] }
 0xe14   :  { %v3629_v60 = vmul.f32 0.5, %v3613_v7 }
 0xe15   :  { %9887 = vmatprep.mubr.f32.mxu1 %v3642_v4  ;;  %v3628_v42 = vmul.f32 0.5, %v3612_v31 }
 0xe16   :  { %9888 = vmatmul.mubr.f32.gmra.mrb[92].mxu1 %v3643_v61  ;;  %v3645_v36 = vmul.f32 %v3629_v60, %v14264_v3  ;;  %v16516_v60 = vld [vmem:[#allocation20_spill] sm:$0xff] }
 0xe17   :  { %v3644_v26 = vmul.f32 %v3628_v42, %v3494_v6 }
 0xe19   :  { %9890 = vmatprep.mubr.f32.mxu1 %v3644_v26  ;;  %v16517_v26 = vld [vmem:[#allocation19_spill] sm:$0xff] }
 0xe1a   :  { %9891 = vmatmul.mubr.f32.gmra.mrb[94].mxu1 %v3645_v36 }
 0xe42   :  { %v9903_v29 = vpop.f32.mrb[96].mxu0 }
 0xe43   :  { %v14288_v53 = vadd.f32 %v9903_v29, %v14285_v8  ;;  %v4229_v18 = vpop.f32.mrb[97].mxu0 }
 0xe44   :  { %v14291_v62 = vadd.f32 %v14285_v8, %v4229_v18  ;;  %v16519_v18 = vld [vmem:[#allocation21_spill] sm:$0xff] }
 0xe45   :  { %16505 = vst [vmem:[#allocation103_spill] sm:$0xff] %v14288_v53  ;;  %v4342_v6 = vmul.f32 %v14288_v53, %v16507_v21  ;;  %v4326_v3 = vmul.f32 %v14288_v53, %v16508_v57  ;;  %v4334_v45 = vmul.f32 %v14288_v53, %v16532_v58 }
 0xe46   :  { %16506 = vst [vmem:[#allocation104_spill] sm:$0xff] %v14291_v62  ;;  %9279 = vmatprep.mubr.msk.f32.mxu1 %vm189_vm0, %v14291_v62  ;;  %v4341_v23 = vmul.f32 %v14291_v62, %v16509_v25  ;;  %v4325_v51 = vmul.f32 %v14291_v62, %v16510_v20 }
 0xe48   :  { %v11144_v19 = vpack.i.bf16 %v4342_v6, %v4341_v23  ;;  %v11149_v37 = vpack.i.bf16 %v4326_v3, %v4325_v51  ;;  %v16520_v3 = vld [vmem:[#allocation22_spill] sm:$0xff] }
 0xe49   :  { %v9906_v9 = vpop.f32.mrb[98].mxu0 }
 0xe4a   :  { %v14304_v24 = vadd.f32 %v9906_v9, %v14285_v8  ;;  %11145 = vrot.lane.b32.xlu0 %v11144_v19, %s12095_s26  ;;  %11150 = vrot.lane.b32.xlu1 %v11149_v37, %s12095_s26  ;;  %v4239_v5 = vpop.f32.mrb[99].mxu0  ;;  %v16521_v19 = vld [vmem:[#allocation24_spill] sm:$0xff]  ;;  %v16522_v9 = vld [vmem:[#allocation23_spill] sm:$0xff] }
 0xe4b   :  { %v14309_v43 = vadd.f32 %v14285_v8, %v4239_v5 }
 0xe4c   :  { %16511 = vst [vmem:[#allocation13_spill] sm:$0xff] %v14304_v24  ;;  %v4344_v48 = vmul.f32 %v14304_v24, %v16513_v10  ;;  %v4328_v36 = vmul.f32 %v14304_v24, %v16517_v26  ;;  %v4352_v16 = vmul.f32 %v14304_v24, %v16534_v35  ;;  %v4336_v27 = vmul.f32 %v14304_v24, %v16536_v0 }
 0xe4d   :  { %16512 = vst [vmem:[#allocation15_spill] sm:$0xff] %v14309_v43  ;;  %v4343_v33 = vmul.f32 %v14309_v43, %v16514_v39  ;;  %v4327_v42 = vmul.f32 %v14309_v43, %v16516_v60  ;;  %v4351_v40 = vmul.f32 %v14309_v43, %v16533_v30  ;;  %v4335_v28 = vmul.f32 %v14309_v43, %v16535_v1 }
 0xe4e   :  { %v9909_v7 = vpop.f32.mrb[100].mxu0 }
 0xe4f   :  { %v14316_v4 = vadd.f32 %v9909_v7, %v14285_v8  ;;  %v4249_v31 = vpop.f32.mrb[101].mxu0  ;;  %v11154_v61 = vpack.i.bf16 %v4344_v48, %v4343_v33  ;;  %v11159_v51 = vpack.i.bf16 %v4328_v36, %v4327_v42  ;;  %v16525_v36 = vld [vmem:[#allocation25_spill] sm:$0xff] }
 0xe50   :  { %v14323_v29 = vadd.f32 %v14285_v8, %v4249_v31 }
 0xe51   :  { %16515 = vst [vmem:[#allocation16_spill] sm:$0xff] %v14316_v4  ;;  %11155 = vrot.lane.b32.xlu1 %v11154_v61, %s12095_s26  ;;  %v4346_v6 = vmul.f32 %v14316_v4, %v16519_v18  ;;  %v4330_v5 = vmul.f32 %v14316_v4, %v16522_v9 }
 0xe52   :  { %16518 = vst [vmem:[#allocation14_spill] sm:$0xff] %v14323_v29  ;;  %v4345_v23 = vmul.f32 %v14323_v29, %v16520_v3  ;;  %v4329_v37 = vmul.f32 %v14323_v29, %v16521_v19 }
 0xe54   :  { %v11164_v48 = vpack.i.bf16 %v4346_v6, %v4345_v23  ;;  %v11169_v33 = vpack.i.bf16 %v4330_v5, %v4329_v37  ;;  %v16527_v23 = vld [vmem:[#allocation26_spill] sm:$0xff]  ;;  %v16528_v37 = vld [vmem:[#allocation28_spill] sm:$0xff] }
 0xe55   :  { %11160 = vrot.lane.b32.xlu1 %v11159_v51, %s12095_s26 }
 0xe56   :  { %11165 = vrot.lane.b32.xlu0 %v11164_v48, %s12095_s26  ;;  %v16529_v48 = vld [vmem:[#allocation30_spill] sm:$0xff] }
 0xe59   :  { %11170 = vrot.lane.b32.xlu1 %v11169_v33, %s12095_s26  ;;  %v4349_v33 = vmul.f32 %v14291_v62, %v16529_v48 }
 0xe7f   :  { %v9912_v7 = vpop.f32.mrb[102].mxu0 }
 0xe80   :  { %v14338_v31 = vadd.f32 %v9912_v7, %v14285_v8  ;;  %v4259_v61 = vpop.f32.mrb[103].mxu0  ;;  %v16530_v7 = vld [vmem:[#allocation29_spill] sm:$0xff] }
 0xe81   :  { %v14341_v42 = vadd.f32 %v14285_v8, %v4259_v61  ;;  %v4350_v46 = vmul.f32 %v14288_v53, %v16530_v7  ;;  %v16531_v61 = vld [vmem:[#allocation32_spill] sm:$0xff] }
 0xe82   :  { %16523 = vst [vmem:[#allocation17_spill] sm:$0xff] %v14338_v31  ;;  %v4348_v11 = vmul.f32 %v14338_v31, %v16525_v36  ;;  %v4332_v6 = vmul.f32 %v14338_v31, %v16526_v47  ;;  %v4333_v17 = vmul.f32 %v14291_v62, %v16531_v61  ;;  %v4356_v12 = vmul.f32 %v14338_v31, %v16542_v2 }
 0xe83   :  { %16524 = vst [vmem:[#allocation18_spill] sm:$0xff] %v14341_v42  ;;  %v4347_v51 = vmul.f32 %v14341_v42, %v16527_v23  ;;  %v4331_v5 = vmul.f32 %v14341_v42, %v16528_v37  ;;  %v11184_v49 = vpack.i.bf16 %v4350_v46, %v4349_v33  ;;  %v16539_v46 = vld [vmem:[#allocation43_spill] sm:$0xff]  ;;  %v11199_v33 = vpack.i.bf16 %v4336_v27, %v4335_v28 }
 0xe84   :  { %v11189_v22 = vpack.i.bf16 %v4334_v45, %v4333_v17  ;;  %v16538_v45 = vld [vmem:[#allocation37_spill] sm:$0xff]  ;;  %v4355_v63 = vmul.f32 %v14341_v42, %v16541_v15  ;;  %v4339_v52 = vmul.f32 %v14341_v42, %v16543_v55  ;;  %v4316_v55 = vld [vmem:[#allocation6 + $0xb8] sm:$0xff] }
 0xe85   :  { %v11174_v13 = vpack.i.bf16 %v4348_v11, %v4347_v51  ;;  %v11179_v41 = vpack.i.bf16 %v4332_v6, %v4331_v5  ;;  %v4354_v17 = vmul.f32 %v14316_v4, %v16538_v45  ;;  %v4337_v11 = vmul.f32 %v14323_v29, %v16539_v46  ;;  %v16540_v6 = vld [vmem:[#allocation42_spill] sm:$0xff] }
 0xe86   :  { %v4338_v51 = vmul.f32 %v14316_v4, %v16540_v6  ;;  %v11194_v5 = vpack.i.bf16 %v4352_v16, %v4351_v40  ;;  %v4340_v6 = vmul.f32 %v14338_v31, %v16544_v34  ;;  %v11214_v27 = vpack.i.bf16 %v4356_v12, %v4355_v63 }
 0xe87   :  { %11175 = vrot.lane.b32.xlu0 %v11174_v13, %s12095_s26  ;;  %11180 = vrot.lane.b32.xlu1 %v11179_v41, %s12095_s26  ;;  %v16537_v13 = vld [vmem:[#allocation38_spill] sm:$0xff] }
 0xe88   :  { %v4353_v41 = vmul.f32 %v14323_v29, %v16537_v13  ;;  %v11219_v28 = vpack.i.bf16 %v4340_v6, %v4339_v52 }
 0xe8b   :  { %11185 = vrot.lane.b32.xlu0 %v11184_v49, %s12095_s26  ;;  %11190 = vrot.lane.b32.xlu1 %v11189_v22, %s12095_s26  ;;  %v11204_v49 = vpack.i.bf16 %v4354_v17, %v4353_v41  ;;  %v11209_v22 = vpack.i.bf16 %v4338_v51, %v4337_v11 }
 0xe8f   :  { %11195 = vrot.lane.b32.xlu0 %v11194_v5, %s12095_s26  ;;  %11200 = vrot.lane.b32.xlu1 %v11199_v33, %s12095_s26 }
 0xe93   :  { %11205 = vrot.lane.b32.xlu0 %v11204_v49, %s12095_s26  ;;  %11210 = vrot.lane.b32.xlu1 %v11209_v22, %s12095_s26 }
 0xe97   :  { %11215 = vrot.lane.b32.xlu0 %v11214_v27, %s12095_s26  ;;  %11220 = vrot.lane.b32.xlu1 %v11219_v28, %s12095_s26 }
 0xebc   :  { %v11151_v16 = vpop.permute.xlu1 %11150  ;;  %v11146_v40 = vpop.permute.xlu0 %11145 }
 0xebd   :  { %v11153_v41 = vunpack.i.h.bf16 %v11151_v16  ;;  %v11152_v17 = vunpack.i.l.bf16 %v11151_v16  ;;  %v11148_v11 = vunpack.i.h.bf16 %v11146_v40  ;;  %v11147_v51 = vunpack.i.l.bf16 %v11146_v40 }
 0xebf   :  { %v10500_v5 = vpack.c.bf16 %v11153_v41, %v11152_v17  ;;  %v10497_v33 = vpack.c.bf16 %v11148_v11, %v11147_v51 }
 0xec1   :  { %10499 = vmatprep.subr.msk.bf16.mxu1 %vm12668_vm1, %v10497_v33 }
 0xec2   :  { %10502 = vmatpush3.bf16.xpose.msk.msra.mxu1 %vm12668_vm1, %v10500_v5 }
 0xec3   :  { %v11156_v12 = vpop.permute.xlu1 %11155 }
 0xec4   :  { %v11158_v52 = vunpack.i.h.bf16 %v11156_v12  ;;  %v11157_v63 = vunpack.i.l.bf16 %v11156_v12 }
 0xec6   :  { %v10503_v6 = vpack.c.bf16 %v11158_v52, %v11157_v63 }
 0xec7   :  { %v11161_v49 = vpop.permute.xlu1 %11160 }
 0xec8   :  { %v11163_v22 = vunpack.i.h.bf16 %v11161_v49  ;;  %v11162_v27 = vunpack.i.l.bf16 %v11161_v49  ;;  %v11166_v28 = vpop.permute.xlu0 %11165  ;;  %10505 = vmatprep.subr.msk.bf16.mxu1 %vm12668_vm1, %v10503_v6  ;;  %v11947_v49 = vld [vmem:[%s16102_s12] ss:$0 sm:$0xff] }
 0xec9   :  { %v11168_v16 = vunpack.i.h.bf16 %v11166_v28  ;;  %v11167_v40 = vunpack.i.l.bf16 %v11166_v28 }
 0xeca   :  { %v10506_v41 = vpack.c.bf16 %v11163_v22, %v11162_v27 }
 0xecb   :  { %v10509_v17 = vpack.c.bf16 %v11168_v16, %v11167_v40  ;;  %v11171_v11 = vpop.permute.xlu1 %11170 }
 0xecc   :  { %10508 = vmatpush3.bf16.xpose.msk.msra.mxu1 %vm12668_vm1, %v10506_v41  ;;  %v11173_v51 = vunpack.i.h.bf16 %v11171_v11  ;;  %v11172_v5 = vunpack.i.l.bf16 %v11171_v11 }
 0xecd   :  { %10511 = vmatprep.subr.msk.bf16.mxu1 %vm12668_vm1, %v10509_v17 }
 0xece   :  { %v10512_v33 = vpack.c.bf16 %v11173_v51, %v11172_v5 }
 0xed4   :  { %10514 = vmatpush3.bf16.xpose.msk.msra.mxu1 %vm12668_vm1, %v10512_v33 }
 0xee1   :  { %v9883_v12 = vpop.f32.mrb[88].mxu1 }
 0xee2   :  { %v3816_v52 = vadd.f32 %v9883_v12, %v13947_v59  ;;  %v3768_v63 = vpop.f32.mrb[89].mxu1 }
 0xee3   :  { %v3815_v6 = vadd.f32 %v3768_v63, %v13950_v14 }
 0xee4   :  { %v14410_v22 = vadd.f32 %v11947_v49, %v3816_v52 }
 0xee5   :  { %v14412_v27 = vadd.f32 %v11947_v49, %v3815_v6  ;;  %v9886_v28 = vpop.f32.mrb[90].mxu1 }
 0xee6   :  { %16546 = vst [vmem:[#allocation20_spill] sm:$0xff] %v14410_v22  ;;  %v3778_v16 = vpop.f32.mrb[91].mxu1  ;;  %v3877_v40 = vsel %vm189_vm0, %v14410_v22, 0.0  ;;  %v3818_v41 = vadd.f32 %v9886_v28, %v13963_v54 }
 0xee7   :  { %16547 = vst [vmem:[#allocation19_spill] sm:$0xff] %v14412_v27  ;;  %v3817_v59 = vadd.f32 %v3778_v16, %v13966_v32  ;;  %3878 = vadd.xlane.f32.xlu1 %v3877_v40  ;;  %v3874_v14 = vsel %vm189_vm0, %v14412_v27, 0.0 }
 0xee8   :  { %3875 = vadd.xlane.f32.xlu0 %v3874_v14  ;;  %v14423_v33 = vadd.f32 %v11947_v49, %v3818_v41 }
 0xee9   :  { %v14420_v17 = vadd.f32 %v11947_v49, %v3817_v59  ;;  %v9889_v11 = vpop.f32.mrb[92].mxu1 }
 0xeea   :  { %v3820_v51 = vadd.f32 %v9889_v11, %v13979_v44  ;;  %v3788_v5 = vpop.f32.mrb[93].mxu1  ;;  %16549 = vst [vmem:[#allocation22_spill] sm:$0xff] %v14423_v33 }
 0xeeb   :  { %16548 = vst [vmem:[#allocation21_spill] sm:$0xff] %v14420_v17  ;;  %v3819_v12 = vadd.f32 %v3788_v5, %v13982_v50  ;;  %v3880_v54 = vsel %vm189_vm0, %v14420_v17, 0.0  ;;  %v3883_v50 = vsel %vm189_vm0, %v14423_v33, 0.0 }
 0xeec   :  { %v14428_v52 = vadd.f32 %v11947_v49, %v3820_v51  ;;  %3881 = vadd.xlane.f32.xlu0 %v3880_v54 }
 0xeed   :  { %v9892_v32 = vpop.f32.mrb[94].mxu1  ;;  %v14433_v16 = vadd.f32 %v11947_v49, %v3819_v12 }
 0xeee   :  { %16550 = vst [vmem:[#allocation24_spill] sm:$0xff] %v14428_v52  ;;  %v3822_v63 = vadd.f32 %v9892_v32, %v13995_v56  ;;  %v3798_v6 = vpop.f32.mrb[95].mxu1  ;;  %v3889_v28 = vsel %vm189_vm0, %v14428_v52, 0.0 }
 0xeef   :  { %16551 = vst [vmem:[#allocation23_spill] sm:$0xff] %v14433_v16  ;;  %v3821_v44 = vadd.f32 %v3798_v6, %v13998_v38  ;;  %3890 = vadd.xlane.f32.xlu1 %v3889_v28  ;;  %v3886_v56 = vsel %vm189_vm0, %v14433_v16, 0.0 }
 0xef0   :  { %v14438_v40 = vadd.f32 %v11947_v49, %v3822_v63  ;;  %3884 = vadd.xlane.f32.xlu0 %v3883_v50 }
 0xef1   :  { %v14442_v59 = vadd.f32 %v11947_v49, %v3821_v44 }
 0xef2   :  { %16552 = vst [vmem:[#allocation25_spill] sm:$0xff] %v14438_v40  ;;  %v3895_v41 = vsel %vm189_vm0, %v14438_v40, 0.0 }
 0xef3   :  { %16553 = vst [vmem:[#allocation27_spill] sm:$0xff] %v14442_v59  ;;  %3896 = vadd.xlane.f32.xlu1 %v3895_v41  ;;  %v3892_v38 = vsel %vm189_vm0, %v14442_v59, 0.0 }
 0xef4   :  { %3887 = vadd.xlane.f32.xlu0 %v3886_v56 }
 0xef8   :  { %3893 = vadd.xlane.f32.xlu0 %v3892_v38 }
 0xef9   :  { %v11181_v14 = vpop.permute.xlu1 %11180  ;;  %v11176_v11 = vpop.permute.xlu0 %11175 }
 0xefa   :  { %v11183_v51 = vunpack.i.h.bf16 %v11181_v14  ;;  %v11182_v5 = vunpack.i.l.bf16 %v11181_v14  ;;  %v11178_v12 = vunpack.i.h.bf16 %v11176_v11  ;;  %v11177_v54 = vunpack.i.l.bf16 %v11176_v11 }
 0xefc   :  { %v10518_v32 = vpack.c.bf16 %v11183_v51, %v11182_v5  ;;  %v10515_v63 = vpack.c.bf16 %v11178_v12, %v11177_v54 }
 0xefd   :  { %v11186_v6 = vpop.permute.xlu0 %11185  ;;  %v11191_v49 = vpop.permute.xlu1 %11190 }
 0xefe   :  { %v11188_v28 = vunpack.i.h.bf16 %v11186_v6  ;;  %v11187_v44 = vunpack.i.l.bf16 %v11186_v6  ;;  %10517 = vmatprep.subr.msk.bf16.mxu1 %vm12668_vm1, %v10515_v63  ;;  %v11193_v41 = vunpack.i.h.bf16 %v11191_v49  ;;  %v11192_v56 = vunpack.i.l.bf16 %v11191_v49 }
 0xeff   :  { %10520 = vmatpush3.bf16.xpose.msk.msra.mxu1 %vm12668_vm1, %v10518_v32 }
 0xf00   :  { %v10521_v50 = vpack.c.bf16 %v11188_v28, %v11187_v44  ;;  %v10524_v11 = vpack.c.bf16 %v11193_v41, %v11192_v56 }
 0xf01   :  { %v11196_v38 = vpop.permute.xlu0 %11195  ;;  %v11201_v51 = vpop.permute.xlu1 %11200 }
 0xf02   :  { %v11198_v34 = vunpack.i.h.bf16 %v11196_v38  ;;  %v11197_v14 = vunpack.i.l.bf16 %v11196_v38  ;;  %10523 = vmatprep.subr.msk.bf16.mxu1 %vm12668_vm1, %v10521_v50  ;;  %v11203_v54 = vunpack.i.h.bf16 %v11201_v51  ;;  %v11202_v32 = vunpack.i.l.bf16 %v11201_v51 }
 0xf04   :  { %v10527_v5 = vpack.c.bf16 %v11198_v34, %v11197_v14  ;;  %v10530_v49 = vpack.c.bf16 %v11203_v54, %v11202_v32 }
 0xf05   :  { %v11206_v12 = vpop.permute.xlu0 %11205  ;;  %v11211_v28 = vpop.permute.xlu1 %11210 }
 0xf06   :  { %v11208_v63 = vunpack.i.h.bf16 %v11206_v12  ;;  %v11207_v6 = vunpack.i.l.bf16 %v11206_v12  ;;  %v11213_v34 = vunpack.i.h.bf16 %v11211_v28  ;;  %v11212_v50 = vunpack.i.l.bf16 %v11211_v28 }
 0xf07   :  { %10526 = vmatpush3.bf16.xpose.msk.msra.mxu1 %vm12668_vm1, %v10524_v11 }
 0xf08   :  { %10529 = vmatprep.subr.msk.bf16.mxu1 %vm12668_vm1, %v10527_v5  ;;  %v10533_v44 = vpack.c.bf16 %v11208_v63, %v11207_v6  ;;  %v10536_v14 = vpack.c.bf16 %v11213_v34, %v11212_v50 }
 0xf09   :  { %v11216_v38 = vpop.permute.xlu0 %11215  ;;  %v11221_v11 = vpop.permute.xlu1 %11220 }
 0xf0a   :  { %v11218_v41 = vunpack.i.h.bf16 %v11216_v38  ;;  %v11217_v56 = vunpack.i.l.bf16 %v11216_v38  ;;  %v11223_v51 = vunpack.i.h.bf16 %v11221_v11  ;;  %v11222_v12 = vunpack.i.l.bf16 %v11221_v11 }
 0xf0c   :  { %v10539_v5 = vpack.c.bf16 %v11218_v41, %v11217_v56  ;;  %v10542_v54 = vpack.c.bf16 %v11223_v51, %v11222_v12 }
 0xf0f   :  { %10532 = vmatpush3.bf16.xpose.msk.msra.mxu1 %vm12668_vm1, %v10530_v49 }
 0xf10   :  { %10535 = vmatprep.subr.msk.bf16.mxu1 %vm12668_vm1, %v10533_v44 }
 0xf17   :  { %10538 = vmatpush3.bf16.xpose.msk.msra.mxu1 %vm12668_vm1, %v10536_v14 }
 0xf18   :  { %10541 = vmatprep.subr.msk.bf16.mxu1 %vm12668_vm1, %v10539_v5 }
 0xf1f   :  { %10544 = vmatpush3.bf16.xpose.msk.msra.mxu1 %vm12668_vm1, %v10542_v54 }
 0xf26   :  { %9280 = vmatmul.mubr.msk.f32.vlgmr.msra.gmra.mrb[96].mxu1 %vm189_vm0, %v14291_v62 }
 0xf27   :  { %9281 = vmatprep.mubr.msk.f32.mxu1 %vm189_vm0, %v14288_v53 }
 0xf2a   :  { %9282 = vmatmul.mubr.msk.f32.gmra.mrb[98].mxu1 %vm189_vm0, %v14288_v53 }
 0xf2b   :  { %9283 = vmatprep.mubr.msk.f32.mxu1 %vm189_vm0, %v14309_v43 }
 0xf2e   :  { %9284 = vmatmul.mubr.msk.f32.gmra.mrb[100].mxu1 %vm189_vm0, %v14309_v43 }
 0xf2f   :  { %9285 = vmatprep.mubr.msk.f32.mxu1 %vm189_vm0, %v14304_v24 }
 0xf32   :  { %9286 = vmatmul.mubr.msk.f32.gmra.mrb[102].mxu1 %vm189_vm0, %v14304_v24 }
 0xf33   :  { %9287 = vmatprep.mubr.msk.f32.mxu1 %vm189_vm0, %v14323_v29 }
 0xf36   :  { %9288 = vmatmul.mubr.msk.f32.gmra.mrb[104].mxu1 %vm189_vm0, %v14323_v29 }
 0xf37   :  { %9289 = vmatprep.mubr.msk.f32.mxu1 %vm189_vm0, %v14316_v4 }
 0xf3a   :  { %9290 = vmatmul.mubr.msk.f32.gmra.mrb[106].mxu1 %vm189_vm0, %v14316_v4 }
 0xf3b   :  { %9291 = vmatprep.mubr.msk.f32.mxu1 %vm189_vm0, %v14341_v42 }
 0xf3e   :  { %9292 = vmatmul.mubr.msk.f32.gmra.mrb[108].mxu1 %vm189_vm0, %v14341_v42  ;;  %v4318_v42 = vld [vmem:[#allocation6 + $0xc8] sm:$0xff] }
 0xf3f   :  { %9293 = vmatprep.mubr.msk.f32.mxu1 %vm189_vm0, %v14338_v31 }
 0xf42   :  { %9294 = vmatmul.mubr.msk.f32.gmra.mrb[110].mxu1 %vm189_vm0, %v14338_v31  ;;  %v4317_v31 = vld [vmem:[#allocation6 + $0xc0] sm:$0xff] }
 0xf74   :  { %v3879_v32 = vpop.xlane.xlu1 %3878 }
 0xf75   :  { %v3907_v63 = vmul.f32 0.03125, %v3879_v32  ;;  %v3876_v6 = vpop.xlane.xlu0 %3875 }
 0xf76   :  { %v3906_v49 = vmul.f32 0.03125, %v3876_v6 }
 0xf77   :  { %v14499_v28 = vsub.f32 %v14410_v22, %v3907_v63  ;;  %v4315_v22 = vld [vmem:[#allocation6 + $0xb0] sm:$0xff] }
 0xf78   :  { %v14502_v44 = vsub.f32 %v14412_v27, %v3906_v49 }
 0xf79   :  { %v3882_v38 = vpop.xlane.xlu0 %3881  ;;  %v3939_v34 = vmul.f32 %v14499_v28, %v14499_v28 }
 0xf7a   :  { %v3908_v50 = vmul.f32 0.03125, %v3882_v38  ;;  %v3938_v41 = vmul.f32 %v14502_v44, %v14502_v44 }
 0xf7b   :  { %v3973_v56 = vsel %vm189_vm0, %v3939_v34, 0.0 }
 0xf7c   :  { %v14510_v14 = vsub.f32 %v14420_v17, %v3908_v50  ;;  %3974 = vadd.xlane.f32.xlu1 %v3973_v56  ;;  %v3891_v11 = vpop.xlane.xlu1 %3890  ;;  %v3970_v5 = vsel %vm189_vm0, %v3938_v41, 0.0 }
 0xf7d   :  { %v3911_v51 = vmul.f32 0.03125, %v3891_v11  ;;  %3971 = vadd.xlane.f32.xlu0 %v3970_v5  ;;  %v3885_v12 = vpop.xlane.xlu0 %3884 }
 0xf7e   :  { %v3909_v54 = vmul.f32 0.03125, %v3885_v12  ;;  %v3940_v32 = vmul.f32 %v14510_v14, %v14510_v14 }
 0xf7f   :  { %v14516_v63 = vsub.f32 %v14428_v52, %v3911_v51  ;;  %v4311_v52 = vld [vmem:[#allocation6 + $0x90] sm:$0xff] }
 0xf80   :  { %v14519_v6 = vsub.f32 %v14423_v33, %v3909_v54  ;;  %v3897_v49 = vpop.xlane.xlu1 %3896  ;;  %v3976_v38 = vsel %vm189_vm0, %v3940_v32, 0.0 }
 0xf81   :  { %v3913_v34 = vmul.f32 0.03125, %v3897_v49  ;;  %3977 = vadd.xlane.f32.xlu0 %v3976_v38  ;;  %v3888_v50 = vpop.xlane.xlu0 %3887  ;;  %v3943_v12 = vmul.f32 %v14516_v63, %v14516_v63 }
 0xf82   :  { %v3910_v41 = vmul.f32 0.03125, %v3888_v50  ;;  %v3941_v56 = vmul.f32 %v14519_v6, %v14519_v6 }
 0xf83   :  { %v14525_v11 = vsub.f32 %v14438_v40, %v3913_v34  ;;  %v3985_v34 = vsel %vm189_vm0, %v3943_v12, 0.0 }
 0xf84   :  { %v14528_v5 = vsub.f32 %v14433_v16, %v3910_v41  ;;  %v3979_v51 = vsel %vm189_vm0, %v3941_v56, 0.0 }
 0xf85   :  { %3980 = vadd.xlane.f32.xlu1 %v3979_v51  ;;  %v3894_v54 = vpop.xlane.xlu0 %3893  ;;  %v3945_v41 = vmul.f32 %v14525_v11, %v14525_v11 }
 0xf86   :  { %v3912_v32 = vmul.f32 0.03125, %v3894_v54  ;;  %v3942_v49 = vmul.f32 %v14528_v5, %v14528_v5 }
 0xf87   :  { %v3991_v51 = vsel %vm189_vm0, %v3945_v41, 0.0 }
 0xf88   :  { %v14536_v38 = vsub.f32 %v14442_v59, %v3912_v32  ;;  %v3982_v50 = vsel %vm189_vm0, %v3942_v49, 0.0  ;;  %v4309_v32 = vld [vmem:[#allocation6 + $0x80] sm:$0xff]  ;;  %v4310_v59 = vld [vmem:[#allocation6 + $0x88] sm:$0xff] }
 0xf89   :  { %3986 = vadd.xlane.f32.xlu1 %v3985_v34  ;;  %3983 = vadd.xlane.f32.xlu0 %v3982_v50  ;;  %v4312_v34 = vld [vmem:[#allocation6 + $0x98] sm:$0xff] }
 0xf8a   :  { %v3944_v56 = vmul.f32 %v14536_v38, %v14536_v38 }
 0xf8c   :  { %v3988_v54 = vsel %vm189_vm0, %v3944_v56, 0.0 }
 0xf8d   :  { %3992 = vadd.xlane.f32.xlu1 %v3991_v51  ;;  %3989 = vadd.xlane.f32.xlu0 %v3988_v54  ;;  %v4313_v51 = vld [vmem:[#allocation6 + $0xa0] sm:$0xff]  ;;  %v4314_v54 = vld [vmem:[#allocation6 + $0xa8] sm:$0xff] }
 0xff9   :  { %v4639_v40 = vpop.f32.mrb[96].mxu1 }
 0xffa   :  { %v14546_v12 = vadd.f32 %v4639_v40, %v4309_v32  ;;  %v4641_v49 = vpop.f32.mrb[97].mxu1 }
 0xffb   :  { %v14548_v16 = vadd.f32 %v4641_v49, %v4310_v59 }
 0xffd   :  { %v4686_v50 = vmax.f32 %v14546_v12, %v14548_v16  ;;  %v4645_v17 = vpop.f32.mrb[98].mxu1 }
 0xffe   :  { %v14552_v33 = vadd.f32 %v4645_v17, %v4311_v52  ;;  %v4647_v41 = vpop.f32.mrb[99].mxu1 }
 0xfff   :  { %v14554_v56 = vadd.f32 %v4647_v41, %v4312_v34  ;;  %4687 = vmax.xlane.f32.xlu0 %v4686_v50 }
0x1001   :  { %v4689_v40 = vmax.f32 %v14552_v33, %v14554_v56  ;;  %v4651_v32 = vpop.f32.mrb[100].mxu1 }
0x1002   :  { %v14558_v59 = vadd.f32 %v4651_v32, %v4313_v51  ;;  %v4653_v49 = vpop.f32.mrb[101].mxu1 }
0x1003   :  { %v14560_v27 = vadd.f32 %v4653_v49, %v4314_v54  ;;  %4690 = vmax.xlane.f32.xlu1 %v4689_v40 }
0x1005   :  { %v4692_v17 = vmax.f32 %v14558_v59, %v14560_v27  ;;  %v4657_v52 = vpop.f32.mrb[102].mxu1 }
0x1006   :  { %v14564_v34 = vadd.f32 %v4657_v52, %v4315_v22  ;;  %v4659_v50 = vpop.f32.mrb[103].mxu1  ;;  %v4319_v22 = vld [vmem:[#allocation6 + $0xd0] sm:$0xff]  ;;  %v4320_v52 = vld [vmem:[#allocation6 + $0xd8] sm:$0xff] }
0x1007   :  { %v14566_v41 = vadd.f32 %v4659_v50, %v4316_v55  ;;  %4693 = vmax.xlane.f32.xlu0 %v4692_v17 }
0x1009   :  { %v4695_v51 = vmax.f32 %v14564_v34, %v14566_v41  ;;  %v3975_v54 = vpop.xlane.xlu1 %3974  ;;  %v4663_v32 = vpop.f32.mrb[104].mxu1 }
0x100a   :  { %v4003_v40 = vmul.f32 0.03125, %v3975_v54  ;;  %v14570_v49 = vadd.f32 %v4663_v32, %v4317_v31  ;;  %v3972_v4 = vpop.xlane.xlu0 %3971  ;;  %v4665_v29 = vpop.f32.mrb[105].mxu1 }
0x100b   :  { %v4002_v24 = vmul.f32 0.03125, %v3972_v4  ;;  %v14572_v43 = vadd.f32 %v4665_v29, %v4318_v42  ;;  %4696 = vmax.xlane.f32.xlu1 %v4695_v51  ;;  %v4321_v4 = vld [vmem:[#allocation6 + $0xe0] sm:$0xff]  ;;  %v4322_v29 = vld [vmem:[#allocation6 + $0xe8] sm:$0xff] }
0x100c   :  { %v4019_v55 = vadd.f32 1e-05, %v4003_v40 }
0x100d   :  { %v4018_v17 = vadd.f32 1e-05, %v4002_v24  ;;  %v4698_v50 = vmax.f32 %v14570_v49, %v14572_v43  ;;  %v4669_v53 = vpop.f32.mrb[106].mxu1 }
0x100e   :  { %11673 = vrsqrt.f32 %v4019_v55  ;;  %v14576_v62 = vadd.f32 %v4669_v53, %v4319_v22  ;;  %v3978_v54 = vpop.xlane.xlu0 %3977  ;;  %v4671_v31 = vpop.f32.mrb[107].mxu1 }
0x100f   :  { %11675 = vrsqrt.f32 %v4018_v17  ;;  %v4004_v32 = vmul.f32 0.03125, %v3978_v54  ;;  %v14578_v2 = vadd.f32 %v4671_v31, %v4320_v52  ;;  %4699 = vmax.xlane.f32.xlu0 %v4698_v50  ;;  %v4323_v17 = vld [vmem:[#allocation6 + $0xf0] sm:$0xff]  ;;  %v4324_v31 = vld [vmem:[#allocation6 + $0xf8] sm:$0xff] }
0x1011   :  { %v4020_v42 = vadd.f32 1e-05, %v4004_v32  ;;  %v4701_v24 = vmax.f32 %v14576_v62, %v14578_v2  ;;  %v4675_v51 = vpop.f32.mrb[108].mxu1 }
0x1012   :  { %v14582_v40 = vadd.f32 %v4675_v51, %v4321_v4  ;;  %v3981_v15 = vpop.xlane.xlu1 %3980  ;;  %v4677_v55 = vpop.f32.mrb[109].mxu1 }
0x1013   :  { %11677 = vrsqrt.f32 %v4020_v42  ;;  %v4005_v53 = vmul.f32 0.03125, %v3981_v15  ;;  %v14584_v22 = vadd.f32 %v4677_v55, %v4322_v29  ;;  %4702 = vmax.xlane.f32.xlu1 %v4701_v24 }
0x1015   :  { %v4021_v52 = vadd.f32 1e-05, %v4005_v53  ;;  %v4704_v50 = vmax.f32 %v14582_v40, %v14584_v22  ;;  %v4681_v54 = vpop.f32.mrb[110].mxu1 }
0x1016   :  { %v14588_v32 = vadd.f32 %v4681_v54, %v4323_v17  ;;  %v3987_v46 = vpop.xlane.xlu1 %3986  ;;  %v3984_v45 = vpop.xlane.xlu0 %3983 }
0x1017   :  { %11679 = vrsqrt.f32 %v4021_v52  ;;  %v4007_v4 = vmul.f32 0.03125, %v3987_v46  ;;  %v4006_v51 = vmul.f32 0.03125, %v3984_v45  ;;  %v4683_v13 = vpop.f32.mrb[111].mxu1  ;;  %4705 = vmax.xlane.f32.xlu0 %v4704_v50 }
0x1018   :  { %v11674_v15 = vpop.eup %11673  ;;  %v14590_v29 = vadd.f32 %v4683_v13, %v4324_v31  ;;  %v11948_v13 = vld [vmem:[%s16339_s5 + $0x1] ss:$0 sm:$0xff] }
0x1019   :  { %v11676_v42 = vpop.eup %11675  ;;  %v4023_v24 = vadd.f32 1e-05, %v4007_v4  ;;  %v4022_v55 = vadd.f32 1e-05, %v4006_v51  ;;  %v4051_v53 = vmul.f32 %v11674_v15, %v14499_v28  ;;  %v11949_v51 = vld [vmem:[%s16340_s6 + $0x1] ss:$0 sm:$0xff] }
0x101a   :  { %v4707_v0 = vmax.f32 %v14588_v32, %v14590_v29  ;;  %v3993_v17 = vpop.xlane.xlu1 %3992  ;;  %v3990_v54 = vpop.xlane.xlu0 %3989  ;;  %v4050_v1 = vmul.f32 %v11676_v42, %v14502_v44 }
0x101b   :  { %11681 = vrsqrt.f32 %v4023_v24  ;;  %v4009_v46 = vmul.f32 0.03125, %v3993_v17  ;;  %v4008_v45 = vmul.f32 0.03125, %v3990_v54  ;;  %v4073_v52 = vmul.f32 %v11948_v13, %v4051_v53 }
0x101c   :  { %11683 = vrsqrt.f32 %v4022_v55  ;;  %4708 = vmax.xlane.f32.xlu1 %v4707_v0  ;;  %v4072_v50 = vmul.f32 %v11948_v13, %v4050_v1 }
0x101d   :  { %v11678_v31 = vpop.eup %11677  ;;  %v4025_v28 = vadd.f32 1e-05, %v4009_v46  ;;  %v4024_v4 = vadd.f32 1e-05, %v4008_v45  ;;  %v4095_v42 = vadd.f32 %v11949_v51, %v4073_v52 }
0x101e   :  { %v4094_v15 = vadd.f32 %v11949_v51, %v4072_v50  ;;  %v4052_v44 = vmul.f32 %v11678_v31, %v14510_v14 }
0x101f   :  { %11685 = vrsqrt.f32 %v4025_v28 }
0x1020   :  { %11687 = vrsqrt.f32 %v4024_v4  ;;  %9913 = vmatprep.mubr.msk.f32.mxu0 %vm189_vm0, %v4094_v15  ;;  %v4074_v24 = vmul.f32 %v11948_v13, %v4052_v44 }
0x1021   :  { %v11680_v53 = vpop.eup %11679  ;;  %9914 = vmatmul.mubr.msk.f32.gmra.mrb[104].mxu0 %vm189_vm0, %v4095_v42 }
0x1022   :  { %v4096_v0 = vadd.f32 %v11949_v51, %v4074_v24  ;;  %v4053_v1 = vmul.f32 %v11680_v53, %v14519_v6 }
0x1024   :  { %9916 = vmatprep.mubr.msk.f32.mxu0 %vm189_vm0, %v4096_v0  ;;  %v4075_v55 = vmul.f32 %v11948_v13, %v4053_v1 }
0x1025   :  { %v11682_v17 = vpop.eup %11681 }
0x1026   :  { %v11684_v54 = vpop.eup %11683  ;;  %v4097_v46 = vadd.f32 %v11949_v51, %v4075_v55  ;;  %v4055_v14 = vmul.f32 %v11682_v17, %v14516_v63 }
0x1027   :  { %v4054_v45 = vmul.f32 %v11684_v54, %v14528_v5 }
0x1028   :  { %9917 = vmatmul.mubr.msk.f32.gmra.mrb[106].mxu0 %vm189_vm0, %v4097_v46  ;;  %v4077_v52 = vmul.f32 %v11948_v13, %v4055_v14 }
0x1029   :  { %v11686_v50 = vpop.eup %11685  ;;  %v4076_v31 = vmul.f32 %v11948_v13, %v4054_v45 }
0x102a   :  { %v11688_v28 = vpop.eup %11687  ;;  %v4099_v4 = vadd.f32 %v11949_v51, %v4077_v52  ;;  %v4057_v15 = vmul.f32 %v11686_v50, %v14525_v11 }
0x102b   :  { %v4098_v6 = vadd.f32 %v11949_v51, %v4076_v31  ;;  %v4056_v44 = vmul.f32 %v11688_v28, %v14536_v38 }
0x102c   :  { %v4079_v42 = vmul.f32 %v11948_v13, %v4057_v15 }
0x102d   :  { %9919 = vmatprep.mubr.msk.f32.mxu0 %vm189_vm0, %v4098_v6  ;;  %v4078_v24 = vmul.f32 %v11948_v13, %v4056_v44  ;;  %v11950_v44 = vld [vmem:[%s16106_s16] sm:$0xff] }
0x102e   :  { %9920 = vmatmul.mubr.msk.f32.gmra.mrb[108].mxu0 %vm189_vm0, %v4099_v4  ;;  %v4101_v63 = vadd.f32 %v11949_v51, %v4079_v42 }
0x102f   :  { %v4100_v5 = vadd.f32 %v11949_v51, %v4078_v24 }
0x1031   :  { %9922 = vmatprep.mubr.msk.f32.mxu0 %vm189_vm0, %v4100_v5 }
0x1032   :  { %9923 = vmatmul.mubr.msk.f32.gmra.mrb[110].mxu0 %vm189_vm0, %v4101_v63 }
0x108c   :  { %v4688_v53 = vpop.xlane.xlu0 %4687 }
0x108d   :  { %v4710_v0 = vsub.f32 %v14546_v12, %v4688_v53  ;;  %v4711_v11 = vsub.f32 %v14548_v16, %v4688_v53 }
0x108f   :  { %v4726_v1 = vmul.f32 1.442695, %v4710_v0  ;;  %v4728_v55 = vmul.f32 1.442695, %v4711_v11 }
0x1090   :  { %v4691_v38 = vpop.xlane.xlu1 %4690 }
0x1091   :  { %11689 = vpow2.f32 %v4726_v1  ;;  %v4712_v17 = vsub.f32 %v14552_v33, %v4691_v38  ;;  %v4713_v13 = vsub.f32 %v14554_v56, %v4691_v38 }
0x1092   :  { %11691 = vpow2.f32 %v4728_v55 }
0x1093   :  { %v4730_v54 = vmul.f32 1.442695, %v4712_v17  ;;  %v4732_v51 = vmul.f32 1.442695, %v4713_v13 }
0x1094   :  { %v4694_v46 = vpop.xlane.xlu0 %4693 }
0x1095   :  { %11693 = vpow2.f32 %v4730_v54  ;;  %v4714_v14 = vsub.f32 %v14558_v59, %v4694_v46  ;;  %v4715_v45 = vsub.f32 %v14560_v27, %v4694_v46 }
0x1096   :  { %11695 = vpow2.f32 %v4732_v51 }
0x1097   :  { %v4734_v12 = vmul.f32 1.442695, %v4714_v14  ;;  %v4736_v16 = vmul.f32 1.442695, %v4715_v45 }
0x1098   :  { %v4697_v52 = vpop.xlane.xlu1 %4696 }
0x1099   :  { %11697 = vpow2.f32 %v4734_v12  ;;  %v4716_v50 = vsub.f32 %v14564_v34, %v4697_v52  ;;  %v4717_v33 = vsub.f32 %v14566_v41, %v4697_v52 }
0x109a   :  { %11699 = vpow2.f32 %v4736_v16 }
0x109b   :  { %v14624_v56 = vpop.eup %11689  ;;  %v4738_v31 = vmul.f32 1.442695, %v4716_v50  ;;  %v4740_v28 = vmul.f32 1.442695, %v4717_v33  ;;  %v16554_v50 = vmov 0.0  }
0x109c   :  { %v14626_v4 = vpop.eup %11691  ;;  %v4700_v15 = vpop.xlane.xlu0 %4699 }
0x109d   :  { %11701 = vpow2.f32 %v4738_v31  ;;  %4822 = vmatprep.mubr.f32.mxu0 %v14626_v4  ;;  %v4718_v27 = vsub.f32 %v14570_v49, %v4700_v15  ;;  %v4719_v59 = vsub.f32 %v14572_v43, %v4700_v15 }
0x109e   :  { %11703 = vpow2.f32 %v4740_v28  ;;  %4823 = vmatmul.mubr.f32.vlgmr.msra.gmra.mrb[112].mxu0 %v14624_v56 }
0x109f   :  { %v14632_v34 = vpop.eup %11693  ;;  %v4742_v41 = vmul.f32 1.442695, %v4718_v27  ;;  %v4744_v6 = vmul.f32 1.442695, %v4719_v59  ;;  %8618 = vmatpush1.msk.msra.mxu0 %vm1501_vm2, %v11950_v44 }
0x10a0   :  { %v14638_v42 = vpop.eup %11695  ;;  %v4703_v24 = vpop.xlane.xlu1 %4702 }
0x10a1   :  { %11705 = vpow2.f32 %v4742_v41  ;;  %v4720_v49 = vsub.f32 %v14576_v62, %v4703_v24  ;;  %v4721_v43 = vsub.f32 %v14578_v2, %v4703_v24  ;;  %4827 = vmatprep.mubr.f32.mxu0 %v14638_v42 }
0x10a2   :  { %11707 = vpow2.f32 %v4744_v6  ;;  %4828 = vmatmul.mubr.f32.gmra.mrb[114].mxu0 %v14632_v34 }
0x10a3   :  { %v14644_v63 = vpop.eup %11697  ;;  %v4746_v5 = vmul.f32 1.442695, %v4720_v49  ;;  %v4748_v53 = vmul.f32 1.442695, %v4721_v43 }
0x10a4   :  { %v14646_v0 = vpop.eup %11699  ;;  %v4706_v11 = vpop.xlane.xlu0 %4705 }
0x10a5   :  { %11709 = vpow2.f32 %v4746_v5  ;;  %4832 = vmatprep.mubr.f32.mxu0 %v14646_v0  ;;  %v4722_v1 = vsub.f32 %v14582_v40, %v4706_v11  ;;  %v4723_v62 = vsub.f32 %v14584_v22, %v4706_v11 }
0x10a6   :  { %11711 = vpow2.f32 %v4748_v53  ;;  %4833 = vmatmul.mubr.f32.gmra.mrb[116].mxu0 %v14644_v63 }
0x10a7   :  { %v14652_v2 = vpop.eup %11701  ;;  %v4750_v55 = vmul.f32 1.442695, %v4722_v1  ;;  %v4752_v38 = vmul.f32 1.442695, %v4723_v62  ;;  %v11951_v62 = vld [vmem:[%s16363_s15 + $0x1] ss:$0 sm:$0xff] }
0x10a8   :  { %v14654_v17 = vpop.eup %11703 }
0x10a9   :  { %11713 = vpow2.f32 %v4750_v55  ;;  %v4709_v13 = vpop.xlane.xlu1 %4708  ;;  %4837 = vmatprep.mubr.f32.mxu0 %v14654_v17 }
0x10aa   :  { %11715 = vpow2.f32 %v4752_v38  ;;  %v4724_v54 = vsub.f32 %v14588_v32, %v4709_v13  ;;  %v4725_v40 = vsub.f32 %v14590_v29, %v4709_v13  ;;  %4838 = vmatmul.mubr.f32.gmra.mrb[118].mxu0 %v14652_v2 }
0x10ab   :  { %v14660_v22 = vpop.eup %11705 }
0x10ac   :  { %v14662_v51 = vpop.eup %11707  ;;  %v4754_v46 = vmul.f32 1.442695, %v4724_v54  ;;  %v4756_v14 = vmul.f32 1.442695, %v4725_v40 }
0x10ad   :  { %4842 = vmatprep.mubr.f32.mxu0 %v14662_v51 }
0x10ae   :  { %11717 = vpow2.f32 %v4754_v46  ;;  %4843 = vmatmul.mubr.f32.gmra.mrb[120].mxu0 %v14660_v22 }
0x10af   :  { %v14666_v45 = vpop.eup %11709  ;;  %11719 = vpow2.f32 %v4756_v14 }
0x10b0   :  { %v14668_v12 = vpop.eup %11711 }
0x10b1   :  { %4847 = vmatprep.mubr.f32.mxu0 %v14668_v12 }
0x10b2   :  { %4848 = vmatmul.mubr.f32.gmra.mrb[122].mxu0 %v14666_v45 }
0x10b3   :  { %v14672_v32 = vpop.eup %11713 }
0x10b4   :  { %v14674_v29 = vpop.eup %11715 }
0x10b5   :  { %4852 = vmatprep.mubr.f32.mxu0 %v14674_v29 }
0x10b6   :  { %4853 = vmatmul.mubr.f32.gmra.mrb[124].mxu0 %v14672_v32 }
0x10b8   :  { %v14678_v16 = vpop.eup %11717 }
0x10b9   :  { %v14680_v52 = vpop.eup %11719 }
0x10ba   :  { %4857 = vmatprep.mubr.f32.mxu0 %v14680_v52 }
0x10bb   :  { %4858 = vmatmul.mubr.f32.gmra.mrb[126].mxu0 %v14678_v16 }
0x10bc   :  { %4967 = vmatprep.mubr.f32.mxu0 %v16554_v50 }
0x10f4   :  { %v9915_v33 = vpop.f32.mrb[104].mxu0 }
0x10f5   :  { %v14686_v31 = vadd.f32 %v9915_v33, %v14285_v8  ;;  %v4269_v28 = vpop.f32.mrb[105].mxu0 }
0x10f6   :  { %v14689_v15 = vadd.f32 %v14285_v8, %v4269_v28 }
0x10f7   :  { %v5266_v27 = vmul.f32 %v14686_v31, %v16508_v57  ;;  %v5282_v59 = vmul.f32 %v14686_v31, %v16507_v21 }
0x10f8   :  { %v5265_v41 = vmul.f32 %v14689_v15, %v16510_v20  ;;  %v5281_v6 = vmul.f32 %v14689_v15, %v16509_v25 }
0x10fa   :  { %v11229_v44 = vpack.i.bf16 %v5266_v27, %v5265_v41  ;;  %v11224_v24 = vpack.i.bf16 %v5282_v59, %v5281_v6  ;;  %v5289_v59 = vmul.f32 %v14689_v15, %v16529_v48 }
0x10fb   :  { %v9918_v49 = vpop.f32.mrb[106].mxu0 }
0x10fc   :  { %v14700_v43 = vadd.f32 %v9918_v49, %v14285_v8  ;;  %v4279_v5 = vpop.f32.mrb[107].mxu0  ;;  %11230 = vrot.lane.b32.xlu1 %v11229_v44, %s12095_s26  ;;  %11225 = vrot.lane.b32.xlu0 %v11224_v24, %s12095_s26  ;;  %v16555_v44 = vld [vmem:[#allocation36_spill] sm:$0xff]  ;;  %v16556_v49 = vld [vmem:[#allocation35_spill] sm:$0xff] }
0x10fd   :  { %v14705_v57 = vadd.f32 %v14285_v8, %v4279_v5  ;;  %v16557_v5 = vld [vmem:[#allocation38_spill] sm:$0xff] }
0x10fe   :  { %v5284_v21 = vmul.f32 %v14700_v43, %v16513_v10  ;;  %v5268_v1 = vmul.f32 %v14700_v43, %v16517_v26  ;;  %v5292_v48 = vmul.f32 %v14700_v43, %v16534_v35 }
0x10ff   :  { %v5283_v25 = vmul.f32 %v14705_v57, %v16514_v39  ;;  %v5267_v11 = vmul.f32 %v14705_v57, %v16516_v60  ;;  %v5291_v6 = vmul.f32 %v14705_v57, %v16533_v30  ;;  %v5275_v24 = vmul.f32 %v14705_v57, %v16555_v44 }
0x1101   :  { %v9921_v20 = vpop.f32.mrb[108].mxu0  ;;  %v11234_v53 = vpack.i.bf16 %v5284_v21, %v5283_v25  ;;  %v11239_v13 = vpack.i.bf16 %v5268_v1, %v5267_v11  ;;  %v16558_v25 = vld [vmem:[#allocation37_spill] sm:$0xff]  ;;  %v16560_v11 = vld [vmem:[#allocation42_spill] sm:$0xff] }
0x1102   :  { %v14718_v8 = vadd.f32 %v11951_v62, %v9921_v20  ;;  %v4289_v55 = vpop.f32.mrb[109].mxu0  ;;  %v16559_v20 = vld [vmem:[#allocation43_spill] sm:$0xff] }
0x1103   :  { %v14720_v38 = vadd.f32 %v11951_v62, %v4289_v55  ;;  %11235 = vrot.lane.b32.xlu1 %v11234_v53, %s12095_s26  ;;  %v16561_v55 = vld [vmem:[#allocation45_spill] sm:$0xff] }
0x1104   :  { %v5286_v10 = vmul.f32 %v14718_v8, %v16519_v18  ;;  %v5270_v54 = vmul.f32 %v14718_v8, %v16522_v9  ;;  %v5294_v30 = vmul.f32 %v14718_v8, %v16558_v25  ;;  %v5278_v1 = vmul.f32 %v14718_v8, %v16560_v11  ;;  %v16576_v25 = vld [vmem:[#allocation75_spill] sm:$0xff] }
0x1105   :  { %v9924_v39 = vpop.f32.mrb[110].mxu0  ;;  %v5285_v60 = vmul.f32 %v14720_v38, %v16520_v3  ;;  %v5269_v26 = vmul.f32 %v14720_v38, %v16521_v19  ;;  %v5293_v21 = vmul.f32 %v14720_v38, %v16557_v5  ;;  %v5277_v53 = vmul.f32 %v14720_v38, %v16559_v20  ;;  %v16575_v5 = vld [vmem:[#allocation74_spill] sm:$0xff]  ;;  %v16577_v20 = vld [vmem:[#allocation76_spill] sm:$0xff] }
0x1106   :  { %v14731_v40 = vadd.f32 %v11951_v62, %v9924_v39  ;;  %v4299_v46 = vpop.f32.mrb[111].mxu0  ;;  %v16562_v39 = vld [vmem:[#allocation44_spill] sm:$0xff] }
0x1107   :  { %v14733_v14 = vadd.f32 %v11951_v62, %v4299_v46  ;;  %11240 = vrot.lane.b32.xlu1 %v11239_v13, %s12095_s26  ;;  %v11244_v33 = vpack.i.bf16 %v5286_v10, %v5285_v60  ;;  %v11249_v3 = vpack.i.bf16 %v5270_v54, %v5269_v26  ;;  %v11284_v62 = vpack.i.bf16 %v5294_v30, %v5293_v21  ;;  %v16563_v26 = vld [vmem:[#allocation47_spill] sm:$0xff]  ;;  %v16564_v46 = vld [vmem:[#allocation46_spill] sm:$0xff] }
0x1108   :  { %v5288_v18 = vmul.f32 %v14731_v40, %v16525_v36  ;;  %v5272_v28 = vmul.f32 %v14731_v40, %v16526_v47  ;;  %v5290_v36 = vmul.f32 %v14686_v31, %v16530_v7  ;;  %v5296_v13 = vmul.f32 %v14731_v40, %v16562_v39  ;;  %v16581_v39 = vld [vmem:[#allocation78_spill] sm:$0xff] }
0x1109   :  { %11245 = vrot.lane.b32.xlu0 %v11244_v33, %s12095_s26  ;;  %v5287_v19 = vmul.f32 %v14733_v14, %v16527_v23  ;;  %v5271_v9 = vmul.f32 %v14733_v14, %v16528_v37  ;;  %v5273_v23 = vmul.f32 %v14689_v15, %v16531_v61  ;;  %v5274_v37 = vmul.f32 %v14686_v31, %v16532_v58 }
0x110a   :  { %v11264_v47 = vpack.i.bf16 %v5290_v36, %v5289_v59  ;;  %v5276_v61 = vmul.f32 %v14700_v43, %v16556_v49  ;;  %v11274_v58 = vpack.i.bf16 %v5292_v48, %v5291_v6  ;;  %v5295_v10 = vmul.f32 %v14733_v14, %v16561_v55  ;;  %v16571_v48 = vld [vmem:[#allocation72_spill] sm:$0xff]  ;;  %v16574_v49 = vld [vmem:[#allocation13_spill] sm:$0xff] }
0x110b   :  { %11250 = vrot.lane.b32.xlu1 %v11249_v3, %s12095_s26  ;;  %v11254_v27 = vpack.i.bf16 %v5288_v18, %v5287_v19  ;;  %v11259_v41 = vpack.i.bf16 %v5272_v28, %v5271_v9  ;;  %v11269_v7 = vpack.i.bf16 %v5274_v37, %v5273_v23  ;;  %v11289_v60 = vpack.i.bf16 %v5278_v1, %v5277_v53  ;;  %v16565_v3 = vld [vmem:[#allocation68_spill] sm:$0xff]  ;;  %v16567_v28 = vld [vmem:[#allocation69_spill] sm:$0xff]  ;;  %v16570_v37 = vld [vmem:[#allocation71_spill] sm:$0xff] }
0x110c   :  { %v11279_v35 = vpack.i.bf16 %v5276_v61, %v5275_v24  ;;  %v5279_v54 = vmul.f32 %v14733_v14, %v16563_v26  ;;  %v5280_v33 = vmul.f32 %v14731_v40, %v16564_v46  ;;  %v11294_v18 = vpack.i.bf16 %v5296_v13, %v5295_v10  ;;  %v16566_v19 = vld [vmem:[#allocation104_spill] sm:$0xff]  ;;  %v16573_v24 = vld [vmem:[#allocation73_spill] sm:$0xff]  ;;  %v16578_v53 = vld [vmem:[#allocation14_spill] sm:$0xff] }
0x110d   :  { %11255 = vrot.lane.b32.xlu0 %v11254_v27, %s12095_s26  ;;  %v4373_v9 = vmul.f32 %v16566_v19, %v16565_v3  ;;  %v16568_v27 = vld [vmem:[#allocation103_spill] sm:$0xff]  ;;  %v4376_v61 = vmul.f32 %v16574_v49, %v16573_v24  ;;  %v4360_v30 = vmul.f32 %v16574_v49, %v16576_v25  ;;  %v4377_v11 = vmul.f32 %v16578_v53, %v16577_v20  ;;  %v16579_v1 = vld [vmem:[#allocation77_spill] sm:$0xff] }
0x110e   :  { %v4374_v59 = vmul.f32 %v16568_v27, %v16567_v28  ;;  %v11299_v36 = vpack.i.bf16 %v5280_v33, %v5279_v54  ;;  %v4361_v13 = vmul.f32 %v16578_v53, %v16581_v39  ;;  %v16583_v46 = vld [vmem:[#allocation79_spill] sm:$0xff]  ;;  %v16584_v33 = vld [vmem:[#allocation18_spill] sm:$0xff] }
0x110f   :  { %11260 = vrot.lane.b32.xlu1 %v11259_v41, %s12095_s26  ;;  %v16569_v41 = vld [vmem:[#allocation70_spill] sm:$0xff] }
0x1110   :  { %v4357_v23 = vmul.f32 %v16566_v19, %v16569_v41  ;;  %v11304_v6 = vpack.i.bf16 %v4374_v59, %v4373_v9  ;;  %v16585_v9 = vld [vmem:[#allocation80_spill] sm:$0xff]  ;;  %v16586_v59 = vld [vmem:[#allocation17_spill] sm:$0xff] }
0x1111   :  { %11265 = vrot.lane.b32.xlu0 %v11264_v47, %s12095_s26  ;;  %v4358_v47 = vmul.f32 %v16568_v27, %v16570_v37 }
0x1113   :  { %11270 = vrot.lane.b32.xlu1 %v11269_v7, %s12095_s26  ;;  %v16572_v7 = vld [vmem:[#allocation15_spill] sm:$0xff] }
0x1114   :  { %v4375_v44 = vmul.f32 %v16572_v7, %v16571_v48  ;;  %v4359_v21 = vmul.f32 %v16572_v7, %v16575_v5 }
0x1115   :  { %11275 = vrot.lane.b32.xlu0 %v11274_v58, %s12095_s26  ;;  %v11309_v58 = vpack.i.bf16 %v4358_v47, %v4357_v23  ;;  %v16587_v47 = vld [vmem:[#allocation81_spill] sm:$0xff] }
0x1116   :  { %v11319_v10 = vpack.i.bf16 %v4360_v30, %v4359_v21  ;;  %v16589_v21 = vld [vmem:[#allocation40_spill] sm:$0xff] }
0x1117   :  { %11280 = vrot.lane.b32.xlu1 %v11279_v35, %s12095_s26  ;;  %v11314_v35 = vpack.i.bf16 %v4376_v61, %v4375_v44  ;;  %v16588_v44 = vld [vmem:[#allocation41_spill] sm:$0xff]  ;;  %v4381_v30 = vmul.f32 %v16566_v19, %v16589_v21 }
0x1118   :  { %v4364_v61 = vmul.f32 %v16586_v59, %v16588_v44 }
0x1119   :  { %11285 = vrot.lane.b32.xlu0 %v11284_v62, %s12095_s26  ;;  %v16580_v62 = vld [vmem:[#allocation16_spill] sm:$0xff] }
0x111a   :  { %v4378_v55 = vmul.f32 %v16580_v62, %v16579_v1 }
0x111b   :  { %11290 = vrot.lane.b32.xlu1 %v11289_v60, %s12095_s26  ;;  %v16582_v60 = vld [vmem:[#allocation39_spill] sm:$0xff] }
0x111c   :  { %v4362_v26 = vmul.f32 %v16580_v62, %v16582_v60  ;;  %v11324_v54 = vpack.i.bf16 %v4378_v55, %v4377_v11 }
0x111d   :  { %11295 = vrot.lane.b32.xlu0 %v11294_v18, %s12095_s26  ;;  %v4379_v18 = vmul.f32 %v16584_v33, %v16583_v46 }
0x111e   :  { %v11329_v23 = vpack.i.bf16 %v4362_v26, %v4361_v13  ;;  %v16592_v26 = vld [vmem:[#allocation84_spill] sm:$0xff] }
0x111f   :  { %11300 = vrot.lane.b32.xlu1 %v11299_v36, %s12095_s26  ;;  %v4380_v36 = vmul.f32 %v16586_v59, %v16585_v9 }
0x1121   :  { %11305 = vrot.lane.b32.xlu0 %v11304_v6, %s12096_s3  ;;  %v4363_v6 = vmul.f32 %v16584_v33, %v16587_v47 }
0x1123   :  { %11310 = vrot.lane.b32.xlu1 %v11309_v58, %s12096_s3  ;;  %v11334_v58 = vpack.i.bf16 %v4380_v36, %v4379_v18  ;;  %v11339_v55 = vpack.i.bf16 %v4364_v61, %v4363_v6  ;;  %v16594_v36 = vld [vmem:[#allocation86_spill] sm:$0xff]  ;;  %v16596_v61 = vld [vmem:[#allocation88_spill] sm:$0xff] }
0x1124   :  { %v4384_v47 = vmul.f32 %v16574_v49, %v16594_v36 }
0x1125   :  { %11315 = vrot.lane.b32.xlu0 %v11314_v35, %s12096_s3  ;;  %v16590_v35 = vld [vmem:[#allocation82_spill] sm:$0xff] }
0x1126   :  { %v4382_v11 = vmul.f32 %v16568_v27, %v16590_v35 }
0x1127   :  { %11320 = vrot.lane.b32.xlu1 %v11319_v10, %s12096_s3  ;;  %v16591_v10 = vld [vmem:[#allocation83_spill] sm:$0xff] }
0x1128   :  { %v4365_v13 = vmul.f32 %v16566_v19, %v16591_v10  ;;  %v11344_v44 = vpack.i.bf16 %v4382_v11, %v4381_v30  ;;  %v4368_v19 = vmul.f32 %v16574_v49, %v16596_v61  ;;  %v16598_v11 = vld [vmem:[#allocation90_spill] sm:$0xff] }
0x1129   :  { %11325 = vrot.lane.b32.xlu0 %v11324_v54, %s12096_s3  ;;  %v4366_v54 = vmul.f32 %v16568_v27, %v16592_v26  ;;  %v4386_v26 = vmul.f32 %v16580_v62, %v16598_v11 }
0x112b   :  { %11330 = vrot.lane.b32.xlu1 %v11329_v23, %s12096_s3  ;;  %v16593_v23 = vld [vmem:[#allocation85_spill] sm:$0xff]  ;;  %v11349_v35 = vpack.i.bf16 %v4366_v54, %v4365_v13  ;;  %v16600_v54 = vld [vmem:[#allocation92_spill] sm:$0xff] }
0x112c   :  { %v4383_v18 = vmul.f32 %v16572_v7, %v16593_v23 }
0x112d   :  { %11335 = vrot.lane.b32.xlu0 %v11334_v58, %s12096_s3  ;;  %v16595_v58 = vld [vmem:[#allocation87_spill] sm:$0xff] }
0x112e   :  { %v4367_v6 = vmul.f32 %v16572_v7, %v16595_v58  ;;  %v11354_v27 = vpack.i.bf16 %v4384_v47, %v4383_v18  ;;  %v4370_v7 = vmul.f32 %v16580_v62, %v16600_v54  ;;  %v16602_v18 = vld [vmem:[#allocation94_spill] sm:$0xff] }
0x112f   :  { %11340 = vrot.lane.b32.xlu1 %v11339_v55, %s12096_s3  ;;  %v16597_v55 = vld [vmem:[#allocation89_spill] sm:$0xff]  ;;  %v4388_v61 = vmul.f32 %v16586_v59, %v16602_v18 }
0x1130   :  { %v4385_v30 = vmul.f32 %v16578_v53, %v16597_v55  ;;  %v11359_v10 = vpack.i.bf16 %v4368_v19, %v4367_v6  ;;  %v16604_v19 = vld [vmem:[#allocation96_spill] sm:$0xff] }
0x1131   :  { %11345 = vrot.lane.b32.xlu0 %v11344_v44, %s12096_s3  ;;  %v16599_v44 = vld [vmem:[#allocation91_spill] sm:$0xff] }
0x1132   :  { %v4369_v13 = vmul.f32 %v16578_v53, %v16599_v44  ;;  %v11364_v49 = vpack.i.bf16 %v4386_v26, %v4385_v30  ;;  %v4372_v53 = vmul.f32 %v16586_v59, %v16604_v19 }
0x1133   :  { %11350 = vrot.lane.b32.xlu1 %v11349_v35, %s12096_s3  ;;  %v16601_v35 = vld [vmem:[#allocation93_spill] sm:$0xff] }
0x1134   :  { %v4387_v47 = vmul.f32 %v16584_v33, %v16601_v35  ;;  %v11369_v58 = vpack.i.bf16 %v4370_v7, %v4369_v13 }
0x1135   :  { %11355 = vrot.lane.b32.xlu0 %v11354_v27, %s12096_s3  ;;  %v16603_v27 = vld [vmem:[#allocation95_spill] sm:$0xff] }
0x1136   :  { %v4371_v6 = vmul.f32 %v16584_v33, %v16603_v27  ;;  %v11374_v62 = vpack.i.bf16 %v4388_v61, %v4387_v47 }
0x1137   :  { %11360 = vrot.lane.b32.xlu1 %v11359_v10, %s12096_s3 }
0x1138   :  { %v11379_v10 = vpack.i.bf16 %v4372_v53, %v4371_v6 }
0x1139   :  { %11365 = vrot.lane.b32.xlu0 %v11364_v49, %s12096_s3 }
0x113b   :  { %11370 = vrot.lane.b32.xlu1 %v11369_v58, %s12096_s3 }
0x113d   :  { %11375 = vrot.lane.b32.xlu0 %v11374_v62, %s12096_s3 }
0x113f   :  { %11380 = vrot.lane.b32.xlu1 %v11379_v10, %s12096_s3 }
0x116e   :  { %v11226_v26 = vpop.permute.xlu0 %11225  ;;  %v11231_v44 = vpop.permute.xlu1 %11230 }
0x116f   :  { %v11228_v30 = vunpack.i.h.bf16 %v11226_v26  ;;  %v11227_v54 = vunpack.i.l.bf16 %v11226_v26 }
0x1171   :  { %v10609_v49 = vpack.c.bf16 %v11228_v30, %v11227_v54  ;;  %v9327_v13 = vpop.f32.mrb[112].mxu0  ;;  %v11233_v54 = vunpack.i.h.bf16 %v11231_v44  ;;  %v11232_v30 = vunpack.i.l.bf16 %v11231_v44 }
0x1172   :  { %v9328_v7 = vpop.f32.mrb[113].mxu0 }
0x1173   :  { %v9329_v18 = vadd.f32 %v9328_v7, %v9327_v13  ;;  %10611 = vmatprep.subr.msk.bf16.mxu0 %vm12668_vm1, %v10609_v49 }
0x1175   :  { %v4825_v59 = vadd.f32 1e-30, %v9329_v18  ;;  %v9330_v19 = vpop.f32.mrb[114].mxu0  ;;  %v11236_v58 = vpop.permute.xlu1 %11235 }
0x1176   :  { %v9331_v61 = vpop.f32.mrb[115].mxu0  ;;  %v11238_v49 = vunpack.i.h.bf16 %v11236_v58  ;;  %v11237_v18 = vunpack.i.l.bf16 %v11236_v58 }
0x1177   :  { %11721 = vrcp.f32 %v4825_v59  ;;  %v9332_v47 = vadd.f32 %v9331_v61, %v9330_v19  ;;  %v10612_v61 = vpack.c.bf16 %v11233_v54, %v11232_v30 }
0x1179   :  { %v4830_v6 = vadd.f32 1e-30, %v9332_v47  ;;  %v9333_v53 = vpop.f32.mrb[116].mxu0  ;;  %v11241_v62 = vpop.permute.xlu1 %11240 }
0x117a   :  { %v9334_v10 = vpop.f32.mrb[117].mxu0 }
0x117b   :  { %11723 = vrcp.f32 %v4830_v6  ;;  %v9335_v26 = vadd.f32 %v9334_v10, %v9333_v53  ;;  %v11246_v27 = vpop.permute.xlu0 %11245  ;;  %v10615_v6 = vpack.c.bf16 %v11238_v49, %v11237_v18 }
0x117c   :  { %v11248_v30 = vunpack.i.h.bf16 %v11246_v27 }
0x117d   :  { %v4835_v35 = vadd.f32 1e-30, %v9335_v26  ;;  %v9336_v13 = vpop.f32.mrb[118].mxu0  ;;  %v14870_v7 = vpop.permute.xlu1 %11250 }
0x117e   :  { %v9337_v11 = vpop.f32.mrb[119].mxu0 }
0x117f   :  { %11725 = vrcp.f32 %v4835_v35  ;;  %v9338_v55 = vadd.f32 %v9337_v11, %v9336_v13  ;;  %v11256_v59 = vpop.permute.xlu0 %11255  ;;  %v11243_v11 = vunpack.i.h.bf16 %v11241_v62  ;;  %v11242_v35 = vunpack.i.l.bf16 %v11241_v62 }
0x1180   :  { %v11247_v13 = vunpack.i.l.bf16 %v11246_v27 }
0x1181   :  { %v11722_v19 = vpop.eup %11721  ;;  %v4840_v47 = vadd.f32 1e-30, %v9338_v55  ;;  %v9339_v36 = vpop.f32.mrb[120].mxu0 }
0x1182   :  { %v14872_v23 = vpop.permute.xlu1 %11260  ;;  %v9340_v53 = vpop.f32.mrb[121].mxu0  ;;  %8619 = vmatmul.mubr.msk.f32.vlgmr.msra.gmra.mrb[128].mxu0 %vm1476_vm3, %v11722_v19 }
0x1183   :  { %11727 = vrcp.f32 %v4840_v47  ;;  %v9341_v44 = vadd.f32 %v9340_v53, %v9339_v36  ;;  %10614 = vmatpush3.bf16.xpose.msk.msra.mxu0 %vm12668_vm1, %v10612_v61  ;;  %v14877_v58 = vpop.permute.xlu0 %11265  ;;  %4973 = vmatprep.mubr.f32.mxu0 %v16554_v50  ;;  %v10618_v61 = vpack.c.bf16 %v11243_v11, %v11242_v35  ;;  %v10621_v53 = vpack.c.bf16 %v11248_v30, %v11247_v13 }
0x1184   :  { %10617 = vmatprep.subr.msk.bf16.mxu0 %vm12668_vm1, %v10615_v6  ;;  %v11253_v35 = vunpack.i.h.bf16 %v14870_v7  ;;  %v11258_v13 = vunpack.i.h.bf16 %v11256_v59 }
0x1185   :  { %v11724_v55 = vpop.eup %11723  ;;  %v4845_v10 = vadd.f32 1e-30, %v9341_v44  ;;  %v9342_v26 = vpop.f32.mrb[122].mxu0 }
0x1186   :  { %v14882_v54 = vpop.permute.xlu1 %11270  ;;  %v9343_v36 = vpop.f32.mrb[123].mxu0  ;;  %8620 = vmatmul.mubr.msk.f32.gmra.mrb[130].mxu0 %vm1476_vm3, %v11724_v55 }
0x1187   :  { %11729 = vrcp.f32 %v4845_v10  ;;  %v9344_v49 = vadd.f32 %v9343_v36, %v9342_v26  ;;  %v14885_v18 = vpop.permute.xlu0 %11275  ;;  %4979 = vmatprep.mubr.f32.mxu0 %v16554_v50  ;;  %v11252_v10 = vunpack.i.l.bf16 %v14870_v7  ;;  %v11257_v36 = vunpack.i.l.bf16 %v11256_v59 }
0x1189   :  { %v11726_v19 = vpop.eup %11725  ;;  %v4850_v47 = vadd.f32 1e-30, %v9344_v49  ;;  %v9345_v6 = vpop.f32.mrb[124].mxu0  ;;  %v10627_v7 = vpack.c.bf16 %v11258_v13, %v11257_v36  ;;  %v11268_v13 = vunpack.i.h.bf16 %v14877_v58 }
0x118a   :  { %v14888_v62 = vpop.permute.xlu1 %11280  ;;  %v9346_v44 = vpop.f32.mrb[125].mxu0  ;;  %8621 = vmatmul.mubr.msk.f32.gmra.mrb[132].mxu0 %vm1476_vm3, %v11726_v19 }
0x118b   :  { %11731 = vrcp.f32 %v4850_v47  ;;  %v9347_v27 = vadd.f32 %v9346_v44, %v9345_v6  ;;  %10620 = vmatpush3.bf16.xpose.msk.msra.mxu0 %vm12668_vm1, %v10618_v61  ;;  %v14893_v55 = vpop.permute.xlu0 %11285  ;;  %4985 = vmatprep.mubr.f32.mxu0 %v16554_v50 }
0x118c   :  { %10623 = vmatprep.subr.msk.bf16.mxu0 %vm12668_vm1, %v10621_v53  ;;  %v10624_v53 = vpack.c.bf16 %v11253_v35, %v11252_v10  ;;  %v11263_v35 = vunpack.i.h.bf16 %v14872_v23  ;;  %v11262_v10 = vunpack.i.l.bf16 %v14872_v23 }
0x118d   :  { %v11728_v11 = vpop.eup %11727  ;;  %v4855_v26 = vadd.f32 1e-30, %v9347_v27 }
0x118e   :  { %v14900_v30 = vpop.permute.xlu1 %11290  ;;  %v9348_v49 = vpop.f32.mrb[126].mxu0  ;;  %8622 = vmatmul.mubr.msk.f32.gmra.mrb[134].mxu0 %vm1476_vm3, %v11728_v11  ;;  %v10630_v39 = vpack.c.bf16 %v11263_v35, %v11262_v10  ;;  %v11272_v35 = vunpack.i.l.bf16 %v14882_v54 }
0x118f   :  { %11733 = vrcp.f32 %v4855_v26  ;;  %v9349_v19 = vpop.f32.mrb[127].mxu0  ;;  %v14903_v61 = vpop.permute.xlu0 %11295  ;;  %4991 = vmatprep.mubr.f32.mxu0 %v16554_v50 }
0x1190   :  { %v9350_v47 = vadd.f32 %v9349_v19, %v9348_v49  ;;  %v11267_v19 = vunpack.i.l.bf16 %v14877_v58 }
0x1191   :  { %v11730_v6 = vpop.eup %11729 }
0x1192   :  { %v14906_v44 = vpop.permute.xlu1 %11300  ;;  %v4860_v27 = vadd.f32 1e-30, %v9350_v47  ;;  %8623 = vmatmul.mubr.msk.f32.gmra.mrb[136].mxu0 %vm1476_vm3, %v11730_v6  ;;  %v10633_v9 = vpack.c.bf16 %v11268_v13, %v11267_v19 }
0x1193   :  { %10626 = vmatpush3.bf16.xpose.msk.msra.mxu0 %vm12668_vm1, %v10624_v53  ;;  %v11306_v59 = vpop.permute.xlu0 %11305  ;;  %4997 = vmatprep.mubr.f32.mxu0 %v16554_v50 }
0x1194   :  { %11735 = vrcp.f32 %v4860_v27  ;;  %v11308_v11 = vunpack.i.h.bf16 %v11306_v59  ;;  %v11307_v26 = vunpack.i.l.bf16 %v11306_v59  ;;  %10629 = vmatprep.subr.msk.bf16.mxu0 %vm12668_vm1, %v10627_v7 }
0x1195   :  { %v11732_v49 = vpop.eup %11731 }
0x1196   :  { %v11311_v36 = vpop.permute.xlu1 %11310  ;;  %v10577_v47 = vpack.c.bf16 %v11308_v11, %v11307_v26  ;;  %8624 = vmatmul.mubr.msk.f32.gmra.mrb[138].mxu0 %vm1476_vm3, %v11732_v49 }
0x1197   :  { %v11313_v6 = vunpack.i.h.bf16 %v11311_v36  ;;  %v11312_v53 = vunpack.i.l.bf16 %v11311_v36  ;;  %v11316_v27 = vpop.permute.xlu0 %11315  ;;  %5003 = vmatprep.mubr.f32.mxu0 %v16554_v50 }
0x1198   :  { %v11318_v7 = vunpack.i.h.bf16 %v11316_v27  ;;  %v11317_v21 = vunpack.i.l.bf16 %v11316_v27  ;;  %10578 = vmatprep.subr.bf16.mxu1 %v10577_v47 }
0x1199   :  { %v10579_v59 = vpack.c.bf16 %v11313_v6, %v11312_v53  ;;  %v11734_v60 = vpop.eup %11733 }
0x119a   :  { %v11321_v23 = vpop.permute.xlu1 %11320  ;;  %v10581_v46 = vpack.c.bf16 %v11318_v7, %v11317_v21  ;;  %8625 = vmatmul.mubr.msk.f32.gmra.mrb[140].mxu0 %vm1476_vm3, %v11734_v60  ;;  %v11273_v21 = vunpack.i.h.bf16 %v14882_v54  ;;  %v11278_v60 = vunpack.i.h.bf16 %v14885_v18 }
0x119b   :  { %v11323_v25 = vunpack.i.h.bf16 %v11321_v23  ;;  %v11322_v5 = vunpack.i.l.bf16 %v11321_v23  ;;  %10580 = vmatpush3.bf16.msra.mxu1 %v10579_v59  ;;  %10632 = vmatpush3.bf16.xpose.msk.msra.mxu0 %vm12668_vm1, %v10630_v39  ;;  %v11326_v58 = vpop.permute.xlu0 %11325  ;;  %v11277_v39 = vunpack.i.l.bf16 %v14885_v18 }
0x119c   :  { %5009 = vmatprep.mubr.f32.mxu0 %v16554_v50  ;;  %v11328_v26 = vunpack.i.h.bf16 %v11326_v58  ;;  %v11327_v49 = vunpack.i.l.bf16 %v11326_v58  ;;  %10635 = vmatprep.subr.msk.bf16.mxu0 %vm12668_vm1, %v10633_v9  ;;  %v10636_v54 = vpack.c.bf16 %v11273_v21, %v11272_v35  ;;  %v11288_v21 = vunpack.i.h.bf16 %v14893_v55 }
0x119d   :  { %v10583_v11 = vpack.c.bf16 %v11323_v25, %v11322_v5  ;;  %10582 = vmatprep.subr.bf16.mxu1 %v10581_v46  ;;  %v10639_v53 = vpack.c.bf16 %v11278_v60, %v11277_v39  ;;  %v11287_v60 = vunpack.i.l.bf16 %v14893_v55 }
0x119e   :  { %v11331_v10 = vpop.permute.xlu1 %11330  ;;  %v11736_v13 = vpop.eup %11735  ;;  %v10585_v36 = vpack.c.bf16 %v11328_v26, %v11327_v49  ;;  %v11283_v26 = vunpack.i.h.bf16 %v14888_v62  ;;  %v11282_v49 = vunpack.i.l.bf16 %v14888_v62 }
0x119f   :  { %v11333_v19 = vunpack.i.h.bf16 %v11331_v10  ;;  %v11332_v47 = vunpack.i.l.bf16 %v11331_v10  ;;  %10584 = vmatpush3.bf16.msra.mxu1 %v10583_v11  ;;  %8626 = vmatmul.mubr.msk.f32.gmra.mrb[142].mxu0 %vm1476_vm3, %v11736_v13  ;;  %v11336_v5 = vpop.permute.xlu0 %11335 }
0x11a0   :  { %9439 = vmatprep.mubr.msk.f32.mxu0 %vm189_vm0, %v14689_v15  ;;  %v11338_v46 = vunpack.i.h.bf16 %v11336_v5  ;;  %v11337_v9 = vunpack.i.l.bf16 %v11336_v5  ;;  %10586 = vmatprep.subr.bf16.mxu1 %v10585_v36 }
0x11a1   :  { %v10587_v25 = vpack.c.bf16 %v11333_v19, %v11332_v47 }
0x11a2   :  { %v11341_v6 = vpop.permute.xlu1 %11340  ;;  %v10589_v27 = vpack.c.bf16 %v11338_v46, %v11337_v9  ;;  %v10645_v9 = vpack.c.bf16 %v11288_v21, %v11287_v60 }
0x11a3   :  { %v11343_v59 = vunpack.i.h.bf16 %v11341_v6  ;;  %v11342_v18 = vunpack.i.l.bf16 %v11341_v6  ;;  %10588 = vmatpush3.bf16.msra.mxu1 %v10587_v25  ;;  %10638 = vmatpush3.bf16.xpose.msk.msra.mxu0 %vm12668_vm1, %v10636_v54  ;;  %v11346_v7 = vpop.permute.xlu0 %11345  ;;  %v10642_v25 = vpack.c.bf16 %v11283_v26, %v11282_v49 }
0x11a4   :  { %v11348_v58 = vunpack.i.h.bf16 %v11346_v7  ;;  %v11347_v11 = vunpack.i.l.bf16 %v11346_v7  ;;  %10641 = vmatprep.subr.msk.bf16.mxu0 %vm12668_vm1, %v10639_v53  ;;  %10590 = vmatprep.subr.bf16.mxu1 %v10589_v27  ;;  %v11292_v7 = vunpack.i.l.bf16 %v14900_v30 }
0x11a5   :  { %v10591_v23 = vpack.c.bf16 %v11343_v59, %v11342_v18  ;;  %v11293_v18 = vunpack.i.h.bf16 %v14900_v30 }
0x11a6   :  { %v11351_v35 = vpop.permute.xlu1 %11350  ;;  %v10593_v10 = vpack.c.bf16 %v11348_v58, %v11347_v11  ;;  %v11297_v11 = vunpack.i.l.bf16 %v14903_v61 }
0x11a7   :  { %v11353_v13 = vunpack.i.h.bf16 %v11351_v35  ;;  %v11352_v39 = vunpack.i.l.bf16 %v11351_v35  ;;  %10592 = vmatpush3.bf16.msra.mxu1 %v10591_v23  ;;  %v11356_v36 = vpop.permute.xlu0 %11355  ;;  %v11298_v23 = vunpack.i.h.bf16 %v14903_v61 }
0x11a8   :  { %v11358_v47 = vunpack.i.h.bf16 %v11356_v36  ;;  %v11357_v5 = vunpack.i.l.bf16 %v11356_v36  ;;  %10594 = vmatprep.subr.bf16.mxu1 %v10593_v10 }
0x11a9   :  { %v10595_v19 = vpack.c.bf16 %v11353_v13, %v11352_v39  ;;  %v10648_v39 = vpack.c.bf16 %v11293_v18, %v11292_v7  ;;  %v16608_v7 = vld [vmem:[#allocation51_spill] sm:$0xff] }
0x11aa   :  { %v11361_v46 = vpop.permute.xlu1 %11360  ;;  %v10597_v54 = vpack.c.bf16 %v11358_v47, %v11357_v5 }
0x11ab   :  { %v11363_v6 = vunpack.i.h.bf16 %v11361_v46  ;;  %v11362_v62 = vunpack.i.l.bf16 %v11361_v46  ;;  %10596 = vmatpush3.bf16.msra.mxu1 %v10595_v19  ;;  %10644 = vmatpush3.bf16.xpose.msk.msra.mxu0 %vm12668_vm1, %v10642_v25  ;;  %v11366_v55 = vpop.permute.xlu0 %11365  ;;  %v10651_v19 = vpack.c.bf16 %v11298_v23, %v11297_v11  ;;  %v11303_v25 = vunpack.i.h.bf16 %v14906_v44  ;;  %v16609_v11 = vld [vmem:[#allocation52_spill] sm:$0xff] }
0x11ac   :  { %v11368_v27 = vunpack.i.h.bf16 %v11366_v55  ;;  %v11367_v59 = vunpack.i.l.bf16 %v11366_v55  ;;  %10647 = vmatprep.subr.msk.bf16.mxu0 %vm12668_vm1, %v10645_v9  ;;  %10598 = vmatprep.subr.bf16.mxu1 %v10597_v54  ;;  %v11302_v46 = vunpack.i.l.bf16 %v14906_v44  ;;  %v16606_v9 = vld [vmem:[#allocation49_spill] sm:$0xff] }
0x11ad   :  { %v10599_v53 = vpack.c.bf16 %v11363_v6, %v11362_v62 }
0x11ae   :  { %v11371_v58 = vpop.permute.xlu1 %11370  ;;  %v10601_v26 = vpack.c.bf16 %v11368_v27, %v11367_v59  ;;  %v10654_v54 = vpack.c.bf16 %v11303_v25, %v11302_v46  ;;  %v16607_v59 = vld [vmem:[#allocation50_spill] sm:$0xff]  ;;  %v16617_v25 = vld [vmem:[#allocation60_spill] sm:$0xff] }
0x11af   :  { %v11373_v49 = vunpack.i.h.bf16 %v11371_v58  ;;  %v11372_v21 = vunpack.i.l.bf16 %v11371_v58  ;;  %10600 = vmatpush3.bf16.msra.mxu1 %v10599_v53  ;;  %v11376_v35 = vpop.permute.xlu0 %11375 }
0x11b0   :  { %v11378_v10 = vunpack.i.h.bf16 %v11376_v35  ;;  %v11377_v13 = vunpack.i.l.bf16 %v11376_v35  ;;  %10602 = vmatprep.subr.bf16.mxu1 %v10601_v26  ;;  %v16610_v26 = vld [vmem:[#allocation53_spill] sm:$0xff] }
0x11b1   :  { %v10603_v60 = vpack.c.bf16 %v11373_v49, %v11372_v21  ;;  %v16611_v21 = vld [vmem:[#allocation54_spill] sm:$0xff] }
0x11b2   :  { %v11381_v36 = vpop.permute.xlu1 %11380  ;;  %v10605_v47 = vpack.c.bf16 %v11378_v10, %v11377_v13  ;;  %v16613_v13 = vld [vmem:[#allocation56_spill] sm:$0xff] }
0x11b3   :  { %v11383_v5 = vunpack.i.h.bf16 %v11381_v36  ;;  %v11382_v30 = vunpack.i.l.bf16 %v11381_v36  ;;  %10604 = vmatpush3.bf16.msra.mxu1 %v10603_v60  ;;  %10650 = vmatpush3.bf16.xpose.msk.msra.mxu0 %vm12668_vm1, %v10648_v39  ;;  %v16612_v60 = vld [vmem:[#allocation55_spill] sm:$0xff]  ;;  %v16614_v36 = vld [vmem:[#allocation57_spill] sm:$0xff] }
0x11b4   :  { %10653 = vmatprep.subr.msk.bf16.mxu0 %vm12668_vm1, %v10651_v19  ;;  %10606 = vmatprep.subr.bf16.mxu1 %v10605_v47  ;;  %v16615_v47 = vld [vmem:[#allocation58_spill] sm:$0xff] }
0x11b5   :  { %v10607_v61 = vpack.c.bf16 %v11383_v5, %v11382_v30  ;;  %v16616_v30 = vld [vmem:[#allocation59_spill] sm:$0xff] }
0x11b7   :  { %10608 = vmatpush3.bf16.msra.mxu1 %v10607_v61 }
0x11b8   :  { %10658 = vmatprep.subr.bf16.mxu1 %v16606_v9  ;;  %v16618_v9 = vld [vmem:[#allocation61_spill] sm:$0xff] }
0x11bb   :  { %10656 = vmatpush3.bf16.xpose.msk.msra.mxu0 %vm12668_vm1, %v10654_v54 }
0x11c2   :  { %9440 = vmatmul.mubr.msk.f32.vlgmr.msra.gmra.mrb[144].mxu0 %vm189_vm0, %v14689_v15 }
0x11c3   :  { %9441 = vmatprep.mubr.msk.f32.mxu0 %vm189_vm0, %v14686_v31 }
0x11c6   :  { %9442 = vmatmul.mubr.msk.f32.gmra.mrb[146].mxu0 %vm189_vm0, %v14686_v31 }
0x11c7   :  { %9443 = vmatprep.mubr.msk.f32.mxu0 %vm189_vm0, %v14705_v57 }
0x11ca   :  { %9444 = vmatmul.mubr.msk.f32.gmra.mrb[148].mxu0 %vm189_vm0, %v14705_v57 }
0x11cb   :  { %9445 = vmatprep.mubr.msk.f32.mxu0 %vm189_vm0, %v14700_v43 }
0x11ce   :  { %9446 = vmatmul.mubr.msk.f32.gmra.mrb[150].mxu0 %vm189_vm0, %v14700_v43 }
0x11cf   :  { %9447 = vmatprep.mubr.msk.f32.mxu0 %vm189_vm0, %v14720_v38 }
0x11d2   :  { %9448 = vmatmul.mubr.msk.f32.gmra.mrb[152].mxu0 %vm189_vm0, %v14720_v38 }
0x11d3   :  { %9449 = vmatprep.mubr.msk.f32.mxu0 %vm189_vm0, %v14718_v8 }
0x11d6   :  { %9450 = vmatmul.mubr.msk.f32.gmra.mrb[154].mxu0 %vm189_vm0, %v14718_v8 }
0x11d7   :  { %9451 = vmatprep.mubr.msk.f32.mxu0 %vm189_vm0, %v14733_v14 }
0x11da   :  { %9452 = vmatmul.mubr.msk.f32.gmra.mrb[156].mxu0 %vm189_vm0, %v14733_v14 }
0x11db   :  { %9453 = vmatprep.mubr.msk.f32.mxu0 %vm189_vm0, %v14731_v40 }
0x11de   :  { %9454 = vmatmul.mubr.msk.f32.gmra.mrb[158].mxu0 %vm189_vm0, %v14731_v40 }
0x1255   :  { %v4969_v33 = vpop.f32.mrb[128].mxu0 }
0x1256   :  { %v4971_v44 = vpop.f32.mrb[129].mxu0  ;;  %v5016_v62 = vmul.f32 %v14624_v56, %v4969_v33  ;;  %v16619_v33 = vld [vmem:[#allocation62_spill] sm:$0xff] }
0x1257   :  { %v5017_v6 = vmul.f32 %v14626_v4, %v4971_v44  ;;  %v16620_v44 = vld [vmem:[#allocation63_spill] sm:$0xff] }
0x1259   :  { %v4975_v55 = vpop.f32.mrb[130].mxu0  ;;  %5224 = vmatprep.mubr.f32.mxu1 %v5017_v6 }
0x125a   :  { %v4977_v53 = vpop.f32.mrb[131].mxu0  ;;  %5225 = vmatmul.mubr.f32.vlgmr.msra.gmra.mrb[112].mxu1 %v5016_v62  ;;  %v5018_v18 = vmul.f32 %v14632_v34, %v4975_v55  ;;  %v16622_v62 = vld [vmem:[#allocation66_spill] sm:$0xff]  ;;  %v11952_v55 = vld [vmem:[#allocation6 + $0x80] sm:$0xff] }
0x125b   :  { %v5019_v27 = vmul.f32 %v14638_v42, %v4977_v53  ;;  %10660 = vmatpush3.bf16.msra.mxu1 %v16607_v59  ;;  %v11953_v59 = vld [vmem:[#allocation6 + $0x88] sm:$0xff] }
0x125c   :  { %10662 = vmatprep.subr.bf16.mxu1 %v16608_v7 }
0x125d   :  { %v4981_v23 = vpop.f32.mrb[132].mxu0  ;;  %5229 = vmatprep.mubr.f32.mxu1 %v5019_v27 }
0x125e   :  { %v4983_v58 = vpop.f32.mrb[133].mxu0  ;;  %5230 = vmatmul.mubr.f32.gmra.mrb[114].mxu1 %v5018_v18  ;;  %v5020_v56 = vmul.f32 %v14644_v63, %v4981_v23 }
0x125f   :  { %v5021_v4 = vmul.f32 %v14646_v0, %v4983_v58  ;;  %10664 = vmatpush3.bf16.msra.mxu1 %v16609_v11 }
0x1260   :  { %10666 = vmatprep.subr.bf16.mxu1 %v16610_v26 }
0x1261   :  { %v4987_v49 = vpop.f32.mrb[134].mxu0  ;;  %5234 = vmatprep.mubr.f32.mxu1 %v5021_v4  ;;  %v11955_v4 = vld [vmem:[#allocation6 + $0x98] sm:$0xff] }
0x1262   :  { %v4989_v42 = vpop.f32.mrb[135].mxu0  ;;  %5235 = vmatmul.mubr.f32.gmra.mrb[116].mxu1 %v5020_v56  ;;  %v5022_v35 = vmul.f32 %v14652_v2, %v4987_v49  ;;  %v11956_v49 = vld [vmem:[#allocation6 + $0xa0] sm:$0xff] }
0x1263   :  { %v5023_v34 = vmul.f32 %v14654_v17, %v4989_v42  ;;  %10668 = vmatpush3.bf16.msra.mxu1 %v16611_v21  ;;  %v11957_v21 = vld [vmem:[#allocation6 + $0xa8] sm:$0xff] }
0x1264   :  { %10670 = vmatprep.subr.bf16.mxu1 %v16612_v60 }
0x1265   :  { %v4993_v10 = vpop.f32.mrb[136].mxu0  ;;  %5239 = vmatprep.mubr.f32.mxu1 %v5023_v34 }
0x1266   :  { %v4995_v0 = vpop.f32.mrb[137].mxu0  ;;  %5240 = vmatmul.mubr.f32.gmra.mrb[118].mxu1 %v5022_v35  ;;  %v5024_v39 = vmul.f32 %v14660_v22, %v4993_v10 }
0x1267   :  { %v5025_v63 = vmul.f32 %v14662_v51, %v4995_v0  ;;  %10672 = vmatpush3.bf16.msra.mxu1 %v16613_v13  ;;  %v11958_v0 = vld [vmem:[#allocation6 + $0xb0] sm:$0xff] }
0x1268   :  { %10674 = vmatprep.subr.bf16.mxu1 %v16614_v36 }
0x1269   :  { %v4999_v19 = vpop.f32.mrb[138].mxu0  ;;  %5244 = vmatprep.mubr.f32.mxu1 %v5025_v63 }
0x126a   :  { %v5001_v17 = vpop.f32.mrb[139].mxu0  ;;  %5245 = vmatmul.mubr.f32.gmra.mrb[120].mxu1 %v5024_v39  ;;  %v5026_v5 = vmul.f32 %v14666_v45, %v4999_v19  ;;  %v11959_v39 = vld [vmem:[#allocation6 + $0xb8] sm:$0xff] }
0x126b   :  { %v5027_v2 = vmul.f32 %v14668_v12, %v5001_v17  ;;  %10676 = vmatpush3.bf16.msra.mxu1 %v16615_v47 }
0x126c   :  { %10678 = vmatprep.subr.bf16.mxu1 %v16616_v30  ;;  %v11961_v30 = vld [vmem:[#allocation6 + $0xc8] sm:$0xff] }
0x126d   :  { %v5005_v61 = vpop.f32.mrb[140].mxu0  ;;  %5249 = vmatprep.mubr.f32.mxu1 %v5027_v2  ;;  %v11960_v2 = vld [vmem:[#allocation6 + $0xc0] sm:$0xff] }
0x126e   :  { %v5007_v51 = vpop.f32.mrb[141].mxu0  ;;  %5250 = vmatmul.mubr.f32.gmra.mrb[122].mxu1 %v5026_v5  ;;  %v5028_v46 = vmul.f32 %v14672_v32, %v5005_v61 }
0x126f   :  { %v5029_v22 = vmul.f32 %v14674_v29, %v5007_v51  ;;  %10680 = vmatpush3.bf16.msra.mxu1 %v16617_v25  ;;  %v16621_v29 = vld [vmem:[#allocation64_spill] sm:$0xff]  ;;  %v11962_v25 = vld [vmem:[#allocation6 + $0xd0] sm:$0xff] }
0x1270   :  { %10682 = vmatprep.subr.bf16.mxu1 %v16618_v9 }
0x1271   :  { %5254 = vmatprep.mubr.f32.mxu1 %v5029_v22 }
0x1272   :  { %v5011_v12 = vpop.f32.mrb[142].mxu0  ;;  %5255 = vmatmul.mubr.f32.gmra.mrb[124].mxu1 %v5028_v46 }
0x1273   :  { %v5013_v54 = vpop.f32.mrb[143].mxu0  ;;  %10684 = vmatpush3.bf16.msra.mxu1 %v16619_v33  ;;  %v5030_v6 = vmul.f32 %v14678_v16, %v5011_v12  ;;  %v11954_v16 = vld [vmem:[#allocation6 + $0x90] sm:$0xff]  ;;  %v11963_v12 = vld [vmem:[#allocation6 + $0xd8] sm:$0xff] }
0x1274   :  { %v5031_v45 = vmul.f32 %v14680_v52, %v5013_v54  ;;  %10686 = vmatprep.subr.bf16.mxu1 %v16620_v44  ;;  %v11964_v44 = vld [vmem:[#allocation6 + $0xe0] sm:$0xff] }
0x1276   :  { %5259 = vmatprep.mubr.f32.mxu1 %v5031_v45 }
0x1277   :  { %5260 = vmatmul.mubr.f32.gmra.mrb[126].mxu1 %v5030_v6 }
0x1278   :  { %10688 = vmatpush3.bf16.msra.mxu1 %v16621_v29 }
0x1279   :  { %8667 = vmatprep.subr.msk.mxu1 %vm1501_vm2, %v16622_v62  ;;  %v11965_v62 = vld [vmem:[#allocation6 + $0xe8] sm:$0xff] }
0x1295   :  { %v5579_v32 = vpop.f32.mrb[144].mxu0 }
0x1296   :  { %v15021_v53 = vadd.f32 %v11952_v55, %v5579_v32  ;;  %v5581_v27 = vpop.f32.mrb[145].mxu0 }
0x1297   :  { %v15023_v18 = vadd.f32 %v11953_v59, %v5581_v27  ;;  %v11966_v59 = vld [vmem:[#allocation6 + $0xf0] sm:$0xff] }
0x1299   :  { %v5626_v52 = vmax.f32 %v15021_v53, %v15023_v18  ;;  %v5585_v7 = vpop.f32.mrb[146].mxu0 }
0x129a   :  { %v15027_v23 = vadd.f32 %v11954_v16, %v5585_v7  ;;  %v5587_v58 = vpop.f32.mrb[147].mxu0  ;;  %v11967_v16 = vld [vmem:[#allocation6 + $0xf8] sm:$0xff] }
0x129b   :  { %v15029_v11 = vadd.f32 %v11955_v4, %v5587_v58  ;;  %5627 = vmax.xlane.f32.xlu0 %v5626_v52 }
0x129d   :  { %v5629_v56 = vmax.f32 %v15027_v23, %v15029_v11  ;;  %v5591_v26 = vpop.f32.mrb[148].mxu0 }
0x129e   :  { %v15033_v42 = vadd.f32 %v11956_v49, %v5591_v26  ;;  %v5593_v34 = vpop.f32.mrb[149].mxu0  ;;  %v5298_v26 = vmul.f32 %v14686_v31, %v16570_v37  ;;  %v5313_v49 = vmul.f32 %v14689_v15, %v16565_v3  ;;  %v5318_v37 = vmul.f32 %v14718_v8, %v16579_v1 }
0x129f   :  { %v15035_v35 = vadd.f32 %v11957_v21, %v5593_v34  ;;  %5630 = vmax.xlane.f32.xlu1 %v5629_v56  ;;  %v5297_v56 = vmul.f32 %v14689_v15, %v16569_v41  ;;  %v5314_v34 = vmul.f32 %v14686_v31, %v16567_v28  ;;  %v5317_v41 = vmul.f32 %v14720_v38, %v16577_v20  ;;  %v16623_v28 = vld [vmem:[#allocation74_spill] sm:$0xff] }
0x12a1   :  { %v5632_v60 = vmax.f32 %v15033_v42, %v15035_v35  ;;  %v5597_v10 = vpop.f32.mrb[150].mxu0  ;;  %v11389_v21 = vpack.i.bf16 %v5298_v26, %v5297_v56 }
0x12a2   :  { %v15039_v63 = vadd.f32 %v11958_v0, %v5597_v10  ;;  %v5599_v13 = vpop.f32.mrb[151].mxu0  ;;  %v5316_v10 = vmul.f32 %v14700_v43, %v16573_v24  ;;  %v11384_v0 = vpack.i.bf16 %v5314_v34, %v5313_v49  ;;  %v16625_v24 = vld [vmem:[#allocation79_spill] sm:$0xff] }
0x12a3   :  { %v15041_v36 = vadd.f32 %v11959_v39, %v5599_v13  ;;  %5633 = vmax.xlane.f32.xlu0 %v5632_v60  ;;  %v5315_v60 = vmul.f32 %v14705_v57, %v16571_v48  ;;  %v5299_v13 = vmul.f32 %v14705_v57, %v16623_v28  ;;  %v16624_v39 = vld [vmem:[#allocation75_spill] sm:$0xff] }
0x12a4   :  { %v5300_v48 = vmul.f32 %v14700_v43, %v16624_v39  ;;  %v16635_v49 = vld [vmem:[#allocation83_spill] sm:$0xff] }
0x12a5   :  { %v5635_v19 = vmax.f32 %v15039_v63, %v15041_v36  ;;  %v5603_v17 = vpop.f32.mrb[152].mxu0  ;;  %v11394_v3 = vpack.i.bf16 %v5316_v10, %v5315_v60  ;;  %v5305_v34 = vmul.f32 %v14689_v15, %v16635_v49 }
0x12a6   :  { %v15045_v47 = vadd.f32 %v11960_v2, %v5603_v17  ;;  %v5605_v5 = vpop.f32.mrb[153].mxu0  ;;  %v5319_v17 = vmul.f32 %v14733_v14, %v16625_v24  ;;  %v16626_v2 = vld [vmem:[#allocation80_spill] sm:$0xff]  ;;  %v11399_v1 = vpack.i.bf16 %v5300_v48, %v5299_v13  ;;  %v16639_v13 = vld [vmem:[#allocation87_spill] sm:$0xff] }
0x12a7   :  { %v15047_v61 = vadd.f32 %v11961_v30, %v5605_v5  ;;  %5636 = vmax.xlane.f32.xlu0 %v5635_v19  ;;  %v11404_v19 = vpack.i.bf16 %v5318_v37, %v5317_v41  ;;  %v5320_v20 = vmul.f32 %v14731_v40, %v16626_v2  ;;  %v16627_v5 = vld [vmem:[#allocation78_spill] sm:$0xff]  ;;  %v5307_v39 = vmul.f32 %v14705_v57, %v16639_v13  ;;  %v16640_v48 = vld [vmem:[#allocation88_spill] sm:$0xff] }
0x12a8   :  { %v5301_v30 = vmul.f32 %v14720_v38, %v16627_v5  ;;  %v16638_v37 = vld [vmem:[#allocation90_spill] sm:$0xff] }
0x12a9   :  { %v5638_v51 = vmax.f32 %v15045_v47, %v15047_v61  ;;  %v5609_v22 = vpop.f32.mrb[154].mxu0 }
0x12aa   :  { %v15051_v46 = vadd.f32 %v11962_v25, %v5609_v22  ;;  %v5611_v9 = vpop.f32.mrb[155].mxu0  ;;  %v11414_v25 = vpack.i.bf16 %v5320_v20, %v5319_v17  ;;  %v16642_v17 = vld [vmem:[#allocation94_spill] sm:$0xff] }
0x12ab   :  { %v15053_v54 = vadd.f32 %v11963_v12, %v5611_v9  ;;  %5639 = vmax.xlane.f32.xlu0 %v5638_v51  ;;  %v16628_v51 = vld [vmem:[#allocation39_spill] sm:$0xff]  ;;  %v16629_v9 = vld [vmem:[#allocation40_spill] sm:$0xff]  ;;  %v5328_v2 = vmul.f32 %v14731_v40, %v16642_v17 }
0x12ac   :  { %v5302_v22 = vmul.f32 %v14718_v8, %v16628_v51  ;;  %v5321_v12 = vmul.f32 %v14689_v15, %v16629_v9  ;;  %v5308_v15 = vmul.f32 %v14700_v43, %v16640_v48  ;;  %v16646_v9 = vld [vmem:[#allocation96_spill] sm:$0xff] }
0x12ad   :  { %v5641_v33 = vmax.f32 %v15051_v46, %v15053_v54  ;;  %v5615_v45 = vpop.f32.mrb[156].mxu0 }
0x12ae   :  { %v15057_v6 = vadd.f32 %v11964_v44, %v5615_v45  ;;  %v5617_v29 = vpop.f32.mrb[157].mxu0  ;;  %v11409_v44 = vpack.i.bf16 %v5302_v22, %v5301_v30  ;;  %v11439_v20 = vpack.i.bf16 %v5308_v15, %v5307_v39  ;;  %v16644_v30 = vld [vmem:[#allocation92_spill] sm:$0xff]  ;;  %v16645_v22 = vld [vmem:[#allocation95_spill] sm:$0xff] }
0x12af   :  { %v15059_v32 = vadd.f32 %v11965_v62, %v5617_v29  ;;  %5642 = vmax.xlane.f32.xlu1 %v5641_v33  ;;  %v16630_v33 = vld [vmem:[#allocation82_spill] sm:$0xff]  ;;  %v16631_v29 = vld [vmem:[#allocation81_spill] sm:$0xff] }
0x12b0   :  { %v5322_v45 = vmul.f32 %v14686_v31, %v16630_v33  ;;  %v5303_v62 = vmul.f32 %v14733_v14, %v16631_v29 }
0x12b1   :  { %v5644_v55 = vmax.f32 %v15057_v6, %v15059_v32  ;;  %v5621_v27 = vpop.f32.mrb[158].mxu0 }
0x12b2   :  { %v15063_v52 = vadd.f32 %v11966_v59, %v5621_v27  ;;  %v5623_v7 = vpop.f32.mrb[159].mxu0  ;;  %v11424_v59 = vpack.i.bf16 %v5322_v45, %v5321_v12  ;;  %v5312_v12 = vmul.f32 %v14731_v40, %v16646_v9 }
0x12b3   :  { %v15065_v58 = vadd.f32 %v11967_v16, %v5623_v7  ;;  %5645 = vmax.xlane.f32.xlu0 %v5644_v55  ;;  %v16632_v55 = vld [vmem:[#allocation41_spill] sm:$0xff] }
0x12b4   :  { %v5304_v27 = vmul.f32 %v14731_v40, %v16632_v55  ;;  %v16633_v7 = vld [vmem:[#allocation85_spill] sm:$0xff] }
0x12b5   :  { %v5647_v4 = vmax.f32 %v15063_v52, %v15065_v58  ;;  %v5323_v16 = vmul.f32 %v14705_v57, %v16633_v7  ;;  %v5310_v57 = vmul.f32 %v14718_v8, %v16644_v30 }
0x12b6   :  { %v11419_v26 = vpack.i.bf16 %v5304_v27, %v5303_v62 }
0x12b7   :  { %5648 = vmax.xlane.f32.xlu1 %v5647_v4  ;;  %v16634_v4 = vld [vmem:[#allocation86_spill] sm:$0xff] }
0x12b8   :  { %v5324_v56 = vmul.f32 %v14700_v43, %v16634_v4 }
0x12ba   :  { %v11434_v10 = vpack.i.bf16 %v5324_v56, %v5323_v16 }
0x12c8   :  { %11390 = vrot.lane.b32.xlu1 %v11389_v21, %s12096_s3  ;;  %v16636_v21 = vld [vmem:[#allocation84_spill] sm:$0xff] }
0x12c9   :  { %11385 = vrot.lane.b32.xlu0 %v11384_v0, %s12096_s3  ;;  %v5306_v60 = vmul.f32 %v14686_v31, %v16636_v21  ;;  %v16637_v0 = vld [vmem:[#allocation89_spill] sm:$0xff] }
0x12ca   :  { %v5325_v41 = vmul.f32 %v14720_v38, %v16637_v0  ;;  %v16641_v31 = vld [vmem:[#allocation93_spill] sm:$0xff] }
0x12cb   :  { %v11429_v28 = vpack.i.bf16 %v5306_v60, %v5305_v34  ;;  %v5327_v24 = vmul.f32 %v14733_v14, %v16641_v31 }
0x12cc   :  { %11395 = vrot.lane.b32.xlu1 %v11394_v3, %s12096_s3  ;;  %v5326_v3 = vmul.f32 %v14718_v8, %v16638_v37 }
0x12cd   :  { %11405 = vrot.lane.b32.xlu0 %v11404_v19, %s12096_s3  ;;  %v11454_v51 = vpack.i.bf16 %v5328_v2, %v5327_v24  ;;  %v11968_v24 = vld [vmem:[%s16106_s16] sm:$0xff] }
0x12ce   :  { %v11444_v19 = vpack.i.bf16 %v5326_v3, %v5325_v41 }
0x12d0   :  { %11400 = vrot.lane.b32.xlu1 %v11399_v1, %s12096_s3  ;;  %v16643_v1 = vld [vmem:[#allocation91_spill] sm:$0xff] }
0x12d1   :  { %11415 = vrot.lane.b32.xlu0 %v11414_v25, %s12096_s3  ;;  %v5309_v5 = vmul.f32 %v14720_v38, %v16643_v1  ;;  %v5311_v25 = vmul.f32 %v14733_v14, %v16645_v22 }
0x12d3   :  { %v11449_v43 = vpack.i.bf16 %v5310_v57, %v5309_v5  ;;  %v11459_v33 = vpack.i.bf16 %v5312_v12, %v5311_v25 }
0x12d4   :  { %11410 = vrot.lane.b32.xlu1 %v11409_v44, %s12096_s3 }
0x12d5   :  { %11425 = vrot.lane.b32.xlu0 %v11424_v59, %s12096_s3 }
0x12d8   :  { %11420 = vrot.lane.b32.xlu1 %v11419_v26, %s12096_s3 }
0x12d9   :  { %11435 = vrot.lane.b32.xlu0 %v11434_v10, %s12096_s3 }
0x12dc   :  { %11430 = vrot.lane.b32.xlu1 %v11429_v28, %s12096_s3 }
0x12dd   :  { %11445 = vrot.lane.b32.xlu0 %v11444_v19, %s12096_s3 }
0x12e0   :  { %11440 = vrot.lane.b32.xlu1 %v11439_v20, %s12096_s3 }
0x12e1   :  { %11455 = vrot.lane.b32.xlu0 %v11454_v51, %s12096_s3 }
0x12e4   :  { %11450 = vrot.lane.b32.xlu1 %v11449_v43, %s12096_s3 }
0x12e8   :  { %11460 = vrot.lane.b32.xlu1 %v11459_v33, %s12096_s3 }
0x1328   :  { %v5628_v38 = vpop.xlane.xlu0 %5627 }
0x1329   :  { %v5650_v8 = vsub.f32 %v15021_v53, %v5628_v38  ;;  %v5651_v45 = vsub.f32 %v15023_v18, %v5628_v38 }
0x132b   :  { %v5666_v44 = vmul.f32 1.442695, %v5650_v8  ;;  %v5668_v29 = vmul.f32 1.442695, %v5651_v45 }
0x132c   :  { %v5631_v62 = vpop.xlane.xlu1 %5630 }
0x132d   :  { %11737 = vpow2.f32 %v5666_v44  ;;  %v5652_v55 = vsub.f32 %v15027_v23, %v5631_v62  ;;  %v5653_v14 = vsub.f32 %v15029_v11, %v5631_v62  ;;  %v9383_v27 = vpop.f32.mrb[112].mxu1 }
0x132e   :  { %11739 = vpow2.f32 %v5668_v29  ;;  %v9384_v40 = vpop.f32.mrb[113].mxu1 }
0x132f   :  { %v5670_v59 = vmul.f32 1.442695, %v5652_v55  ;;  %v5672_v7 = vmul.f32 1.442695, %v5653_v14  ;;  %v15153_v16 = vadd.f32 %v9384_v40, %v9383_v27 }
0x1330   :  { %v5634_v4 = vpop.xlane.xlu0 %5633 }
0x1331   :  { %11741 = vpow2.f32 %v5670_v59  ;;  %v5654_v53 = vsub.f32 %v15033_v42, %v5634_v4  ;;  %v5655_v18 = vsub.f32 %v15035_v35, %v5634_v4  ;;  %v9386_v56 = vpop.f32.mrb[114].mxu1 }
0x1332   :  { %11743 = vpow2.f32 %v5672_v7  ;;  %v9387_v26 = vpop.f32.mrb[115].mxu1 }
0x1333   :  { %v5674_v49 = vmul.f32 1.442695, %v5654_v53  ;;  %v5676_v23 = vmul.f32 1.442695, %v5655_v18  ;;  %v15157_v34 = vadd.f32 %v9387_v26, %v9386_v56 }
0x1334   :  { %v5637_v11 = vpop.xlane.xlu0 %5636 }
0x1335   :  { %11745 = vpow2.f32 %v5674_v49  ;;  %v5656_v21 = vsub.f32 %v15039_v63, %v5637_v11  ;;  %v5657_v60 = vsub.f32 %v15041_v36, %v5637_v11  ;;  %v9389_v10 = vpop.f32.mrb[116].mxu1 }
0x1336   :  { %11747 = vpow2.f32 %v5676_v23  ;;  %v9390_v0 = vpop.f32.mrb[117].mxu1 }
0x1337   :  { %v15161_v41 = vpop.eup %11737  ;;  %v5678_v42 = vmul.f32 1.442695, %v5656_v21  ;;  %v5680_v35 = vmul.f32 1.442695, %v5657_v60  ;;  %v15163_v37 = vadd.f32 %v9390_v0, %v9389_v10 }
0x1338   :  { %v15165_v3 = vpop.eup %11739  ;;  %v5640_v28 = vpop.xlane.xlu0 %5639 }
0x1339   :  { %11749 = vpow2.f32 %v5678_v42  ;;  %5762 = vmatprep.mubr.f32.mxu1 %v15165_v3  ;;  %v5658_v13 = vsub.f32 %v15045_v47, %v5640_v28  ;;  %v5659_v63 = vsub.f32 %v15047_v61, %v5640_v28  ;;  %v9392_v36 = vpop.f32.mrb[118].mxu1 }
0x133a   :  { %11751 = vpow2.f32 %v5680_v35  ;;  %5763 = vmatmul.mubr.f32.vlgmr.msra.gmra.mrb[128].mxu1 %v15161_v41  ;;  %v9393_v39 = vpop.f32.mrb[119].mxu1 }
0x133b   :  { %v15171_v48 = vpop.eup %11741  ;;  %v5682_v15 = vmul.f32 1.442695, %v5658_v13  ;;  %v5684_v19 = vmul.f32 1.442695, %v5659_v63  ;;  %v15173_v31 = vadd.f32 %v9393_v39, %v9392_v36  ;;  %8668 = vmatpush1.msk.msra.mxu1 %vm1501_vm2, %v11968_v24 }
0x133c   :  { %v15179_v47 = vpop.eup %11743  ;;  %v5643_v61 = vpop.xlane.xlu1 %5642 }
0x133d   :  { %11753 = vpow2.f32 %v5682_v15  ;;  %v5660_v17 = vsub.f32 %v15051_v46, %v5643_v61  ;;  %v5661_v2 = vsub.f32 %v15053_v54, %v5643_v61  ;;  %5767 = vmatprep.mubr.f32.mxu1 %v15179_v47  ;;  %v9395_v20 = vpop.f32.mrb[120].mxu1 }
0x133e   :  { %11755 = vpow2.f32 %v5684_v19  ;;  %5768 = vmatmul.mubr.f32.gmra.mrb[130].mxu1 %v15171_v48  ;;  %v9396_v1 = vpop.f32.mrb[121].mxu1 }
0x133f   :  { %v15185_v5 = vpop.eup %11745  ;;  %v5686_v30 = vmul.f32 1.442695, %v5660_v17  ;;  %v5688_v57 = vmul.f32 1.442695, %v5661_v2  ;;  %v15187_v51 = vadd.f32 %v9396_v1, %v9395_v20 }
0x1340   :  { %v15189_v43 = vpop.eup %11747  ;;  %v5646_v22 = vpop.xlane.xlu0 %5645 }
0x1341   :  { %11757 = vpow2.f32 %v5686_v30  ;;  %5772 = vmatprep.mubr.f32.mxu1 %v15189_v43  ;;  %v5662_v46 = vsub.f32 %v15057_v6, %v5646_v22  ;;  %v5663_v54 = vsub.f32 %v15059_v32, %v5646_v22  ;;  %v9398_v25 = vpop.f32.mrb[122].mxu1 }
0x1342   :  { %11759 = vpow2.f32 %v5688_v57  ;;  %5773 = vmatmul.mubr.f32.gmra.mrb[132].mxu1 %v15185_v5  ;;  %v9399_v9 = vpop.f32.mrb[123].mxu1 }
0x1343   :  { %v15195_v12 = vpop.eup %11749  ;;  %v5690_v33 = vmul.f32 1.442695, %v5662_v46  ;;  %v5692_v38 = vmul.f32 1.442695, %v5663_v54  ;;  %v15197_v8 = vadd.f32 %v9399_v9, %v9398_v25 }
0x1344   :  { %v15199_v45 = vpop.eup %11751  ;;  %v5649_v44 = vpop.xlane.xlu1 %5648 }
0x1345   :  { %v11386_v29 = vpop.permute.xlu0 %11385  ;;  %11761 = vpow2.f32 %v5690_v33  ;;  %v5664_v6 = vsub.f32 %v15063_v52, %v5649_v44  ;;  %v5665_v32 = vsub.f32 %v15065_v58, %v5649_v44  ;;  %5777 = vmatprep.mubr.f32.mxu1 %v15199_v45  ;;  %v9401_v55 = vpop.f32.mrb[124].mxu1 }
0x1346   :  { %v11388_v62 = vunpack.i.h.bf16 %v11386_v29  ;;  %11763 = vpow2.f32 %v5692_v38  ;;  %v11387_v14 = vunpack.i.l.bf16 %v11386_v29  ;;  %5778 = vmatmul.mubr.f32.gmra.mrb[134].mxu1 %v15195_v12  ;;  %v9402_v27 = vpop.f32.mrb[125].mxu1 }
0x1347   :  { %v15205_v40 = vpop.eup %11753  ;;  %v5694_v59 = vmul.f32 1.442695, %v5664_v6  ;;  %v5696_v7 = vmul.f32 1.442695, %v5665_v32  ;;  %v15207_v4 = vadd.f32 %v9402_v27, %v9401_v55 }
0x1348   :  { %v15209_v53 = vpop.eup %11755  ;;  %v10689_v52 = vpack.c.bf16 %v11388_v62, %v11387_v14  ;;  %v11391_v18 = vpop.permute.xlu1 %11390 }
0x1349   :  { %v11406_v58 = vpop.permute.xlu0 %11405  ;;  %11765 = vpow2.f32 %v5694_v59  ;;  %v11393_v56 = vunpack.i.h.bf16 %v11391_v18  ;;  %v11392_v26 = vunpack.i.l.bf16 %v11391_v18  ;;  %5782 = vmatprep.mubr.f32.mxu1 %v15209_v53 }
0x134a   :  { %11767 = vpow2.f32 %v5696_v7  ;;  %5783 = vmatmul.mubr.f32.gmra.mrb[136].mxu1 %v15205_v40  ;;  %10690 = vmatprep.subr.bf16.mxu0 %v10689_v52  ;;  %v9404_v49 = vpop.f32.mrb[126].mxu1  ;;  %v11408_v39 = vunpack.i.h.bf16 %v11406_v58  ;;  %v11407_v15 = vunpack.i.l.bf16 %v11406_v58 }
0x134b   :  { %v15213_v23 = vpop.eup %11757  ;;  %v10691_v11 = vpack.c.bf16 %v11393_v56, %v11392_v26  ;;  %v9405_v21 = vpop.f32.mrb[127].mxu1 }
0x134c   :  { %v15215_v60 = vpop.eup %11759  ;;  %v15217_v10 = vadd.f32 %v9405_v21, %v9404_v49  ;;  %v11396_v0 = vpop.permute.xlu1 %11395  ;;  %v10697_v30 = vpack.c.bf16 %v11408_v39, %v11407_v15 }
0x134d   :  { %v11416_v42 = vpop.permute.xlu0 %11415  ;;  %v11398_v35 = vunpack.i.h.bf16 %v11396_v0  ;;  %v11397_v28 = vunpack.i.l.bf16 %v11396_v0  ;;  %5787 = vmatprep.mubr.f32.mxu1 %v15215_v60  ;;  %10692 = vmatpush3.bf16.msra.mxu0 %v10691_v11 }
0x134e   :  { %5788 = vmatmul.mubr.f32.gmra.mrb[138].mxu1 %v15213_v23  ;;  %v11418_v57 = vunpack.i.h.bf16 %v11416_v42  ;;  %v11417_v22 = vunpack.i.l.bf16 %v11416_v42 }
0x134f   :  { %v15221_v13 = vpop.eup %11761  ;;  %v10693_v63 = vpack.c.bf16 %v11398_v35, %v11397_v28 }
0x1350   :  { %v15223_v36 = vpop.eup %11763  ;;  %v11401_v19 = vpop.permute.xlu1 %11400  ;;  %v10701_v38 = vpack.c.bf16 %v11418_v57, %v11417_v22 }
0x1351   :  { %v11426_v24 = vpop.permute.xlu0 %11425  ;;  %v11403_v61 = vunpack.i.h.bf16 %v11401_v19  ;;  %v11402_v17 = vunpack.i.l.bf16 %v11401_v19  ;;  %5792 = vmatprep.mubr.f32.mxu1 %v15223_v36  ;;  %10694 = vmatprep.subr.bf16.mxu0 %v10693_v63 }
0x1352   :  { %5793 = vmatmul.mubr.f32.gmra.mrb[140].mxu1 %v15221_v13  ;;  %v11428_v44 = vunpack.i.h.bf16 %v11426_v24  ;;  %v11427_v29 = vunpack.i.l.bf16 %v11426_v24 }
0x1353   :  { %v15227_v2 = vpop.eup %11765  ;;  %v10695_v20 = vpack.c.bf16 %v11403_v61, %v11402_v17 }
0x1354   :  { %v15229_v1 = vpop.eup %11767  ;;  %v11411_v46 = vpop.permute.xlu1 %11410  ;;  %v10705_v27 = vpack.c.bf16 %v11428_v44, %v11427_v29 }
0x1355   :  { %v11413_v54 = vunpack.i.h.bf16 %v11411_v46  ;;  %v11412_v25 = vunpack.i.l.bf16 %v11411_v46  ;;  %5797 = vmatprep.mubr.f32.mxu1 %v15229_v1  ;;  %v11436_v9 = vpop.permute.xlu0 %11435  ;;  %10696 = vmatpush3.bf16.msra.mxu0 %v10695_v20 }
0x1356   :  { %5798 = vmatmul.mubr.f32.gmra.mrb[142].mxu1 %v15227_v2  ;;  %10698 = vmatprep.subr.bf16.mxu0 %v10697_v30  ;;  %v11438_v59 = vunpack.i.h.bf16 %v11436_v9  ;;  %v11437_v7 = vunpack.i.l.bf16 %v11436_v9 }
0x1357   :  { %v10699_v33 = vpack.c.bf16 %v11413_v54, %v11412_v25  ;;  %5907 = vmatprep.mubr.f32.mxu1 %v16554_v50  ;;  %v8677_v54 = vld [vmem:[%s16477_s29 + $0x20] sm:$0xff]  ;;  %v8678_v25 = vld [vmem:[%s16477_s29 + $0x28] sm:$0xff] }
0x1358   :  { %v11421_v6 = vpop.permute.xlu1 %11420  ;;  %v10709_v26 = vpack.c.bf16 %v11438_v59, %v11437_v7  ;;  %v10721_v9 = vpack.c.bf16 %v8678_v25, %v8677_v54 }
0x1359   :  { %v11423_v32 = vunpack.i.h.bf16 %v11421_v6  ;;  %v11422_v62 = vunpack.i.l.bf16 %v11421_v6  ;;  %10700 = vmatpush3.bf16.msra.mxu0 %v10699_v33  ;;  %v11446_v14 = vpop.permute.xlu0 %11445 }
0x135a   :  { %10702 = vmatprep.subr.bf16.mxu0 %v10701_v38  ;;  %v11448_v49 = vunpack.i.h.bf16 %v11446_v14  ;;  %v11447_v11 = vunpack.i.l.bf16 %v11446_v14  ;;  %10722 = vmatprep.subr.bf16.mxu1 %v10721_v9 }
0x135b   :  { %v10703_v55 = vpack.c.bf16 %v11423_v32, %v11422_v62 }
0x135c   :  { %v11431_v52 = vpop.permute.xlu1 %11430  ;;  %v10713_v63 = vpack.c.bf16 %v11448_v49, %v11447_v11 }
0x135d   :  { %v11433_v18 = vunpack.i.h.bf16 %v11431_v52  ;;  %v11432_v58 = vunpack.i.l.bf16 %v11431_v52  ;;  %10704 = vmatpush3.bf16.msra.mxu0 %v10703_v55  ;;  %v11456_v0 = vpop.permute.xlu0 %11455 }
0x135e   :  { %10706 = vmatprep.subr.bf16.mxu0 %v10705_v27  ;;  %v11458_v39 = vunpack.i.h.bf16 %v11456_v0  ;;  %v11457_v15 = vunpack.i.l.bf16 %v11456_v0 }
0x135f   :  { %v10707_v56 = vpack.c.bf16 %v11433_v18, %v11432_v58  ;;  %v8679_v18 = vld [vmem:[%s16477_s29 + $0x30] sm:$0xff]  ;;  %v8680_v58 = vld [vmem:[%s16477_s29 + $0x38] sm:$0xff] }
0x1360   :  { %v11441_v21 = vpop.permute.xlu1 %11440  ;;  %v10717_v20 = vpack.c.bf16 %v11458_v39, %v11457_v15  ;;  %v10725_v49 = vpack.c.bf16 %v8680_v58, %v8679_v18 }
0x1361   :  { %v11443_v42 = vunpack.i.h.bf16 %v11441_v21  ;;  %v11442_v35 = vunpack.i.l.bf16 %v11441_v21  ;;  %10708 = vmatpush3.bf16.msra.mxu0 %v10707_v56 }
0x1362   :  { %10710 = vmatprep.subr.bf16.mxu0 %v10709_v26 }
0x1363   :  { %v10711_v28 = vpack.c.bf16 %v11443_v42, %v11442_v35 }
0x1364   :  { %v11451_v19 = vpop.permute.xlu1 %11450 }
0x1365   :  { %v11453_v24 = vunpack.i.h.bf16 %v11451_v19  ;;  %v11452_v61 = vunpack.i.l.bf16 %v11451_v19  ;;  %10712 = vmatpush3.bf16.msra.mxu0 %v10711_v28 }
0x1366   :  { %10714 = vmatprep.subr.bf16.mxu0 %v10713_v63 }
0x1367   :  { %v10715_v17 = vpack.c.bf16 %v11453_v24, %v11452_v61 }
0x1368   :  { %v11461_v30 = vpop.permute.xlu1 %11460 }
0x1369   :  { %v11463_v57 = vunpack.i.h.bf16 %v11461_v30  ;;  %v11462_v22 = vunpack.i.l.bf16 %v11461_v30  ;;  %10716 = vmatpush3.bf16.msra.mxu0 %v10715_v17 }
0x136a   :  { %10718 = vmatprep.subr.bf16.mxu0 %v10717_v20 }
0x136b   :  { %v10719_v46 = vpack.c.bf16 %v11463_v57, %v11462_v22 }
0x136d   :  { %10720 = vmatpush3.bf16.msra.mxu0 %v10719_v46 }
0x140d   :  { %v9487_v33 = vpop.f32.mrb[128].mxu1 }
0x140e   :  { %v9488_v38 = vpop.f32.mrb[129].mxu1 }
0x140f   :  { %v9489_v44 = vadd.f32 %v9488_v38, %v9487_v33 }
0x1411   :  { %v5765_v29 = vadd.f32 1e-30, %v9489_v44  ;;  %v9490_v6 = vpop.f32.mrb[130].mxu1 }
0x1412   :  { %v9491_v32 = vpop.f32.mrb[131].mxu1 }
0x1413   :  { %11769 = vrcp.f32 %v5765_v29  ;;  %v9492_v62 = vadd.f32 %v9491_v32, %v9490_v6 }
0x1415   :  { %v5770_v55 = vadd.f32 1e-30, %v9492_v62  ;;  %v9493_v14 = vpop.f32.mrb[132].mxu1 }
0x1416   :  { %v9494_v27 = vpop.f32.mrb[133].mxu1 }
0x1417   :  { %11771 = vrcp.f32 %v5770_v55  ;;  %v9495_v59 = vadd.f32 %v9494_v27, %v9493_v14 }
0x1419   :  { %v5775_v7 = vadd.f32 1e-30, %v9495_v59  ;;  %v9496_v52 = vpop.f32.mrb[134].mxu1 }
0x141a   :  { %v9497_v56 = vpop.f32.mrb[135].mxu1 }
0x141b   :  { %11773 = vrcp.f32 %v5775_v7  ;;  %v9498_v26 = vadd.f32 %v9497_v56, %v9496_v52 }
0x141d   :  { %v11770_v11 = vpop.eup %11769  ;;  %v5780_v21 = vadd.f32 1e-30, %v9498_v26  ;;  %v9499_v0 = vpop.f32.mrb[136].mxu1 }
0x141e   :  { %v9500_v42 = vpop.f32.mrb[137].mxu1  ;;  %8669 = vmatmul.mubr.msk.f32.vlgmr.msra.gmra.mrb[144].mxu1 %vm1476_vm3, %v11770_v11 }
0x141f   :  { %11775 = vrcp.f32 %v5780_v21  ;;  %v9501_v35 = vadd.f32 %v9500_v42, %v9499_v0  ;;  %5913 = vmatprep.mubr.f32.mxu1 %v16554_v50  ;;  %10724 = vmatpush3.bf16.msra.mxu1 %v10721_v9  ;;  %v16649_v42 = vld [vmem:[#allocation97_spill] sm:$0xff] }
0x1420   :  { %10726 = vmatprep.subr.bf16.mxu1 %v10725_v49 }
0x1421   :  { %v11772_v28 = vpop.eup %11771  ;;  %v5785_v63 = vadd.f32 1e-30, %v9501_v35  ;;  %v9502_v39 = vpop.f32.mrb[138].mxu1 }
0x1422   :  { %v9503_v15 = vpop.f32.mrb[139].mxu1  ;;  %8670 = vmatmul.mubr.msk.f32.gmra.mrb[146].mxu1 %vm1476_vm3, %v11772_v28 }
0x1423   :  { %11777 = vrcp.f32 %v5785_v63  ;;  %v9504_v19 = vadd.f32 %v9503_v15, %v9502_v39  ;;  %5919 = vmatprep.mubr.f32.mxu1 %v16554_v50  ;;  %10728 = vmatpush3.bf16.msra.mxu1 %v10725_v49  ;;  %v16647_v49 = vld [vmem:[#allocation67_spill] sm:$0xff]  ;;  %v16650_v39 = vld [vmem:[#allocation98_spill] sm:$0xff] }
0x1425   :  { %v11774_v24 = vpop.eup %11773  ;;  %v5790_v61 = vadd.f32 1e-30, %v9504_v19  ;;  %v9505_v17 = vpop.f32.mrb[140].mxu1 }
0x1426   :  { %v9506_v20 = vpop.f32.mrb[141].mxu1  ;;  %8671 = vmatmul.mubr.msk.f32.gmra.mrb[148].mxu1 %vm1476_vm3, %v11774_v24 }
0x1427   :  { %11779 = vrcp.f32 %v5790_v61  ;;  %v9507_v30 = vadd.f32 %v9506_v20, %v9505_v17  ;;  %5925 = vmatprep.mubr.f32.mxu1 %v16554_v50  ;;  %v16651_v17 = vld [vmem:[#allocation99_spill] sm:$0xff] }
0x1429   :  { %v11776_v57 = vpop.eup %11775  ;;  %v5795_v22 = vadd.f32 1e-30, %v9507_v30  ;;  %v9508_v46 = vpop.f32.mrb[142].mxu1 }
0x142a   :  { %v9509_v54 = vpop.f32.mrb[143].mxu1  ;;  %8672 = vmatmul.mubr.msk.f32.gmra.mrb[150].mxu1 %vm1476_vm3, %v11776_v57 }
0x142b   :  { %11781 = vrcp.f32 %v5795_v22  ;;  %v9510_v25 = vadd.f32 %v9509_v54, %v9508_v46  ;;  %5931 = vmatprep.mubr.f32.mxu1 %v16554_v50  ;;  %v16652_v46 = vld [vmem:[#allocation100_spill] sm:$0xff] }
0x142d   :  { %v11778_v9 = vpop.eup %11777  ;;  %v5800_v33 = vadd.f32 1e-30, %v9510_v25 }
0x142e   :  { %8673 = vmatmul.mubr.msk.f32.gmra.mrb[152].mxu1 %vm1476_vm3, %v11778_v9 }
0x142f   :  { %11783 = vrcp.f32 %v5800_v33  ;;  %5937 = vmatprep.mubr.f32.mxu1 %v16554_v50  ;;  %v16653_v33 = vld [vmem:[#allocation101_spill] sm:$0xff] }
0x1431   :  { %v11780_v38 = vpop.eup %11779 }
0x1432   :  { %8674 = vmatmul.mubr.msk.f32.gmra.mrb[154].mxu1 %vm1476_vm3, %v11780_v38 }
0x1433   :  { %5943 = vmatprep.mubr.f32.mxu1 %v16554_v50 }
0x1435   :  { %v11782_v44 = vpop.eup %11781 }
0x1436   :  { %8675 = vmatmul.mubr.msk.f32.gmra.mrb[156].mxu1 %vm1476_vm3, %v11782_v44 }
0x1437   :  { %5949 = vmatprep.mubr.f32.mxu1 %v16554_v50 }
0x1439   :  { %v11784_v29 = vpop.eup %11783 }
0x143a   :  { %8676 = vmatmul.mubr.msk.f32.gmra.mrb[158].mxu1 %vm1476_vm3, %v11784_v29 }
0x143b   :  { %9933 = vmatprep.mubr.msk.f32.mxu1 %vm189_vm0, %v15153_v16 }
0x143e   :  { %9934 = vmatmul.mubr.msk.f32.vlgmr.msra.gmra.mrb[160].mxu1 %vm189_vm0, %v15157_v34 }
0x143f   :  { %9936 = vmatprep.mubr.msk.f32.mxu1 %vm189_vm0, %v15163_v37 }
0x1442   :  { %9937 = vmatmul.mubr.msk.f32.gmra.mrb[162].mxu1 %vm189_vm0, %v15173_v31 }
0x1443   :  { %9939 = vmatprep.mubr.msk.f32.mxu1 %vm189_vm0, %v15187_v51 }
0x1446   :  { %9940 = vmatmul.mubr.msk.f32.gmra.mrb[164].mxu1 %vm189_vm0, %v15197_v8 }
0x1447   :  { %9942 = vmatprep.mubr.msk.f32.mxu1 %vm189_vm0, %v15207_v4 }
0x144a   :  { %9943 = vmatmul.mubr.msk.f32.gmra.mrb[166].mxu1 %vm189_vm0, %v15217_v10 }
0x14f1   :  { %v5909_v50 = vpop.f32.mrb[144].mxu1 }
0x14f2   :  { %v5911_v16 = vpop.f32.mrb[145].mxu1  ;;  %v5956_v37 = vmul.f32 %v15161_v41, %v5909_v50 }
0x14f3   :  { %v5957_v34 = vmul.f32 %v15165_v3, %v5911_v16  ;;  %v16654_v16 = vld [vmem:[#allocation102_spill] sm:$0xff] }
0x14f5   :  { %v5915_v6 = vpop.f32.mrb[146].mxu1  ;;  %6164 = vmatprep.mubr.f32.mxu0 %v5957_v34 }
0x14f6   :  { %v5917_v31 = vpop.f32.mrb[147].mxu1  ;;  %6165 = vmatmul.mubr.f32.vlgmr.msra.gmra.mrb[160].mxu0 %v5956_v37  ;;  %v5958_v8 = vmul.f32 %v15171_v48, %v5915_v6 }
0x14f7   :  { %v5959_v51 = vmul.f32 %v15179_v47, %v5917_v31 }
0x14f9   :  { %v5921_v32 = vpop.f32.mrb[148].mxu1  ;;  %6169 = vmatprep.mubr.f32.mxu0 %v5959_v51 }
0x14fa   :  { %v5923_v4 = vpop.f32.mrb[149].mxu1  ;;  %6170 = vmatmul.mubr.f32.gmra.mrb[162].mxu0 %v5958_v8  ;;  %v5960_v62 = vmul.f32 %v15185_v5, %v5921_v32 }
0x14fb   :  { %v5961_v10 = vmul.f32 %v15189_v43, %v5923_v4 }
0x14fd   :  { %v5927_v55 = vpop.f32.mrb[150].mxu1  ;;  %6174 = vmatprep.mubr.f32.mxu0 %v5961_v10 }
0x14fe   :  { %v5929_v3 = vpop.f32.mrb[151].mxu1  ;;  %6175 = vmatmul.mubr.f32.gmra.mrb[164].mxu0 %v5960_v62  ;;  %v5962_v14 = vmul.f32 %v15195_v12, %v5927_v55 }
0x14ff   :  { %v5963_v41 = vmul.f32 %v15199_v45, %v5929_v3 }
0x1501   :  { %v5933_v27 = vpop.f32.mrb[152].mxu1  ;;  %6179 = vmatprep.mubr.f32.mxu0 %v5963_v41 }
0x1502   :  { %v5935_v47 = vpop.f32.mrb[153].mxu1  ;;  %6180 = vmatmul.mubr.f32.gmra.mrb[166].mxu0 %v5962_v14  ;;  %v5964_v59 = vmul.f32 %v15205_v40, %v5933_v27 }
0x1503   :  { %v5965_v48 = vmul.f32 %v15209_v53, %v5935_v47 }
0x1505   :  { %v5939_v7 = vpop.f32.mrb[154].mxu1  ;;  %6184 = vmatprep.mubr.f32.mxu0 %v5965_v48 }
0x1506   :  { %v5941_v43 = vpop.f32.mrb[155].mxu1  ;;  %6185 = vmatmul.mubr.f32.gmra.mrb[168].mxu0 %v5964_v59  ;;  %v5966_v52 = vmul.f32 %v15213_v23, %v5939_v7  ;;  %v15296_v23 = vld [vmem:[%s16478_s22 + $0x1] ss:$0 sm:$0xff] }
0x1507   :  { %v5967_v5 = vmul.f32 %v15215_v60, %v5941_v43 }
0x1509   :  { %v5945_v18 = vpop.f32.mrb[156].mxu1  ;;  %6189 = vmatprep.mubr.f32.mxu0 %v5967_v5 }
0x150a   :  { %v5947_v45 = vpop.f32.mrb[157].mxu1  ;;  %6190 = vmatmul.mubr.f32.gmra.mrb[170].mxu0 %v5966_v52  ;;  %v5968_v58 = vmul.f32 %v15221_v13, %v5945_v18  ;;  %v16648_v13 = vld [vmem:[#allocation65_spill] sm:$0xff] }
0x150b   :  { %v5969_v12 = vmul.f32 %v15223_v36, %v5947_v45 }
0x150d   :  { %v5951_v56 = vpop.f32.mrb[158].mxu1  ;;  %6194 = vmatprep.mubr.f32.mxu0 %v5969_v12 }
0x150e   :  { %v5953_v53 = vpop.f32.mrb[159].mxu1  ;;  %6195 = vmatmul.mubr.f32.gmra.mrb[172].mxu0 %v5968_v58  ;;  %v5970_v26 = vmul.f32 %v15227_v2, %v5951_v56 }
0x150f   :  { %v5971_v40 = vmul.f32 %v15229_v1, %v5953_v53 }
0x1511   :  { %6199 = vmatprep.mubr.f32.mxu0 %v5971_v40  ;;  %v9935_v60 = vpop.f32.mrb[160].mxu1 }
0x1512   :  { %v6404_v11 = vadd.f32 %v9935_v60, %v16647_v49  ;;  %6200 = vmatmul.mubr.f32.gmra.mrb[174].mxu0 %v5970_v26  ;;  %v6324_v36 = vpop.f32.mrb[161].mxu1 }
0x1513   :  { %v6403_v21 = vadd.f32 %v6324_v36, %v16648_v13 }
0x1514   :  { %v15301_v0 = vadd.f32 %v15296_v23, %v6404_v11  ;;  %v16655_v11 = vld [vmem:[#allocation20_spill] sm:$0xff] }
0x1515   :  { %v15304_v1 = vadd.f32 %v15296_v23, %v6403_v21  ;;  %v9938_v2 = vpop.f32.mrb[162].mxu1  ;;  %v16656_v21 = vld [vmem:[#allocation19_spill] sm:$0xff] }
0x1516   :  { %v6406_v35 = vadd.f32 %v9938_v2, %v16649_v42  ;;  %v6334_v28 = vpop.f32.mrb[163].mxu1  ;;  %v6450_v63 = vsel %vm189_vm0, %v15301_v0, 0.0 }
0x1517   :  { %v6405_v15 = vadd.f32 %v6334_v28, %v16650_v39  ;;  %6451 = vadd.xlane.f32.xlu1 %v6450_v63  ;;  %v6447_v19 = vsel %vm189_vm0, %v15304_v1, 0.0 }
0x1518   :  { %v15313_v24 = vadd.f32 %v15296_v23, %v6406_v35  ;;  %6448 = vadd.xlane.f32.xlu0 %v6447_v19  ;;  %v16657_v19 = vld [vmem:[#allocation22_spill] sm:$0xff] }
0x1519   :  { %v9941_v61 = vpop.f32.mrb[164].mxu1  ;;  %v15319_v22 = vadd.f32 %v15296_v23, %v6405_v15 }
0x151a   :  { %v6408_v20 = vadd.f32 %v9941_v61, %v16651_v17  ;;  %v6344_v30 = vpop.f32.mrb[165].mxu1  ;;  %v6456_v57 = vsel %vm189_vm0, %v15313_v24, 0.0 }
0x151b   :  { %v6407_v54 = vadd.f32 %v6344_v30, %v16652_v46  ;;  %v6453_v37 = vsel %vm189_vm0, %v15319_v22, 0.0 }
0x151c   :  { %v15323_v25 = vadd.f32 %v15296_v23, %v6408_v20  ;;  %6457 = vadd.xlane.f32.xlu0 %v6456_v57  ;;  %v16658_v20 = vld [vmem:[#allocation21_spill] sm:$0xff] }
0x151d   :  { %v9944_v9 = vpop.f32.mrb[166].mxu1  ;;  %v15329_v50 = vadd.f32 %v15296_v23, %v6407_v54 }
0x151e   :  { %v6410_v38 = vadd.f32 %v9944_v9, %v16653_v33  ;;  %v6354_v44 = vpop.f32.mrb[167].mxu1  ;;  %v6462_v29 = vsel %vm189_vm0, %v15323_v25, 0.0 }
0x151f   :  { %v6409_v34 = vadd.f32 %v6354_v44, %v16654_v16  ;;  %6463 = vadd.xlane.f32.xlu1 %v6462_v29  ;;  %v6459_v8 = vsel %vm189_vm0, %v15329_v50, 0.0  ;;  %v16659_v44 = vld [vmem:[#allocation24_spill] sm:$0xff] }
0x1520   :  { %v15335_v6 = vadd.f32 %v15296_v23, %v6410_v38  ;;  %6454 = vadd.xlane.f32.xlu0 %v6453_v37  ;;  %v16660_v37 = vld [vmem:[#allocation23_spill] sm:$0xff] }
0x1521   :  { %v15340_v51 = vadd.f32 %v15296_v23, %v6409_v34 }
0x1522   :  { %v6468_v31 = vsel %vm189_vm0, %v15335_v6, 0.0 }
0x1523   :  { %6469 = vadd.xlane.f32.xlu1 %v6468_v31  ;;  %v6465_v32 = vsel %vm189_vm0, %v15340_v51, 0.0 }
0x1524   :  { %6460 = vadd.xlane.f32.xlu0 %v6459_v8 }
0x1528   :  { %6466 = vadd.xlane.f32.xlu0 %v6465_v32 }
0x15a4   :  { %v6452_v34 = vpop.xlane.xlu1 %6451 }
0x15a5   :  { %v6449_v39 = vpop.xlane.xlu0 %6448 }
0x15a9   :  { %v6458_v54 = vpop.xlane.xlu0 %6457 }
0x15ad   :  { %v6455_v8 = vpop.xlane.xlu0 %6454 }
0x15c9   :  { %v9543_v4 = vpop.f32.mrb[160].mxu0 }
0x15ca   :  { %v9544_v10 = vpop.f32.mrb[161].mxu0 }
0x15cb   :  { %v9545_v62 = vadd.f32 %v9544_v10, %v9543_v4  ;;  %v6496_v10 = vmul.f32 0.03125, %v6452_v34 }
0x15cd   :  { %v9546_v55 = vpop.f32.mrb[162].mxu0  ;;  %9945 = vmatprep.mubr.msk.f32.mxu1 %vm189_vm0, %v9545_v62 }
0x15ce   :  { %v9547_v3 = vpop.f32.mrb[163].mxu0 }
0x15cf   :  { %v9548_v41 = vadd.f32 %v9547_v3, %v9546_v55  ;;  %v6495_v55 = vmul.f32 0.03125, %v6449_v39 }
0x15d1   :  { %v9549_v14 = vpop.f32.mrb[164].mxu0  ;;  %9946 = vmatmul.mubr.msk.f32.gmra.mrb[168].mxu1 %vm189_vm0, %v9548_v41  ;;  %v6464_v41 = vpop.xlane.xlu1 %6463 }
0x15d2   :  { %v9550_v27 = vpop.f32.mrb[165].mxu0 }
0x15d3   :  { %v9551_v47 = vadd.f32 %v9550_v27, %v9549_v14  ;;  %v15391_v27 = vsub.f32 %v15301_v0, %v6496_v10  ;;  %v8705_v10 = vld [vmem:[%s16099_s9 + $0x30] sm:$0xff] }
0x15d5   :  { %v9552_v48 = vpop.f32.mrb[166].mxu0  ;;  %9948 = vmatprep.mubr.msk.f32.mxu1 %vm189_vm0, %v9551_v47  ;;  %v6498_v47 = vmul.f32 0.03125, %v6458_v54 }
0x15d6   :  { %v9553_v59 = vpop.f32.mrb[167].mxu0 }
0x15d7   :  { %v9554_v7 = vadd.f32 %v9553_v59, %v9552_v48  ;;  %v6461_v48 = vpop.xlane.xlu0 %6460  ;;  %v16661_v59 = vld [vmem:[#allocation25_spill] sm:$0xff] }
0x15d9   :  { %v9555_v43 = vpop.f32.mrb[168].mxu0  ;;  %9949 = vmatmul.mubr.msk.f32.gmra.mrb[170].mxu1 %vm189_vm0, %v9554_v7 }
0x15da   :  { %v9556_v5 = vpop.f32.mrb[169].mxu0 }
0x15db   :  { %v9557_v52 = vadd.f32 %v9556_v5, %v9555_v43  ;;  %v15395_v5 = vsub.f32 %v15304_v1, %v6495_v55  ;;  %v8706_v55 = vld [vmem:[%s16099_s9 + $0x38] sm:$0xff] }
0x15dd   :  { %v9558_v18 = vpop.f32.mrb[170].mxu0  ;;  %9951 = vmatprep.mubr.msk.f32.mxu1 %vm189_vm0, %v9557_v52  ;;  %v6497_v52 = vmul.f32 0.03125, %v6455_v8  ;;  %v8704_v8 = vld [vmem:[%s16099_s9 + $0x28] sm:$0xff] }
0x15de   :  { %v9559_v45 = vpop.f32.mrb[171].mxu0 }
0x15df   :  { %v9560_v12 = vadd.f32 %v9559_v45, %v9558_v18  ;;  %v16662_v18 = vld [vmem:[#allocation27_spill] sm:$0xff] }
0x15e1   :  { %v9561_v58 = vpop.f32.mrb[172].mxu0  ;;  %9952 = vmatmul.mubr.msk.f32.gmra.mrb[172].mxu1 %vm189_vm0, %v9560_v12 }
0x15e2   :  { %v9562_v56 = vpop.f32.mrb[173].mxu0 }
0x15e3   :  { %v9563_v53 = vadd.f32 %v9562_v56, %v9561_v58  ;;  %v15405_v56 = vsub.f32 %v15313_v24, %v6498_v47 }
0x15e5   :  { %v9564_v40 = vpop.f32.mrb[174].mxu0  ;;  %9954 = vmatprep.mubr.msk.f32.mxu1 %vm189_vm0, %v9563_v53  ;;  %v6500_v53 = vmul.f32 0.03125, %v6464_v41 }
0x15e6   :  { %v9565_v26 = vpop.f32.mrb[175].mxu0 }
0x15e7   :  { %v9566_v60 = vadd.f32 %v9565_v26, %v9564_v40  ;;  %v6528_v26 = vmul.f32 %v15391_v27, %v15391_v27 }
0x15e9   :  { %9955 = vmatmul.mubr.msk.f32.gmra.mrb[174].mxu1 %vm189_vm0, %v9566_v60  ;;  %v15412_v60 = vsub.f32 %v15319_v22, %v6497_v52 }
0x16a4   :  { %v9947_v49 = vpop.f32.mrb[168].mxu1 }
0x16a5   :  { %v6412_v36 = vadd.f32 %v9947_v49, %v16655_v11  ;;  %v6364_v13 = vpop.f32.mrb[169].mxu1  ;;  %v6470_v49 = vpop.xlane.xlu1 %6469  ;;  %v6499_v11 = vmul.f32 0.03125, %v6461_v48 }
0x16a6   :  { %v6411_v2 = vadd.f32 %v6364_v13, %v16656_v21  ;;  %v6467_v13 = vpop.xlane.xlu0 %6466  ;;  %v15419_v21 = vsub.f32 %v15323_v25, %v6500_v53 }
0x16a7   :  { %v15357_v42 = vadd.f32 %v15296_v23, %v6412_v36  ;;  %v6527_v36 = vmul.f32 %v15395_v5, %v15395_v5  ;;  %v15425_v39 = vsub.f32 %v15329_v50, %v6499_v11 }
0x16a8   :  { %v15360_v35 = vadd.f32 %v15296_v23, %v6411_v2  ;;  %v6502_v2 = vmul.f32 0.03125, %v6470_v49 }
0x16a9   :  { %v6474_v28 = vsel %vm189_vm0, %v15357_v42, 0.0 }
0x16aa   :  { %6475 = vadd.xlane.f32.xlu1 %v6474_v28  ;;  %v6471_v63 = vsel %vm189_vm0, %v15360_v35, 0.0  ;;  %v6546_v28 = vsel %vm189_vm0, %v6528_v26, 0.0 }
0x16ab   :  { %6472 = vadd.xlane.f32.xlu0 %v6471_v63  ;;  %v6530_v63 = vmul.f32 %v15405_v56, %v15405_v56 }
0x16ac   :  { %v9950_v15 = vpop.f32.mrb[170].mxu1 }
0x16ad   :  { %v6414_v61 = vadd.f32 %v9950_v15, %v16657_v19  ;;  %v6374_v17 = vpop.f32.mrb[171].mxu1  ;;  %v6501_v15 = vmul.f32 0.03125, %v6467_v13  ;;  %v6543_v19 = vsel %vm189_vm0, %v6527_v36, 0.0 }
0x16ae   :  { %v6413_v30 = vadd.f32 %v6374_v17, %v16658_v20  ;;  %v15431_v17 = vsub.f32 %v15335_v6, %v6502_v2  ;;  %v6552_v20 = vsel %vm189_vm0, %v6530_v63, 0.0 }
0x16af   :  { %v15369_v57 = vadd.f32 %v15296_v23, %v6414_v61  ;;  %v6529_v61 = vmul.f32 %v15412_v60, %v15412_v60  ;;  %v15437_v54 = vsub.f32 %v15340_v51, %v6501_v15 }
0x16b0   :  { %v15372_v46 = vadd.f32 %v15296_v23, %v6413_v30  ;;  %v6532_v30 = vmul.f32 %v15419_v21, %v15419_v21 }
0x16b1   :  { %v6480_v9 = vsel %vm189_vm0, %v15369_v57, 0.0 }
0x16b2   :  { %6481 = vadd.xlane.f32.xlu1 %v6480_v9  ;;  %v6477_v33 = vsel %vm189_vm0, %v15372_v46, 0.0  ;;  %v6549_v9 = vsel %vm189_vm0, %v6529_v61, 0.0 }
0x16b3   :  { %6478 = vadd.xlane.f32.xlu0 %v6477_v33  ;;  %v6531_v33 = vmul.f32 %v15425_v39, %v15425_v39 }
0x16b4   :  { %v9953_v38 = vpop.f32.mrb[172].mxu1 }
0x16b5   :  { %v6416_v29 = vadd.f32 %v9953_v38, %v16659_v44  ;;  %v6384_v16 = vpop.f32.mrb[173].mxu1  ;;  %v6558_v38 = vsel %vm189_vm0, %v6532_v30, 0.0  ;;  %v6534_v44 = vmul.f32 %v15431_v17, %v15431_v17 }
0x16b6   :  { %v6415_v31 = vadd.f32 %v6384_v16, %v16660_v37  ;;  %v6533_v16 = vmul.f32 %v15437_v54, %v15437_v54 }
0x16b7   :  { %v15381_v32 = vadd.f32 %v15296_v23, %v6416_v29  ;;  %v6555_v29 = vsel %vm189_vm0, %v6531_v33, 0.0  ;;  %v6564_v34 = vsel %vm189_vm0, %v6534_v44, 0.0 }
0x16b8   :  { %v15384_v4 = vadd.f32 %v15296_v23, %v6415_v31  ;;  %v6561_v37 = vsel %vm189_vm0, %v6533_v16, 0.0  ;;  %v8703_v31 = vld [vmem:[%s16099_s9 + $0x20] sm:$0xff] }
0x16b9   :  { %v6486_v62 = vsel %vm189_vm0, %v15381_v32, 0.0 }
0x16ba   :  { %6487 = vadd.xlane.f32.xlu1 %v6486_v62  ;;  %v6483_v3 = vsel %vm189_vm0, %v15384_v4, 0.0  ;;  %v10729_v62 = vpack.c.bf16 %v8704_v8, %v8703_v31 }
0x16bb   :  { %6484 = vadd.xlane.f32.xlu0 %v6483_v3  ;;  %v10733_v3 = vpack.c.bf16 %v8706_v55, %v8705_v10 }
0x16bc   :  { %v9956_v14 = vpop.f32.mrb[174].mxu1  ;;  %10730 = vmatprep.subr.bf16.mxu0 %v10729_v62 }
0x16bd   :  { %v6418_v7 = vadd.f32 %v9956_v14, %v16661_v59  ;;  %v6394_v43 = vpop.f32.mrb[175].mxu1  ;;  %10732 = vmatpush3.bf16.msra.mxu0 %v10729_v62 }
0x16be   :  { %v6417_v45 = vadd.f32 %v6394_v43, %v16662_v18  ;;  %10734 = vmatprep.subr.bf16.mxu0 %v10733_v3 }
0x16bf   :  { %v15399_v12 = vadd.f32 %v15296_v23, %v6418_v7 }
0x16c0   :  { %v15402_v58 = vadd.f32 %v15296_v23, %v6417_v45 }
0x16c1   :  { %v6492_v40 = vsel %vm189_vm0, %v15399_v12, 0.0  ;;  %10736 = vmatpush3.bf16.msra.mxu0 %v10733_v3 }
0x16c2   :  { %6493 = vadd.xlane.f32.xlu1 %v6492_v40  ;;  %v6489_v23 = vsel %vm189_vm0, %v15402_v58, 0.0 }
0x16c3   :  { %6490 = vadd.xlane.f32.xlu0 %v6489_v23 }
0x16c6   :  { %6547 = vadd.xlane.f32.xlu1 %v6546_v28 }
0x16c7   :  { %6544 = vadd.xlane.f32.xlu0 %v6543_v19 }
0x16ca   :  { %6553 = vadd.xlane.f32.xlu1 %v6552_v20 }
0x16cb   :  { %6550 = vadd.xlane.f32.xlu0 %v6549_v9 }
0x16ce   :  { %6559 = vadd.xlane.f32.xlu1 %v6558_v38 }
0x16cf   :  { %6556 = vadd.xlane.f32.xlu0 %v6555_v29 }
0x16d2   :  { %6565 = vadd.xlane.f32.xlu1 %v6564_v34 }
0x16d3   :  { %6562 = vadd.xlane.f32.xlu0 %v6561_v37 }
0x1737   :  { %v6476_v41 = vpop.xlane.xlu1 %6475 }
0x1738   :  { %v6504_v14 = vmul.f32 0.03125, %v6476_v41  ;;  %v6473_v47 = vpop.xlane.xlu0 %6472 }
0x1739   :  { %v6503_v48 = vmul.f32 0.03125, %v6473_v47 }
0x173a   :  { %v15463_v59 = vsub.f32 %v15357_v42, %v6504_v14 }
0x173b   :  { %v15466_v7 = vsub.f32 %v15360_v35, %v6503_v48 }
0x173c   :  { %v6536_v43 = vmul.f32 %v15463_v59, %v15463_v59 }
0x173d   :  { %v6535_v52 = vmul.f32 %v15466_v7, %v15466_v7 }
0x173e   :  { %v6570_v18 = vsel %vm189_vm0, %v6536_v43, 0.0 }
0x173f   :  { %v6482_v45 = vpop.xlane.xlu1 %6481  ;;  %6571 = vadd.xlane.f32.xlu1 %v6570_v18  ;;  %v6567_v53 = vsel %vm189_vm0, %v6535_v52, 0.0 }
0x1740   :  { %v6506_v40 = vmul.f32 0.03125, %v6482_v45  ;;  %v6479_v26 = vpop.xlane.xlu0 %6478  ;;  %6568 = vadd.xlane.f32.xlu0 %v6567_v53 }
0x1741   :  { %v6505_v49 = vmul.f32 0.03125, %v6479_v26 }
0x1742   :  { %v15475_v11 = vsub.f32 %v15369_v57, %v6506_v40 }
0x1743   :  { %v15478_v23 = vsub.f32 %v15372_v46, %v6505_v49 }
0x1744   :  { %v6538_v36 = vmul.f32 %v15475_v11, %v15475_v11 }
0x1745   :  { %v6537_v13 = vmul.f32 %v15478_v23, %v15478_v23 }
0x1746   :  { %v6576_v2 = vsel %vm189_vm0, %v6538_v36, 0.0 }
0x1747   :  { %v6488_v28 = vpop.xlane.xlu1 %6487  ;;  %6577 = vadd.xlane.f32.xlu1 %v6576_v2  ;;  %v6573_v63 = vsel %vm189_vm0, %v6537_v13, 0.0 }
0x1748   :  { %v6508_v15 = vmul.f32 0.03125, %v6488_v28  ;;  %v6485_v19 = vpop.xlane.xlu0 %6484  ;;  %6574 = vadd.xlane.f32.xlu0 %v6573_v63 }
0x1749   :  { %v6507_v61 = vmul.f32 0.03125, %v6485_v19 }
0x174a   :  { %v15487_v20 = vsub.f32 %v15381_v32, %v6508_v15 }
0x174b   :  { %v15490_v30 = vsub.f32 %v15384_v4, %v6507_v61 }
0x174c   :  { %v6540_v9 = vmul.f32 %v15487_v20, %v15487_v20 }
0x174d   :  { %v6539_v33 = vmul.f32 %v15490_v30, %v15490_v30 }
0x174e   :  { %v6582_v38 = vsel %vm189_vm0, %v6540_v9, 0.0 }
0x174f   :  { %6583 = vadd.xlane.f32.xlu1 %v6582_v38  ;;  %v6494_v44 = vpop.xlane.xlu1 %6493  ;;  %v6579_v29 = vsel %vm189_vm0, %v6539_v33, 0.0 }
0x1750   :  { %v6510_v16 = vmul.f32 0.03125, %v6494_v44  ;;  %6580 = vadd.xlane.f32.xlu0 %v6579_v29  ;;  %v6491_v34 = vpop.xlane.xlu0 %6490  ;;  %v15513_v44 = vld [vmem:[%s16097_s7 + $0x1] ss:$0 sm:$0xff] }
0x1751   :  { %v6509_v37 = vmul.f32 0.03125, %v6491_v34 }
0x1752   :  { %v15499_v31 = vsub.f32 %v15399_v12, %v6510_v16 }
0x1753   :  { %v15502_v8 = vsub.f32 %v15402_v58, %v6509_v37  ;;  %v6548_v10 = vpop.xlane.xlu1 %6547 }
0x1754   :  { %v6592_v62 = vmul.f32 0.03125, %v6548_v10  ;;  %v6545_v55 = vpop.xlane.xlu0 %6544  ;;  %v6542_v3 = vmul.f32 %v15499_v31, %v15499_v31 }
0x1755   :  { %v6591_v41 = vmul.f32 0.03125, %v6545_v55  ;;  %v6541_v14 = vmul.f32 %v15502_v8, %v15502_v8 }
0x1756   :  { %v6608_v47 = vadd.f32 1e-05, %v6592_v62  ;;  %v6588_v48 = vsel %vm189_vm0, %v6542_v3, 0.0  ;;  %v15520_v62 = vld [vmem:[%s16098_s8 + $0x1] ss:$0 sm:$0xff] }
0x1757   :  { %v6607_v43 = vadd.f32 1e-05, %v6591_v41  ;;  %6589 = vadd.xlane.f32.xlu1 %v6588_v48  ;;  %v6554_v52 = vpop.xlane.xlu1 %6553  ;;  %v6585_v18 = vsel %vm189_vm0, %v6541_v14, 0.0 }
0x1758   :  { %11785 = vrsqrt.f32 %v6608_v47  ;;  %v6594_v45 = vmul.f32 0.03125, %v6554_v52  ;;  %6586 = vadd.xlane.f32.xlu0 %v6585_v18  ;;  %v6551_v53 = vpop.xlane.xlu0 %6550 }
0x1759   :  { %11787 = vrsqrt.f32 %v6607_v43  ;;  %v6593_v40 = vmul.f32 0.03125, %v6551_v53 }
0x175a   :  { %v6610_v26 = vadd.f32 1e-05, %v6594_v45 }
0x175b   :  { %v6609_v49 = vadd.f32 1e-05, %v6593_v40  ;;  %v6560_v36 = vpop.xlane.xlu1 %6559 }
0x175c   :  { %11789 = vrsqrt.f32 %v6610_v26  ;;  %v6596_v13 = vmul.f32 0.03125, %v6560_v36  ;;  %v6557_v2 = vpop.xlane.xlu0 %6556 }
0x175d   :  { %11791 = vrsqrt.f32 %v6609_v49  ;;  %v6595_v28 = vmul.f32 0.03125, %v6557_v2 }
0x175e   :  { %v6612_v63 = vadd.f32 1e-05, %v6596_v13 }
0x175f   :  { %v6611_v15 = vadd.f32 1e-05, %v6595_v28  ;;  %v6566_v19 = vpop.xlane.xlu1 %6565 }
0x1760   :  { %11793 = vrsqrt.f32 %v6612_v63  ;;  %v6598_v61 = vmul.f32 0.03125, %v6566_v19  ;;  %v6563_v9 = vpop.xlane.xlu0 %6562 }
0x1761   :  { %11795 = vrsqrt.f32 %v6611_v15  ;;  %v6597_v33 = vmul.f32 0.03125, %v6563_v9 }
0x1762   :  { %v11786_v38 = vpop.eup %11785  ;;  %v6614_v29 = vadd.f32 1e-05, %v6598_v61 }
0x1763   :  { %v11788_v16 = vpop.eup %11787  ;;  %v6640_v34 = vmul.f32 %v11786_v38, %v15391_v27  ;;  %v6613_v37 = vadd.f32 1e-05, %v6597_v33  ;;  %v7052_v38 = vld [vmem:[#allocation4 + $0x90] sm:$0xff] }
0x1764   :  { %11797 = vrsqrt.f32 %v6614_v29  ;;  %v6639_v10 = vmul.f32 %v11788_v16, %v15395_v5  ;;  %v7053_v29 = vld [vmem:[#allocation4 + $0x98] sm:$0xff] }
0x1765   :  { %v6662_v55 = vmul.f32 %v15513_v44, %v6640_v34  ;;  %11799 = vrsqrt.f32 %v6613_v37  ;;  %v10741_v37 = vpack.c.bf16 %v7053_v29, %v7052_v38  ;;  %v7064_v38 = vld [vmem:[#allocation4 + $0xf0] sm:$0xff]  ;;  %v7065_v29 = vld [vmem:[#allocation4 + $0xf8] sm:$0xff] }
0x1766   :  { %v11790_v3 = vpop.eup %11789  ;;  %v6661_v41 = vmul.f32 %v15513_v44, %v6639_v10 }
0x1767   :  { %v11792_v14 = vpop.eup %11791  ;;  %v6642_v47 = vmul.f32 %v11790_v3, %v15405_v56  ;;  %v6684_v5 = vadd.f32 %v15520_v62, %v6662_v55 }
0x1768   :  { %v6683_v27 = vadd.f32 %v15520_v62, %v6661_v41  ;;  %v6641_v48 = vmul.f32 %v11792_v14, %v15412_v60  ;;  %v7054_v41 = vld [vmem:[#allocation4 + $0xa0] sm:$0xff]  ;;  %v7055_v14 = vld [vmem:[#allocation4 + $0xa8] sm:$0xff] }
0x1769   :  { %v6664_v43 = vmul.f32 %v15513_v44, %v6642_v47  ;;  %v10745_v47 = vpack.c.bf16 %v7055_v14, %v7054_v41 }
0x176a   :  { %v11794_v52 = vpop.eup %11793  ;;  %9965 = vmatprep.mubr.msk.f32.mxu0 %vm189_vm0, %v6683_v27  ;;  %v6663_v18 = vmul.f32 %v15513_v44, %v6641_v48  ;;  %v7056_v48 = vld [vmem:[#allocation4 + $0xb0] sm:$0xff] }
0x176b   :  { %v11796_v45 = vpop.eup %11795  ;;  %9966 = vmatmul.mubr.msk.f32.vlgmr.msra.gmra.mrb[176].mxu0 %vm189_vm0, %v6684_v5  ;;  %v6644_v53 = vmul.f32 %v11794_v52, %v15419_v21  ;;  %v6686_v60 = vadd.f32 %v15520_v62, %v6664_v43  ;;  %v7057_v5 = vld [vmem:[#allocation4 + $0xb8] sm:$0xff] }
0x176c   :  { %v6685_v56 = vadd.f32 %v15520_v62, %v6663_v18  ;;  %v6643_v40 = vmul.f32 %v11796_v45, %v15425_v39  ;;  %v10749_v18 = vpack.c.bf16 %v7057_v5, %v7056_v48 }
0x176d   :  { %v6666_v26 = vmul.f32 %v15513_v44, %v6644_v53 }
0x176e   :  { %v11798_v49 = vpop.eup %11797  ;;  %9968 = vmatprep.mubr.msk.f32.mxu0 %vm189_vm0, %v6685_v56  ;;  %v6665_v36 = vmul.f32 %v15513_v44, %v6643_v40  ;;  %v7058_v40 = vld [vmem:[#allocation4 + $0xc0] sm:$0xff] }
0x176f   :  { %v11800_v13 = vpop.eup %11799  ;;  %9969 = vmatmul.mubr.msk.f32.gmra.mrb[178].mxu0 %vm189_vm0, %v6686_v60  ;;  %v6646_v2 = vmul.f32 %v11798_v49, %v15431_v17  ;;  %v6688_v39 = vadd.f32 %v15520_v62, %v6666_v26  ;;  %v7050_v17 = vld [vmem:[#allocation4 + $0x80] sm:$0xff]  ;;  %v7059_v60 = vld [vmem:[#allocation4 + $0xc8] sm:$0xff]  ;;  %v7060_v49 = vld [vmem:[#allocation4 + $0xd0] sm:$0xff] }
0x1770   :  { %v6687_v21 = vadd.f32 %v15520_v62, %v6665_v36  ;;  %v6645_v28 = vmul.f32 %v11800_v13, %v15437_v54  ;;  %v7051_v54 = vld [vmem:[#allocation4 + $0x88] sm:$0xff]  ;;  %v10753_v26 = vpack.c.bf16 %v7059_v60, %v7058_v40  ;;  %v7061_v36 = vld [vmem:[#allocation4 + $0xd8] sm:$0xff]  ;;  %v7062_v13 = vld [vmem:[#allocation4 + $0xe0] sm:$0xff] }
0x1771   :  { %v6668_v63 = vmul.f32 %v15513_v44, %v6646_v2  ;;  %v10737_v9 = vpack.c.bf16 %v7051_v54, %v7050_v17 }
0x1772   :  { %9971 = vmatprep.mubr.msk.f32.mxu0 %vm189_vm0, %v6687_v21  ;;  %v6667_v15 = vmul.f32 %v15513_v44, %v6645_v28  ;;  %v10757_v21 = vpack.c.bf16 %v7061_v36, %v7060_v49  ;;  %v7063_v28 = vld [vmem:[#allocation4 + $0xe8] sm:$0xff] }
0x1773   :  { %9972 = vmatmul.mubr.msk.f32.gmra.mrb[180].mxu0 %vm189_vm0, %v6688_v39  ;;  %v6690_v61 = vadd.f32 %v15520_v62, %v6668_v63  ;;  %10738 = vmatprep.subr.bf16.mxu1 %v10737_v9  ;;  %v10761_v54 = vpack.c.bf16 %v7063_v28, %v7062_v13 }
0x1774   :  { %v6689_v19 = vadd.f32 %v15520_v62, %v6667_v15  ;;  %10740 = vmatpush3.bf16.msra.mxu1 %v10737_v9 }
0x1775   :  { %10742 = vmatprep.subr.bf16.mxu1 %v10741_v37 }
0x1776   :  { %9974 = vmatprep.mubr.msk.f32.mxu0 %vm189_vm0, %v6689_v19 }
0x1777   :  { %9975 = vmatmul.mubr.msk.f32.gmra.mrb[182].mxu0 %vm189_vm0, %v6690_v61 }
0x1778   :  { %10744 = vmatpush3.bf16.msra.mxu1 %v10741_v37 }
0x1779   :  { %10746 = vmatprep.subr.bf16.mxu1 %v10745_v47 }
0x177c   :  { %10748 = vmatpush3.bf16.msra.mxu1 %v10745_v47 }
0x177d   :  { %10750 = vmatprep.subr.bf16.mxu1 %v10749_v18 }
0x1780   :  { %10752 = vmatpush3.bf16.msra.mxu1 %v10749_v18 }
0x1781   :  { %10754 = vmatprep.subr.bf16.mxu1 %v10753_v26 }
0x1784   :  { %10756 = vmatpush3.bf16.msra.mxu1 %v10753_v26 }
0x1785   :  { %10758 = vmatprep.subr.bf16.mxu1 %v10757_v21 }
0x1788   :  { %10760 = vmatpush3.bf16.msra.mxu1 %v10757_v21 }
0x1789   :  { %10762 = vmatprep.subr.bf16.mxu1 %v10761_v54 }
0x178c   :  { %10764 = vmatpush3.bf16.msra.mxu1 %v10761_v54 }
0x17cc   :  { %v6572_v33 = vpop.xlane.xlu1 %6571 }
0x17cd   :  { %v6600_v16 = vmul.f32 0.03125, %v6572_v33  ;;  %v6569_v34 = vpop.xlane.xlu0 %6568 }
0x17ce   :  { %v6599_v10 = vmul.f32 0.03125, %v6569_v34 }
0x17cf   :  { %v6616_v55 = vadd.f32 1e-05, %v6600_v16 }
0x17d0   :  { %v6615_v3 = vadd.f32 1e-05, %v6599_v10  ;;  %v10765_v10 = vpack.c.bf16 %v7065_v29, %v7064_v38 }
0x17d1   :  { %11801 = vrsqrt.f32 %v6616_v55 }
0x17d2   :  { %11803 = vrsqrt.f32 %v6615_v3  ;;  %10766 = vmatprep.subr.bf16.mxu1 %v10765_v10 }
0x17d3   :  { %10768 = vmatpush3.bf16.msra.mxu1 %v10765_v10 }
0x17d4   :  { %v6578_v27 = vpop.xlane.xlu1 %6577 }
0x17d5   :  { %v6602_v43 = vmul.f32 0.03125, %v6578_v27  ;;  %v6575_v52 = vpop.xlane.xlu0 %6574 }
0x17d6   :  { %v6601_v45 = vmul.f32 0.03125, %v6575_v52 }
0x17d7   :  { %v6618_v53 = vadd.f32 1e-05, %v6602_v43 }
0x17d8   :  { %v6617_v56 = vadd.f32 1e-05, %v6601_v45 }
0x17d9   :  { %11805 = vrsqrt.f32 %v6618_v53 }
0x17da   :  { %11807 = vrsqrt.f32 %v6617_v56 }
0x17db   :  { %v11802_v2 = vpop.eup %11801 }
0x17dc   :  { %v11804_v39 = vpop.eup %11803  ;;  %v6584_v63 = vpop.xlane.xlu1 %6583  ;;  %v6648_v15 = vmul.f32 %v11802_v2, %v15463_v59 }
0x17dd   :  { %v6604_v19 = vmul.f32 0.03125, %v6584_v63  ;;  %v6581_v61 = vpop.xlane.xlu0 %6580  ;;  %v6647_v17 = vmul.f32 %v11804_v39, %v15466_v7 }
0x17de   :  { %v6603_v9 = vmul.f32 0.03125, %v6581_v61  ;;  %v6670_v33 = vmul.f32 %v15513_v44, %v6648_v15 }
0x17df   :  { %v6620_v16 = vadd.f32 1e-05, %v6604_v19  ;;  %v6669_v34 = vmul.f32 %v15513_v44, %v6647_v17  ;;  %v15587_v19 = vld [vmem:[%s16100_s10 + $0x1] ss:$0 sm:$0xff] }
0x17e0   :  { %v6619_v37 = vadd.f32 1e-05, %v6603_v9  ;;  %v6692_v7 = vadd.f32 %v15520_v62, %v6670_v33 }
0x17e1   :  { %11809 = vrsqrt.f32 %v6620_v16  ;;  %v6691_v59 = vadd.f32 %v15520_v62, %v6669_v34 }
0x17e2   :  { %11811 = vrsqrt.f32 %v6619_v37 }
0x17e3   :  { %v11806_v55 = vpop.eup %11805  ;;  %9977 = vmatprep.mubr.msk.f32.mxu0 %vm189_vm0, %v6691_v59 }
0x17e4   :  { %v11808_v3 = vpop.eup %11807  ;;  %v6590_v41 = vpop.xlane.xlu1 %6589  ;;  %9978 = vmatmul.mubr.msk.f32.gmra.mrb[184].mxu0 %vm189_vm0, %v6692_v7  ;;  %v6650_v14 = vmul.f32 %v11806_v55, %v15475_v11 }
0x17e5   :  { %v6606_v47 = vmul.f32 0.03125, %v6590_v41  ;;  %v6587_v27 = vpop.xlane.xlu0 %6586  ;;  %v6649_v48 = vmul.f32 %v11808_v3, %v15478_v23 }
0x17e6   :  { %v6605_v5 = vmul.f32 0.03125, %v6587_v27  ;;  %v6672_v43 = vmul.f32 %v15513_v44, %v6650_v14 }
0x17e7   :  { %v6622_v52 = vadd.f32 1e-05, %v6606_v47  ;;  %v6671_v18 = vmul.f32 %v15513_v44, %v6649_v48 }
0x17e8   :  { %v6621_v45 = vadd.f32 1e-05, %v6605_v5  ;;  %v6694_v11 = vadd.f32 %v15520_v62, %v6672_v43 }
0x17e9   :  { %11813 = vrsqrt.f32 %v6622_v52  ;;  %v6693_v53 = vadd.f32 %v15520_v62, %v6671_v18 }
0x17ea   :  { %11815 = vrsqrt.f32 %v6621_v45 }
0x17eb   :  { %v11810_v56 = vpop.eup %11809  ;;  %9980 = vmatprep.mubr.msk.f32.mxu0 %vm189_vm0, %v6693_v53 }
0x17ec   :  { %v11812_v40 = vpop.eup %11811  ;;  %9981 = vmatmul.mubr.msk.f32.gmra.mrb[186].mxu0 %vm189_vm0, %v6694_v11  ;;  %v6652_v23 = vmul.f32 %v11810_v56, %v15487_v20 }
0x17ed   :  { %v6651_v60 = vmul.f32 %v11812_v40, %v15490_v30 }
0x17ee   :  { %v6674_v26 = vmul.f32 %v15513_v44, %v6652_v23 }
0x17ef   :  { %v6673_v49 = vmul.f32 %v15513_v44, %v6651_v60 }
0x17f0   :  { %v6696_v13 = vadd.f32 %v15520_v62, %v6674_v26 }
0x17f1   :  { %v6695_v36 = vadd.f32 %v15520_v62, %v6673_v49 }
0x17f3   :  { %v11814_v2 = vpop.eup %11813  ;;  %9983 = vmatprep.mubr.msk.f32.mxu0 %vm189_vm0, %v6695_v36 }
0x17f4   :  { %v11816_v21 = vpop.eup %11815  ;;  %9984 = vmatmul.mubr.msk.f32.gmra.mrb[188].mxu0 %vm189_vm0, %v6696_v13  ;;  %v6654_v28 = vmul.f32 %v11814_v2, %v15499_v31 }
0x17f5   :  { %v6653_v20 = vmul.f32 %v11816_v21, %v15502_v8 }
0x17f6   :  { %v6676_v30 = vmul.f32 %v15513_v44, %v6654_v28 }
0x17f7   :  { %v6675_v39 = vmul.f32 %v15513_v44, %v6653_v20 }
0x17f8   :  { %v6698_v15 = vadd.f32 %v15520_v62, %v6676_v30 }
0x17f9   :  { %v6697_v63 = vadd.f32 %v15520_v62, %v6675_v39 }
0x17fb   :  { %9986 = vmatprep.mubr.msk.f32.mxu0 %vm189_vm0, %v6697_v63 }
0x17fc   :  { %9987 = vmatmul.mubr.msk.f32.gmra.mrb[190].mxu0 %vm189_vm0, %v6698_v15 }
0x183e   :  { %v9967_v31 = vpop.f32.mrb[176].mxu0 }
0x183f   :  { %v15590_v8 = vadd.f32 %v9967_v31, %v15587_v19  ;;  %v6826_v61 = vpop.f32.mrb[177].mxu0 }
0x1840   :  { %v15593_v44 = vadd.f32 %v15587_v19, %v6826_v61 }
0x1841   :  { %v6906_v62 = vmul.f32 %v15590_v8, %v15590_v8 }
0x1842   :  { %v6905_v17 = vmul.f32 %v15593_v44, %v15593_v44  ;;  %v9970_v54 = vpop.f32.mrb[178].mxu0 }
0x1843   :  { %v6922_v9 = vmul.f32 %v6906_v62, %v15590_v8  ;;  %v15601_v33 = vadd.f32 %v9970_v54, %v15587_v19  ;;  %v6836_v38 = vpop.f32.mrb[179].mxu0 }
0x1844   :  { %v6921_v29 = vmul.f32 %v6905_v17, %v15593_v44  ;;  %v15605_v16 = vadd.f32 %v15587_v19, %v6836_v38 }
0x1845   :  { %v6938_v34 = vmul.f32 0.044715, %v6922_v9  ;;  %v6908_v37 = vmul.f32 %v15601_v33, %v15601_v33 }
0x1846   :  { %v6937_v59 = vmul.f32 0.044715, %v6921_v29  ;;  %v6907_v10 = vmul.f32 %v15605_v16, %v15605_v16  ;;  %v9973_v7 = vpop.f32.mrb[180].mxu0 }
0x1847   :  { %v6954_v55 = vadd.f32 %v6938_v34, %v15590_v8  ;;  %v6924_v3 = vmul.f32 %v6908_v37, %v15601_v33  ;;  %v15614_v41 = vadd.f32 %v9973_v7, %v15587_v19  ;;  %v6846_v14 = vpop.f32.mrb[181].mxu0 }
0x1848   :  { %v6953_v47 = vadd.f32 %v6937_v59, %v15593_v44  ;;  %v6923_v27 = vmul.f32 %v6907_v10, %v15605_v16  ;;  %v15619_v48 = vadd.f32 %v15587_v19, %v6846_v14 }
0x1849   :  { %v6970_v5 = vmul.f32 0.7978846, %v6954_v55  ;;  %v6940_v43 = vmul.f32 0.044715, %v6924_v3  ;;  %v6910_v52 = vmul.f32 %v15614_v41, %v15614_v41 }
0x184a   :  { %v6969_v18 = vmul.f32 0.7978846, %v6953_v47  ;;  %v6939_v45 = vmul.f32 0.044715, %v6923_v27  ;;  %v6909_v53 = vmul.f32 %v15619_v48, %v15619_v48  ;;  %v9976_v11 = vpop.f32.mrb[182].mxu0 }
0x184b   :  { %11817 = vtanh.f32 %v6970_v5  ;;  %v6956_v56 = vadd.f32 %v6940_v43, %v15601_v33  ;;  %v6926_v40 = vmul.f32 %v6910_v52, %v15614_v41  ;;  %v15628_v23 = vadd.f32 %v9976_v11, %v15587_v19  ;;  %v6856_v60 = vpop.f32.mrb[183].mxu0 }
0x184c   :  { %v6955_v26 = vadd.f32 %v6939_v45, %v15605_v16  ;;  %v6925_v49 = vmul.f32 %v6909_v53, %v15619_v48  ;;  %v6857_v36 = vadd.f32 %v15587_v19, %v6856_v60  ;;  %11819 = vtanh.f32 %v6969_v18 }
0x184d   :  { %v6972_v13 = vmul.f32 0.7978846, %v6956_v56  ;;  %v6942_v2 = vmul.f32 0.044715, %v6926_v40  ;;  %v6912_v21 = vmul.f32 %v15628_v23, %v15628_v23 }
0x184e   :  { %v6971_v28 = vmul.f32 0.7978846, %v6955_v26  ;;  %v6941_v20 = vmul.f32 0.044715, %v6925_v49  ;;  %v6911_v30 = vmul.f32 %v6857_v36, %v6857_v36 }
0x184f   :  { %v6958_v39 = vadd.f32 %v6942_v2, %v15614_v41  ;;  %v6928_v63 = vmul.f32 %v6912_v21, %v15628_v23  ;;  %11821 = vtanh.f32 %v6972_v13 }
0x1850   :  { %v6957_v15 = vadd.f32 %v6941_v20, %v15619_v48  ;;  %v6927_v31 = vmul.f32 %v6911_v30, %v6857_v36  ;;  %11823 = vtanh.f32 %v6971_v28 }
0x1851   :  { %v6974_v61 = vmul.f32 0.7978846, %v6958_v39  ;;  %v6944_v62 = vmul.f32 0.044715, %v6928_v63 }
0x1852   :  { %v6973_v17 = vmul.f32 0.7978846, %v6957_v15  ;;  %v6943_v54 = vmul.f32 0.044715, %v6927_v31 }
0x1853   :  { %v6960_v9 = vadd.f32 %v6944_v62, %v15628_v23  ;;  %11825 = vtanh.f32 %v6974_v61 }
0x1854   :  { %v6959_v38 = vadd.f32 %v6943_v54, %v6857_v36  ;;  %11827 = vtanh.f32 %v6973_v17 }
0x1855   :  { %v11818_v29 = vpop.eup %11817  ;;  %v6976_v34 = vmul.f32 0.7978846, %v6960_v9 }
0x1856   :  { %v11820_v37 = vpop.eup %11819  ;;  %v7002_v59 = vadd.f32 1.0, %v11818_v29  ;;  %v6975_v10 = vmul.f32 0.7978846, %v6959_v38 }
0x1857   :  { %v7001_v7 = vadd.f32 1.0, %v11820_v37  ;;  %11829 = vtanh.f32 %v6976_v34 }
0x1858   :  { %v7018_v55 = vmul.f32 0.5, %v7002_v59  ;;  %11831 = vtanh.f32 %v6975_v10 }
0x1859   :  { %v11822_v3 = vpop.eup %11821  ;;  %v7017_v14 = vmul.f32 0.5, %v7001_v7 }
0x185a   :  { %v11824_v47 = vpop.eup %11823  ;;  %v7004_v27 = vadd.f32 1.0, %v11822_v3  ;;  %v7034_v52 = vmul.f32 %v7018_v55, %v15590_v8 }
0x185b   :  { %v7033_v5 = vmul.f32 %v7017_v14, %v15593_v44  ;;  %v7003_v43 = vadd.f32 1.0, %v11824_v47 }
0x185c   :  { %v7020_v18 = vmul.f32 0.5, %v7004_v27 }
0x185d   :  { %v11826_v45 = vpop.eup %11825  ;;  %10021 = vmatprep.mubr.f32.mxu1 %v7033_v5  ;;  %v7019_v53 = vmul.f32 0.5, %v7003_v43 }
0x185e   :  { %v11828_v11 = vpop.eup %11827  ;;  %10022 = vmatmul.mubr.f32.vlgmr.msra.gmra.mrb[176].mxu1 %v7034_v52  ;;  %v7006_v56 = vadd.f32 1.0, %v11826_v45  ;;  %v7036_v26 = vmul.f32 %v7020_v18, %v15601_v33  ;;  %v7251_v33 = vld [vmem:[%s16107_s17] sm:$0xff] }
0x185f   :  { %v7035_v40 = vmul.f32 %v7019_v53, %v15605_v16  ;;  %v7005_v60 = vadd.f32 1.0, %v11828_v11 }
0x1860   :  { %v7022_v49 = vmul.f32 0.5, %v7006_v56 }
0x1861   :  { %v11830_v13 = vpop.eup %11829  ;;  %10024 = vmatprep.mubr.f32.mxu1 %v7035_v40  ;;  %v7021_v2 = vmul.f32 0.5, %v7005_v60 }
0x1862   :  { %v11832_v44 = vpop.eup %11831  ;;  %10025 = vmatmul.mubr.f32.gmra.mrb[178].mxu1 %v7036_v26  ;;  %v7008_v21 = vadd.f32 1.0, %v11830_v13  ;;  %v7038_v20 = vmul.f32 %v7022_v49, %v15614_v41  ;;  %v7253_v41 = vld [vmem:[%s16107_s17 + $0x10] sm:$0xff] }
0x1863   :  { %v7037_v8 = vmul.f32 %v7021_v2, %v15619_v48  ;;  %v7007_v28 = vadd.f32 1.0, %v11832_v44  ;;  %v7252_v48 = vld [vmem:[%s16107_s17 + $0x8] sm:$0xff] }
0x1864   :  { %v7024_v30 = vmul.f32 0.5, %v7008_v21  ;;  %v10769_v15 = vpack.c.bf16 %v7252_v48, %v7251_v33 }
0x1865   :  { %10027 = vmatprep.mubr.f32.mxu1 %v7037_v8  ;;  %v7023_v39 = vmul.f32 0.5, %v7007_v28 }
0x1866   :  { %10028 = vmatmul.mubr.f32.gmra.mrb[180].mxu1 %v7038_v20  ;;  %v7040_v63 = vmul.f32 %v7024_v30, %v15628_v23  ;;  %10770 = vmatprep.subr.bf16.mxu0 %v10769_v15  ;;  %v7254_v23 = vld [vmem:[%s16107_s17 + $0x18] sm:$0xff] }
0x1867   :  { %v7039_v16 = vmul.f32 %v7023_v39, %v6857_v36  ;;  %10772 = vmatpush3.bf16.msra.mxu0 %v10769_v15  ;;  %v10773_v36 = vpack.c.bf16 %v7254_v23, %v7253_v41 }
0x1869   :  { %10030 = vmatprep.mubr.f32.mxu1 %v7039_v16  ;;  %10774 = vmatprep.subr.bf16.mxu0 %v10773_v36 }
0x186a   :  { %10031 = vmatmul.mubr.f32.gmra.mrb[182].mxu1 %v7040_v63 }
0x186b   :  { %10776 = vmatpush3.bf16.msra.mxu0 %v10773_v36 }
0x18b7   :  { %v9979_v31 = vpop.f32.mrb[184].mxu0 }
0x18b8   :  { %v15659_v61 = vadd.f32 %v9979_v31, %v15587_v19  ;;  %v6866_v62 = vpop.f32.mrb[185].mxu0 }
0x18b9   :  { %v6867_v17 = vadd.f32 %v15587_v19, %v6866_v62 }
0x18ba   :  { %v6914_v54 = vmul.f32 %v15659_v61, %v15659_v61 }
0x18bb   :  { %v6913_v9 = vmul.f32 %v6867_v17, %v6867_v17 }
0x18bc   :  { %v6930_v38 = vmul.f32 %v6914_v54, %v15659_v61 }
0x18bd   :  { %v6929_v29 = vmul.f32 %v6913_v9, %v6867_v17 }
0x18be   :  { %v6946_v34 = vmul.f32 0.044715, %v6930_v38 }
0x18bf   :  { %v6945_v37 = vmul.f32 0.044715, %v6929_v29  ;;  %v9982_v59 = vpop.f32.mrb[186].mxu0 }
0x18c0   :  { %v6962_v10 = vadd.f32 %v6946_v34, %v15659_v61  ;;  %v15667_v7 = vadd.f32 %v9982_v59, %v15587_v19  ;;  %v6876_v55 = vpop.f32.mrb[187].mxu0 }
0x18c1   :  { %v6961_v3 = vadd.f32 %v6945_v37, %v6867_v17  ;;  %v15670_v14 = vadd.f32 %v15587_v19, %v6876_v55 }
0x18c2   :  { %v6978_v47 = vmul.f32 0.7978846, %v6962_v10  ;;  %v6916_v27 = vmul.f32 %v15667_v7, %v15667_v7 }
0x18c3   :  { %v6977_v5 = vmul.f32 0.7978846, %v6961_v3  ;;  %v6915_v43 = vmul.f32 %v15670_v14, %v15670_v14 }
0x18c4   :  { %v6932_v52 = vmul.f32 %v6916_v27, %v15667_v7  ;;  %11833 = vtanh.f32 %v6978_v47 }
0x18c5   :  { %v6931_v18 = vmul.f32 %v6915_v43, %v15670_v14  ;;  %11835 = vtanh.f32 %v6977_v5 }
0x18c6   :  { %v6948_v45 = vmul.f32 0.044715, %v6932_v52 }
0x18c7   :  { %v6947_v53 = vmul.f32 0.044715, %v6931_v18  ;;  %v9985_v11 = vpop.f32.mrb[188].mxu0 }
0x18c8   :  { %v6964_v56 = vadd.f32 %v6948_v45, %v15667_v7  ;;  %v15680_v40 = vadd.f32 %v9985_v11, %v15587_v19  ;;  %v6886_v60 = vpop.f32.mrb[189].mxu0 }
0x18c9   :  { %v6963_v26 = vadd.f32 %v6947_v53, %v15670_v14  ;;  %v6887_v49 = vadd.f32 %v15587_v19, %v6886_v60 }
0x18ca   :  { %v6980_v13 = vmul.f32 0.7978846, %v6964_v56  ;;  %v6918_v2 = vmul.f32 %v15680_v40, %v15680_v40 }
0x18cb   :  { %v6979_v44 = vmul.f32 0.7978846, %v6963_v26  ;;  %v6917_v21 = vmul.f32 %v6887_v49, %v6887_v49 }
0x18cc   :  { %v6934_v8 = vmul.f32 %v6918_v2, %v15680_v40  ;;  %11837 = vtanh.f32 %v6980_v13 }
0x18cd   :  { %v6933_v28 = vmul.f32 %v6917_v21, %v6887_v49  ;;  %11839 = vtanh.f32 %v6979_v44 }
0x18ce   :  { %v11834_v20 = vpop.eup %11833  ;;  %v6950_v30 = vmul.f32 0.044715, %v6934_v8 }
0x18cf   :  { %v11836_v39 = vpop.eup %11835  ;;  %v6949_v16 = vmul.f32 0.044715, %v6933_v28  ;;  %v9988_v63 = vpop.f32.mrb[190].mxu0  ;;  %v7010_v33 = vadd.f32 1.0, %v11834_v20 }
0x18d0   :  { %v6966_v48 = vadd.f32 %v6950_v30, %v15680_v40  ;;  %v6902_v15 = vadd.f32 %v9988_v63, %v15587_v19  ;;  %v6896_v41 = vpop.f32.mrb[191].mxu0  ;;  %v7009_v23 = vadd.f32 1.0, %v11836_v39 }
0x18d1   :  { %v6965_v36 = vadd.f32 %v6949_v16, %v6887_v49  ;;  %v6897_v31 = vadd.f32 %v15587_v19, %v6896_v41  ;;  %v7026_v62 = vmul.f32 0.5, %v7010_v33 }
0x18d2   :  { %v6982_v54 = vmul.f32 0.7978846, %v6966_v48  ;;  %v6920_v9 = vmul.f32 %v6902_v15, %v6902_v15  ;;  %v7025_v38 = vmul.f32 0.5, %v7009_v23 }
0x18d3   :  { %v6981_v29 = vmul.f32 0.7978846, %v6965_v36  ;;  %v6919_v34 = vmul.f32 %v6897_v31, %v6897_v31  ;;  %v7042_v55 = vmul.f32 %v7026_v62, %v15659_v61 }
0x18d4   :  { %v6936_v37 = vmul.f32 %v6920_v9, %v6902_v15  ;;  %v7041_v59 = vmul.f32 %v7025_v38, %v6867_v17  ;;  %11841 = vtanh.f32 %v6982_v54 }
0x18d5   :  { %v6935_v10 = vmul.f32 %v6919_v34, %v6897_v31  ;;  %11843 = vtanh.f32 %v6981_v29 }
0x18d6   :  { %v11838_v3 = vpop.eup %11837  ;;  %v6952_v47 = vmul.f32 0.044715, %v6936_v37  ;;  %10033 = vmatprep.mubr.f32.mxu1 %v7041_v59 }
0x18d7   :  { %v11840_v27 = vpop.eup %11839  ;;  %v6951_v5 = vmul.f32 0.044715, %v6935_v10  ;;  %10034 = vmatmul.mubr.f32.gmra.mrb[184].mxu1 %v7042_v55  ;;  %v7012_v19 = vadd.f32 1.0, %v11838_v3 }
0x18d8   :  { %v6968_v43 = vadd.f32 %v6952_v47, %v6902_v15  ;;  %v7011_v52 = vadd.f32 1.0, %v11840_v27  ;;  %v7448_v47 = vld [vmem:[%s16110_s20] sm:$0xff] }
0x18d9   :  { %v6967_v18 = vadd.f32 %v6951_v5, %v6897_v31  ;;  %v7028_v45 = vmul.f32 0.5, %v7012_v19  ;;  %v7451_v5 = vld [vmem:[%s16110_s20 + $0x18] sm:$0xff] }
0x18da   :  { %v6984_v53 = vmul.f32 0.7978846, %v6968_v43  ;;  %v7027_v11 = vmul.f32 0.5, %v7011_v52  ;;  %v7452_v43 = vld [vmem:[%s16110_s20 + $0x20] sm:$0xff]  ;;  %v7453_v52 = vld [vmem:[%s16110_s20 + $0x28] sm:$0xff] }
0x18db   :  { %v6983_v56 = vmul.f32 0.7978846, %v6967_v18  ;;  %v7044_v61 = vmul.f32 %v7028_v45, %v15667_v7  ;;  %v10785_v18 = vpack.c.bf16 %v7453_v52, %v7452_v43  ;;  %v7454_v45 = vld [vmem:[%s16110_s20 + $0x30] sm:$0xff] }
0x18dc   :  { %v7043_v17 = vmul.f32 %v7027_v11, %v15670_v14  ;;  %11845 = vtanh.f32 %v6984_v53  ;;  %v7455_v53 = vld [vmem:[%s16110_s20 + $0x38] sm:$0xff] }
0x18dd   :  { %11847 = vtanh.f32 %v6983_v56  ;;  %v10789_v11 = vpack.c.bf16 %v7455_v53, %v7454_v45 }
0x18de   :  { %v11842_v60 = vpop.eup %11841  ;;  %10036 = vmatprep.mubr.f32.mxu1 %v7043_v17 }
0x18df   :  { %v11844_v26 = vpop.eup %11843  ;;  %10037 = vmatmul.mubr.f32.gmra.mrb[186].mxu1 %v7044_v61  ;;  %v7014_v13 = vadd.f32 1.0, %v11842_v60 }
0x18e0   :  { %v7013_v2 = vadd.f32 1.0, %v11844_v26 }
0x18e1   :  { %v7030_v44 = vmul.f32 0.5, %v7014_v13 }
0x18e2   :  { %v7029_v21 = vmul.f32 0.5, %v7013_v2 }
0x18e3   :  { %v7046_v28 = vmul.f32 %v7030_v44, %v15680_v40 }
0x18e4   :  { %v7045_v8 = vmul.f32 %v7029_v21, %v6887_v49  ;;  %v15698_v49 = vld [vmem:[%s16102_s12 + $0x1] ss:$0 sm:$0xff] }
0x18e6   :  { %v11846_v20 = vpop.eup %11845  ;;  %10039 = vmatprep.mubr.f32.mxu1 %v7045_v8 }
0x18e7   :  { %v11848_v30 = vpop.eup %11847  ;;  %10040 = vmatmul.mubr.f32.gmra.mrb[188].mxu1 %v7046_v28  ;;  %v7016_v14 = vadd.f32 1.0, %v11846_v20 }
0x18e8   :  { %v7015_v39 = vadd.f32 1.0, %v11848_v30 }
0x18e9   :  { %v7032_v16 = vmul.f32 0.5, %v7016_v14 }
0x18ea   :  { %v7031_v7 = vmul.f32 0.5, %v7015_v39 }
0x18eb   :  { %v7048_v33 = vmul.f32 %v7032_v16, %v6902_v15 }
0x18ec   :  { %v7047_v63 = vmul.f32 %v7031_v7, %v6897_v31 }
0x18ee   :  { %10042 = vmatprep.mubr.f32.mxu1 %v7047_v63 }
0x18ef   :  { %10043 = vmatmul.mubr.f32.gmra.mrb[190].mxu1 %v7048_v33 }
0x1931   :  { %v10023_v48 = vpop.f32.mrb[176].mxu1 }
0x1932   :  { %v7212_v41 = vadd.f32 %v10023_v48, %v15301_v0  ;;  %v7132_v40 = vpop.f32.mrb[177].mxu1 }
0x1933   :  { %v7211_v23 = vadd.f32 %v7132_v40, %v15304_v1 }
0x1934   :  { %v7236_v54 = vadd.f32 %v15698_v49, %v7212_v41 }
0x1935   :  { %v7235_v36 = vadd.f32 %v15698_v49, %v7211_v23  ;;  %v10026_v62 = vpop.f32.mrb[178].mxu1 }
0x1936   :  { %v7214_v15 = vadd.f32 %v10026_v62, %v15313_v24  ;;  %v7142_v31 = vpop.f32.mrb[179].mxu1 }
0x1937   :  { %v7213_v9 = vadd.f32 %v7142_v31, %v15319_v22  ;;  %10053 = vmatprep.mubr.msk.f32.mxu0 %vm189_vm0, %v7235_v36  ;;  %v15806_v36 = vld [vmem:[%s16111_s21] sm:$0xf] }
0x1938   :  { %10054 = vmatmul.mubr.msk.f32.vlgmr.msra.gmra.mrb[192].mxu0 %vm189_vm0, %v7236_v54  ;;  %v7238_v29 = vadd.f32 %v15698_v49, %v7214_v15  ;;  %10117 = vmatprep.subr.msk.mxu0 %vm1501_vm2, %v15806_v36 }
0x1939   :  { %v7237_v0 = vadd.f32 %v15698_v49, %v7213_v9  ;;  %v10029_v38 = vpop.f32.mrb[180].mxu1  ;;  %10118 = vmatpush3.msk.msra.mxu0 %vm1501_vm2, %v15806_v36 }
0x193a   :  { %v7216_v1 = vadd.f32 %v10029_v38, %v15323_v25  ;;  %v7152_v34 = vpop.f32.mrb[181].mxu1  ;;  %10183 = vmatprep.subr.msk.mxu0 %vm1501_vm2, %v15806_v36 }
0x193b   :  { %v7215_v37 = vadd.f32 %v7152_v34, %v15329_v50  ;;  %10056 = vmatprep.mubr.msk.f32.mxu0 %vm189_vm0, %v7237_v0 }
0x193c   :  { %10057 = vmatmul.mubr.msk.f32.gmra.mrb[194].mxu0 %vm189_vm0, %v7238_v29  ;;  %v7240_v59 = vadd.f32 %v15698_v49, %v7216_v1 }
0x193d   :  { %v7239_v24 = vadd.f32 %v15698_v49, %v7215_v37  ;;  %v10032_v22 = vpop.f32.mrb[182].mxu1 }
0x193e   :  { %v7218_v10 = vadd.f32 %v10032_v22, %v15335_v6  ;;  %v7162_v55 = vpop.f32.mrb[183].mxu1  ;;  %v7449_v6 = vld [vmem:[%s16110_s20 + $0x8] sm:$0xff] }
0x193f   :  { %v7217_v3 = vadd.f32 %v7162_v55, %v15340_v51  ;;  %10059 = vmatprep.mubr.msk.f32.mxu0 %vm189_vm0, %v7239_v24  ;;  %v7450_v51 = vld [vmem:[%s16110_s20 + $0x10] sm:$0xff]  ;;  %v10777_v27 = vpack.c.bf16 %v7449_v6, %v7448_v47 }
0x1940   :  { %10060 = vmatmul.mubr.msk.f32.gmra.mrb[196].mxu0 %vm189_vm0, %v7240_v59  ;;  %v7242_v50 = vadd.f32 %v15698_v49, %v7218_v10  ;;  %v10781_v19 = vpack.c.bf16 %v7451_v5, %v7450_v51 }
0x1941   :  { %v7241_v25 = vadd.f32 %v15698_v49, %v7217_v3  ;;  %10778 = vmatprep.subr.bf16.mxu1 %v10777_v27 }
0x1942   :  { %10780 = vmatpush3.bf16.msra.mxu1 %v10777_v27 }
0x1943   :  { %10062 = vmatprep.mubr.msk.f32.mxu0 %vm189_vm0, %v7241_v25  ;;  %10782 = vmatprep.subr.bf16.mxu1 %v10781_v19 }
0x1944   :  { %10063 = vmatmul.mubr.msk.f32.gmra.mrb[198].mxu0 %vm189_vm0, %v7242_v50 }
0x1946   :  { %10784 = vmatpush3.bf16.msra.mxu1 %v10781_v19 }
0x1947   :  { %10786 = vmatprep.subr.bf16.mxu1 %v10785_v18 }
0x194a   :  { %10788 = vmatpush3.bf16.msra.mxu1 %v10785_v18 }
0x194b   :  { %10790 = vmatprep.subr.bf16.mxu1 %v10789_v11 }
0x194e   :  { %10792 = vmatpush3.bf16.msra.mxu1 %v10789_v11 }
0x194f   :  { %10794 = vmatprep.subr.bf16.mxu1 %v10777_v27 }
0x19aa   :  { %v10035_v56 = vpop.f32.mrb[184].mxu1 }
0x19ab   :  { %v7220_v17 = vadd.f32 %v10035_v56, %v15357_v42  ;;  %v7172_v61 = vpop.f32.mrb[185].mxu1 }
0x19ac   :  { %v7219_v60 = vadd.f32 %v7172_v61, %v15360_v35 }
0x19ad   :  { %v7244_v13 = vadd.f32 %v15698_v49, %v7220_v17 }
0x19ae   :  { %v7243_v26 = vadd.f32 %v15698_v49, %v7219_v60 }
0x19b0   :  { %10065 = vmatprep.mubr.msk.f32.mxu0 %vm189_vm0, %v7243_v26 }
0x19b1   :  { %10066 = vmatmul.mubr.msk.f32.gmra.mrb[200].mxu0 %vm189_vm0, %v7244_v13 }
0x19b2   :  { %v10038_v2 = vpop.f32.mrb[186].mxu1 }
0x19b3   :  { %v7222_v44 = vadd.f32 %v10038_v2, %v15369_v57  ;;  %v7182_v21 = vpop.f32.mrb[187].mxu1 }
0x19b4   :  { %v7221_v8 = vadd.f32 %v7182_v21, %v15372_v46 }
0x19b5   :  { %v7246_v42 = vadd.f32 %v15698_v49, %v7222_v44 }
0x19b6   :  { %v7245_v28 = vadd.f32 %v15698_v49, %v7221_v8 }
0x19b8   :  { %10068 = vmatprep.mubr.msk.f32.mxu0 %vm189_vm0, %v7245_v28 }
0x19b9   :  { %10069 = vmatmul.mubr.msk.f32.gmra.mrb[202].mxu0 %vm189_vm0, %v7246_v42 }
0x19ba   :  { %v10041_v35 = vpop.f32.mrb[188].mxu1 }
0x19bb   :  { %v7224_v20 = vadd.f32 %v10041_v35, %v15381_v32  ;;  %v7192_v30 = vpop.f32.mrb[189].mxu1 }
0x19bc   :  { %v7223_v14 = vadd.f32 %v7192_v30, %v15384_v4 }
0x19bd   :  { %v7248_v57 = vadd.f32 %v15698_v49, %v7224_v20 }
0x19be   :  { %v7247_v39 = vadd.f32 %v15698_v49, %v7223_v14 }
0x19c0   :  { %10071 = vmatprep.mubr.msk.f32.mxu0 %vm189_vm0, %v7247_v39 }
0x19c1   :  { %10072 = vmatmul.mubr.msk.f32.gmra.mrb[204].mxu0 %vm189_vm0, %v7248_v57 }
0x19c2   :  { %v10044_v46 = vpop.f32.mrb[190].mxu1 }
0x19c3   :  { %v7226_v16 = vadd.f32 %v10044_v46, %v15399_v12  ;;  %v7202_v7 = vpop.f32.mrb[191].mxu1 }
0x19c4   :  { %v7225_v63 = vadd.f32 %v7202_v7, %v15402_v58 }
0x19c5   :  { %v7250_v32 = vadd.f32 %v15698_v49, %v7226_v16 }
0x19c6   :  { %v7249_v33 = vadd.f32 %v15698_v49, %v7225_v63 }
0x19c8   :  { %10074 = vmatprep.mubr.msk.f32.mxu0 %vm189_vm0, %v7249_v33 }
0x19c9   :  { %10075 = vmatmul.mubr.msk.f32.gmra.mrb[206].mxu0 %vm189_vm0, %v7250_v32 }
0x1a0b   :  { %v15771_v4 = vpop.f32.mrb[192].mxu0 }
0x1a0c   :  { %v15773_v48 = vpop.f32.mrb[193].mxu0 }
0x1a0d   :  { %10093 = vmatprep.mubr.msk.f32.mxu1 %vm7456_vm4, %v15773_v48 }
0x1a0e   :  { %10094 = vmatmul.mubr.msk.f32.vlgmr.msra.gmra.mrb[192].mxu1 %vm7456_vm4, %v15771_v4 }
0x1a0f   :  { %v15779_v12 = vpop.f32.mrb[194].mxu0  ;;  %10796 = vmatpush3.bf16.msra.mxu1 %v10777_v27 }
0x1a10   :  { %v15781_v58 = vpop.f32.mrb[195].mxu0  ;;  %10798 = vmatprep.subr.bf16.mxu1 %v10781_v19 }
0x1a11   :  { %10096 = vmatprep.mubr.msk.f32.mxu1 %vm7456_vm4, %v15781_v58 }
0x1a12   :  { %10097 = vmatmul.mubr.msk.f32.gmra.mrb[194].mxu1 %vm7456_vm4, %v15779_v12 }
0x1a13   :  { %v15787_v41 = vpop.f32.mrb[196].mxu0  ;;  %10800 = vmatpush3.bf16.msra.mxu1 %v10781_v19 }
0x1a14   :  { %v15789_v49 = vpop.f32.mrb[197].mxu0  ;;  %10802 = vmatprep.subr.bf16.mxu1 %v10785_v18 }
0x1a15   :  { %10099 = vmatprep.mubr.msk.f32.mxu1 %vm7456_vm4, %v15789_v49 }
0x1a16   :  { %10100 = vmatmul.mubr.msk.f32.gmra.mrb[196].mxu1 %vm7456_vm4, %v15787_v41 }
0x1a17   :  { %v15795_v40 = vpop.f32.mrb[198].mxu0  ;;  %10804 = vmatpush3.bf16.msra.mxu1 %v10785_v18 }
0x1a18   :  { %v15797_v23 = vpop.f32.mrb[199].mxu0  ;;  %10806 = vmatprep.subr.bf16.mxu1 %v10789_v11 }
0x1a19   :  { %10102 = vmatprep.mubr.msk.f32.mxu1 %vm7456_vm4, %v15797_v23 }
0x1a1a   :  { %10103 = vmatmul.mubr.msk.f32.gmra.mrb[198].mxu1 %vm7456_vm4, %v15795_v40 }
0x1a1b   :  { %10808 = vmatpush3.bf16.msra.mxu1 %v10789_v11 }
0x1a1c   :  { %10809 = vmatprep.subr.msk.mxu1 %vm1501_vm2, %v15806_v36 }
0x1a84   :  { %v15816_v62 = vpop.f32.mrb[200].mxu0 }
0x1a85   :  { %v15818_v54 = vpop.f32.mrb[201].mxu0 }
0x1a86   :  { %10105 = vmatprep.mubr.msk.f32.mxu1 %vm7456_vm4, %v15818_v54 }
0x1a87   :  { %10106 = vmatmul.mubr.msk.f32.gmra.mrb[200].mxu1 %vm7456_vm4, %v15816_v62 }
0x1a8c   :  { %v15824_v15 = vpop.f32.mrb[202].mxu0 }
0x1a8d   :  { %v15826_v31 = vpop.f32.mrb[203].mxu0 }
0x1a8e   :  { %10108 = vmatprep.mubr.msk.f32.mxu1 %vm7456_vm4, %v15826_v31 }
0x1a8f   :  { %10109 = vmatmul.mubr.msk.f32.gmra.mrb[202].mxu1 %vm7456_vm4, %v15824_v15 }
0x1a94   :  { %v15832_v9 = vpop.f32.mrb[204].mxu0 }
0x1a95   :  { %v15834_v0 = vpop.f32.mrb[205].mxu0 }
0x1a96   :  { %10111 = vmatprep.mubr.msk.f32.mxu1 %vm7456_vm4, %v15834_v0 }
0x1a97   :  { %10112 = vmatmul.mubr.msk.f32.gmra.mrb[204].mxu1 %vm7456_vm4, %v15832_v9 }
0x1a9c   :  { %v15840_v38 = vpop.f32.mrb[206].mxu0 }
0x1a9d   :  { %v15842_v29 = vpop.f32.mrb[207].mxu0 }
0x1a9e   :  { %10114 = vmatprep.mubr.msk.f32.mxu1 %vm7456_vm4, %v15842_v29 }
0x1a9f   :  { %10115 = vmatmul.mubr.msk.f32.gmra.mrb[206].mxu1 %vm7456_vm4, %v15840_v38 }
0x1ae1   :  { %v10095_v1 = vpop.f32.mrb[192].mxu1 }
0x1ae2   :  { %v7571_v34 = vpop.f32.mrb[193].mxu1 }
0x1ae3   :  { %10119 = vmatprep.mubr.msk.f32.mxu0 %vm1476_vm3, %v7571_v34 }
0x1ae4   :  { %10120 = vmatmul.mubr.msk.f32.vlgmr.msra.gmra.mrb[208].mxu0 %vm1476_vm3, %v10095_v1 }
0x1ae5   :  { %v10098_v37 = vpop.f32.mrb[194].mxu1  ;;  %10184 = vmatpush3.msk.msra.mxu0 %vm1501_vm2, %v15806_v36 }
0x1ae6   :  { %v7581_v24 = vpop.f32.mrb[195].mxu1 }
0x1ae7   :  { %10122 = vmatprep.mubr.msk.f32.mxu0 %vm1476_vm3, %v7581_v24 }
0x1ae8   :  { %10123 = vmatmul.mubr.msk.f32.gmra.mrb[210].mxu0 %vm1476_vm3, %v10098_v37 }
0x1ae9   :  { %v10101_v22 = vpop.f32.mrb[196].mxu1 }
0x1aea   :  { %v7591_v59 = vpop.f32.mrb[197].mxu1 }
0x1aeb   :  { %10125 = vmatprep.mubr.msk.f32.mxu0 %vm1476_vm3, %v7591_v59 }
0x1aec   :  { %10126 = vmatmul.mubr.msk.f32.gmra.mrb[212].mxu0 %vm1476_vm3, %v10101_v22 }
0x1aed   :  { %v10104_v10 = vpop.f32.mrb[198].mxu1 }
0x1aee   :  { %v7601_v55 = vpop.f32.mrb[199].mxu1 }
0x1aef   :  { %10128 = vmatprep.mubr.msk.f32.mxu0 %vm1476_vm3, %v7601_v55 }
0x1af0   :  { %10129 = vmatmul.mubr.msk.f32.gmra.mrb[214].mxu0 %vm1476_vm3, %v10104_v10 }
0x1b5a   :  { %v10107_v3 = vpop.f32.mrb[200].mxu1 }
0x1b5b   :  { %v7611_v25 = vpop.f32.mrb[201].mxu1 }
0x1b5c   :  { %10131 = vmatprep.mubr.msk.f32.mxu0 %vm1476_vm3, %v7611_v25 }
0x1b5d   :  { %10132 = vmatmul.mubr.msk.f32.gmra.mrb[216].mxu0 %vm1476_vm3, %v10107_v3 }
0x1b62   :  { %v10110_v50 = vpop.f32.mrb[202].mxu1 }
0x1b63   :  { %v7621_v47 = vpop.f32.mrb[203].mxu1 }
0x1b64   :  { %10134 = vmatprep.mubr.msk.f32.mxu0 %vm1476_vm3, %v7621_v47 }
0x1b65   :  { %10135 = vmatmul.mubr.msk.f32.gmra.mrb[218].mxu0 %vm1476_vm3, %v10110_v50 }
0x1b6a   :  { %v10113_v6 = vpop.f32.mrb[204].mxu1 }
0x1b6b   :  { %v7631_v51 = vpop.f32.mrb[205].mxu1 }
0x1b6c   :  { %10137 = vmatprep.mubr.msk.f32.mxu0 %vm1476_vm3, %v7631_v51 }
0x1b6d   :  { %10138 = vmatmul.mubr.msk.f32.gmra.mrb[220].mxu0 %vm1476_vm3, %v10113_v6 }
0x1b72   :  { %v10116_v27 = vpop.f32.mrb[206].mxu1 }
0x1b73   :  { %v7641_v5 = vpop.f32.mrb[207].mxu1 }
0x1b74   :  { %10140 = vmatprep.mubr.msk.f32.mxu0 %vm1476_vm3, %v7641_v5 }
0x1b75   :  { %10141 = vmatmul.mubr.msk.f32.gmra.mrb[222].mxu0 %vm1476_vm3, %v10116_v27 }
0x1bb7   :  { %v10121_v19 = vpop.f32.mrb[208].mxu0 }
0x1bb8   :  { %v15867_v43 = vsub.f32 %v15771_v4, %v10121_v19  ;;  %v7768_v52 = vpop.f32.mrb[209].mxu0 }
0x1bb9   :  { %v15870_v18 = vsub.f32 %v15773_v48, %v7768_v52 }
0x1bba   :  { %v7864_v11 = vmul.f32 %v15867_v43, %v15867_v43 }
0x1bbb   :  { %v7863_v45 = vmul.f32 %v15870_v18, %v15870_v18  ;;  %v10124_v53 = vpop.f32.mrb[210].mxu0 }
0x1bbc   :  { %v15877_v56 = vsub.f32 %v15779_v12, %v10124_v53  ;;  %v7778_v17 = vpop.f32.mrb[211].mxu0 }
0x1bbd   :  { %v15880_v61 = vsub.f32 %v15781_v58, %v7778_v17  ;;  %10159 = vmatprep.mubr.msk.f32.mxu1 %vm7456_vm4, %v7863_v45 }
0x1bbe   :  { %10160 = vmatmul.mubr.msk.f32.vlgmr.msra.gmra.mrb[208].mxu1 %vm7456_vm4, %v7864_v11  ;;  %v7866_v13 = vmul.f32 %v15877_v56, %v15877_v56 }
0x1bbf   :  { %v7865_v60 = vmul.f32 %v15880_v61, %v15880_v61  ;;  %v10127_v26 = vpop.f32.mrb[212].mxu0  ;;  %10810 = vmatpush3.msk.msra.mxu1 %vm1501_vm2, %v15806_v36 }
0x1bc0   :  { %v15891_v2 = vsub.f32 %v15787_v41, %v10127_v26  ;;  %v7788_v44 = vpop.f32.mrb[213].mxu0 }
0x1bc1   :  { %v15894_v21 = vsub.f32 %v15789_v49, %v7788_v44  ;;  %10162 = vmatprep.mubr.msk.f32.mxu1 %vm7456_vm4, %v7865_v60 }
0x1bc2   :  { %10163 = vmatmul.mubr.msk.f32.gmra.mrb[210].mxu1 %vm7456_vm4, %v7866_v13  ;;  %v7868_v42 = vmul.f32 %v15891_v2, %v15891_v2 }
0x1bc3   :  { %v7867_v8 = vmul.f32 %v15894_v21, %v15894_v21  ;;  %v10130_v28 = vpop.f32.mrb[214].mxu0 }
0x1bc4   :  { %v15903_v35 = vsub.f32 %v15795_v40, %v10130_v28  ;;  %v7798_v20 = vpop.f32.mrb[215].mxu0 }
0x1bc5   :  { %v15906_v30 = vsub.f32 %v15797_v23, %v7798_v20  ;;  %10165 = vmatprep.mubr.msk.f32.mxu1 %vm7456_vm4, %v7867_v8 }
0x1bc6   :  { %10166 = vmatmul.mubr.msk.f32.gmra.mrb[212].mxu1 %vm7456_vm4, %v7868_v42  ;;  %v7870_v39 = vmul.f32 %v15903_v35, %v15903_v35 }
0x1bc7   :  { %v7869_v14 = vmul.f32 %v15906_v30, %v15906_v30 }
0x1bc9   :  { %10168 = vmatprep.mubr.msk.f32.mxu1 %vm7456_vm4, %v7869_v14 }
0x1bca   :  { %10169 = vmatmul.mubr.msk.f32.gmra.mrb[214].mxu1 %vm7456_vm4, %v7870_v39  ;;  %v15984_v39 = vld [vmem:[%s16108_s18] ss:$0 sm:$0xff] }
0x1c30   :  { %v10133_v57 = vpop.f32.mrb[216].mxu0 }
0x1c31   :  { %v15917_v46 = vsub.f32 %v15816_v62, %v10133_v57  ;;  %v7808_v16 = vpop.f32.mrb[217].mxu0 }
0x1c32   :  { %v15920_v7 = vsub.f32 %v15818_v54, %v7808_v16 }
0x1c33   :  { %v7872_v33 = vmul.f32 %v15917_v46, %v15917_v46 }
0x1c34   :  { %v7871_v63 = vmul.f32 %v15920_v7, %v15920_v7 }
0x1c36   :  { %10171 = vmatprep.mubr.msk.f32.mxu1 %vm7456_vm4, %v7871_v63 }
0x1c37   :  { %10172 = vmatmul.mubr.msk.f32.gmra.mrb[216].mxu1 %vm7456_vm4, %v7872_v33  ;;  %v15991_v33 = vld [vmem:[%s16109_s19] ss:$0 sm:$0xff] }
0x1c38   :  { %v10136_v32 = vpop.f32.mrb[218].mxu0 }
0x1c39   :  { %v15929_v4 = vsub.f32 %v15824_v15, %v10136_v32  ;;  %v7818_v48 = vpop.f32.mrb[219].mxu0 }
0x1c3a   :  { %v15932_v12 = vsub.f32 %v15826_v31, %v7818_v48 }
0x1c3b   :  { %v7874_v41 = vmul.f32 %v15929_v4, %v15929_v4 }
0x1c3c   :  { %v7873_v58 = vmul.f32 %v15932_v12, %v15932_v12 }
0x1c3e   :  { %10174 = vmatprep.mubr.msk.f32.mxu1 %vm7456_vm4, %v7873_v58 }
0x1c3f   :  { %10175 = vmatmul.mubr.msk.f32.gmra.mrb[218].mxu1 %vm7456_vm4, %v7874_v41 }
0x1c40   :  { %v10139_v49 = vpop.f32.mrb[220].mxu0 }
0x1c41   :  { %v15941_v40 = vsub.f32 %v15832_v9, %v10139_v49  ;;  %v7828_v23 = vpop.f32.mrb[221].mxu0 }
0x1c42   :  { %v15944_v36 = vsub.f32 %v15834_v0, %v7828_v23 }
0x1c43   :  { %v7876_v54 = vmul.f32 %v15941_v40, %v15941_v40 }
0x1c44   :  { %v7875_v62 = vmul.f32 %v15944_v36, %v15944_v36 }
0x1c46   :  { %10177 = vmatprep.mubr.msk.f32.mxu1 %vm7456_vm4, %v7875_v62 }
0x1c47   :  { %10178 = vmatmul.mubr.msk.f32.gmra.mrb[220].mxu1 %vm7456_vm4, %v7876_v54 }
0x1c48   :  { %v10142_v15 = vpop.f32.mrb[222].mxu0 }
0x1c49   :  { %v15953_v31 = vsub.f32 %v15840_v38, %v10142_v15  ;;  %v7838_v9 = vpop.f32.mrb[223].mxu0 }
0x1c4a   :  { %v15956_v1 = vsub.f32 %v15842_v29, %v7838_v9 }
0x1c4b   :  { %v7878_v34 = vmul.f32 %v15953_v31, %v15953_v31 }
0x1c4c   :  { %v7877_v0 = vmul.f32 %v15956_v1, %v15956_v1 }
0x1c4e   :  { %10180 = vmatprep.mubr.msk.f32.mxu1 %vm7456_vm4, %v7877_v0 }
0x1c4f   :  { %10181 = vmatmul.mubr.msk.f32.gmra.mrb[222].mxu1 %vm7456_vm4, %v7878_v34 }
0x1c91   :  { %v10161_v37 = vpop.f32.mrb[208].mxu1 }
0x1c92   :  { %v7993_v24 = vpop.f32.mrb[209].mxu1 }
0x1c93   :  { %10185 = vmatprep.mubr.msk.f32.mxu0 %vm1476_vm3, %v7993_v24 }
0x1c94   :  { %10186 = vmatmul.mubr.msk.f32.vlgmr.msra.gmra.mrb[224].mxu0 %vm1476_vm3, %v10161_v37 }
0x1c95   :  { %v10164_v38 = vpop.f32.mrb[210].mxu1 }
0x1c96   :  { %v8003_v22 = vpop.f32.mrb[211].mxu1 }
0x1c97   :  { %10188 = vmatprep.mubr.msk.f32.mxu0 %vm1476_vm3, %v8003_v22 }
0x1c98   :  { %10189 = vmatmul.mubr.msk.f32.gmra.mrb[226].mxu0 %vm1476_vm3, %v10164_v38 }
0x1c99   :  { %v10167_v29 = vpop.f32.mrb[212].mxu1 }
0x1c9a   :  { %v8013_v59 = vpop.f32.mrb[213].mxu1 }
0x1c9b   :  { %10191 = vmatprep.mubr.msk.f32.mxu0 %vm1476_vm3, %v8013_v59 }
0x1c9c   :  { %10192 = vmatmul.mubr.msk.f32.gmra.mrb[228].mxu0 %vm1476_vm3, %v10167_v29 }
0x1c9d   :  { %v10170_v10 = vpop.f32.mrb[214].mxu1 }
0x1c9e   :  { %v8023_v55 = vpop.f32.mrb[215].mxu1 }
0x1c9f   :  { %10194 = vmatprep.mubr.msk.f32.mxu0 %vm1476_vm3, %v8023_v55 }
0x1ca0   :  { %10195 = vmatmul.mubr.msk.f32.gmra.mrb[230].mxu0 %vm1476_vm3, %v10170_v10 }
0x1d0a   :  { %v10173_v3 = vpop.f32.mrb[216].mxu1 }
0x1d0b   :  { %v8033_v25 = vpop.f32.mrb[217].mxu1 }
0x1d0c   :  { %10197 = vmatprep.mubr.msk.f32.mxu0 %vm1476_vm3, %v8033_v25 }
0x1d0d   :  { %10198 = vmatmul.mubr.msk.f32.gmra.mrb[232].mxu0 %vm1476_vm3, %v10173_v3 }
0x1d12   :  { %v10176_v50 = vpop.f32.mrb[218].mxu1 }
0x1d13   :  { %v8043_v47 = vpop.f32.mrb[219].mxu1 }
0x1d14   :  { %10200 = vmatprep.mubr.msk.f32.mxu0 %vm1476_vm3, %v8043_v47 }
0x1d15   :  { %10201 = vmatmul.mubr.msk.f32.gmra.mrb[234].mxu0 %vm1476_vm3, %v10176_v50 }
0x1d1a   :  { %v10179_v6 = vpop.f32.mrb[220].mxu1 }
0x1d1b   :  { %v8053_v51 = vpop.f32.mrb[221].mxu1 }
0x1d1c   :  { %10203 = vmatprep.mubr.msk.f32.mxu0 %vm1476_vm3, %v8053_v51 }
0x1d1d   :  { %10204 = vmatmul.mubr.msk.f32.gmra.mrb[236].mxu0 %vm1476_vm3, %v10179_v6 }
0x1d22   :  { %v10182_v27 = vpop.f32.mrb[222].mxu1 }
0x1d23   :  { %v8063_v5 = vpop.f32.mrb[223].mxu1 }
0x1d24   :  { %10206 = vmatprep.mubr.msk.f32.mxu1 %vm1476_vm3, %v8063_v5 }
0x1d25   :  { %10207 = vmatmul.mubr.msk.f32.vlgmr.msra.gmra.mrb[224].mxu1 %vm1476_vm3, %v10182_v27 }
0x1d67   :  { %v10187_v19 = vpop.f32.mrb[224].mxu0 }
0x1d68   :  { %v8186_v52 = vpop.f32.mrb[225].mxu0 }
0x1d69   :  { %v8187_v15 = vadd.f32 1e-05, %v8186_v52 }
0x1d6b   :  { %v10190_v45 = vpop.f32.mrb[226].mxu0 }
0x1d6c   :  { %v8196_v53 = vpop.f32.mrb[227].mxu0 }
0x1d6d   :  { %v8197_v34 = vadd.f32 1e-05, %v8196_v53 }
0x1d6f   :  { %v10193_v11 = vpop.f32.mrb[228].mxu0 }
0x1d70   :  { %v8212_v17 = vadd.f32 1e-05, %v10193_v11  ;;  %v8206_v60 = vpop.f32.mrb[229].mxu0 }
0x1d71   :  { %v8207_v26 = vadd.f32 1e-05, %v8206_v60 }
0x1d72   :  { %11849 = vrsqrt.f32 %v8212_v17 }
0x1d73   :  { %11851 = vrsqrt.f32 %v8207_v26  ;;  %v10196_v13 = vpop.f32.mrb[230].mxu0 }
0x1d74   :  { %v8222_v44 = vadd.f32 1e-05, %v10196_v13  ;;  %v8216_v8 = vpop.f32.mrb[231].mxu0 }
0x1d75   :  { %v8217_v28 = vadd.f32 1e-05, %v8216_v8 }
0x1d76   :  { %11853 = vrsqrt.f32 %v8222_v44 }
0x1d77   :  { %11855 = vrsqrt.f32 %v8217_v28 }
0x1d7c   :  { %v11850_v42 = vpop.eup %11849 }
0x1d7d   :  { %v11852_v20 = vpop.eup %11851  ;;  %v8286_v14 = vmul.f32 %v11850_v42, %v15891_v2 }
0x1d7e   :  { %v8285_v57 = vmul.f32 %v11852_v20, %v15894_v21 }
0x1d7f   :  { %v8309_v16 = vmul.f32 %v15984_v39, %v8286_v14 }
0x1d80   :  { %v11854_v63 = vpop.eup %11853  ;;  %v8308_v32 = vmul.f32 %v15984_v39, %v8285_v57 }
0x1d81   :  { %v11856_v48 = vpop.eup %11855  ;;  %v8332_v2 = vadd.f32 %v15991_v33, %v8309_v16  ;;  %v8288_v58 = vmul.f32 %v11854_v63, %v15903_v35  ;;  %v8192_v35 = vadd.f32 1e-05, %v10187_v19 }
0x1d82   :  { %v8331_v41 = vadd.f32 %v15991_v33, %v8308_v32  ;;  %v8287_v49 = vmul.f32 %v11856_v48, %v15906_v30  ;;  %v8202_v30 = vadd.f32 1e-05, %v10190_v45 }
0x1d83   :  { %8349 = vrot.lane.b32.xlu1 %v8332_v2, %s12096_s3  ;;  %v8311_v21 = vmul.f32 %v15984_v39, %v8288_v58  ;;  %11857 = vrsqrt.f32 %v8192_v35 }
0x1d84   :  { %8347 = vrot.lane.b32.xlu0 %v8331_v41, %s12096_s3  ;;  %v8310_v62 = vmul.f32 %v15984_v39, %v8287_v49  ;;  %11859 = vrsqrt.f32 %v8187_v15 }
0x1d85   :  { %v8334_v23 = vadd.f32 %v15991_v33, %v8311_v21  ;;  %11861 = vrsqrt.f32 %v8202_v30 }
0x1d86   :  { %v8333_v54 = vadd.f32 %v15991_v33, %v8310_v62  ;;  %11863 = vrsqrt.f32 %v8197_v34 }
0x1d87   :  { %8353 = vrot.lane.b32.xlu1 %v8334_v23, %s12096_s3 }
0x1d8b   :  { %8351 = vrot.lane.b32.xlu1 %v8333_v54, %s12096_s3 }
0x1d8d   :  { %v11858_v24 = vpop.eup %11857 }
0x1d8e   :  { %v11860_v22 = vpop.eup %11859  ;;  %v8282_v29 = vmul.f32 %v11858_v24, %v15867_v43 }
0x1d8f   :  { %v11862_v59 = vpop.eup %11861  ;;  %v8281_v10 = vmul.f32 %v11860_v22, %v15870_v18 }
0x1d90   :  { %v8305_v3 = vmul.f32 %v15984_v39, %v8282_v29  ;;  %v8284_v25 = vmul.f32 %v11862_v59, %v15877_v56  ;;  %v11864_v50 = vpop.eup %11863 }
0x1d91   :  { %v8304_v51 = vmul.f32 %v15984_v39, %v8281_v10  ;;  %v8283_v19 = vmul.f32 %v11864_v50, %v15880_v61 }
0x1d92   :  { %v8328_v5 = vadd.f32 %v15991_v33, %v8305_v3  ;;  %v8307_v43 = vmul.f32 %v15984_v39, %v8284_v25 }
0x1d93   :  { %v8327_v52 = vadd.f32 %v15991_v33, %v8304_v51  ;;  %v8306_v61 = vmul.f32 %v15984_v39, %v8283_v19 }
0x1d94   :  { %v8330_v17 = vadd.f32 %v15991_v33, %v8307_v43 }
0x1d95   :  { %v8329_v28 = vadd.f32 %v15991_v33, %v8306_v61 }
0x1de0   :  { %v16006_v9 = vpop.f32.mrb[232].mxu0 }
0x1de1   :  { %v16008_v0 = vpop.f32.mrb[233].mxu0  ;;  %v8232_v35 = vadd.f32 1e-05, %v16006_v9 }
0x1de2   :  { %v8227_v15 = vadd.f32 1e-05, %v16008_v0 }
0x1de8   :  { %v16010_v37 = vpop.f32.mrb[234].mxu0 }
0x1de9   :  { %v16012_v38 = vpop.f32.mrb[235].mxu0 }
0x1df0   :  { %v10205_v55 = vpop.f32.mrb[236].mxu0 }
0x1df1   :  { %v8252_v47 = vadd.f32 1e-05, %v10205_v55  ;;  %v8246_v6 = vpop.f32.mrb[237].mxu0 }
0x1df2   :  { %v8247_v27 = vadd.f32 1e-05, %v8246_v6 }
0x1df3   :  { %11865 = vrsqrt.f32 %v8252_v47 }
0x1df4   :  { %11867 = vrsqrt.f32 %v8247_v27 }
0x1df5   :  { %v8350_v18 = vpop.permute.xlu1 %8349 }
0x1df6   :  { %v8360_v45 = vsel %vm7456_vm4, %v8328_v5, %v8350_v18  ;;  %v8348_v56 = vpop.permute.xlu0 %8347 }
0x1df7   :  { %8364 = vst [vmem:[%s16663_s13 + $0x8] sm:$0xff] %v8360_v45  ;;  %v8359_v53 = vsel %vm7456_vm4, %v8327_v52, %v8348_v56 }
0x1df8   :  { %8363 = vst [vmem:[%s16663_s13] sm:$0xff] %v8359_v53  ;;  %v10208_v11 = vpop.f32.mrb[224].mxu1 }
0x1df9   :  { %v8262_v60 = vadd.f32 1e-05, %v10208_v11  ;;  %v8354_v26 = vpop.permute.xlu1 %8353  ;;  %v8256_v13 = vpop.f32.mrb[225].mxu1 }
0x1dfa   :  { %v8362_v44 = vsel %vm7456_vm4, %v8330_v17, %v8354_v26  ;;  %v8257_v8 = vadd.f32 1e-05, %v8256_v13 }
0x1dfb   :  { %11869 = vrsqrt.f32 %v8262_v60  ;;  %8366 = vst [vmem:[%s16663_s13 + $0x18] sm:$0xff] %v8362_v44 }
0x1dfc   :  { %11871 = vrsqrt.f32 %v8257_v8 }
0x1dfd   :  { %v11866_v42 = vpop.eup %11865  ;;  %v8352_v20 = vpop.permute.xlu1 %8351  ;;  %11873 = vrsqrt.f32 %v8232_v35 }
0x1dfe   :  { %v11868_v14 = vpop.eup %11867  ;;  %v8361_v57 = vsel %vm7456_vm4, %v8329_v28, %v8352_v20  ;;  %v8294_v16 = vmul.f32 %v11866_v42, %v15941_v40  ;;  %11875 = vrsqrt.f32 %v8227_v15 }
0x1dff   :  { %v8293_v63 = vmul.f32 %v11868_v14, %v15944_v36  ;;  %8365 = vst [vmem:[%s16663_s13 + $0x10] sm:$0xff] %v8361_v57 }
0x1e00   :  { %v8317_v32 = vmul.f32 %v15984_v39, %v8294_v16 }
0x1e01   :  { %v8316_v48 = vmul.f32 %v15984_v39, %v8293_v63 }
0x1e02   :  { %v8340_v2 = vadd.f32 %v15991_v33, %v8317_v32 }
0x1e03   :  { %v8339_v58 = vadd.f32 %v15991_v33, %v8316_v48 }
0x1e04   :  { %8373 = vrot.lane.b32.xlu1 %v8340_v2, %s12096_s3 }
0x1e05   :  { %v11870_v41 = vpop.eup %11869  ;;  %8371 = vrot.lane.b32.xlu0 %v8339_v58, %s12096_s3 }
0x1e06   :  { %v11872_v40 = vpop.eup %11871  ;;  %v8296_v36 = vmul.f32 %v11870_v41, %v15953_v31  ;;  %v8242_v31 = vadd.f32 1e-05, %v16010_v37 }
0x1e07   :  { %v8295_v49 = vmul.f32 %v11872_v40, %v15956_v1  ;;  %v8237_v1 = vadd.f32 1e-05, %v16012_v38  ;;  %v11874_v30 = vpop.eup %11873 }
0x1e08   :  { %v8319_v21 = vmul.f32 %v15984_v39, %v8296_v36  ;;  %11877 = vrsqrt.f32 %v8242_v31  ;;  %v11876_v34 = vpop.eup %11875  ;;  %v8290_v24 = vmul.f32 %v11874_v30, %v15917_v46 }
0x1e09   :  { %v8318_v23 = vmul.f32 %v15984_v39, %v8295_v49  ;;  %11879 = vrsqrt.f32 %v8237_v1  ;;  %v8289_v22 = vmul.f32 %v11876_v34, %v15920_v7 }
0x1e0a   :  { %v8342_v62 = vadd.f32 %v15991_v33, %v8319_v21  ;;  %v8313_v29 = vmul.f32 %v15984_v39, %v8290_v24 }
0x1e0b   :  { %v8341_v54 = vadd.f32 %v15991_v33, %v8318_v23  ;;  %v8312_v9 = vmul.f32 %v15984_v39, %v8289_v22 }
0x1e0c   :  { %8377 = vrot.lane.b32.xlu1 %v8342_v62, %s12096_s3  ;;  %v8336_v10 = vadd.f32 %v15991_v33, %v8313_v29 }
0x1e0d   :  { %8375 = vrot.lane.b32.xlu0 %v8341_v54, %s12096_s3  ;;  %v8335_v38 = vadd.f32 %v15991_v33, %v8312_v9 }
0x1e12   :  { %v11878_v59 = vpop.eup %11877 }
0x1e13   :  { %v11880_v0 = vpop.eup %11879  ;;  %v8292_v37 = vmul.f32 %v11878_v59, %v15929_v4 }
0x1e14   :  { %v8291_v3 = vmul.f32 %v11880_v0, %v15932_v12 }
0x1e15   :  { %v8315_v4 = vmul.f32 %v15984_v39, %v8292_v37 }
0x1e16   :  { %v8314_v50 = vmul.f32 %v15984_v39, %v8291_v3 }
0x1e17   :  { %v8338_v47 = vadd.f32 %v15991_v33, %v8315_v4 }
0x1e18   :  { %v8337_v6 = vadd.f32 %v15991_v33, %v8314_v50 }
0x1e76   :  { %v8374_v55 = vpop.permute.xlu1 %8373 }
0x1e77   :  { %v8384_v25 = vsel %vm7456_vm4, %v8336_v10, %v8374_v55  ;;  %v8372_v46 = vpop.permute.xlu0 %8371 }
0x1e78   :  { %8812 = vst [vmem:[%s16663_s13 + $0x28] sm:$0xff] %v8384_v25  ;;  %v8383_v7 = vsel %vm7456_vm4, %v8335_v38, %v8372_v46 }
0x1e79   :  { %8811 = vst [vmem:[%s16663_s13 + $0x20] sm:$0xff] %v8383_v7 }
0x1e7e   :  { %v8378_v12 = vpop.permute.xlu1 %8377 }
0x1e7f   :  { %v8386_v51 = vsel %vm7456_vm4, %v8338_v47, %v8378_v12  ;;  %v8376_v27 = vpop.permute.xlu0 %8375 }
0x1e80   :  { %8814 = vst [vmem:[%s16663_s13 + $0x38] sm:$0xff] %v8386_v51  ;;  %v8385_v5 = vsel %vm7456_vm4, %v8337_v6, %v8376_v27 }
0x1e81   :  { %8813 = vst [vmem:[%s16663_s13 + $0x30] sm:$0xff] %v8385_v5 }
0x1e82   :  { %8396 = vsyncpa [#allocation3], 1 }
0x1e83   :  { %8397 = vsyncpa [#allocation5], 1 }
0x1e84   :  { %8398 = vsyncpa [#allocation8], 1 }

</bundles_post_ra>
